<compile_context>
chip_gen: v7x
topology: tpu7x:2x2x1
jax: 0.10.0
libtpu: 0.0.40
codegen_flags: <defaults>
</compile_context>

<pallas_src>
import jax
import jax.numpy as jnp
import numpy as np
from jax.experimental import pallas as pl
from jax.experimental.pallas import tpu as pltpu

F32 = jnp.float32
BF16 = jnp.bfloat16
EPS = 1e-5

BLOCK_B = 8          # images per grid step
FRAME_ROWS = 176     # 11 * 16 zero-padded frame rows per image (row = y*16 + x)
M1 = 144             # conv1 matmul rows per image (multiple of 16, covers rows 0..129 + slack)


def decider_kernel(x_ref, w1_ref, s1_ref, b1_ref, w2_ref, s2_ref, b2_ref,
                   wmap_ref, bl_ref, out_ref, p1s_ref):
    """Fused Decider forward for BLOCK_B images per grid step.

    x_ref   : (B, 176, 256) bf16  zero-padded frame, row = y*16 + x, image at y,x in 1..8
    w1_ref  : (768, 384)    bf16  conv1 weight, row = ky*256 + cin, col = kx*128 + cout
    s1_ref  : (1, 128) f32        folded BN1 scale
    b1_ref  : (1, 128) f32        folded (conv1 bias + BN1) bias
    w2_ref  : (1152, 64)    bf16  conv2 weight, row = (ky*3+kx)*128 + cin
    s2_ref  : (1, 64) f32         folded BN2 scale
    b2_ref  : (1, 64) f32         folded (conv2 bias + BN2) bias
    wmap_ref: (32, 64) f32        linear weight scattered onto the pooled-map rows {0,2,16,18}
    bl_ref  : (1, 128) f32        linear bias broadcast over lanes
    out_ref : (B, 128) f32        per-image scalar broadcast over 128 lanes
    p1s_ref : VMEM (B, 64, 128) f32 scratch for the stride-2 column-pair maxpool read
    """
    B = x_ref.shape[0]

    # ---- conv1 (256->128, 3x3, SAME) as ONE MXU matmul --------------------------------------
    # LHS column block ky holds F[r + 16*ky, :]; the matmul output column block kx holds
    # z_kx[r] = sum_ky F[r + 16*ky] @ W1[ky, kx].
    lhs = jnp.concatenate(
        [x_ref[:, 0:M1, :], x_ref[:, 16:16 + M1, :], x_ref[:, 32:32 + M1, :]],
        axis=-1)                                                     # (B, 144, 768) bf16
    zz = jnp.dot(lhs.reshape(B * M1, 768), w1_ref[...],
                 preferred_element_type=F32)                         # (B*144, 384) f32
    zz = zz.reshape(B, M1, 384)
    # combine the 3 kx blocks with +kx row shifts; conv output row = oy*16 + ox (ox 0..7 valid)
    z = (zz[:, 0:128, 0:128] + zz[:, 1:129, 128:256] + zz[:, 2:130, 256:384])
    z = jnp.maximum(z * s1_ref[...] + b1_ref[...], 0.0)              # (B, 128, 128) BN + ReLU

    # ---- maxpool 2x2 (stage 1) ---------------------------------------------------------------
    # rows = oy*16 + ox = oi*32 + parity*16 + ox : pair the oy parities with an aligned reshape.
    z5 = z.reshape(B, 4, 2, 16, 128)
    tm = jnp.maximum(z5[:, :, 0], z5[:, :, 1]).reshape(B, 64, 128)   # rows = oi*16 + ox
    p1s_ref[...] = tm
    p1 = jnp.maximum(p1s_ref[:, pl.ds(0, 32, 2), :],                 # ox even
                     p1s_ref[:, pl.ds(1, 32, 2), :])                 # ox odd
    # p1: (B, 32, 128), row = oi*8 + oj (oj 0..3 valid, 4..7 junk, masked below)

    # ---- conv2 (128->64, 3x3, SAME) as ONE lane-concatenated K=1152 matmul --------------------
    zero = jnp.zeros((B, 16, 128), F32)
    pz = jnp.concatenate([zero, p1, zero], axis=1)                   # (B, 64, 128), p1 at 16..47
    oj = jax.lax.broadcasted_iota(jnp.int32, (B, 32, 128), 1) % 8
    taps = []
    for dy in (-1, 0, 1):
        for dx in (-1, 0, 1):
            sh = pz[:, 16 + 8 * dy + dx: 48 + 8 * dy + dx, :]        # shifted pooled map
            ok = (oj + dx >= 0) & (oj + dx <= 3)                     # column border mask
            taps.append(jnp.where(ok, sh, 0.0))
    lhs2 = jnp.concatenate(taps, axis=-1).astype(BF16)               # (B, 32, 1152)
    z2 = jnp.dot(lhs2.reshape(B * 32, 1152), w2_ref[...],
                 preferred_element_type=F32)                         # (B*32, 64) f32
    z2 = jnp.maximum(z2 * s2_ref[...] + b2_ref[...], 0.0).reshape(B, 32, 64)

    # ---- maxpool 2x2 (stage 2) fused with Linear(256 -> 1) -----------------------------------
    # rows = oi*8 + oj; pool cells land on rows {0, 2, 16, 18} after the two rolls.
    pm1 = jnp.maximum(z2, pltpu.roll(z2, shift=31, axis=1))          # pair oj, oj+1
    pm2 = jnp.maximum(pm1, pltpu.roll(pm1, shift=24, axis=1))        # pair oi, oi+1
    res = jnp.sum(pm2 * wmap_ref[...], axis=1)                       # (B, 64)
    tot = jnp.sum(res, axis=-1, keepdims=True)                       # (B, 1)
    out_ref[...] = jnp.broadcast_to(tot, (B, 128)) + bl_ref[...]


@jax.jit
def decider_forward(x_nchw, params):
    (W1, b1c, g1, be1, m1, v1, W2, b2c, g2, be2, m2, v2, Wl, bl) = params
    n = x_nchw.shape[0]
    npad = ((n + BLOCK_B - 1) // BLOCK_B) * BLOCK_B

    # fold BN (eval mode) + conv bias into per-channel scale / bias (kept in f32)
    s1 = (g1 / jnp.sqrt(v1 + EPS)).astype(F32)
    bb1 = ((b1c - m1) * s1 + be1).astype(F32)
    s2 = (g2 / jnp.sqrt(v2 + EPS)).astype(F32)
    bb2 = ((b2c - m2) * s2 + be2).astype(F32)

    # conv weights OIHW -> kernel layouts (bf16 for the MXU fast path)
    w1big = jnp.transpose(W1, (2, 1, 3, 0)).reshape(768, 384).astype(BF16)   # [ky*256+cin, kx*128+cout]
    w2cat = jnp.transpose(W2, (2, 3, 1, 0)).reshape(1152, 64).astype(BF16)   # [(ky*3+kx)*128+cin, cout]

    # linear weight: PyTorch flattens (C, H, W); scatter onto pooled-map rows {0, 2, 16, 18}
    wl4 = Wl.reshape(64, 2, 2)                       # [c, i2, j2]
    wmap = jnp.zeros((32, 64), F32)
    wmap = wmap.at[0, :].set(wl4[:, 0, 0])
    wmap = wmap.at[2, :].set(wl4[:, 0, 1])
    wmap = wmap.at[16, :].set(wl4[:, 1, 0])
    wmap = wmap.at[18, :].set(wl4[:, 1, 1])
    blv = jnp.full((1, 128), bl[0], F32)

    # raw zero-padded frame per image (layout plumbing only; no im2col expansion in HBM)
    x_nhwc = jnp.transpose(x_nchw, (0, 2, 3, 1)).astype(BF16)        # (n, 8, 8, 256)
    frame = jnp.zeros((npad, 11, 16, 256), BF16)
    frame = frame.at[:n, 1:9, 1:9, :].set(x_nhwc)
    xf = frame.reshape(npad, FRAME_ROWS, 256)

    out = pl.pallas_call(
        decider_kernel,
        out_shape=jax.ShapeDtypeStruct((npad, 128), F32),
        grid=(npad // BLOCK_B,),
        in_specs=[
            pl.BlockSpec((BLOCK_B, FRAME_ROWS, 256), lambda i: (i, 0, 0)),   # frames
            pl.BlockSpec((768, 384), lambda i: (0, 0)),                      # w1big
            pl.BlockSpec((1, 128), lambda i: (0, 0)),                        # s1
            pl.BlockSpec((1, 128), lambda i: (0, 0)),                        # bb1
            pl.BlockSpec((1152, 64), lambda i: (0, 0)),                      # w2cat
            pl.BlockSpec((1, 64), lambda i: (0, 0)),                         # s2
            pl.BlockSpec((1, 64), lambda i: (0, 0)),                         # bb2
            pl.BlockSpec((32, 64), lambda i: (0, 0)),                        # wmap
            pl.BlockSpec((1, 128), lambda i: (0, 0)),                        # bl
        ],
        out_specs=pl.BlockSpec((BLOCK_B, 128), lambda i: (i, 0)),
        scratch_shapes=[pltpu.VMEM((BLOCK_B, 64, 128), F32)],
        compiler_params=pltpu.CompilerParams(
            dimension_semantics=("parallel",),
            vmem_limit_bytes=32 * 1024 * 1024),
    )(xf, w1big, s1.reshape(1, 128), bb1.reshape(1, 128),
      w2cat, s2.reshape(1, 64), bb2.reshape(1, 64), wmap, blv)

    return out[:n, :1]                                               # (n, 1)


def decider_reference(x_nchw, params):
    """Plain-JAX reference mirroring the PyTorch forward (eval-mode BN, f32 HIGHEST)."""
    (W1, b1c, g1, be1, m1, v1, W2, b2c, g2, be2, m2, v2, Wl, bl) = params

    def block(y, W, bc, g, be, m, v):
        y = jax.lax.conv_general_dilated(
            y, W, (1, 1), 'SAME',
            dimension_numbers=('NCHW', 'OIHW', 'NCHW'),
            precision=jax.lax.Precision.HIGHEST)
        y = y + bc[None, :, None, None]
        y = (y - m[None, :, None, None]) / jnp.sqrt(v + EPS)[None, :, None, None]
        y = y * g[None, :, None, None] + be[None, :, None, None]
        y = jnp.maximum(y, 0.0)
        y = jax.lax.reduce_window(y, -jnp.inf, jax.lax.max,
                                  (1, 1, 2, 2), (1, 1, 2, 2), 'VALID')
        return y

    y = block(x_nchw.astype(F32), W1, b1c, g1, be1, m1, v1)
    y = block(y, W2, b2c, g2, be2, m2, v2)
    flat = y.reshape(y.shape[0], -1)            # (N, 256) in (C, H, W) order
    return flat @ Wl.T + bl[None, :]


if __name__ == "__main__":
    key = jax.random.PRNGKey(0)
    keys = jax.random.split(key, 16)

    # input implied by the module: Linear(256,1) after two 2x maxpools on 64 ch => 8x8 spatial
    n = 16
    x = jax.random.normal(keys[0], (n, 256, 8, 8), F32)          # NCHW, like PyTorch

    W1 = 0.02 * jax.random.normal(keys[1], (128, 256, 3, 3), F32)
    b1c = 0.02 * jax.random.normal(keys[2], (128,), F32)
    g1 = 1.0 + 0.1 * jax.random.normal(keys[3], (128,), F32)
    be1 = 0.1 * jax.random.normal(keys[4], (128,), F32)
    m1 = 0.1 * jax.random.normal(keys[5], (128,), F32)
    v1 = jax.random.uniform(keys[6], (128,), F32, 0.5, 1.5)

    W2 = 0.02 * jax.random.normal(keys[7], (64, 128, 3, 3), F32)
    b2c = 0.02 * jax.random.normal(keys[8], (64,), F32)
    g2 = 1.0 + 0.1 * jax.random.normal(keys[9], (64,), F32)
    be2 = 0.1 * jax.random.normal(keys[10], (64,), F32)
    m2 = 0.1 * jax.random.normal(keys[11], (64,), F32)
    v2 = jax.random.uniform(keys[12], (64,), F32, 0.5, 1.5)

    Wl = 0.05 * jax.random.normal(keys[13], (1, 256), F32)
    bl = 0.05 * jax.random.normal(keys[14], (1,), F32)

    params = (W1, b1c, g1, be1, m1, v1, W2, b2c, g2, be2, m2, v2, Wl, bl)

    out = jax.block_until_ready(decider_forward(x, params))
    ref = jax.block_until_ready(decider_reference(x, params))

    out_np, ref_np = np.asarray(out), np.asarray(ref)
    # bf16 MXU inputs with f32 accumulation vs f32-HIGHEST reference: small deviation expected.
    if out_np.shape != (n, 1) or not np.allclose(out_np, ref_np, rtol=5e-2, atol=5e-2):
        raise AssertionError(
            f"mismatch: shape={out_np.shape} max_abs_err={np.max(np.abs(out_np - ref_np))}")
    print("KERNEL_OK")
</pallas_src>

<mosaic_0001>
module attributes {stable_mosaic.version = 11 : i64} {
  func.func @decider_kernel(%arg0: i32, %arg1: memref<8x176x256xbf16, #tpu.memory_space<vmem>>, %arg2: memref<768x384xbf16, #tpu.memory_space<vmem>>, %arg3: memref<1x128xf32, #tpu.memory_space<vmem>>, %arg4: memref<1x128xf32, #tpu.memory_space<vmem>>, %arg5: memref<1152x64xbf16, #tpu.memory_space<vmem>>, %arg6: memref<1x64xf32, #tpu.memory_space<vmem>>, %arg7: memref<1x64xf32, #tpu.memory_space<vmem>>, %arg8: memref<32x64xf32, #tpu.memory_space<vmem>>, %arg9: memref<1x128xf32, #tpu.memory_space<vmem>>, %arg10: memref<8x128xf32, #tpu.memory_space<vmem>>, %arg11: memref<8x64x128xf32, #tpu.memory_space<vmem>>) attributes {dimension_semantics = [#tpu.dimension_semantics<parallel>], iteration_bounds = array<i64: 2>, scalar_prefetch = 0 : i64, scratch_operands = 1 : i64, tpu.core_type = #tpu.core_type<tc>, window_params = [{transform_indices = @transform_0, window_bounds = array<i64: 8, 176, 256>}, {pipeline_mode = #tpu.pipeline_mode<synchronous>, transform_indices = @transform_1, window_bounds = array<i64: 768, 384>}, {pipeline_mode = #tpu.pipeline_mode<synchronous>, transform_indices = @transform_2, window_bounds = array<i64: 1, 128>}, {pipeline_mode = #tpu.pipeline_mode<synchronous>, transform_indices = @transform_3, window_bounds = array<i64: 1, 128>}, {pipeline_mode = #tpu.pipeline_mode<synchronous>, transform_indices = @transform_4, window_bounds = array<i64: 1152, 64>}, {pipeline_mode = #tpu.pipeline_mode<synchronous>, transform_indices = @transform_5, window_bounds = array<i64: 1, 64>}, {pipeline_mode = #tpu.pipeline_mode<synchronous>, transform_indices = @transform_6, window_bounds = array<i64: 1, 64>}, {pipeline_mode = #tpu.pipeline_mode<synchronous>, transform_indices = @transform_7, window_bounds = array<i64: 32, 64>}, {pipeline_mode = #tpu.pipeline_mode<synchronous>, transform_indices = @transform_8, window_bounds = array<i64: 1, 128>}, {transform_indices = @transform_9, window_bounds = array<i64: 8, 128>}]} {
    %c0 = arith.constant 0 : index
    %c0_0 = arith.constant 0 : index
    %c0_1 = arith.constant 0 : index
    %0 = vector.load %arg1[%c0, %c0_0, %c0_1] : memref<8x176x256xbf16, #tpu.memory_space<vmem>>, vector<8x144x256xbf16>
    %c0_2 = arith.constant 0 : index
    %c16 = arith.constant 16 : index
    %c0_3 = arith.constant 0 : index
    %1 = vector.load %arg1[%c0_2, %c16, %c0_3] : memref<8x176x256xbf16, #tpu.memory_space<vmem>>, vector<8x144x256xbf16>
    %c0_4 = arith.constant 0 : index
    %c32 = arith.constant 32 : index
    %c0_5 = arith.constant 0 : index
    %2 = vector.load %arg1[%c0_4, %c32, %c0_5] : memref<8x176x256xbf16, #tpu.memory_space<vmem>>, vector<8x144x256xbf16>
    %3 = tpu.concatenate %0, %1, %2 in 2 : vector<8x144x256xbf16>, vector<8x144x256xbf16>, vector<8x144x256xbf16> -> vector<8x144x768xbf16>
    %4 = vector.shape_cast %3 : vector<8x144x768xbf16> to vector<1152x768xbf16>
    %c0_6 = arith.constant 0 : index
    %c0_7 = arith.constant 0 : index
    %5 = vector.load %arg2[%c0_6, %c0_7] : memref<768x384xbf16, #tpu.memory_space<vmem>>, vector<768x384xbf16>
    %cst = arith.constant dense<0.000000e+00> : vector<1152x384xf32>
    %6 = tpu.matmul %4, %5, %cst {dimension_numbers = #tpu.dot_dimension_numbers<[1], [0], [0], [1], [0, 0, 1, 1], [], []>} : vector<1152x768xbf16>, vector<768x384xbf16>, vector<1152x384xf32> -> vector<1152x384xf32>
    %7 = vector.shape_cast %6 : vector<1152x384xf32> to vector<8x144x384xf32>
    %8 = vector.extract_strided_slice %7 {offsets = [0, 0, 0], sizes = [8, 128, 128], strides = [1, 1, 1]} : vector<8x144x384xf32> to vector<8x128x128xf32>
    %9 = vector.extract_strided_slice %7 {offsets = [0, 1, 128], sizes = [8, 128, 128], strides = [1, 1, 1]} : vector<8x144x384xf32> to vector<8x128x128xf32>
    %10 = arith.addf %8, %9 : vector<8x128x128xf32>
    %11 = vector.extract_strided_slice %7 {offsets = [0, 2, 256], sizes = [8, 128, 128], strides = [1, 1, 1]} : vector<8x144x384xf32> to vector<8x128x128xf32>
    %12 = arith.addf %10, %11 : vector<8x128x128xf32>
    %c0_8 = arith.constant 0 : index
    %c0_9 = arith.constant 0 : index
    %13 = vector.load %arg3[%c0_8, %c0_9] : memref<1x128xf32, #tpu.memory_space<vmem>>, vector<1x128xf32>
    %14 = vector.shape_cast %13 : vector<1x128xf32> to vector<1x1x128xf32>
    %15 = vector.broadcast %14 : vector<1x1x128xf32> to vector<8x128x128xf32>
    %16 = arith.mulf %12, %15 : vector<8x128x128xf32>
    %c0_10 = arith.constant 0 : index
    %c0_11 = arith.constant 0 : index
    %17 = vector.load %arg4[%c0_10, %c0_11] : memref<1x128xf32, #tpu.memory_space<vmem>>, vector<1x128xf32>
    %18 = vector.shape_cast %17 : vector<1x128xf32> to vector<1x1x128xf32>
    %19 = vector.broadcast %18 : vector<1x1x128xf32> to vector<8x128x128xf32>
    %20 = arith.addf %16, %19 : vector<8x128x128xf32>
    %cst_12 = arith.constant 0.000000e+00 : f32
    %21 = vector.broadcast %cst_12 : f32 to vector<8x128x128xf32>
    %22 = arith.maximumf %20, %21 : vector<8x128x128xf32>
    %23 = vector.shape_cast %22 : vector<8x128x128xf32> to vector<8x4x2x16x128xf32>
    %24 = vector.extract_strided_slice %23 {offsets = [0, 0, 0, 0, 0], sizes = [8, 4, 1, 16, 128], strides = [1, 1, 1, 1, 1]} : vector<8x4x2x16x128xf32> to vector<8x4x1x16x128xf32>
    %25 = vector.shape_cast %24 : vector<8x4x1x16x128xf32> to vector<8x4x16x128xf32>
    %26 = vector.extract_strided_slice %23 {offsets = [0, 0, 1, 0, 0], sizes = [8, 4, 1, 16, 128], strides = [1, 1, 1, 1, 1]} : vector<8x4x2x16x128xf32> to vector<8x4x1x16x128xf32>
    %27 = vector.shape_cast %26 : vector<8x4x1x16x128xf32> to vector<8x4x16x128xf32>
    %28 = arith.maximumf %25, %27 : vector<8x4x16x128xf32>
    %29 = vector.shape_cast %28 : vector<8x4x16x128xf32> to vector<8x64x128xf32>
    %c0_13 = arith.constant 0 : index
    %c0_14 = arith.constant 0 : index
    %c0_15 = arith.constant 0 : index
    %30 = vector.load %arg11[%c0_13, %c0_14, %c0_15] : memref<8x64x128xf32, #tpu.memory_space<vmem>>, vector<8x64x128xf32>
    tpu.vector_store %arg11[%c0_13, %c0_14, %c0_15], %29 {strides = array<i32>} : memref<8x64x128xf32, #tpu.memory_space<vmem>>, vector<8x64x128xf32>,
    %c0_16 = arith.constant 0 : index
    %c0_17 = arith.constant 0 : index
    %c0_18 = arith.constant 0 : index
    %31 = tpu.strided_load %arg11[%c0_16, %c0_17, %c0_18] {strides = array<i32: 1, 2, 1>} : memref<8x64x128xf32, #tpu.memory_space<vmem>>, vector<8x32x128xf32>
    %c0_19 = arith.constant 0 : index
    %c1 = arith.constant 1 : index
    %c0_20 = arith.constant 0 : index
    %32 = tpu.strided_load %arg11[%c0_19, %c1, %c0_20] {strides = array<i32: 1, 2, 1>} : memref<8x64x128xf32, #tpu.memory_space<vmem>>, vector<8x32x128xf32>
    %33 = arith.maximumf %31, %32 : vector<8x32x128xf32>
    %cst_21 = arith.constant 0.000000e+00 : f32
    %34 = vector.broadcast %cst_21 : f32 to vector<8x16x128xf32>
    %35 = tpu.concatenate %34, %33, %34 in 1 : vector<8x16x128xf32>, vector<8x32x128xf32>, vector<8x16x128xf32> -> vector<8x64x128xf32>
    %36 = tpu.iota {dimensions = array<i32: 1>} : vector<8x32x128xi32>
    %c8_i32 = arith.constant 8 : i32
    %c0_i32 = arith.constant 0 : i32
    %37 = arith.cmpi eq, %c8_i32, %c0_i32 : i32
    %c1_i32 = arith.constant 1 : i32
    %38 = arith.select %37, %c1_i32, %c8_i32 : i32
    %39 = vector.broadcast %38 : i32 to vector<8x32x128xi32>
    %40 = arith.remsi %36, %39 : vector<8x32x128xi32>
    %c0_i32_22 = arith.constant 0 : i32
    %41 = vector.broadcast %c0_i32_22 : i32 to vector<8x32x128xi32>
    %42 = arith.cmpi ne, %40, %41 : vector<8x32x128xi32>
    %c0_i32_23 = arith.constant 0 : i32
    %43 = vector.broadcast %c0_i32_23 : i32 to vector<8x32x128xi32>
    %44 = arith.cmpi slt, %40, %43 : vector<8x32x128xi32>
    %c0_i32_24 = arith.constant 0 : i32
    %45 = arith.cmpi slt, %38, %c0_i32_24 : i32
    %46 = vector.broadcast %45 : i1 to vector<8x32x128xi1>
    %47 = vector.broadcast %46 : vector<8x32x128xi1> to vector<8x32x128xi1>
    %48 = arith.xori %44, %47 : vector<8x32x128xi1>
    %49 = arith.andi %48, %42 : vector<8x32x128xi1>
    %50 = vector.broadcast %38 : i32 to vector<8x32x128xi32>
    %51 = arith.addi %40, %50 : vector<8x32x128xi32>
    %52 = arith.select %49, %51, %40 : vector<8x32x128xi1>, vector<8x32x128xi32>
    %53 = vector.extract_strided_slice %35 {offsets = [0, 7, 0], sizes = [8, 32, 128], strides = [1, 1, 1]} : vector<8x64x128xf32> to vector<8x32x128xf32>
    %c-1_i32 = arith.constant -1 : i32
    %54 = vector.broadcast %c-1_i32 : i32 to vector<8x32x128xi32>
    %55 = arith.addi %52, %54 : vector<8x32x128xi32>
    %c0_i32_25 = arith.constant 0 : i32
    %56 = vector.broadcast %c0_i32_25 : i32 to vector<8x32x128xi32>
    %57 = arith.cmpi sge, %55, %56 : vector<8x32x128xi32>
    %c-1_i32_26 = arith.constant -1 : i32
    %58 = vector.broadcast %c-1_i32_26 : i32 to vector<8x32x128xi32>
    %59 = arith.addi %52, %58 : vector<8x32x128xi32>
    %c3_i32 = arith.constant 3 : i32
    %60 = vector.broadcast %c3_i32 : i32 to vector<8x32x128xi32>
    %61 = arith.cmpi sle, %59, %60 : vector<8x32x128xi32>
    %62 = arith.andi %57, %61 : vector<8x32x128xi1>
    %cst_27 = arith.constant 0.000000e+00 : f32
    %63 = vector.broadcast %cst_27 : f32 to vector<8x32x128xf32>
    %64 = arith.select %62, %53, %63 : vector<8x32x128xi1>, vector<8x32x128xf32>
    %65 = vector.extract_strided_slice %35 {offsets = [0, 8, 0], sizes = [8, 32, 128], strides = [1, 1, 1]} : vector<8x64x128xf32> to vector<8x32x128xf32>
    %c0_i32_28 = arith.constant 0 : i32
    %66 = vector.broadcast %c0_i32_28 : i32 to vector<8x32x128xi32>
    %67 = arith.addi %52, %66 : vector<8x32x128xi32>
    %c0_i32_29 = arith.constant 0 : i32
    %68 = vector.broadcast %c0_i32_29 : i32 to vector<8x32x128xi32>
    %69 = arith.cmpi sge, %67, %68 : vector<8x32x128xi32>
    %c0_i32_30 = arith.constant 0 : i32
    %70 = vector.broadcast %c0_i32_30 : i32 to vector<8x32x128xi32>
    %71 = arith.addi %52, %70 : vector<8x32x128xi32>
    %c3_i32_31 = arith.constant 3 : i32
    %72 = vector.broadcast %c3_i32_31 : i32 to vector<8x32x128xi32>
    %73 = arith.cmpi sle, %71, %72 : vector<8x32x128xi32>
    %74 = arith.andi %69, %73 : vector<8x32x128xi1>
    %cst_32 = arith.constant 0.000000e+00 : f32
    %75 = vector.broadcast %cst_32 : f32 to vector<8x32x128xf32>
    %76 = arith.select %74, %65, %75 : vector<8x32x128xi1>, vector<8x32x128xf32>
    %77 = vector.extract_strided_slice %35 {offsets = [0, 9, 0], sizes = [8, 32, 128], strides = [1, 1, 1]} : vector<8x64x128xf32> to vector<8x32x128xf32>
    %c1_i32_33 = arith.constant 1 : i32
    %78 = vector.broadcast %c1_i32_33 : i32 to vector<8x32x128xi32>
    %79 = arith.addi %52, %78 : vector<8x32x128xi32>
    %c0_i32_34 = arith.constant 0 : i32
    %80 = vector.broadcast %c0_i32_34 : i32 to vector<8x32x128xi32>
    %81 = arith.cmpi sge, %79, %80 : vector<8x32x128xi32>
    %c1_i32_35 = arith.constant 1 : i32
    %82 = vector.broadcast %c1_i32_35 : i32 to vector<8x32x128xi32>
    %83 = arith.addi %52, %82 : vector<8x32x128xi32>
    %c3_i32_36 = arith.constant 3 : i32
    %84 = vector.broadcast %c3_i32_36 : i32 to vector<8x32x128xi32>
    %85 = arith.cmpi sle, %83, %84 : vector<8x32x128xi32>
    %86 = arith.andi %81, %85 : vector<8x32x128xi1>
    %cst_37 = arith.constant 0.000000e+00 : f32
    %87 = vector.broadcast %cst_37 : f32 to vector<8x32x128xf32>
    %88 = arith.select %86, %77, %87 : vector<8x32x128xi1>, vector<8x32x128xf32>
    %89 = vector.extract_strided_slice %35 {offsets = [0, 15, 0], sizes = [8, 32, 128], strides = [1, 1, 1]} : vector<8x64x128xf32> to vector<8x32x128xf32>
    %c-1_i32_38 = arith.constant -1 : i32
    %90 = vector.broadcast %c-1_i32_38 : i32 to vector<8x32x128xi32>
    %91 = arith.addi %52, %90 : vector<8x32x128xi32>
    %c0_i32_39 = arith.constant 0 : i32
    %92 = vector.broadcast %c0_i32_39 : i32 to vector<8x32x128xi32>
    %93 = arith.cmpi sge, %91, %92 : vector<8x32x128xi32>
    %c-1_i32_40 = arith.constant -1 : i32
    %94 = vector.broadcast %c-1_i32_40 : i32 to vector<8x32x128xi32>
    %95 = arith.addi %52, %94 : vector<8x32x128xi32>
    %c3_i32_41 = arith.constant 3 : i32
    %96 = vector.broadcast %c3_i32_41 : i32 to vector<8x32x128xi32>
    %97 = arith.cmpi sle, %95, %96 : vector<8x32x128xi32>
    %98 = arith.andi %93, %97 : vector<8x32x128xi1>
    %cst_42 = arith.constant 0.000000e+00 : f32
    %99 = vector.broadcast %cst_42 : f32 to vector<8x32x128xf32>
    %100 = arith.select %98, %89, %99 : vector<8x32x128xi1>, vector<8x32x128xf32>
    %101 = vector.extract_strided_slice %35 {offsets = [0, 16, 0], sizes = [8, 32, 128], strides = [1, 1, 1]} : vector<8x64x128xf32> to vector<8x32x128xf32>
    %c0_i32_43 = arith.constant 0 : i32
    %102 = vector.broadcast %c0_i32_43 : i32 to vector<8x32x128xi32>
    %103 = arith.addi %52, %102 : vector<8x32x128xi32>
    %c0_i32_44 = arith.constant 0 : i32
    %104 = vector.broadcast %c0_i32_44 : i32 to vector<8x32x128xi32>
    %105 = arith.cmpi sge, %103, %104 : vector<8x32x128xi32>
    %c0_i32_45 = arith.constant 0 : i32
    %106 = vector.broadcast %c0_i32_45 : i32 to vector<8x32x128xi32>
    %107 = arith.addi %52, %106 : vector<8x32x128xi32>
    %c3_i32_46 = arith.constant 3 : i32
    %108 = vector.broadcast %c3_i32_46 : i32 to vector<8x32x128xi32>
    %109 = arith.cmpi sle, %107, %108 : vector<8x32x128xi32>
    %110 = arith.andi %105, %109 : vector<8x32x128xi1>
    %cst_47 = arith.constant 0.000000e+00 : f32
    %111 = vector.broadcast %cst_47 : f32 to vector<8x32x128xf32>
    %112 = arith.select %110, %101, %111 : vector<8x32x128xi1>, vector<8x32x128xf32>
    %113 = vector.extract_strided_slice %35 {offsets = [0, 17, 0], sizes = [8, 32, 128], strides = [1, 1, 1]} : vector<8x64x128xf32> to vector<8x32x128xf32>
    %c1_i32_48 = arith.constant 1 : i32
    %114 = vector.broadcast %c1_i32_48 : i32 to vector<8x32x128xi32>
    %115 = arith.addi %52, %114 : vector<8x32x128xi32>
    %c0_i32_49 = arith.constant 0 : i32
    %116 = vector.broadcast %c0_i32_49 : i32 to vector<8x32x128xi32>
    %117 = arith.cmpi sge, %115, %116 : vector<8x32x128xi32>
    %c1_i32_50 = arith.constant 1 : i32
    %118 = vector.broadcast %c1_i32_50 : i32 to vector<8x32x128xi32>
    %119 = arith.addi %52, %118 : vector<8x32x128xi32>
    %c3_i32_51 = arith.constant 3 : i32
    %120 = vector.broadcast %c3_i32_51 : i32 to vector<8x32x128xi32>
    %121 = arith.cmpi sle, %119, %120 : vector<8x32x128xi32>
    %122 = arith.andi %117, %121 : vector<8x32x128xi1>
    %cst_52 = arith.constant 0.000000e+00 : f32
    %123 = vector.broadcast %cst_52 : f32 to vector<8x32x128xf32>
    %124 = arith.select %122, %113, %123 : vector<8x32x128xi1>, vector<8x32x128xf32>
    %125 = vector.extract_strided_slice %35 {offsets = [0, 23, 0], sizes = [8, 32, 128], strides = [1, 1, 1]} : vector<8x64x128xf32> to vector<8x32x128xf32>
    %c-1_i32_53 = arith.constant -1 : i32
    %126 = vector.broadcast %c-1_i32_53 : i32 to vector<8x32x128xi32>
    %127 = arith.addi %52, %126 : vector<8x32x128xi32>
    %c0_i32_54 = arith.constant 0 : i32
    %128 = vector.broadcast %c0_i32_54 : i32 to vector<8x32x128xi32>
    %129 = arith.cmpi sge, %127, %128 : vector<8x32x128xi32>
    %c-1_i32_55 = arith.constant -1 : i32
    %130 = vector.broadcast %c-1_i32_55 : i32 to vector<8x32x128xi32>
    %131 = arith.addi %52, %130 : vector<8x32x128xi32>
    %c3_i32_56 = arith.constant 3 : i32
    %132 = vector.broadcast %c3_i32_56 : i32 to vector<8x32x128xi32>
    %133 = arith.cmpi sle, %131, %132 : vector<8x32x128xi32>
    %134 = arith.andi %129, %133 : vector<8x32x128xi1>
    %cst_57 = arith.constant 0.000000e+00 : f32
    %135 = vector.broadcast %cst_57 : f32 to vector<8x32x128xf32>
    %136 = arith.select %134, %125, %135 : vector<8x32x128xi1>, vector<8x32x128xf32>
    %137 = vector.extract_strided_slice %35 {offsets = [0, 24, 0], sizes = [8, 32, 128], strides = [1, 1, 1]} : vector<8x64x128xf32> to vector<8x32x128xf32>
    %c0_i32_58 = arith.constant 0 : i32
    %138 = vector.broadcast %c0_i32_58 : i32 to vector<8x32x128xi32>
    %139 = arith.addi %52, %138 : vector<8x32x128xi32>
    %c0_i32_59 = arith.constant 0 : i32
    %140 = vector.broadcast %c0_i32_59 : i32 to vector<8x32x128xi32>
    %141 = arith.cmpi sge, %139, %140 : vector<8x32x128xi32>
    %c0_i32_60 = arith.constant 0 : i32
    %142 = vector.broadcast %c0_i32_60 : i32 to vector<8x32x128xi32>
    %143 = arith.addi %52, %142 : vector<8x32x128xi32>
    %c3_i32_61 = arith.constant 3 : i32
    %144 = vector.broadcast %c3_i32_61 : i32 to vector<8x32x128xi32>
    %145 = arith.cmpi sle, %143, %144 : vector<8x32x128xi32>
    %146 = arith.andi %141, %145 : vector<8x32x128xi1>
    %cst_62 = arith.constant 0.000000e+00 : f32
    %147 = vector.broadcast %cst_62 : f32 to vector<8x32x128xf32>
    %148 = arith.select %146, %137, %147 : vector<8x32x128xi1>, vector<8x32x128xf32>
    %149 = vector.extract_strided_slice %35 {offsets = [0, 25, 0], sizes = [8, 32, 128], strides = [1, 1, 1]} : vector<8x64x128xf32> to vector<8x32x128xf32>
    %c1_i32_63 = arith.constant 1 : i32
    %150 = vector.broadcast %c1_i32_63 : i32 to vector<8x32x128xi32>
    %151 = arith.addi %52, %150 : vector<8x32x128xi32>
    %c0_i32_64 = arith.constant 0 : i32
    %152 = vector.broadcast %c0_i32_64 : i32 to vector<8x32x128xi32>
    %153 = arith.cmpi sge, %151, %152 : vector<8x32x128xi32>
    %c1_i32_65 = arith.constant 1 : i32
    %154 = vector.broadcast %c1_i32_65 : i32 to vector<8x32x128xi32>
    %155 = arith.addi %52, %154 : vector<8x32x128xi32>
    %c3_i32_66 = arith.constant 3 : i32
    %156 = vector.broadcast %c3_i32_66 : i32 to vector<8x32x128xi32>
    %157 = arith.cmpi sle, %155, %156 : vector<8x32x128xi32>
    %158 = arith.andi %153, %157 : vector<8x32x128xi1>
    %cst_67 = arith.constant 0.000000e+00 : f32
    %159 = vector.broadcast %cst_67 : f32 to vector<8x32x128xf32>
    %160 = arith.select %158, %149, %159 : vector<8x32x128xi1>, vector<8x32x128xf32>
    %161 = tpu.concatenate %64, %76, %88, %100, %112, %124, %136, %148, %160 in 2 : vector<8x32x128xf32>, vector<8x32x128xf32>, vector<8x32x128xf32>, vector<8x32x128xf32>, vector<8x32x128xf32>, vector<8x32x128xf32>, vector<8x32x128xf32>, vector<8x32x128xf32>, vector<8x32x128xf32> -> vector<8x32x1152xf32>
    %162 = arith.truncf %161 : vector<8x32x1152xf32> to vector<8x32x1152xbf16>
    %163 = vector.shape_cast %162 : vector<8x32x1152xbf16> to vector<256x1152xbf16>
    %c0_68 = arith.constant 0 : index
    %c0_69 = arith.constant 0 : index
    %164 = vector.load %arg5[%c0_68, %c0_69] : memref<1152x64xbf16, #tpu.memory_space<vmem>>, vector<1152x64xbf16>
    %cst_70 = arith.constant dense<0.000000e+00> : vector<256x64xf32>
    %165 = tpu.matmul %163, %164, %cst_70 {dimension_numbers = #tpu.dot_dimension_numbers<[1], [0], [0], [1], [0, 0, 1, 1], [], []>} : vector<256x1152xbf16>, vector<1152x64xbf16>, vector<256x64xf32> -> vector<256x64xf32>
    %c0_71 = arith.constant 0 : index
    %c0_72 = arith.constant 0 : index
    %166 = vector.load %arg6[%c0_71, %c0_72] : memref<1x64xf32, #tpu.memory_space<vmem>>, vector<1x64xf32>
    %167 = vector.broadcast %166 : vector<1x64xf32> to vector<256x64xf32>
    %168 = arith.mulf %165, %167 : vector<256x64xf32>
    %c0_73 = arith.constant 0 : index
    %c0_74 = arith.constant 0 : index
    %169 = vector.load %arg7[%c0_73, %c0_74] : memref<1x64xf32, #tpu.memory_space<vmem>>, vector<1x64xf32>
    %170 = vector.broadcast %169 : vector<1x64xf32> to vector<256x64xf32>
    %171 = arith.addf %168, %170 : vector<256x64xf32>
    %cst_75 = arith.constant 0.000000e+00 : f32
    %172 = vector.broadcast %cst_75 : f32 to vector<256x64xf32>
    %173 = arith.maximumf %171, %172 : vector<256x64xf32>
    %174 = vector.shape_cast %173 : vector<256x64xf32> to vector<8x32x64xf32>
    %c31_i32 = arith.constant 31 : i32
    %175 = tpu.dynamic_rotate %174 by %c31_i32 dim 1 : vector<8x32x64xf32>, i32 -> vector<8x32x64xf32>
    %176 = arith.maximumf %174, %175 : vector<8x32x64xf32>
    %c24_i32 = arith.constant 24 : i32
    %177 = tpu.dynamic_rotate %176 by %c24_i32 dim 1 : vector<8x32x64xf32>, i32 -> vector<8x32x64xf32>
    %178 = arith.maximumf %176, %177 : vector<8x32x64xf32>
    %c0_76 = arith.constant 0 : index
    %c0_77 = arith.constant 0 : index
    %179 = vector.load %arg8[%c0_76, %c0_77] : memref<32x64xf32, #tpu.memory_space<vmem>>, vector<32x64xf32>
    %180 = vector.shape_cast %179 : vector<32x64xf32> to vector<1x32x64xf32>
    %181 = vector.broadcast %180 : vector<1x32x64xf32> to vector<8x32x64xf32>
    %182 = arith.mulf %178, %181 : vector<8x32x64xf32>
    %cst_78 = arith.constant dense<0.000000e+00> : vector<8x64xf32>
    %183 = vector.multi_reduction <add>, %182, %cst_78 [1] : vector<8x32x64xf32> to vector<8x64xf32>
    %cst_79 = arith.constant dense<0.000000e+00> : vector<8xf32>
    %184 = vector.multi_reduction <add>, %183, %cst_79 [1] : vector<8x64xf32> to vector<8xf32>
    %185 = vector.shape_cast %184 : vector<8xf32> to vector<8x1xf32>
    %186 = vector.shape_cast %185 : vector<8x1xf32> to vector<8x1xf32>
    %187 = vector.broadcast %186 : vector<8x1xf32> to vector<8x128xf32>
    %c0_80 = arith.constant 0 : index
    %c0_81 = arith.constant 0 : index
    %188 = vector.load %arg9[%c0_80, %c0_81] : memref<1x128xf32, #tpu.memory_space<vmem>>, vector<1x128xf32>
    %189 = vector.broadcast %188 : vector<1x128xf32> to vector<8x128xf32>
    %190 = arith.addf %187, %189 : vector<8x128xf32>
    %c0_82 = arith.constant 0 : index
    %c0_83 = arith.constant 0 : index
    %191 = vector.load %arg10[%c0_82, %c0_83] : memref<8x128xf32, #tpu.memory_space<vmem>>, vector<8x128xf32>
    tpu.vector_store %arg10[%c0_82, %c0_83], %190 {strides = array<i32>} : memref<8x128xf32, #tpu.memory_space<vmem>>, vector<8x128xf32>,
    return
  }
  func.func @transform_0(%arg0: i32) -> (i32, i32, i32) {
    %c0_i32 = arith.constant 0 : i32
    %c0_i32_0 = arith.constant 0 : i32
    %c0_i32_1 = arith.constant 0 : i32
    return %arg0, %c0_i32, %c0_i32_0 : i32, i32, i32
  }
  func.func @transform_1(%arg0: i32) -> (i32, i32) {
    %c0_i32 = arith.constant 0 : i32
    %c0_i32_0 = arith.constant 0 : i32
    %c0_i32_1 = arith.constant 0 : i32
    return %c0_i32, %c0_i32_0 : i32, i32
  }
  func.func @transform_2(%arg0: i32) -> (i32, i32) {
    %c0_i32 = arith.constant 0 : i32
    %c0_i32_0 = arith.constant 0 : i32
    %c0_i32_1 = arith.constant 0 : i32
    return %c0_i32, %c0_i32_0 : i32, i32
  }
  func.func @transform_3(%arg0: i32) -> (i32, i32) {
    %c0_i32 = arith.constant 0 : i32
    %c0_i32_0 = arith.constant 0 : i32
    %c0_i32_1 = arith.constant 0 : i32
    return %c0_i32, %c0_i32_0 : i32, i32
  }
  func.func @transform_4(%arg0: i32) -> (i32, i32) {
    %c0_i32 = arith.constant 0 : i32
    %c0_i32_0 = arith.constant 0 : i32
    %c0_i32_1 = arith.constant 0 : i32
    return %c0_i32, %c0_i32_0 : i32, i32
  }
  func.func @transform_5(%arg0: i32) -> (i32, i32) {
    %c0_i32 = arith.constant 0 : i32
    %c0_i32_0 = arith.constant 0 : i32
    %c0_i32_1 = arith.constant 0 : i32
    return %c0_i32, %c0_i32_0 : i32, i32
  }
  func.func @transform_6(%arg0: i32) -> (i32, i32) {
    %c0_i32 = arith.constant 0 : i32
    %c0_i32_0 = arith.constant 0 : i32
    %c0_i32_1 = arith.constant 0 : i32
    return %c0_i32, %c0_i32_0 : i32, i32
  }
  func.func @transform_7(%arg0: i32) -> (i32, i32) {
    %c0_i32 = arith.constant 0 : i32
    %c0_i32_0 = arith.constant 0 : i32
    %c0_i32_1 = arith.constant 0 : i32
    return %c0_i32, %c0_i32_0 : i32, i32
  }
  func.func @transform_8(%arg0: i32) -> (i32, i32) {
    %c0_i32 = arith.constant 0 : i32
    %c0_i32_0 = arith.constant 0 : i32
    %c0_i32_1 = arith.constant 0 : i32
    return %c0_i32, %c0_i32_0 : i32, i32
  }
  func.func @transform_9(%arg0: i32) -> (i32, i32) {
    %c0_i32 = arith.constant 0 : i32
    %c0_i32_0 = arith.constant 0 : i32
    return %arg0, %c0_i32 : i32, i32
  }
}

</mosaic_0001>

<bundles_post_ra>
// kernel: decider_forward.1
= control target key start
LH: loop header
LB: loop body
LE: loop exit
PB: predicated region body
PF: predicated region fallthrough
CT: control target
= control target key end

     0   :  { %s15241_s30 = smov 0   ;;  %s19474_s0 = inlined_call_operand.vmem [shape: bf16[16,176,256], index: 0, kind: input, shape index: {}]   ;;  %s19475_s1 = inlined_call_operand.vmem [shape: bf16[768,384], index: 1, kind: input, shape index: {}]   ;;  %s19476_s2 = inlined_call_operand.vmem [shape: f32[1,128], index: 2, kind: input, shape index: {}]   ;;  %s19477_s3 = inlined_call_operand.vmem [shape: f32[1,128], index: 3, kind: input, shape index: {}]   ;;  %s19478_s4 = inlined_call_operand.vmem [shape: bf16[1152,64], index: 4, kind: input, shape index: {}]   ;;  %s19479_s5 = inlined_call_operand.vmem [shape: f32[1,64], index: 5, kind: input, shape index: {}]   ;;  %s19480_s6 = inlined_call_operand.vmem [shape: f32[1,64], index: 6, kind: input, shape index: {}]   ;;  %s19481_s7 = inlined_call_operand.vmem [shape: f32[32,64], index: 7, kind: input, shape index: {}]   ;;  %s19482_s8 = inlined_call_operand.vmem [shape: f32[1,128], index: 8, kind: input, shape index: {}]   ;;  %s19483_s9 = inlined_call_operand.vmem [shape: f32[16,128], index: 9, kind: output, shape index: {}]  }
   0x1 LB: > { %s15247_s10 = sadd.s32 4294967295, %s15186_s30   ;;  %p11726_p0 = scmp.ge.s32.totalorder %s15186_s30, 1  ;;  %s15186_s30 = sphi %s15241_s30, %s19_s30  }
   0x2   : > { %p289_p1 = scmp.lt.s32.totalorder %s15186_s30, 3 }
   0x4   : > { %p290_p2 = pnand %p11726_p0, %p289_p1 }
   0x6   : > { %293 = sbr.rel (%p290_p2) target bundleno = 2683 (0xa7b), region = 56 }
   0xd   : > { %v14329_v0 = vld [vmem:[%s19475_s1 + $0x4] ss:$12 sps:$4 sm:$0xff]   ;;  %v19484_v1 = vmov 0   ;;  %v14331_v2 = vld [vmem:[%s19475_s1 + $0x8] ss:$12 sps:$4 sm:$0xff]   ;;  %s11727_s26 = sshll.u32 %s15247_s10, 3 }
   0xe   : > { %5308 = vmatprep.subr.bf16.mxu1 %v19484_v1  ;;  %3121 = vmatprep.subr.bf16.mxu0 %v14329_v0  ;;  %v14332_v3 = vld [vmem:[%s19475_s1] ss:$12 sps:$4 sm:$0xff]   ;;  %v14333_v4 = vld [vmem:[%s19475_s1 + $0x1c] ss:$12 sps:$4 sm:$0xff]   ;;  %v14336_v6 = vld [vmem:[%s19475_s1 + $0x18] ss:$12 sps:$4 sm:$0xff]  }
   0xf   : > { %5309 = vmatpush1.bf16.msra.mxu1 %v14331_v2  ;;  %3122 = vmatpush1.bf16.msra.mxu0 %v14332_v3  ;;  %v14335_v5 = vld [vmem:[%s19475_s1 + $0x20] ss:$12 sps:$4 sm:$0xff]   ;;  %v14339_v8 = vld [vmem:[%s19475_s1 + $0x38] ss:$12 sps:$4 sm:$0xff]   ;;  %v14340_v9 = vld [vmem:[%s19475_s1 + $0x30] ss:$12 sps:$4 sm:$0xff]  }
  0x10   : > { %5310 = vmatprep.subr.bf16.mxu1 %v19484_v1  ;;  %3123 = vmatprep.subr.bf16.mxu0 %v14333_v4  ;;  %v14337_v7 = vld [vmem:[%s19475_s1 + $0x34] ss:$12 sps:$4 sm:$0xff]   ;;  %v14341_v10 = vld [vmem:[%s19475_s1 + $0x4c] ss:$12 sps:$4 sm:$0xff]   ;;  %v14343_v11 = vld [vmem:[%s19475_s1 + $0x50] ss:$12 sps:$4 sm:$0xff]  }
  0x11   : > { %v14344_v12 = vld [vmem:[%s19475_s1 + $0x48] ss:$12 sps:$4 sm:$0xff]   ;;  %v14345_v13 = vld [vmem:[%s19475_s1 + $0x64] ss:$12 sps:$4 sm:$0xff]   ;;  %v14348_v15 = vld [vmem:[%s19475_s1 + $0x60] ss:$12 sps:$4 sm:$0xff]  }
  0x12   : > { %v14347_v14 = vld [vmem:[%s19475_s1 + $0x68] ss:$12 sps:$4 sm:$0xff]   ;;  %v14351_v17 = vld [vmem:[%s19475_s1 + $0x80] ss:$12 sps:$4 sm:$0xff]   ;;  %v14352_v18 = vld [vmem:[%s19475_s1 + $0x78] ss:$12 sps:$4 sm:$0xff]  }
  0x13   : > { %5311 = vmatpush1.bf16.msra.mxu1 %v14335_v5  ;;  %3124 = vmatpush1.bf16.msra.mxu0 %v14336_v6  ;;  %v14349_v16 = vld [vmem:[%s19475_s1 + $0x7c] ss:$12 sps:$4 sm:$0xff]   ;;  %v14353_v19 = vld [vmem:[%s19475_s1 + $0x94] ss:$12 sps:$4 sm:$0xff]   ;;  %p326_p3 = scmp.lt.s32.totalorder %s11727_s26, 15  ;;  %vm7904_vm0 = vcmask 1045504  }
  0x14   : > { %5312 = vmatprep.subr.bf16.mxu1 %v19484_v1  ;;  %3125 = vmatprep.subr.bf16.mxu0 %v14337_v7  ;;  %v14355_v20 = vld [vmem:[%s19475_s1 + $0x98] ss:$12 sps:$4 sm:$0xff]   ;;  %v14356_v21 = vld [vmem:[%s19475_s1 + $0x90] ss:$12 sps:$4 sm:$0xff]   ;;  %v14360_v24 = vld [vmem:[%s19475_s1 + $0xa8] ss:$12 sps:$4 sm:$0xff]  }
  0x15   : > { %v14357_v22 = vld [vmem:[%s19475_s1 + $0xac] ss:$12 sps:$4 sm:$0xff]   ;;  %s20201_s26 = smov (!%p326_p3, %s11727_s26), 15  ;;  %v14359_v23 = vld [vmem:[%s19475_s1 + $0xb0] ss:$12 sps:$4 sm:$0xff]   ;;  %vm7247_vm1 = vcmask 1046528  }
  0x16   : > { %v14361_v25 = vld [vmem:[%s19475_s1 + $0xc4] ss:$12 sps:$4 sm:$0xff]   ;;  %s14317_s24 = smul.u32 176, %s20201_s26  ;;  %v14363_v26 = vld [vmem:[%s19475_s1 + $0xc8] ss:$12 sps:$4 sm:$0xff]   ;;  %vm9204_vm2 = vcmask 1040384  }
  0x17   : > { %5313 = vmatpush1.bf16.msra.mxu1 %v14339_v8  ;;  %3126 = vmatpush1.bf16.msra.mxu0 %v14340_v9  ;;  %v14364_v27 = vld [vmem:[%s19475_s1 + $0xc0] ss:$12 sps:$4 sm:$0xff]   ;;  %v14365_v28 = vld [vmem:[%s19475_s1 + $0xdc] ss:$12 sps:$4 sm:$0xff]   ;;  %v14368_v30 = vld [vmem:[%s19475_s1 + $0xd8] ss:$12 sps:$4 sm:$0xff]  }
  0x18   : > { %5314 = vmatprep.subr.bf16.mxu1 %v19484_v1  ;;  %3127 = vmatprep.subr.bf16.mxu0 %v14341_v10  ;;  %v14367_v29 = vld [vmem:[%s19475_s1 + $0xe0] ss:$12 sps:$4 sm:$0xff]   ;;  %s15351_s16 = scalar_lea.vmem %s19474_s0, %s14317_s24  ;;  %v14371_v33 = vld [vmem:[%s19475_s1 + $0xf8] ss:$12 sps:$4 sm:$0xff]   ;;  %v14372_v34 = vld [vmem:[%s19475_s1 + $0xf0] ss:$12 sps:$4 sm:$0xff]  }
  0x19   : > { %v14369_v31 = vld [vmem:[%s19475_s1 + $0xf4] ss:$12 sps:$4 sm:$0xff]   ;;  %v14395_v32 = vld [vmem:[%s15351_s16 + $0x4] ss:$8 sps:$4 sm:$0xff]   ;;  %v14375_v36 = vld [vmem:[%s19475_s1 + $0x110] ss:$12 sps:$4 sm:$0xff]  }
  0x1a   : > { %v14373_v35 = vld [vmem:[%s19475_s1 + $0x10c] ss:$12 sps:$4 sm:$0xff]   ;;  %5340 = vmatprep.mubr.bf16.mxu1 %v14395_v32  ;;  %3153 = vmatprep.mubr.bf16.mxu0 %v14395_v32  ;;  %v14376_v37 = vld [vmem:[%s19475_s1 + $0x108] ss:$12 sps:$4 sm:$0xff]   ;;  %v14377_v38 = vld [vmem:[%s19475_s1 + $0x124] ss:$12 sps:$4 sm:$0xff]  }
  0x1b   : > { %5315 = vmatpush1.bf16.msra.mxu1 %v14343_v11  ;;  %3128 = vmatpush1.bf16.msra.mxu0 %v14344_v12  ;;  %v14379_v39 = vld [vmem:[%s19475_s1 + $0x128] ss:$12 sps:$4 sm:$0xff]   ;;  %v14380_v40 = vld [vmem:[%s19475_s1 + $0x120] ss:$12 sps:$4 sm:$0xff]   ;;  %v14384_v43 = vld [vmem:[%s19475_s1 + $0x138] ss:$12 sps:$4 sm:$0xff]  }
  0x1c   : > { %5316 = vmatprep.subr.bf16.mxu1 %v19484_v1  ;;  %3129 = vmatprep.subr.bf16.mxu0 %v14345_v13  ;;  %v14381_v41 = vld [vmem:[%s19475_s1 + $0x13c] ss:$12 sps:$4 sm:$0xff]   ;;  %v14383_v42 = vld [vmem:[%s19475_s1 + $0x140] ss:$12 sps:$4 sm:$0xff]   ;;  %v14387_v45 = vld [vmem:[%s19475_s1 + $0x158] ss:$12 sps:$4 sm:$0xff]  }
  0x1d   : > { %v14385_v44 = vld [vmem:[%s19475_s1 + $0x154] ss:$12 sps:$4 sm:$0xff]   ;;  %v14388_v46 = vld [vmem:[%s19475_s1 + $0x150] ss:$12 sps:$4 sm:$0xff]   ;;  %v14389_v47 = vld [vmem:[%s19475_s1 + $0x16c] ss:$12 sps:$4 sm:$0xff]  }
  0x1e   : > { %v14391_v48 = vld [vmem:[%s19475_s1 + $0x170] ss:$12 sps:$4 sm:$0xff]   ;;  %v14392_v49 = vld [vmem:[%s19475_s1 + $0x168] ss:$12 sps:$4 sm:$0xff]   ;;  %v14396_v52 = vld [vmem:[%s19475_s1 + $0x180] ss:$12 sps:$4 sm:$0xff]  }
  0x1f   : > { %5317 = vmatpush1.bf16.msra.mxu1 %v14347_v14  ;;  %3130 = vmatpush1.bf16.msra.mxu0 %v14348_v15  ;;  %v14398_v50 = vld [vmem:[%s19475_s1 + $0x184] ss:$12 sps:$4 sm:$0xff]   ;;  %v14393_v51 = vld [vmem:[%s15351_s16] ss:$8 sps:$4 sm:$0xff]   ;;  %v14400_v54 = vld [vmem:[%s15351_s16 + $0x14] ss:$8 sps:$4 sm:$0xff]  }
  0x20   : > { %5318 = vmatprep.subr.bf16.mxu1 %v19484_v1  ;;  %3131 = vmatprep.subr.bf16.mxu0 %v14349_v16  ;;  %v14399_v53 = vld [vmem:[%s19475_s1 + $0x188] ss:$12 sps:$4 sm:$0xff]   ;;  %v14418_v56 = vld [vmem:[%s19475_s1 + $0x1a0] ss:$12 sps:$4 sm:$0xff]   ;;  %v14402_v57 = vld [vmem:[%s15351_s16 + $0x10] ss:$8 sps:$4 sm:$0xff]  }
  0x21   : > { %v14414_v55 = vld [vmem:[%s19475_s1 + $0x19c] ss:$12 sps:$4 sm:$0xff]   ;;  %v14412_v58 = vld [vmem:[%s19475_s1 + $0x198] ss:$12 sps:$4 sm:$0xff]   ;;  %v14433_v59 = vld [vmem:[%s19475_s1 + $0x1b4] ss:$12 sps:$4 sm:$0xff]  }
  0x22   : > { %v14403_v60 = vld [vmem:[%s15351_s16 + $0x24] ss:$8 sps:$4 sm:$0xff]   ;;  %v14431_v61 = vld [vmem:[%s19475_s1 + $0x1b0] ss:$12 sps:$4 sm:$0xff]   ;;  %v14447_v0 = vld [vmem:[%s19475_s1 + $0x1c8] ss:$12 sps:$4 sm:$0xff]  }
  0x23   : > { %5319 = vmatpush1.bf16.msra.mxu1 %v14351_v17  ;;  %3132 = vmatpush1.bf16.msra.mxu0 %v14352_v18  ;;  %v14434_v62 = vld [vmem:[%s19475_s1 + $0x1b8] ss:$12 sps:$4 sm:$0xff]   ;;  %v14405_v2 = vld [vmem:[%s15351_s16 + $0x20] ss:$8 sps:$4 sm:$0xff]   ;;  %v14453_v3 = vld [vmem:[%s19475_s1 + $0x1d0] ss:$12 sps:$4 sm:$0xff]  }
  0x24   : > { %5320 = vmatprep.subr.bf16.mxu1 %v19484_v1  ;;  %3133 = vmatprep.subr.bf16.mxu0 %v14353_v19  ;;  %v14449_v63 = vld [vmem:[%s19475_s1 + $0x1cc] ss:$12 sps:$4 sm:$0xff]   ;;  %v14406_v4 = vld [vmem:[%s15351_s16 + $0x34] ss:$8 sps:$4 sm:$0xff]   ;;  %v14468_v6 = vld [vmem:[%s19475_s1 + $0x1e4] ss:$12 sps:$4 sm:$0xff]  }
  0x25   : > { %v14466_v5 = vld [vmem:[%s19475_s1 + $0x1e0] ss:$12 sps:$4 sm:$0xff]   ;;  %v14469_v7 = vld [vmem:[%s19475_s1 + $0x1e8] ss:$12 sps:$4 sm:$0xff]   ;;  %v14408_v8 = vld [vmem:[%s15351_s16 + $0x30] ss:$8 sps:$4 sm:$0xff]  }
  0x26   : > { %v14409_v9 = vld [vmem:[%s15351_s16 + $0x44] ss:$8 sps:$4 sm:$0xff]   ;;  %v14411_v10 = vld [vmem:[%s15351_s16 + $0x40] ss:$8 sps:$4 sm:$0xff]   ;;  %v14415_v11 = vld [vmem:[%s15351_s16 + $0x54] ss:$8 sps:$4 sm:$0xff]  }
  0x27   : > { %5321 = vmatpush1.bf16.msra.mxu1 %v14355_v20  ;;  %3134 = vmatpush1.bf16.msra.mxu0 %v14356_v21  ;;  %v14417_v12 = vld [vmem:[%s15351_s16 + $0x50] ss:$8 sps:$4 sm:$0xff]   ;;  %v14419_v13 = vld [vmem:[%s15351_s16 + $0x64] ss:$8 sps:$4 sm:$0xff]   ;;  %v14421_v14 = vld [vmem:[%s15351_s16 + $0x60] ss:$8 sps:$4 sm:$0xff]  }
  0x28   : > { %5322 = vmatprep.subr.bf16.mxu1 %v19484_v1  ;;  %3135 = vmatprep.subr.bf16.mxu0 %v14357_v22  ;;  %v14422_v15 = vld [vmem:[%s15351_s16 + $0x74] ss:$8 sps:$4 sm:$0xff]   ;;  %v14482_v16 = vld [vmem:[%s19475_s1 + $0x1f8] ss:$12 sps:$4 sm:$0xff]   ;;  %v14488_v20 = vld [vmem:[%s19475_s1 + $0x200] ss:$12 sps:$4 sm:$0xff]  }
  0x29   : > { %v14484_v17 = vld [vmem:[%s19475_s1 + $0x1fc] ss:$12 sps:$4 sm:$0xff]   ;;  %v14424_v18 = vld [vmem:[%s15351_s16 + $0x70] ss:$8 sps:$4 sm:$0xff]   ;;  %v14425_v19 = vld [vmem:[%s15351_s16 + $0x84] ss:$8 sps:$4 sm:$0xff]  }
  0x2a   : > { %v14427_v21 = vld [vmem:[%s15351_s16 + $0x80] ss:$8 sps:$4 sm:$0xff]   ;;  %v14428_v22 = vld [vmem:[%s15351_s16 + $0xb4] ss:$8 sps:$4 sm:$0xff]   ;;  %vm19562_vm15 = vmmov 1   ;;  %p332_p4 = scmp.lt.s32.totalorder %s15247_s10, 1 }
  0x2b   : > { %5323 = vmatpush1.bf16.msra.mxu1 %v14359_v23  ;;  %3136 = vmatpush1.bf16.msra.mxu0 %v14360_v24  ;;  %v14430_v23 = vld [vmem:[%s15351_s16 + $0xb0] ss:$8 sps:$4 sm:$0xff]   ;;  %v14435_v24 = vld [vmem:[%s15351_s16 + $0xc4] ss:$8 sps:$4 sm:$0xff]   ;;  %v14443_v32 = vld [vmem:[%s15351_s16 + $0xe0] ss:$8 sps:$4 sm:$0xff]  }
  0x2c   : > { %5324 = vmatprep.subr.bf16.mxu1 %v19484_v1  ;;  %3137 = vmatprep.subr.bf16.mxu0 %v14361_v25  ;;  %v14437_v25 = vld [vmem:[%s15351_s16 + $0xc0] ss:$8 sps:$4 sm:$0xff]   ;;  %s20203_s10 = smov (!%p332_p4, %s15247_s10), 1 }
  0x2d   : > { %s11729_s24 = sshll.u32 %s20203_s10, 3 }
  0x2e   : > { %s335_s29 = scalar_lea.vmem %s19483_s9, %s11729_s24 }
  0x2f   : > { %5325 = vmatpush1.bf16.msra.mxu1 %v14363_v26  ;;  %3138 = vmatpush1.bf16.msra.mxu0 %v14364_v27  ;;  %v14438_v26 = vld [vmem:[%s15351_s16 + $0xd4] ss:$8 sps:$4 sm:$0xff]   ;;  %v14440_v27 = vld [vmem:[%s15351_s16 + $0xd0] ss:$8 sps:$4 sm:$0xff]  }
  0x30   : > { %5326 = vmatprep.subr.bf16.mxu1 %v19484_v1  ;;  %3139 = vmatprep.subr.bf16.mxu0 %v14365_v28  ;;  %v14441_v28 = vld [vmem:[%s15351_s16 + $0xe4] ss:$8 sps:$4 sm:$0xff]  }
  0x33   : > { %5327 = vmatpush1.bf16.msra.mxu1 %v14367_v29  ;;  %3140 = vmatpush1.bf16.msra.mxu0 %v14368_v30  ;;  %v14501_v29 = vld [vmem:[%s19475_s1 + $0x210] ss:$12 sps:$4 sm:$0xff]   ;;  %v14503_v30 = vld [vmem:[%s19475_s1 + $0x214] ss:$12 sps:$4 sm:$0xff]  }
  0x34   : > { %5328 = vmatprep.subr.bf16.mxu1 %v19484_v1  ;;  %3141 = vmatprep.subr.bf16.mxu0 %v14369_v31  ;;  %v14504_v31 = vld [vmem:[%s19475_s1 + $0x218] ss:$12 sps:$4 sm:$0xff]  }
  0x37   : > { %5329 = vmatpush1.bf16.msra.mxu1 %v14371_v33  ;;  %3142 = vmatpush1.bf16.msra.mxu0 %v14372_v34  ;;  %v14444_v33 = vld [vmem:[%s15351_s16 + $0xf4] ss:$8 sps:$4 sm:$0xff]   ;;  %v14446_v34 = vld [vmem:[%s15351_s16 + $0xf0] ss:$8 sps:$4 sm:$0xff]  }
  0x38   : > { %5330 = vmatprep.subr.bf16.mxu1 %v19484_v1  ;;  %3143 = vmatprep.subr.bf16.mxu0 %v14373_v35  ;;  %v14450_v35 = vld [vmem:[%s15351_s16 + $0x104] ss:$8 sps:$4 sm:$0xff]  }
  0x3b   : > { %5331 = vmatpush1.bf16.msra.mxu1 %v14375_v36  ;;  %3144 = vmatpush1.bf16.msra.mxu0 %v14376_v37  ;;  %v14452_v36 = vld [vmem:[%s15351_s16 + $0x100] ss:$8 sps:$4 sm:$0xff]   ;;  %v14454_v37 = vld [vmem:[%s15351_s16 + $0x114] ss:$8 sps:$4 sm:$0xff]  }
  0x3c   : > { %5332 = vmatprep.subr.bf16.mxu1 %v19484_v1  ;;  %3145 = vmatprep.subr.bf16.mxu0 %v14377_v38  ;;  %v14456_v38 = vld [vmem:[%s15351_s16 + $0x110] ss:$8 sps:$4 sm:$0xff]  }
  0x3f   : > { %5333 = vmatpush1.bf16.msra.mxu1 %v14379_v39  ;;  %3146 = vmatpush1.bf16.msra.mxu0 %v14380_v40  ;;  %v14457_v39 = vld [vmem:[%s15351_s16 + $0x124] ss:$8 sps:$4 sm:$0xff]   ;;  %v14517_v40 = vld [vmem:[%s19475_s1 + $0x228] ss:$12 sps:$4 sm:$0xff]  }
  0x40   : > { %5334 = vmatprep.subr.bf16.mxu1 %v19484_v1  ;;  %3147 = vmatprep.subr.bf16.mxu0 %v14381_v41  ;;  %v14519_v41 = vld [vmem:[%s19475_s1 + $0x22c] ss:$12 sps:$4 sm:$0xff]  }
  0x43   : > { %5335 = vmatpush1.bf16.msra.mxu1 %v14383_v42  ;;  %3148 = vmatpush1.bf16.msra.mxu0 %v14384_v43  ;;  %v14459_v42 = vld [vmem:[%s15351_s16 + $0x120] ss:$8 sps:$4 sm:$0xff]   ;;  %v14460_v43 = vld [vmem:[%s15351_s16 + $0x134] ss:$8 sps:$4 sm:$0xff]  }
  0x44   : > { %5336 = vmatprep.subr.bf16.mxu1 %v19484_v1  ;;  %3149 = vmatprep.subr.bf16.mxu0 %v14385_v44  ;;  %v14523_v44 = vld [vmem:[%s19475_s1 + $0x230] ss:$12 sps:$4 sm:$0xff]  }
  0x47   : > { %5337 = vmatpush1.bf16.msra.mxu1 %v14387_v45  ;;  %3150 = vmatpush1.bf16.msra.mxu0 %v14388_v46  ;;  %v14462_v45 = vld [vmem:[%s15351_s16 + $0x130] ss:$8 sps:$4 sm:$0xff]   ;;  %v14463_v46 = vld [vmem:[%s15351_s16 + $0x164] ss:$8 sps:$4 sm:$0xff]  }
  0x48   : > { %5338 = vmatprep.subr.bf16.mxu1 %v19484_v1  ;;  %3151 = vmatprep.subr.bf16.mxu0 %v14389_v47  ;;  %v14465_v47 = vld [vmem:[%s15351_s16 + $0x160] ss:$8 sps:$4 sm:$0xff]  }
  0x4b   : > { %5339 = vmatpush1.bf16.msra.mxu1 %v14391_v48  ;;  %3152 = vmatpush1.bf16.msra.mxu0 %v14392_v49  ;;  %v14470_v48 = vld [vmem:[%s15351_s16 + $0x174] ss:$8 sps:$4 sm:$0xff]   ;;  %v14472_v49 = vld [vmem:[%s15351_s16 + $0x170] ss:$8 sps:$4 sm:$0xff]  }
  0x4c   : > { %5909 = vmatprep.subr.bf16.mxu1 %v19484_v1  ;;  %3850 = vmatprep.subr.bf16.mxu0 %v14398_v50  ;;  %v14473_v50 = vld [vmem:[%s15351_s16 + $0x184] ss:$8 sps:$4 sm:$0xff]  }
  0x4e   : > { %5341 = vmatmul.mubr.bf16.vlgmr.msra.gmra.mrb[0].mxu1 %v14393_v51  ;;  %3154 = vmatmul.mubr.bf16.vlgmr.msra.gmra.mrb[0].mxu0 %v14393_v51  ;;  %v14475_v51 = vld [vmem:[%s15351_s16 + $0x180] ss:$8 sps:$4 sm:$0xff]  }
  0x4f   : > { %5910 = vmatpush1.bf16.msra.mxu1 %v14399_v53  ;;  %3851 = vmatpush1.bf16.msra.mxu0 %v14396_v52  ;;  %v14476_v52 = vld [vmem:[%s15351_s16 + $0x194] ss:$8 sps:$4 sm:$0xff]   ;;  %v14536_v53 = vld [vmem:[%s19475_s1 + $0x240] ss:$12 sps:$4 sm:$0xff]  }
  0x50   : > { %5348 = vmatprep.mubr.bf16.mxu1 %v14400_v54  ;;  %3163 = vmatprep.mubr.bf16.mxu0 %v14400_v54  ;;  %v14538_v54 = vld [vmem:[%s19475_s1 + $0x244] ss:$12 sps:$4 sm:$0xff]  }
  0x51   : > { %3852 = vmatprep.subr.bf16.mxu0 %v14414_v55  ;;  %5911 = vmatprep.subr.bf16.mxu1 %v19484_v1  ;;  %v14539_v55 = vld [vmem:[%s19475_s1 + $0x248] ss:$12 sps:$4 sm:$0xff]  }
  0x53   : > { %5912 = vmatpush1.bf16.msra.mxu1 %v14418_v56  ;;  %3853 = vmatpush1.bf16.msra.mxu0 %v14412_v58  ;;  %v14478_v56 = vld [vmem:[%s15351_s16 + $0x190] ss:$8 sps:$4 sm:$0xff]   ;;  %v14481_v58 = vld [vmem:[%s15351_s16 + $0x1a0] ss:$8 sps:$4 sm:$0xff]  }
  0x54   : > { %5913 = vmatprep.subr.bf16.mxu1 %v19484_v1  ;;  %3854 = vmatprep.subr.bf16.mxu0 %v14433_v59  ;;  %v14485_v59 = vld [vmem:[%s15351_s16 + $0x1b4] ss:$8 sps:$4 sm:$0xff]  }
  0x56   : > { %5349 = vmatmul.mubr.bf16.gmra.mrb[4].mxu1 %v14402_v57  ;;  %3164 = vmatmul.mubr.bf16.gmra.mrb[4].mxu0 %v14402_v57  ;;  %v14479_v57 = vld [vmem:[%s15351_s16 + $0x1a4] ss:$8 sps:$4 sm:$0xff]  }
  0x57   : > { %5356 = vmatprep.mubr.bf16.mxu1 %v14403_v60  ;;  %3173 = vmatprep.mubr.bf16.mxu0 %v14403_v60  ;;  %v14487_v60 = vld [vmem:[%s15351_s16 + $0x1b0] ss:$8 sps:$4 sm:$0xff]  }
  0x58   : > { %3855 = vmatpush1.bf16.msra.mxu0 %v14431_v61  ;;  %5914 = vmatpush1.bf16.msra.mxu1 %v14434_v62  ;;  %v14489_v61 = vld [vmem:[%s15351_s16 + $0x1c4] ss:$8 sps:$4 sm:$0xff]   ;;  %v14491_v62 = vld [vmem:[%s15351_s16 + $0x1c0] ss:$8 sps:$4 sm:$0xff]  }
  0x59   : > { %3856 = vmatprep.subr.bf16.mxu0 %v14449_v63  ;;  %5915 = vmatprep.subr.bf16.mxu1 %v19484_v1  ;;  %v14492_v63 = vld [vmem:[%s15351_s16 + $0x1d4] ss:$8 sps:$4 sm:$0xff]  }
  0x5c   : > { %3857 = vmatpush1.bf16.msra.mxu0 %v14447_v0  ;;  %5916 = vmatpush1.bf16.msra.mxu1 %v14453_v3  ;;  %v14552_v0 = vld [vmem:[%s19475_s1 + $0x258] ss:$12 sps:$4 sm:$0xff]  }
  0x5d   : > { %5917 = vmatprep.subr.bf16.mxu1 %v19484_v1  ;;  %3858 = vmatprep.subr.bf16.mxu0 %v14468_v6  ;;  %v14494_v3 = vld [vmem:[%s15351_s16 + $0x1d0] ss:$8 sps:$4 sm:$0xff]   ;;  %v14497_v6 = vld [vmem:[%s15351_s16 + $0x1e0] ss:$8 sps:$4 sm:$0xff]  }
  0x5e   : > { %5357 = vmatmul.mubr.bf16.gmra.mrb[8].mxu1 %v14405_v2  ;;  %3174 = vmatmul.mubr.bf16.gmra.mrb[8].mxu0 %v14405_v2  ;;  %v14554_v2 = vld [vmem:[%s19475_s1 + $0x25c] ss:$12 sps:$4 sm:$0xff]  }
  0x5f   : > { %5364 = vmatprep.mubr.bf16.mxu1 %v14406_v4  ;;  %3183 = vmatprep.mubr.bf16.mxu0 %v14406_v4  ;;  %v14495_v4 = vld [vmem:[%s15351_s16 + $0x1e4] ss:$8 sps:$4 sm:$0xff]  }
  0x60   : > { %5918 = vmatpush1.bf16.msra.mxu1 %v14469_v7  ;;  %3859 = vmatpush1.bf16.msra.mxu0 %v14466_v5  ;;  %v14558_v5 = vld [vmem:[%s19475_s1 + $0x260] ss:$12 sps:$4 sm:$0xff]   ;;  %v14498_v7 = vld [vmem:[%s15351_s16 + $0x214] ss:$8 sps:$4 sm:$0xff]  }
  0x61   : > { %5919 = vmatprep.subr.bf16.mxu1 %v19484_v1  ;;  %3860 = vmatprep.subr.bf16.mxu0 %v14484_v17  ;;  %v14513_v17 = vld [vmem:[%s15351_s16 + $0x240] ss:$8 sps:$4 sm:$0xff]  }
  0x64   : > { %3861 = vmatpush1.bf16.msra.mxu0 %v14482_v16  ;;  %5920 = vmatpush1.bf16.msra.mxu1 %v14488_v20  ;;  %v14574_v16 = vld [vmem:[%s19475_s1 + $0x278] ss:$12 sps:$4 sm:$0xff]  }
  0x65   : > { %5921 = vmatprep.subr.bf16.mxu1 %v19484_v1  ;;  %3862 = vmatprep.subr.bf16.mxu0 %v14503_v30  ;;  %v14520_v20 = vld [vmem:[%s15351_s16 + $0x264] ss:$8 sps:$4 sm:$0xff]   ;;  %v14532_v30 = vld [vmem:[%s15351_s16 + $0x290] ss:$8 sps:$4 sm:$0xff]  }
  0x66   : > { %5365 = vmatmul.mubr.bf16.gmra.mrb[12].mxu1 %v14408_v8  ;;  %3184 = vmatmul.mubr.bf16.gmra.mrb[12].mxu0 %v14408_v8  ;;  %v14500_v8 = vld [vmem:[%s15351_s16 + $0x210] ss:$8 sps:$4 sm:$0xff]  }
  0x67   : > { %5372 = vmatprep.mubr.bf16.mxu1 %v14409_v9  ;;  %3193 = vmatprep.mubr.bf16.mxu0 %v14409_v9  ;;  %v14505_v9 = vld [vmem:[%s15351_s16 + $0x224] ss:$8 sps:$4 sm:$0xff]  }
  0x68   : > { %5922 = vmatpush1.bf16.msra.mxu1 %v14504_v31  ;;  %3863 = vmatpush1.bf16.msra.mxu0 %v14501_v29  ;;  %v14593_v29 = vld [vmem:[%s19475_s1 + $0x290] ss:$12 sps:$4 sm:$0xff]   ;;  %v14533_v31 = vld [vmem:[%s15351_s16 + $0x2c4] ss:$8 sps:$4 sm:$0xff]  }
  0x69   : > { %5923 = vmatprep.subr.bf16.mxu1 %v19484_v1  ;;  %3864 = vmatprep.subr.bf16.mxu0 %v14519_v41  ;;  %v14548_v41 = vld [vmem:[%s15351_s16 + $0x2f0] ss:$8 sps:$4 sm:$0xff]  }
  0x6c   : > { %3865 = vmatpush1.bf16.msra.mxu0 %v14517_v40  ;;  %5924 = vmatpush1.bf16.msra.mxu1 %v14523_v44  ;;  %v14609_v40 = vld [vmem:[%s19475_s1 + $0x2a8] ss:$12 sps:$4 sm:$0xff]  }
  0x6d   : > { %5925 = vmatprep.subr.bf16.mxu1 %v19484_v1  ;;  %3866 = vmatprep.subr.bf16.mxu0 %v14538_v54  ;;  %v14555_v44 = vld [vmem:[%s15351_s16 + $0x314] ss:$8 sps:$4 sm:$0xff]   ;;  %v14567_v54 = vld [vmem:[%s15351_s16 + $0x340] ss:$8 sps:$4 sm:$0xff]  }
  0x6e   : > { %5373 = vmatmul.mubr.bf16.gmra.mrb[16].mxu1 %v14411_v10  ;;  %3194 = vmatmul.mubr.bf16.gmra.mrb[16].mxu0 %v14411_v10  ;;  %v14507_v10 = vld [vmem:[%s15351_s16 + $0x220] ss:$8 sps:$4 sm:$0xff]  }
  0x6f   : > { %5380 = vmatprep.mubr.bf16.mxu1 %v14415_v11  ;;  %3203 = vmatprep.mubr.bf16.mxu0 %v14415_v11  ;;  %v14508_v11 = vld [vmem:[%s15351_s16 + $0x234] ss:$8 sps:$4 sm:$0xff]  }
  0x70   : > { %5926 = vmatpush1.bf16.msra.mxu1 %v14539_v55  ;;  %3867 = vmatpush1.bf16.msra.mxu0 %v14536_v53  ;;  %v14628_v53 = vld [vmem:[%s19475_s1 + $0x2c0] ss:$12 sps:$4 sm:$0xff]   ;;  %v14568_v55 = vld [vmem:[%s15351_s16 + $0x374] ss:$8 sps:$4 sm:$0xff]  }
  0x71   : > { %5927 = vmatprep.subr.bf16.mxu1 %v19484_v1  ;;  %3868 = vmatprep.subr.bf16.mxu0 %v14554_v2  ;;  %v14584_v2 = vld [vmem:[%s15351_s16 + $0x3b4] ss:$8 sps:$4 sm:$0xff]  }
  0x74   : > { %3869 = vmatpush1.bf16.msra.mxu0 %v14552_v0  ;;  %5928 = vmatpush1.bf16.msra.mxu1 %v14558_v5  ;;  %v14583_v0 = vld [vmem:[%s15351_s16 + $0x3a0] ss:$8 sps:$4 sm:$0xff]   ;;  %v14590_v5 = vld [vmem:[%s15351_s16 + $0x3c4] ss:$8 sps:$4 sm:$0xff]  }
  0x75   : > { %5929 = vmatprep.subr.bf16.mxu1 %v19484_v1 }
  0x76   : > { %5381 = vmatmul.mubr.bf16.gmra.mrb[20].mxu1 %v14417_v12  ;;  %3204 = vmatmul.mubr.bf16.gmra.mrb[20].mxu0 %v14417_v12  ;;  %v14510_v12 = vld [vmem:[%s15351_s16 + $0x230] ss:$8 sps:$4 sm:$0xff]  }
  0x77   : > { %5388 = vmatprep.mubr.bf16.mxu1 %v14419_v13  ;;  %3213 = vmatprep.mubr.bf16.mxu0 %v14419_v13  ;;  %v14511_v13 = vld [vmem:[%s15351_s16 + $0x244] ss:$8 sps:$4 sm:$0xff]  }
  0x78   : > { %5930 = vmatpush1.bf16.msra.mxu1 %v14574_v16  ;;  %v14603_v16 = vld [vmem:[%s15351_s16 + $0x424] ss:$8 sps:$4 sm:$0xff]  }
  0x79   : > { %5931 = vmatprep.subr.bf16.mxu1 %v19484_v1 }
  0x7c   : > { %5932 = vmatpush1.bf16.msra.mxu1 %v14593_v29  ;;  %v14629_v29 = vld [vmem:[%s15351_s16 + $0x484] ss:$8 sps:$4 sm:$0xff]  }
  0x7d   : > { %5933 = vmatprep.subr.bf16.mxu1 %v19484_v1 }
  0x7e   : > { %5389 = vmatmul.mubr.bf16.gmra.mrb[24].mxu1 %v14421_v14  ;;  %3214 = vmatmul.mubr.bf16.gmra.mrb[24].mxu0 %v14421_v14  ;;  %v14571_v14 = vld [vmem:[%s19475_s1 + $0x270] ss:$12 sps:$4 sm:$0xff]  }
  0x7f   : > { %5396 = vmatprep.mubr.bf16.mxu1 %v14422_v15  ;;  %3223 = vmatprep.mubr.bf16.mxu0 %v14422_v15  ;;  %v14573_v15 = vld [vmem:[%s19475_s1 + $0x274] ss:$12 sps:$4 sm:$0xff]  }
  0x80   : > { %3870 = vmatprep.subr.bf16.mxu0 %v14573_v15  ;;  %5934 = vmatpush1.bf16.msra.mxu1 %v14609_v40  ;;  %v14602_v15 = vld [vmem:[%s15351_s16 + $0x3f0] ss:$8 sps:$4 sm:$0xff]  }
  0x81   : > { %3871 = vmatpush1.bf16.msra.mxu0 %v14571_v14  ;;  %5935 = vmatprep.subr.bf16.mxu1 %v19484_v1  ;;  %v14663_v14 = vld [vmem:[%s19475_s1 + $0x2f0] ss:$12 sps:$4 sm:$0xff]  }
  0x84   : > { %5936 = vmatpush1.bf16.msra.mxu1 %v14628_v53 }
  0x85   : > { %5937 = vmatprep.subr.bf16.mxu1 %v19484_v1 }
  0x86   : > { %5397 = vmatmul.mubr.bf16.gmra.mrb[28].mxu1 %v14424_v18  ;;  %3224 = vmatmul.mubr.bf16.gmra.mrb[28].mxu0 %v14424_v18  ;;  %v14514_v18 = vld [vmem:[%s15351_s16 + $0x254] ss:$8 sps:$4 sm:$0xff]  }
  0x87   : > { %5404 = vmatprep.mubr.bf16.mxu1 %v14425_v19  ;;  %3233 = vmatprep.mubr.bf16.mxu0 %v14425_v19  ;;  %v14516_v19 = vld [vmem:[%s15351_s16 + $0x250] ss:$8 sps:$4 sm:$0xff]  }
  0x8e   : > { %5405 = vmatmul.mubr.bf16.gmra.mrb[32].mxu1 %v14427_v21  ;;  %3234 = vmatmul.mubr.bf16.gmra.mrb[32].mxu0 %v14427_v21  ;;  %v14522_v21 = vld [vmem:[%s15351_s16 + $0x260] ss:$8 sps:$4 sm:$0xff]  }
  0x8f   : > { %5411 = vmatprep.mubr.bf16.mxu1 %v14428_v22  ;;  %3240 = vmatprep.mubr.bf16.mxu0 %v14428_v22  ;;  %v14524_v22 = vld [vmem:[%s15351_s16 + $0x274] ss:$8 sps:$4 sm:$0xff]  }
  0x96   : > { %5412 = vmatmul.mubr.bf16.gmra.mrb[36].mxu1 %v14430_v23  ;;  %3241 = vmatmul.mubr.bf16.gmra.mrb[36].mxu0 %v14430_v23  ;;  %v14526_v23 = vld [vmem:[%s15351_s16 + $0x270] ss:$8 sps:$4 sm:$0xff]  }
  0x97   : > { %5419 = vmatprep.mubr.bf16.mxu1 %v14435_v24  ;;  %3250 = vmatprep.mubr.bf16.mxu0 %v14435_v24  ;;  %v14527_v24 = vld [vmem:[%s15351_s16 + $0x284] ss:$8 sps:$4 sm:$0xff]  }
  0x9e   : > { %5420 = vmatmul.mubr.bf16.gmra.mrb[40].mxu1 %v14437_v25  ;;  %3251 = vmatmul.mubr.bf16.gmra.mrb[40].mxu0 %v14437_v25  ;;  %v14587_v25 = vld [vmem:[%s19475_s1 + $0x288] ss:$12 sps:$4 sm:$0xff]  }
  0x9f   : > { %5427 = vmatprep.mubr.bf16.mxu1 %v14438_v26  ;;  %3260 = vmatprep.mubr.bf16.mxu0 %v14438_v26  ;;  %v14589_v26 = vld [vmem:[%s19475_s1 + $0x28c] ss:$12 sps:$4 sm:$0xff]  }
  0xa0   : > { %3872 = vmatprep.subr.bf16.mxu0 %v14589_v26  ;;  %v14621_v26 = vld [vmem:[%s15351_s16 + $0x460] ss:$8 sps:$4 sm:$0xff]  }
  0xa1   : > { %3873 = vmatpush1.bf16.msra.mxu0 %v14587_v25  ;;  %v14619_v25 = vld [vmem:[%s15351_s16 + $0x464] ss:$8 sps:$4 sm:$0xff]  }
  0xa6   : > { %5428 = vmatmul.mubr.bf16.gmra.mrb[44].mxu1 %v14440_v27  ;;  %3261 = vmatmul.mubr.bf16.gmra.mrb[44].mxu0 %v14440_v27  ;;  %v14529_v27 = vld [vmem:[%s15351_s16 + $0x280] ss:$8 sps:$4 sm:$0xff]  }
  0xa7   : > { %5435 = vmatprep.mubr.bf16.mxu1 %v14441_v28  ;;  %3270 = vmatprep.mubr.bf16.mxu0 %v14441_v28  ;;  %v14530_v28 = vld [vmem:[%s15351_s16 + $0x294] ss:$8 sps:$4 sm:$0xff]  }
  0xae   : > { %5436 = vmatmul.mubr.bf16.gmra.mrb[48].mxu1 %v14443_v32  ;;  %3271 = vmatmul.mubr.bf16.gmra.mrb[48].mxu0 %v14443_v32  ;;  %v14535_v32 = vld [vmem:[%s15351_s16 + $0x2c0] ss:$8 sps:$4 sm:$0xff]  }
  0xaf   : > { %5443 = vmatprep.mubr.bf16.mxu1 %v14444_v33  ;;  %3280 = vmatprep.mubr.bf16.mxu0 %v14444_v33  ;;  %v14540_v33 = vld [vmem:[%s15351_s16 + $0x2d4] ss:$8 sps:$4 sm:$0xff]  }
  0xb6   : > { %5444 = vmatmul.mubr.bf16.gmra.mrb[52].mxu1 %v14446_v34  ;;  %3281 = vmatmul.mubr.bf16.gmra.mrb[52].mxu0 %v14446_v34  ;;  %v14542_v34 = vld [vmem:[%s15351_s16 + $0x2d0] ss:$8 sps:$4 sm:$0xff]  }
  0xb7   : > { %5451 = vmatprep.mubr.bf16.mxu1 %v14450_v35  ;;  %3290 = vmatprep.mubr.bf16.mxu0 %v14450_v35  ;;  %v14543_v35 = vld [vmem:[%s15351_s16 + $0x2e4] ss:$8 sps:$4 sm:$0xff]  }
  0xbe   : > { %5452 = vmatmul.mubr.bf16.gmra.mrb[56].mxu1 %v14452_v36  ;;  %3291 = vmatmul.mubr.bf16.gmra.mrb[56].mxu0 %v14452_v36  ;;  %v14545_v36 = vld [vmem:[%s15351_s16 + $0x2e0] ss:$8 sps:$4 sm:$0xff]  }
  0xbf   : > { %5459 = vmatprep.mubr.bf16.mxu1 %v14454_v37  ;;  %3300 = vmatprep.mubr.bf16.mxu0 %v14454_v37  ;;  %v14546_v37 = vld [vmem:[%s15351_s16 + $0x2f4] ss:$8 sps:$4 sm:$0xff]  }
  0xc6   : > { %5460 = vmatmul.mubr.bf16.gmra.mrb[60].mxu1 %v14456_v38  ;;  %3301 = vmatmul.mubr.bf16.gmra.mrb[60].mxu0 %v14456_v38  ;;  %v14606_v38 = vld [vmem:[%s19475_s1 + $0x2a0] ss:$12 sps:$4 sm:$0xff]  }
  0xc7   : > { %5467 = vmatprep.mubr.bf16.mxu1 %v14457_v39  ;;  %3310 = vmatprep.mubr.bf16.mxu0 %v14457_v39  ;;  %v14608_v39 = vld [vmem:[%s19475_s1 + $0x2a4] ss:$12 sps:$4 sm:$0xff]  }
  0xc8   : > { %3874 = vmatprep.subr.bf16.mxu0 %v14608_v39 }
  0xc9   : > { %3875 = vmatpush1.bf16.msra.mxu0 %v14606_v38 }
  0xce   : > { %5468 = vmatmul.mubr.bf16.gmra.mrb[64].mxu1 %v14459_v42  ;;  %3311 = vmatmul.mubr.bf16.gmra.mrb[64].mxu0 %v14459_v42  ;;  %v14549_v42 = vld [vmem:[%s15351_s16 + $0x304] ss:$8 sps:$4 sm:$0xff]  }
  0xcf   : > { %5475 = vmatprep.mubr.bf16.mxu1 %v14460_v43  ;;  %3320 = vmatprep.mubr.bf16.mxu0 %v14460_v43  ;;  %v14551_v43 = vld [vmem:[%s15351_s16 + $0x300] ss:$8 sps:$4 sm:$0xff]  }
  0xd6   : > { %5476 = vmatmul.mubr.bf16.gmra.mrb[68].mxu1 %v14462_v45  ;;  %3321 = vmatmul.mubr.bf16.gmra.mrb[68].mxu0 %v14462_v45  ;;  %v14557_v45 = vld [vmem:[%s15351_s16 + $0x310] ss:$8 sps:$4 sm:$0xff]  }
  0xd7   : > { %5482 = vmatprep.mubr.bf16.mxu1 %v14463_v46  ;;  %3327 = vmatprep.mubr.bf16.mxu0 %v14463_v46  ;;  %v14559_v46 = vld [vmem:[%s15351_s16 + $0x324] ss:$8 sps:$4 sm:$0xff]  }
  0xde   : > { %5483 = vmatmul.mubr.bf16.gmra.mrb[72].mxu1 %v14465_v47  ;;  %3328 = vmatmul.mubr.bf16.gmra.mrb[72].mxu0 %v14465_v47  ;;  %v14561_v47 = vld [vmem:[%s15351_s16 + $0x320] ss:$8 sps:$4 sm:$0xff]  }
  0xdf   : > { %5490 = vmatprep.mubr.bf16.mxu1 %v14470_v48  ;;  %3337 = vmatprep.mubr.bf16.mxu0 %v14470_v48  ;;  %v14562_v48 = vld [vmem:[%s15351_s16 + $0x334] ss:$8 sps:$4 sm:$0xff]  }
  0xe6   : > { %5491 = vmatmul.mubr.bf16.gmra.mrb[76].mxu1 %v14472_v49  ;;  %3338 = vmatmul.mubr.bf16.gmra.mrb[76].mxu0 %v14472_v49  ;;  %v14622_v49 = vld [vmem:[%s19475_s1 + $0x2b8] ss:$12 sps:$4 sm:$0xff]  }
  0xe7   : > { %5498 = vmatprep.mubr.bf16.mxu1 %v14473_v50  ;;  %3347 = vmatprep.mubr.bf16.mxu0 %v14473_v50  ;;  %v14624_v50 = vld [vmem:[%s19475_s1 + $0x2bc] ss:$12 sps:$4 sm:$0xff]  }
  0xe8   : > { %3876 = vmatprep.subr.bf16.mxu0 %v14624_v50 }
  0xe9   : > { %3877 = vmatpush1.bf16.msra.mxu0 %v14622_v49 }
  0xee   : > { %5499 = vmatmul.mubr.bf16.gmra.mrb[80].mxu1 %v14475_v51  ;;  %3348 = vmatmul.mubr.bf16.gmra.mrb[80].mxu0 %v14475_v51  ;;  %v14564_v51 = vld [vmem:[%s15351_s16 + $0x330] ss:$8 sps:$4 sm:$0xff]  }
  0xef   : > { %5506 = vmatprep.mubr.bf16.mxu1 %v14476_v52  ;;  %3357 = vmatprep.mubr.bf16.mxu0 %v14476_v52  ;;  %v14565_v52 = vld [vmem:[%s15351_s16 + $0x344] ss:$8 sps:$4 sm:$0xff]  }
  0xf6   : > { %5507 = vmatmul.mubr.bf16.gmra.mrb[84].mxu1 %v14478_v56  ;;  %3358 = vmatmul.mubr.bf16.gmra.mrb[84].mxu0 %v14478_v56  ;;  %v14570_v56 = vld [vmem:[%s15351_s16 + $0x370] ss:$8 sps:$4 sm:$0xff]  }
  0xf7   : > { %5514 = vmatprep.mubr.bf16.mxu1 %v14479_v57  ;;  %3367 = vmatprep.mubr.bf16.mxu0 %v14479_v57  ;;  %v14575_v57 = vld [vmem:[%s15351_s16 + $0x384] ss:$8 sps:$4 sm:$0xff]  }
  0xfe   : > { %5515 = vmatmul.mubr.bf16.gmra.mrb[88].mxu1 %v14481_v58  ;;  %3368 = vmatmul.mubr.bf16.gmra.mrb[88].mxu0 %v14481_v58  ;;  %v14577_v58 = vld [vmem:[%s15351_s16 + $0x380] ss:$8 sps:$4 sm:$0xff]  }
  0xff   : > { %5522 = vmatprep.mubr.bf16.mxu1 %v14485_v59  ;;  %3377 = vmatprep.mubr.bf16.mxu0 %v14485_v59  ;;  %v14578_v59 = vld [vmem:[%s15351_s16 + $0x394] ss:$8 sps:$4 sm:$0xff]  }
 0x106   : > { %5523 = vmatmul.mubr.bf16.gmra.mrb[92].mxu1 %v14487_v60  ;;  %3378 = vmatmul.mubr.bf16.gmra.mrb[92].mxu0 %v14487_v60  ;;  %v14580_v60 = vld [vmem:[%s15351_s16 + $0x390] ss:$8 sps:$4 sm:$0xff]  }
 0x107   : > { %5530 = vmatprep.mubr.bf16.mxu1 %v14489_v61  ;;  %3387 = vmatprep.mubr.bf16.mxu0 %v14489_v61  ;;  %v14581_v61 = vld [vmem:[%s15351_s16 + $0x3a4] ss:$8 sps:$4 sm:$0xff]  }
 0x10e   : > { %5531 = vmatmul.mubr.bf16.gmra.mrb[96].mxu1 %v14491_v62  ;;  %3388 = vmatmul.mubr.bf16.gmra.mrb[96].mxu0 %v14491_v62  ;;  %v14641_v62 = vld [vmem:[%s19475_s1 + $0x2d0] ss:$12 sps:$4 sm:$0xff]  }
 0x10f   : > { %5538 = vmatprep.mubr.bf16.mxu1 %v14492_v63  ;;  %3397 = vmatprep.mubr.bf16.mxu0 %v14492_v63  ;;  %v14643_v63 = vld [vmem:[%s19475_s1 + $0x2d4] ss:$12 sps:$4 sm:$0xff]  }
 0x110   : > { %3878 = vmatprep.subr.bf16.mxu0 %v14643_v63 }
 0x111   : > { %3879 = vmatpush1.bf16.msra.mxu0 %v14641_v62 }
 0x116   : > { %5539 = vmatmul.mubr.bf16.gmra.mrb[100].mxu1 %v14494_v3  ;;  %3398 = vmatmul.mubr.bf16.gmra.mrb[100].mxu0 %v14494_v3  ;;  %v14644_v3 = vld [vmem:[%s19475_s1 + $0x2d8] ss:$12 sps:$4 sm:$0xff]  }
 0x117   : > { %5546 = vmatprep.mubr.bf16.mxu1 %v14495_v4  ;;  %3407 = vmatprep.mubr.bf16.mxu0 %v14495_v4  ;;  %v14586_v4 = vld [vmem:[%s15351_s16 + $0x3b0] ss:$8 sps:$4 sm:$0xff]  }
 0x118   : > { %5938 = vmatpush1.bf16.msra.mxu1 %v14644_v3 }
 0x119   : > { %5939 = vmatprep.subr.bf16.mxu1 %v19484_v1 }
 0x11c   : > { %5940 = vmatpush1.bf16.msra.mxu1 %v14663_v14 }
 0x11d   : > { %6510 = vmatprep.subr.bf16.mxu1 %v19484_v1 }
 0x11e   : > { %5547 = vmatmul.mubr.bf16.gmra.mrb[104].mxu1 %v14497_v6  ;;  %3408 = vmatmul.mubr.bf16.gmra.mrb[104].mxu0 %v14497_v6  ;;  %v14592_v6 = vld [vmem:[%s15351_s16 + $0x3c0] ss:$8 sps:$4 sm:$0xff]  }
 0x11f   : > { %5553 = vmatprep.mubr.bf16.mxu1 %v14498_v7  ;;  %3414 = vmatprep.mubr.bf16.mxu0 %v14498_v7  ;;  %v14594_v7 = vld [vmem:[%s15351_s16 + $0x3d4] ss:$8 sps:$4 sm:$0xff]  }
 0x126   : > { %5554 = vmatmul.mubr.bf16.gmra.mrb[108].mxu1 %v14500_v8  ;;  %3415 = vmatmul.mubr.bf16.gmra.mrb[108].mxu0 %v14500_v8  ;;  %v14596_v8 = vld [vmem:[%s15351_s16 + $0x3d0] ss:$8 sps:$4 sm:$0xff]  }
 0x127   : > { %5561 = vmatprep.mubr.bf16.mxu1 %v14505_v9  ;;  %3424 = vmatprep.mubr.bf16.mxu0 %v14505_v9  ;;  %v14597_v9 = vld [vmem:[%s15351_s16 + $0x3e4] ss:$8 sps:$4 sm:$0xff]  }
 0x12e   : > { %5562 = vmatmul.mubr.bf16.gmra.mrb[112].mxu1 %v14507_v10  ;;  %3425 = vmatmul.mubr.bf16.gmra.mrb[112].mxu0 %v14507_v10  ;;  %v14599_v10 = vld [vmem:[%s15351_s16 + $0x3e0] ss:$8 sps:$4 sm:$0xff]  }
 0x12f   : > { %5569 = vmatprep.mubr.bf16.mxu1 %v14508_v11  ;;  %3434 = vmatprep.mubr.bf16.mxu0 %v14508_v11  ;;  %v14600_v11 = vld [vmem:[%s15351_s16 + $0x3f4] ss:$8 sps:$4 sm:$0xff]  }
 0x136   : > { %5570 = vmatmul.mubr.bf16.gmra.mrb[116].mxu1 %v14510_v12  ;;  %3435 = vmatmul.mubr.bf16.gmra.mrb[116].mxu0 %v14510_v12  ;;  %v14657_v12 = vld [vmem:[%s19475_s1 + $0x2e8] ss:$12 sps:$4 sm:$0xff]  }
 0x137   : > { %5577 = vmatprep.mubr.bf16.mxu1 %v14511_v13  ;;  %3444 = vmatprep.mubr.bf16.mxu0 %v14511_v13  ;;  %v14659_v13 = vld [vmem:[%s19475_s1 + $0x2ec] ss:$12 sps:$4 sm:$0xff]  }
 0x138   : > { %3880 = vmatprep.subr.bf16.mxu0 %v14659_v13 }
 0x139   : > { %3881 = vmatpush1.bf16.msra.mxu0 %v14657_v12 }
 0x13e   : > { %5578 = vmatmul.mubr.bf16.gmra.mrb[120].mxu1 %v14513_v17  ;;  %3445 = vmatmul.mubr.bf16.gmra.mrb[120].mxu0 %v14513_v17  ;;  %v14605_v17 = vld [vmem:[%s15351_s16 + $0x420] ss:$8 sps:$4 sm:$0xff]  }
 0x13f   : > { %5585 = vmatprep.mubr.bf16.mxu1 %v14514_v18  ;;  %3454 = vmatprep.mubr.bf16.mxu0 %v14514_v18  ;;  %v14610_v18 = vld [vmem:[%s15351_s16 + $0x434] ss:$8 sps:$4 sm:$0xff]  }
 0x146   : > { %5586 = vmatmul.mubr.bf16.gmra.mrb[124].mxu1 %v14516_v19  ;;  %3455 = vmatmul.mubr.bf16.gmra.mrb[124].mxu0 %v14516_v19  ;;  %v14612_v19 = vld [vmem:[%s15351_s16 + $0x430] ss:$8 sps:$4 sm:$0xff]  }
 0x147   : > { %5593 = vmatprep.mubr.bf16.mxu1 %v14520_v20  ;;  %3464 = vmatprep.mubr.bf16.mxu0 %v14520_v20  ;;  %v14613_v20 = vld [vmem:[%s15351_s16 + $0x444] ss:$8 sps:$4 sm:$0xff]  }
 0x14e   : > { %5594 = vmatmul.mubr.bf16.gmra.mrb[128].mxu1 %v14522_v21  ;;  %3465 = vmatmul.mubr.bf16.gmra.mrb[128].mxu0 %v14522_v21  ;;  %v14615_v21 = vld [vmem:[%s15351_s16 + $0x440] ss:$8 sps:$4 sm:$0xff]  }
 0x14f   : > { %5601 = vmatprep.mubr.bf16.mxu1 %v14524_v22  ;;  %3474 = vmatprep.mubr.bf16.mxu0 %v14524_v22  ;;  %v14616_v22 = vld [vmem:[%s15351_s16 + $0x454] ss:$8 sps:$4 sm:$0xff]  }
 0x156   : > { %5602 = vmatmul.mubr.bf16.gmra.mrb[132].mxu1 %v14526_v23  ;;  %3475 = vmatmul.mubr.bf16.gmra.mrb[132].mxu0 %v14526_v23  ;;  %v14675_v23 = vld [vmem:[%s19475_s1 + $0x304] ss:$12 sps:$4 sm:$0xff]  }
 0x157   : > { %5609 = vmatprep.mubr.bf16.mxu1 %v14527_v24  ;;  %3484 = vmatprep.mubr.bf16.mxu0 %v14527_v24  ;;  %v14618_v24 = vld [vmem:[%s15351_s16 + $0x450] ss:$8 sps:$4 sm:$0xff]  }
 0x158   : > { %4579 = vmatprep.subr.bf16.mxu0 %v14675_v23 }
 0x15e   : > { %5610 = vmatmul.mubr.bf16.gmra.mrb[136].mxu1 %v14529_v27  ;;  %3485 = vmatmul.mubr.bf16.gmra.mrb[136].mxu0 %v14529_v27  ;;  %v14625_v27 = vld [vmem:[%s15351_s16 + $0x474] ss:$8 sps:$4 sm:$0xff]  }
 0x15f   : > { %5617 = vmatprep.mubr.bf16.mxu1 %v14530_v28  ;;  %3494 = vmatprep.mubr.bf16.mxu0 %v14530_v28  ;;  %v14627_v28 = vld [vmem:[%s15351_s16 + $0x470] ss:$8 sps:$4 sm:$0xff]  }
 0x166   : > { %5618 = vmatmul.mubr.bf16.gmra.mrb[140].mxu1 %v14532_v30  ;;  %3495 = vmatmul.mubr.bf16.gmra.mrb[140].mxu0 %v14532_v30  ;;  %v14631_v30 = vld [vmem:[%s15351_s16 + $0x480] ss:$8 sps:$4 sm:$0xff]  }
 0x167   : > { %5624 = vmatprep.mubr.bf16.mxu1 %v14533_v31  ;;  %3501 = vmatprep.mubr.bf16.mxu0 %v14533_v31  ;;  %v14632_v31 = vld [vmem:[%s15351_s16 + $0x494] ss:$8 sps:$4 sm:$0xff]  }
 0x16e   : > { %5625 = vmatmul.mubr.bf16.gmra.mrb[144].mxu1 %v14535_v32  ;;  %3502 = vmatmul.mubr.bf16.gmra.mrb[144].mxu0 %v14535_v32  ;;  %v14634_v32 = vld [vmem:[%s15351_s16 + $0x490] ss:$8 sps:$4 sm:$0xff]  }
 0x16f   : > { %5632 = vmatprep.mubr.bf16.mxu1 %v14540_v33  ;;  %3511 = vmatprep.mubr.bf16.mxu0 %v14540_v33  ;;  %v14635_v33 = vld [vmem:[%s15351_s16 + $0x4a4] ss:$8 sps:$4 sm:$0xff]  }
 0x176   : > { %5633 = vmatmul.mubr.bf16.gmra.mrb[148].mxu1 %v14542_v34  ;;  %3512 = vmatmul.mubr.bf16.gmra.mrb[148].mxu0 %v14542_v34  ;;  %v14637_v34 = vld [vmem:[%s15351_s16 + $0x4a0] ss:$8 sps:$4 sm:$0xff]  }
 0x177   : > { %5640 = vmatprep.mubr.bf16.mxu1 %v14543_v35  ;;  %3521 = vmatprep.mubr.bf16.mxu0 %v14543_v35  ;;  %v14638_v35 = vld [vmem:[%s15351_s16 + $0x4d4] ss:$8 sps:$4 sm:$0xff]  }
 0x17e   : > { %5641 = vmatmul.mubr.bf16.gmra.mrb[152].mxu1 %v14545_v36  ;;  %3522 = vmatmul.mubr.bf16.gmra.mrb[152].mxu0 %v14545_v36  ;;  %v14640_v36 = vld [vmem:[%s15351_s16 + $0x4d0] ss:$8 sps:$4 sm:$0xff]  }
 0x17f   : > { %5648 = vmatprep.mubr.bf16.mxu1 %v14546_v37  ;;  %3531 = vmatprep.mubr.bf16.mxu0 %v14546_v37  ;;  %v14647_v37 = vld [vmem:[%s15351_s16 + $0x4e4] ss:$8 sps:$4 sm:$0xff]  }
 0x186   : > { %5649 = vmatmul.mubr.bf16.gmra.mrb[156].mxu1 %v14548_v41  ;;  %3532 = vmatmul.mubr.bf16.gmra.mrb[156].mxu0 %v14548_v41  ;;  %v14645_v41 = vld [vmem:[%s15351_s16 + $0x4e0] ss:$8 sps:$4 sm:$0xff]  }
 0x187   : > { %5656 = vmatprep.mubr.bf16.mxu1 %v14549_v42  ;;  %3541 = vmatprep.mubr.bf16.mxu0 %v14549_v42 }
 0x18e   : > { %5657 = vmatmul.mubr.bf16.gmra.mrb[160].mxu1 %v14551_v43  ;;  %3542 = vmatmul.mubr.bf16.gmra.mrb[160].mxu0 %v14551_v43 }
 0x18f   : > { %5664 = vmatprep.mubr.bf16.mxu1 %v14555_v44  ;;  %3551 = vmatprep.mubr.bf16.mxu0 %v14555_v44  ;;  %v14650_v44 = vld [vmem:[%s15351_s16 + $0x4f4] ss:$8 sps:$4 sm:$0xff]  }
 0x196   : > { %5665 = vmatmul.mubr.bf16.gmra.mrb[164].mxu1 %v14557_v45  ;;  %3552 = vmatmul.mubr.bf16.gmra.mrb[164].mxu0 %v14557_v45 }
 0x197   : > { %5672 = vmatprep.mubr.bf16.mxu1 %v14559_v46  ;;  %3561 = vmatprep.mubr.bf16.mxu0 %v14559_v46 }
 0x19e   : > { %5673 = vmatmul.mubr.bf16.gmra.mrb[168].mxu1 %v14561_v47  ;;  %3562 = vmatmul.mubr.bf16.gmra.mrb[168].mxu0 %v14561_v47 }
 0x19f   : > { %5680 = vmatprep.mubr.bf16.mxu1 %v14562_v48  ;;  %3571 = vmatprep.mubr.bf16.mxu0 %v14562_v48 }
 0x1a6   : > { %5681 = vmatmul.mubr.bf16.gmra.mrb[172].mxu1 %v14564_v51  ;;  %3572 = vmatmul.mubr.bf16.gmra.mrb[172].mxu0 %v14564_v51  ;;  %v14648_v51 = vld [vmem:[%s15351_s16 + $0x4f0] ss:$8 sps:$4 sm:$0xff]  }
 0x1a7   : > { %5688 = vmatprep.mubr.bf16.mxu1 %v14565_v52  ;;  %3581 = vmatprep.mubr.bf16.mxu0 %v14565_v52 }
 0x1ae   : > { %5689 = vmatmul.mubr.bf16.gmra.mrb[176].mxu1 %v14567_v54  ;;  %3582 = vmatmul.mubr.bf16.gmra.mrb[176].mxu0 %v14567_v54  ;;  %v14653_v54 = vld [vmem:[%s15351_s16 + $0x504] ss:$8 sps:$4 sm:$0xff]  }
 0x1af   : > { %5695 = vmatprep.mubr.bf16.mxu1 %v14568_v55  ;;  %3588 = vmatprep.mubr.bf16.mxu0 %v14568_v55 }
 0x1b6   : > { %5696 = vmatmul.mubr.bf16.gmra.mrb[180].mxu1 %v14570_v56  ;;  %3589 = vmatmul.mubr.bf16.gmra.mrb[180].mxu0 %v14570_v56 }
 0x1b7   : > { %5703 = vmatprep.mubr.bf16.mxu1 %v14575_v57  ;;  %3598 = vmatprep.mubr.bf16.mxu0 %v14575_v57 }
 0x1be   : > { %5704 = vmatmul.mubr.bf16.gmra.mrb[184].mxu1 %v14577_v58  ;;  %3599 = vmatmul.mubr.bf16.gmra.mrb[184].mxu0 %v14577_v58 }
 0x1bf   : > { %5711 = vmatprep.mubr.bf16.mxu1 %v14578_v59  ;;  %3608 = vmatprep.mubr.bf16.mxu0 %v14578_v59 }
 0x1c6   : > { %5712 = vmatmul.mubr.bf16.gmra.mrb[188].mxu1 %v14580_v60  ;;  %3609 = vmatmul.mubr.bf16.gmra.mrb[188].mxu0 %v14580_v60 }
 0x1c7   : > { %5719 = vmatprep.mubr.bf16.mxu1 %v14581_v61  ;;  %3618 = vmatprep.mubr.bf16.mxu0 %v14581_v61  ;;  %v14651_v61 = vld [vmem:[%s15351_s16 + $0x500] ss:$8 sps:$4 sm:$0xff]  }
 0x1ce   : > { %5720 = vmatmul.mubr.bf16.gmra.mrb[192].mxu1 %v14583_v0  ;;  %3619 = vmatmul.mubr.bf16.gmra.mrb[192].mxu0 %v14583_v0  ;;  %v14656_v0 = vld [vmem:[%s15351_s16 + $0x514] ss:$8 sps:$4 sm:$0xff]  }
 0x1cf   : > { %5727 = vmatprep.mubr.bf16.mxu1 %v14584_v2  ;;  %3628 = vmatprep.mubr.bf16.mxu0 %v14584_v2 }
 0x1d6   : > { %5728 = vmatmul.mubr.bf16.gmra.mrb[196].mxu1 %v14586_v4  ;;  %3629 = vmatmul.mubr.bf16.gmra.mrb[196].mxu0 %v14586_v4 }
 0x1d7   : > { %5735 = vmatprep.mubr.bf16.mxu1 %v14590_v5  ;;  %3638 = vmatprep.mubr.bf16.mxu0 %v14590_v5 }
 0x1de   : > { %5736 = vmatmul.mubr.bf16.gmra.mrb[200].mxu1 %v14592_v6  ;;  %3639 = vmatmul.mubr.bf16.gmra.mrb[200].mxu0 %v14592_v6 }
 0x1df   : > { %5743 = vmatprep.mubr.bf16.mxu1 %v14594_v7  ;;  %3648 = vmatprep.mubr.bf16.mxu0 %v14594_v7 }
 0x1e6   : > { %5744 = vmatmul.mubr.bf16.gmra.mrb[204].mxu1 %v14596_v8  ;;  %3649 = vmatmul.mubr.bf16.gmra.mrb[204].mxu0 %v14596_v8  ;;  %v14654_v8 = vld [vmem:[%s15351_s16 + $0x510] ss:$8 sps:$4 sm:$0xff]  }
 0x1e7   : > { %5751 = vmatprep.mubr.bf16.mxu1 %v14597_v9  ;;  %3658 = vmatprep.mubr.bf16.mxu0 %v14597_v9 }
 0x1ee   : > { %5752 = vmatmul.mubr.bf16.gmra.mrb[208].mxu1 %v14599_v10  ;;  %3659 = vmatmul.mubr.bf16.gmra.mrb[208].mxu0 %v14599_v10 }
 0x1ef   : > { %5759 = vmatprep.mubr.bf16.mxu1 %v14600_v11  ;;  %3668 = vmatprep.mubr.bf16.mxu0 %v14600_v11  ;;  %v14662_v11 = vld [vmem:[%s15351_s16 + $0x524] ss:$8 sps:$4 sm:$0xff]  }
 0x1f6   : > { %5760 = vmatmul.mubr.bf16.gmra.mrb[212].mxu1 %v14602_v15  ;;  %3669 = vmatmul.mubr.bf16.gmra.mrb[212].mxu0 %v14602_v15 }
 0x1f7   : > { %5766 = vmatprep.mubr.bf16.mxu1 %v14603_v16  ;;  %3675 = vmatprep.mubr.bf16.mxu0 %v14603_v16 }
 0x1fe   : > { %5767 = vmatmul.mubr.bf16.gmra.mrb[216].mxu1 %v14605_v17  ;;  %3676 = vmatmul.mubr.bf16.gmra.mrb[216].mxu0 %v14605_v17 }
 0x1ff   : > { %5774 = vmatprep.mubr.bf16.mxu1 %v14610_v18  ;;  %3685 = vmatprep.mubr.bf16.mxu0 %v14610_v18  ;;  %v15771_v18 = vld [vmem:[%s15351_s16 + $0x520] ss:$8 sps:$4 sm:$0xff]  }
 0x206   : > { %5775 = vmatmul.mubr.bf16.gmra.mrb[220].mxu1 %v14612_v19  ;;  %3686 = vmatmul.mubr.bf16.gmra.mrb[220].mxu0 %v14612_v19 }
 0x207   : > { %5782 = vmatprep.mubr.bf16.mxu1 %v14613_v20  ;;  %3695 = vmatprep.mubr.bf16.mxu0 %v14613_v20 }
 0x20e   : > { %5783 = vmatmul.mubr.bf16.gmra.mrb[224].mxu1 %v14615_v21  ;;  %3696 = vmatmul.mubr.bf16.gmra.mrb[224].mxu0 %v14615_v21  ;;  %v15778_v21 = vld [vmem:[%s15351_s16 + $0x534] ss:$8 sps:$4 sm:$0xff]  }
 0x20f   : > { %5790 = vmatprep.mubr.bf16.mxu1 %v14616_v22  ;;  %3705 = vmatprep.mubr.bf16.mxu0 %v14616_v22 }
 0x216   : > { %5791 = vmatmul.mubr.bf16.gmra.mrb[228].mxu1 %v14618_v24  ;;  %3706 = vmatmul.mubr.bf16.gmra.mrb[228].mxu0 %v14618_v24 }
 0x217   : > { %5798 = vmatprep.mubr.bf16.mxu1 %v14619_v25  ;;  %3715 = vmatprep.mubr.bf16.mxu0 %v14619_v25 }
 0x21e   : > { %5799 = vmatmul.mubr.bf16.gmra.mrb[232].mxu1 %v14621_v26  ;;  %3716 = vmatmul.mubr.bf16.gmra.mrb[232].mxu0 %v14621_v26 }
 0x21f   : > { %5806 = vmatprep.mubr.bf16.mxu1 %v14625_v27  ;;  %3725 = vmatprep.mubr.bf16.mxu0 %v14625_v27 }
 0x226   : > { %5807 = vmatmul.mubr.bf16.gmra.mrb[236].mxu1 %v14627_v28  ;;  %3726 = vmatmul.mubr.bf16.gmra.mrb[236].mxu0 %v14627_v28  ;;  %v15793_v28 = vld [vmem:[%s15351_s16 + $0x530] ss:$8 sps:$4 sm:$0xff]  }
 0x227   : > { %5814 = vmatprep.mubr.bf16.mxu1 %v14629_v29  ;;  %3735 = vmatprep.mubr.bf16.mxu0 %v14629_v29 }
 0x22e   : > { %5815 = vmatmul.mubr.bf16.gmra.mrb[240].mxu1 %v14631_v30  ;;  %3736 = vmatmul.mubr.bf16.gmra.mrb[240].mxu0 %v14631_v30 }
 0x22f   : > { %5822 = vmatprep.mubr.bf16.mxu1 %v14632_v31  ;;  %3745 = vmatprep.mubr.bf16.mxu0 %v14632_v31  ;;  %v15800_v31 = vld [vmem:[%s15351_s16 + $0x544] ss:$8 sps:$4 sm:$0xff]  }
 0x236   : > { %5823 = vmatmul.mubr.bf16.gmra.mrb[244].mxu1 %v14634_v32  ;;  %3746 = vmatmul.mubr.bf16.gmra.mrb[244].mxu0 %v14634_v32 }
 0x237   : > { %5830 = vmatprep.mubr.bf16.mxu1 %v14635_v33  ;;  %3755 = vmatprep.mubr.bf16.mxu0 %v14635_v33 }
 0x23e   : > { %5831 = vmatmul.mubr.bf16.gmra.mrb[248].mxu1 %v14637_v34  ;;  %3756 = vmatmul.mubr.bf16.gmra.mrb[248].mxu0 %v14637_v34 }
 0x23f   : > { %5837 = vmatprep.mubr.bf16.mxu1 %v14638_v35  ;;  %3762 = vmatprep.mubr.bf16.mxu0 %v14638_v35 }
 0x246   : > { %5838 = vmatmul.mubr.bf16.gmra.mrb[252].mxu1 %v14640_v36  ;;  %3763 = vmatmul.mubr.bf16.gmra.mrb[252].mxu0 %v14640_v36 }
 0x247   : > { %5845 = vmatprep.mubr.bf16.mxu1 %v14647_v37  ;;  %3772 = vmatprep.mubr.bf16.mxu0 %v14647_v37 }
 0x249   : > { %v15710_v38 = vpop.f32.mrb[148].mxu1  ;;  %v15712_v39 = vpop.f32.mrb[148].mxu0 }
 0x24a   : > { %19628 = vst [vmem:[#allocation3_spill] sm:$0xff] %v15710_v38  ;;  %19629 = vst [vmem:[#allocation4_spill] sm:$0xff] %v15712_v39  ;;  %v5636_v40 = vpop.f32.mrb[149].mxu1  ;;  %v15715_v42 = vpop.f32.mrb[149].mxu0 }
 0x24b   : > { %19630 = vst [vmem:[#allocation5_spill] sm:$0xff] %v15715_v42  ;;  %v15717_v43 = vpop.f32.mrb[150].mxu1  ;;  %v15720_v45 = vpop.f32.mrb[150].mxu0  ;;  %v15815_v40 = vld [vmem:[%s15351_s16 + $0x540] ss:$8 sps:$4 sm:$0xff]  }
 0x24c   : > { %19631 = vst [vmem:[#allocation6_spill] sm:$0xff] %v15717_v43  ;;  %19632 = vst [vmem:[#allocation7_spill] sm:$0xff] %v15720_v45  ;;  %v5639_v46 = vpop.f32.mrb[151].mxu1  ;;  %v15722_v47 = vpop.f32.mrb[151].mxu0 }
 0x24d   : > { %19633 = vst [vmem:[#allocation8_spill] sm:$0xff] %v15722_v47  ;;  %v15822_v46 = vld [vmem:[%s15351_s16 + $0x554] ss:$8 sps:$4 sm:$0xff]  }
 0x24e   : > { %5846 = vmatmul.mubr.bf16.gmra.mrb[148].mxu1 %v14645_v41  ;;  %3773 = vmatmul.mubr.bf16.gmra.mrb[148].mxu0 %v14645_v41 }
 0x24f   : > { %5853 = vmatprep.mubr.bf16.mxu1 %v14650_v44  ;;  %3782 = vmatprep.mubr.bf16.mxu0 %v14650_v44 }
 0x251   : > { %v15724_v48 = vpop.f32.mrb[152].mxu1  ;;  %v15726_v49 = vpop.f32.mrb[152].mxu0 }
 0x252   : > { %19634 = vst [vmem:[#allocation9_spill] sm:$0xff] %v15724_v48  ;;  %19635 = vst [vmem:[#allocation10_spill] sm:$0xff] %v15726_v49  ;;  %v5644_v50 = vpop.f32.mrb[153].mxu1  ;;  %v15729_v52 = vpop.f32.mrb[153].mxu0  ;;  %v15128_v49 = vld [vmem:[%s15351_s16 + $0x340] ss:$8 sps:$4 sm:$0xff]  }
 0x253   : > { %19636 = vst [vmem:[#allocation11_spill] sm:$0xff] %v15729_v52  ;;  %v15731_v53 = vpop.f32.mrb[154].mxu1  ;;  %v15734_v55 = vpop.f32.mrb[154].mxu0 }
 0x254   : > { %19637 = vst [vmem:[#allocation12_spill] sm:$0xff] %v15731_v53  ;;  %19638 = vst [vmem:[#allocation13_spill] sm:$0xff] %v15734_v55  ;;  %v5647_v56 = vpop.f32.mrb[155].mxu1  ;;  %v15736_v57 = vpop.f32.mrb[155].mxu0 }
 0x255   : > { %19639 = vst [vmem:[#allocation14_spill] sm:$0xff] %v15736_v57  ;;  %v14727_v57 = vld [vmem:[%s15351_s16 + $0x354] ss:$8 sps:$4 sm:$0xff]  }
 0x256   : > { %5854 = vmatmul.mubr.bf16.gmra.mrb[152].mxu1 %v14648_v51  ;;  %3783 = vmatmul.mubr.bf16.gmra.mrb[152].mxu0 %v14648_v51 }
 0x257   : > { %5861 = vmatprep.mubr.bf16.mxu1 %v14653_v54  ;;  %3792 = vmatprep.mubr.bf16.mxu0 %v14653_v54 }
 0x259   : > { %v15738_v58 = vpop.f32.mrb[156].mxu1  ;;  %v15740_v59 = vpop.f32.mrb[156].mxu0 }
 0x25a   : > { %19640 = vst [vmem:[#allocation15_spill] sm:$0xff] %v15738_v58  ;;  %19641 = vst [vmem:[#allocation16_spill] sm:$0xff] %v15740_v59  ;;  %v5652_v60 = vpop.f32.mrb[157].mxu1  ;;  %v15743_v62 = vpop.f32.mrb[157].mxu0 }
 0x25b   : > { %19642 = vst [vmem:[#allocation17_spill] sm:$0xff] %v15743_v62  ;;  %v15745_v63 = vpop.f32.mrb[158].mxu1  ;;  %v15748_v2 = vpop.f32.mrb[158].mxu0 }
 0x25c   : > { %19643 = vst [vmem:[#allocation18_spill] sm:$0xff] %v15745_v63  ;;  %19644 = vst [vmem:[#allocation19_spill] sm:$0xff] %v15748_v2  ;;  %v5655_v3 = vpop.f32.mrb[159].mxu1  ;;  %v15750_v4 = vpop.f32.mrb[159].mxu0  ;;  %v15126_v63 = vld [vmem:[%s15351_s16 + $0x330] ss:$8 sps:$4 sm:$0xff]  }
 0x25d   : > { %19645 = vst [vmem:[#allocation20_spill] sm:$0xff] %v15750_v4 }
 0x25e   : > { %5862 = vmatmul.mubr.bf16.gmra.mrb[156].mxu1 %v14651_v61  ;;  %3793 = vmatmul.mubr.bf16.gmra.mrb[156].mxu0 %v14651_v61 }
 0x25f   : > { %5869 = vmatprep.mubr.bf16.mxu1 %v14656_v0  ;;  %3802 = vmatprep.mubr.bf16.mxu0 %v14656_v0  ;;  %v15835_v0 = vld [vmem:[%s15351_s16 + $0x550] ss:$8 sps:$4 sm:$0xff]  }
 0x261   : > { %v15752_v5 = vpop.f32.mrb[160].mxu1  ;;  %v15754_v6 = vpop.f32.mrb[160].mxu0 }
 0x262   : > { %19646 = vst [vmem:[#allocation21_spill] sm:$0xff] %v15752_v5  ;;  %19647 = vst [vmem:[#allocation22_spill] sm:$0xff] %v15754_v6  ;;  %v5660_v7 = vpop.f32.mrb[161].mxu1  ;;  %v15757_v9 = vpop.f32.mrb[161].mxu0 }
 0x263   : > { %19648 = vst [vmem:[#allocation23_spill] sm:$0xff] %v15757_v9  ;;  %v15759_v10 = vpop.f32.mrb[162].mxu1  ;;  %v15762_v12 = vpop.f32.mrb[162].mxu0 }
 0x264   : > { %19649 = vst [vmem:[#allocation24_spill] sm:$0xff] %v15759_v10  ;;  %19650 = vst [vmem:[#allocation25_spill] sm:$0xff] %v15762_v12  ;;  %v5663_v13 = vpop.f32.mrb[163].mxu1  ;;  %v15764_v14 = vpop.f32.mrb[163].mxu0  ;;  %v15124_v10 = vld [vmem:[%s15351_s16 + $0x320] ss:$8 sps:$4 sm:$0xff]  }
 0x265   : > { %19651 = vst [vmem:[#allocation26_spill] sm:$0xff] %v15764_v14 }
 0x266   : > { %5870 = vmatmul.mubr.bf16.gmra.mrb[160].mxu1 %v14654_v8  ;;  %3803 = vmatmul.mubr.bf16.gmra.mrb[160].mxu0 %v14654_v8 }
 0x267   : > { %5877 = vmatprep.mubr.bf16.mxu1 %v14662_v11  ;;  %3812 = vmatprep.mubr.bf16.mxu0 %v14662_v11 }
 0x269   : > { %v15766_v15 = vpop.f32.mrb[164].mxu1  ;;  %v15768_v16 = vpop.f32.mrb[164].mxu0 }
 0x26a   : > { %19652 = vst [vmem:[#allocation27_spill] sm:$0xff] %v15766_v15  ;;  %19653 = vst [vmem:[#allocation28_spill] sm:$0xff] %v15768_v16  ;;  %v5668_v17 = vpop.f32.mrb[165].mxu1  ;;  %v15773_v19 = vpop.f32.mrb[165].mxu0 }
 0x26b   : > { %19654 = vst [vmem:[#allocation29_spill] sm:$0xff] %v15773_v19  ;;  %v15775_v20 = vpop.f32.mrb[166].mxu1  ;;  %v15780_v22 = vpop.f32.mrb[166].mxu0  ;;  %v15049_v17 = vld [vmem:[%s15351_s16 + $0x14] ss:$8 sps:$4 sm:$0xff]  }
 0x26c   : > { %19655 = vst [vmem:[#allocation30_spill] sm:$0xff] %v15775_v20  ;;  %19656 = vst [vmem:[#allocation31_spill] sm:$0xff] %v15780_v22  ;;  %v5671_v23 = vpop.f32.mrb[167].mxu1  ;;  %v15782_v24 = vpop.f32.mrb[167].mxu0  ;;  %v15122_v20 = vld [vmem:[%s15351_s16 + $0x310] ss:$8 sps:$4 sm:$0xff]  }
 0x26d   : > { %19657 = vst [vmem:[#allocation32_spill] sm:$0xff] %v15782_v24  ;;  %v14676_v23 = vld [vmem:[%s19475_s1 + $0x308] ss:$12 sps:$4 sm:$0xff]  }
 0x26e   : > { %5878 = vmatmul.mubr.bf16.gmra.mrb[164].mxu1 %v15771_v18  ;;  %3813 = vmatmul.mubr.bf16.gmra.mrb[164].mxu0 %v15771_v18 }
 0x26f   : > { %5885 = vmatprep.mubr.bf16.mxu1 %v15778_v21  ;;  %3822 = vmatprep.mubr.bf16.mxu0 %v15778_v21 }
 0x271   : > { %v15788_v25 = vpop.f32.mrb[168].mxu1  ;;  %v15790_v26 = vpop.f32.mrb[168].mxu0 }
 0x272   : > { %19658 = vst [vmem:[#allocation33_spill] sm:$0xff] %v15788_v25  ;;  %19659 = vst [vmem:[#allocation34_spill] sm:$0xff] %v15790_v26  ;;  %v5676_v27 = vpop.f32.mrb[169].mxu1  ;;  %v15795_v29 = vpop.f32.mrb[169].mxu0 }
 0x273   : > { %19660 = vst [vmem:[#allocation35_spill] sm:$0xff] %v15795_v29  ;;  %v15797_v30 = vpop.f32.mrb[170].mxu1  ;;  %v15802_v32 = vpop.f32.mrb[170].mxu0  ;;  %v14673_v27 = vld [vmem:[%s19475_s1 + $0x300] ss:$12 sps:$4 sm:$0xff]  }
 0x274   : > { %19661 = vst [vmem:[#allocation36_spill] sm:$0xff] %v15797_v30  ;;  %19662 = vst [vmem:[#allocation37_spill] sm:$0xff] %v15802_v32  ;;  %v5679_v33 = vpop.f32.mrb[171].mxu1  ;;  %v15804_v34 = vpop.f32.mrb[171].mxu0  ;;  %v15120_v29 = vld [vmem:[%s15351_s16 + $0x300] ss:$8 sps:$4 sm:$0xff]  }
 0x275   : > { %19663 = vst [vmem:[#allocation38_spill] sm:$0xff] %v15804_v34  ;;  %v14679_v33 = vld [vmem:[%s19475_s1 + $0x31c] ss:$12 sps:$4 sm:$0xff]  }
 0x276   : > { %5886 = vmatmul.mubr.bf16.gmra.mrb[168].mxu1 %v15793_v28  ;;  %3823 = vmatmul.mubr.bf16.gmra.mrb[168].mxu0 %v15793_v28 }
 0x277   : > { %5893 = vmatprep.mubr.bf16.mxu1 %v15800_v31  ;;  %3832 = vmatprep.mubr.bf16.mxu0 %v15800_v31 }
 0x279   : > { %v15810_v35 = vpop.f32.mrb[172].mxu1  ;;  %v15812_v36 = vpop.f32.mrb[172].mxu0 }
 0x27a   : > { %19664 = vst [vmem:[#allocation39_spill] sm:$0xff] %v15810_v35  ;;  %19665 = vst [vmem:[#allocation40_spill] sm:$0xff] %v15812_v36  ;;  %v5684_v37 = vpop.f32.mrb[173].mxu1  ;;  %v15817_v41 = vpop.f32.mrb[173].mxu0  ;;  %v19672_v36 = vmov 0  }
 0x27b   : > { %19666 = vst [vmem:[#allocation41_spill] sm:$0xff] %v15817_v41  ;;  %v15819_v44 = vpop.f32.mrb[174].mxu1  ;;  %v15824_v50 = vpop.f32.mrb[174].mxu0  ;;  %v15050_v37 = vld [vmem:[%s15351_s16 + $0x10] ss:$8 sps:$4 sm:$0xff]  }
 0x27c   : > { %19667 = vst [vmem:[#allocation42_spill] sm:$0xff] %v15819_v44  ;;  %19668 = vst [vmem:[#allocation43_spill] sm:$0xff] %v15824_v50  ;;  %v5687_v51 = vpop.f32.mrb[175].mxu1  ;;  %v15826_v54 = vpop.f32.mrb[175].mxu0  ;;  %v15118_v50 = vld [vmem:[%s15351_s16 + $0x2f0] ss:$8 sps:$4 sm:$0xff]  }
 0x27d   : > { %19669 = vst [vmem:[#allocation44_spill] sm:$0xff] %v15826_v54  ;;  %v14680_v51 = vld [vmem:[%s19475_s1 + $0x320] ss:$12 sps:$4 sm:$0xff]  }
 0x27e   : > { %5894 = vmatmul.mubr.bf16.gmra.mrb[172].mxu1 %v15815_v40  ;;  %3833 = vmatmul.mubr.bf16.gmra.mrb[172].mxu0 %v15815_v40 }
 0x27f   : > { %5901 = vmatprep.mubr.bf16.mxu1 %v15822_v46  ;;  %3842 = vmatprep.mubr.bf16.mxu0 %v15822_v46 }
 0x281   : > { %v15832_v56 = vpop.f32.mrb[176].mxu1  ;;  %v3583_v60 = vpop.f32.mrb[176].mxu0 }
 0x282   : > { %19670 = vst [vmem:[#allocation45_spill] sm:$0xff] %v15832_v56  ;;  %v5692_v61 = vpop.f32.mrb[177].mxu1  ;;  %v15837_v3 = vpop.f32.mrb[177].mxu0  ;;  %v15051_v60 = vld [vmem:[%s15351_s16 + $0x24] ss:$8 sps:$4 sm:$0xff]  }
 0x283   : > { %19671 = vst [vmem:[#allocation46_spill] sm:$0xff] %v15837_v3  ;;  %v5693_v7 = vpop.f32.mrb[178].mxu1  ;;  %v3586_v8 = vpop.f32.mrb[178].mxu0  ;;  %v14677_v61 = vld [vmem:[%s19475_s1 + $0x318] ss:$12 sps:$4 sm:$0xff]  }
 0x284   : > { %v5694_v11 = vpop.f32.mrb[179].mxu1  ;;  %v3587_v13 = vpop.f32.mrb[179].mxu0  ;;  %v14686_v7 = vld [vmem:[%s19475_s1 + $0x334] ss:$12 sps:$4 sm:$0xff]   ;;  %v14684_v8 = vld [vmem:[%s19475_s1 + $0x330] ss:$12 sps:$4 sm:$0xff]  }
 0x285   : > { %v14687_v11 = vld [vmem:[%s19475_s1 + $0x338] ss:$12 sps:$4 sm:$0xff]  }
 0x286   : > { %5902 = vmatmul.mubr.bf16.gmra.mrb[176].mxu1 %v15835_v0  ;;  %3843 = vmatmul.mubr.bf16.gmra.mrb[176].mxu0 %v15835_v0  ;;  %v14690_v13 = vld [vmem:[%s19475_s1 + $0x34c] ss:$12 sps:$4 sm:$0xff]  }
 0x287   : > { %5941 = vmatprep.mubr.bf16.mxu1 %v15049_v17  ;;  %3882 = vmatprep.mubr.bf16.mxu0 %v15049_v17  ;;  %v15052_v17 = vld [vmem:[%s15351_s16 + $0x20] ss:$8 sps:$4 sm:$0xff]  }
 0x28e   : > { %5942 = vmatmul.mubr.bf16.vlgmr.msra.gmra.mrb[0].mxu1 %v15050_v37  ;;  %3883 = vmatmul.mubr.bf16.vlgmr.msra.gmra.mrb[0].mxu0 %v15050_v37  ;;  %v15054_v37 = vld [vmem:[%s15351_s16 + $0x30] ss:$8 sps:$4 sm:$0xff]  }
 0x28f   : > { %6511 = vmatpush1.bf16.msra.mxu1 %v14676_v23  ;;  %4580 = vmatpush1.bf16.msra.mxu0 %v14673_v27  ;;  %v15053_v23 = vld [vmem:[%s15351_s16 + $0x34] ss:$8 sps:$4 sm:$0xff]  }
 0x290   : > { %5949 = vmatprep.mubr.bf16.mxu1 %v15051_v60  ;;  %3892 = vmatprep.mubr.bf16.mxu0 %v15051_v60  ;;  %v14688_v27 = vld [vmem:[%s19475_s1 + $0x348] ss:$12 sps:$4 sm:$0xff]   ;;  %v14695_v60 = vld [vmem:[%s19475_s1 + $0x360] ss:$12 sps:$4 sm:$0xff]  }
 0x291   : > { %4581 = vmatprep.subr.bf16.mxu0 %v14679_v33  ;;  %6512 = vmatprep.subr.bf16.mxu1 %v19484_v1  ;;  %v14691_v33 = vld [vmem:[%s19475_s1 + $0x350] ss:$12 sps:$4 sm:$0xff]  }
 0x293   : > { %6513 = vmatpush1.bf16.msra.mxu1 %v14680_v51  ;;  %4582 = vmatpush1.bf16.msra.mxu0 %v14677_v61  ;;  %v15055_v51 = vld [vmem:[%s15351_s16 + $0x44] ss:$8 sps:$4 sm:$0xff]  }
 0x294   : > { %6514 = vmatprep.subr.bf16.mxu1 %v19484_v1  ;;  %4583 = vmatprep.subr.bf16.mxu0 %v14686_v7  ;;  %v14697_v61 = vld [vmem:[%s19475_s1 + $0x364] ss:$12 sps:$4 sm:$0xff]   ;;  %v14698_v7 = vld [vmem:[%s19475_s1 + $0x368] ss:$12 sps:$4 sm:$0xff]  }
 0x296   : > { %5950 = vmatmul.mubr.bf16.gmra.mrb[4].mxu1 %v15052_v17  ;;  %3893 = vmatmul.mubr.bf16.gmra.mrb[4].mxu0 %v15052_v17  ;;  %v15059_v17 = vld [vmem:[%s15351_s16 + $0x64] ss:$8 sps:$4 sm:$0xff]  }
 0x297   : > { %5957 = vmatprep.mubr.bf16.mxu1 %v15053_v23  ;;  %3902 = vmatprep.mubr.bf16.mxu0 %v15053_v23  ;;  %v15060_v23 = vld [vmem:[%s15351_s16 + $0x60] ss:$8 sps:$4 sm:$0xff]  }
 0x298   : > { %4584 = vmatpush1.bf16.msra.mxu0 %v14684_v8  ;;  %6515 = vmatpush1.bf16.msra.mxu1 %v14687_v11  ;;  %v15056_v8 = vld [vmem:[%s15351_s16 + $0x40] ss:$8 sps:$4 sm:$0xff]   ;;  %v15057_v11 = vld [vmem:[%s15351_s16 + $0x54] ss:$8 sps:$4 sm:$0xff]  }
 0x299   : > { %4585 = vmatprep.subr.bf16.mxu0 %v14690_v13  ;;  %6516 = vmatprep.subr.bf16.mxu1 %v19484_v1  ;;  %v15058_v13 = vld [vmem:[%s15351_s16 + $0x50] ss:$8 sps:$4 sm:$0xff]  }
 0x29c   : > { %4586 = vmatpush1.bf16.msra.mxu0 %v14688_v27  ;;  %6517 = vmatpush1.bf16.msra.mxu1 %v14691_v33  ;;  %v15061_v27 = vld [vmem:[%s15351_s16 + $0x74] ss:$8 sps:$4 sm:$0xff]   ;;  %v15062_v33 = vld [vmem:[%s15351_s16 + $0x70] ss:$8 sps:$4 sm:$0xff]  }
 0x29d   : > { %6518 = vmatprep.subr.bf16.mxu1 %v19484_v1  ;;  %4587 = vmatprep.subr.bf16.mxu0 %v14697_v61  ;;  %v14681_v61 = vld [vmem:[%s15351_s16 + $0x94] ss:$8 sps:$4 sm:$0xff]  }
 0x29e   : > { %5958 = vmatmul.mubr.bf16.gmra.mrb[8].mxu1 %v15054_v37  ;;  %3903 = vmatmul.mubr.bf16.gmra.mrb[8].mxu0 %v15054_v37  ;;  %v15063_v37 = vld [vmem:[%s15351_s16 + $0x84] ss:$8 sps:$4 sm:$0xff]  }
 0x29f   : > { %5965 = vmatprep.mubr.bf16.mxu1 %v15055_v51  ;;  %3912 = vmatprep.mubr.bf16.mxu0 %v15055_v51  ;;  %v14699_v51 = vld [vmem:[%s19475_s1 + $0x378] ss:$12 sps:$4 sm:$0xff]  }
 0x2a0   : > { %6519 = vmatpush1.bf16.msra.mxu1 %v14698_v7  ;;  %4588 = vmatpush1.bf16.msra.mxu0 %v14695_v60  ;;  %v14701_v60 = vld [vmem:[%s19475_s1 + $0x37c] ss:$12 sps:$4 sm:$0xff]  }
 0x2a1   : > { %6520 = vmatprep.subr.bf16.mxu1 %v19484_v1  ;;  %4589 = vmatprep.subr.bf16.mxu0 %v14701_v60  ;;  %v15064_v7 = vld [vmem:[%s15351_s16 + $0x80] ss:$8 sps:$4 sm:$0xff]   ;;  %v14706_v60 = vld [vmem:[%s19475_s1 + $0x390] ss:$12 sps:$4 sm:$0xff]  }
 0x2a4   : > { %4590 = vmatpush1.bf16.msra.mxu0 %v14699_v51  ;;  %v15071_v51 = vld [vmem:[%s15351_s16 + $0xf4] ss:$8 sps:$4 sm:$0xff]  }
 0x2a6   : > { %5966 = vmatmul.mubr.bf16.gmra.mrb[12].mxu1 %v15056_v8  ;;  %3913 = vmatmul.mubr.bf16.gmra.mrb[12].mxu0 %v15056_v8  ;;  %v14702_v8 = vld [vmem:[%s19475_s1 + $0x380] ss:$12 sps:$4 sm:$0xff]  }
 0x2a7   : > { %5973 = vmatprep.mubr.bf16.mxu1 %v15057_v11  ;;  %3922 = vmatprep.mubr.bf16.mxu0 %v15057_v11  ;;  %v14683_v11 = vld [vmem:[%s15351_s16 + $0x90] ss:$8 sps:$4 sm:$0xff]  }
 0x2a8   : > { %6521 = vmatpush1.bf16.msra.mxu1 %v14702_v8  ;;  %v15072_v8 = vld [vmem:[%s15351_s16 + $0xf0] ss:$8 sps:$4 sm:$0xff]  }
 0x2a9   : > { %6522 = vmatprep.subr.bf16.mxu1 %v19484_v1 }
 0x2ae   : > { %5974 = vmatmul.mubr.bf16.gmra.mrb[16].mxu1 %v15058_v13  ;;  %3923 = vmatmul.mubr.bf16.gmra.mrb[16].mxu0 %v15058_v13  ;;  %v15065_v13 = vld [vmem:[%s15351_s16 + $0xc4] ss:$8 sps:$4 sm:$0xff]  }
 0x2af   : > { %5981 = vmatprep.mubr.bf16.mxu1 %v15059_v17  ;;  %3932 = vmatprep.mubr.bf16.mxu0 %v15059_v17  ;;  %v15066_v17 = vld [vmem:[%s15351_s16 + $0xc0] ss:$8 sps:$4 sm:$0xff]  }
 0x2b6   : > { %5982 = vmatmul.mubr.bf16.gmra.mrb[20].mxu1 %v15060_v23  ;;  %3933 = vmatmul.mubr.bf16.gmra.mrb[20].mxu0 %v15060_v23  ;;  %v15067_v23 = vld [vmem:[%s15351_s16 + $0xd4] ss:$8 sps:$4 sm:$0xff]  }
 0x2b7   : > { %5989 = vmatprep.mubr.bf16.mxu1 %v15061_v27  ;;  %3942 = vmatprep.mubr.bf16.mxu0 %v15061_v27  ;;  %v15068_v27 = vld [vmem:[%s15351_s16 + $0xd0] ss:$8 sps:$4 sm:$0xff]  }
 0x2be   : > { %5990 = vmatmul.mubr.bf16.gmra.mrb[24].mxu1 %v15062_v33  ;;  %3943 = vmatmul.mubr.bf16.gmra.mrb[24].mxu0 %v15062_v33  ;;  %v15069_v33 = vld [vmem:[%s15351_s16 + $0xe4] ss:$8 sps:$4 sm:$0xff]  }
 0x2bf   : > { %5997 = vmatprep.mubr.bf16.mxu1 %v15063_v37  ;;  %3952 = vmatprep.mubr.bf16.mxu0 %v15063_v37  ;;  %v15070_v37 = vld [vmem:[%s15351_s16 + $0xe0] ss:$8 sps:$4 sm:$0xff]  }
 0x2c6   : > { %5998 = vmatmul.mubr.bf16.gmra.mrb[28].mxu1 %v15064_v7  ;;  %3953 = vmatmul.mubr.bf16.gmra.mrb[28].mxu0 %v15064_v7  ;;  %v14709_v7 = vld [vmem:[%s19475_s1 + $0x398] ss:$12 sps:$4 sm:$0xff]  }
 0x2c7   : > { %6005 = vmatprep.mubr.bf16.mxu1 %v14681_v61  ;;  %3962 = vmatprep.mubr.bf16.mxu0 %v14681_v61  ;;  %v14708_v61 = vld [vmem:[%s19475_s1 + $0x394] ss:$12 sps:$4 sm:$0xff]  }
 0x2c8   : > { %4591 = vmatprep.subr.bf16.mxu0 %v14708_v61  ;;  %6523 = vmatpush1.bf16.msra.mxu1 %v14709_v7  ;;  %v14692_v61 = vld [vmem:[%s15351_s16 + $0x144] ss:$8 sps:$4 sm:$0xff]   ;;  %v15080_v7 = vld [vmem:[%s15351_s16 + $0x130] ss:$8 sps:$4 sm:$0xff]  }
 0x2c9   : > { %4592 = vmatpush1.bf16.msra.mxu0 %v14706_v60  ;;  %6524 = vmatprep.subr.bf16.mxu1 %v19484_v1  ;;  %v14712_v60 = vld [vmem:[%s19475_s1 + $0x3ac] ss:$12 sps:$4 sm:$0xff]  }
 0x2ca   : > { %4593 = vmatprep.subr.bf16.mxu0 %v14712_v60  ;;  %v14717_v60 = vld [vmem:[%s19475_s1 + $0x3c0] ss:$12 sps:$4 sm:$0xff]  }
 0x2ce   : > { %6006 = vmatmul.mubr.bf16.gmra.mrb[32].mxu1 %v14683_v11  ;;  %3963 = vmatmul.mubr.bf16.gmra.mrb[32].mxu0 %v14683_v11  ;;  %v15073_v11 = vld [vmem:[%s15351_s16 + $0x104] ss:$8 sps:$4 sm:$0xff]  }
 0x2cf   : > { %6012 = vmatprep.mubr.bf16.mxu1 %v15065_v13  ;;  %3969 = vmatprep.mubr.bf16.mxu0 %v15065_v13  ;;  %v15074_v13 = vld [vmem:[%s15351_s16 + $0x100] ss:$8 sps:$4 sm:$0xff]  }
 0x2d6   : > { %6013 = vmatmul.mubr.bf16.gmra.mrb[36].mxu1 %v15066_v17  ;;  %3970 = vmatmul.mubr.bf16.gmra.mrb[36].mxu0 %v15066_v17  ;;  %v15075_v17 = vld [vmem:[%s15351_s16 + $0x114] ss:$8 sps:$4 sm:$0xff]  }
 0x2d7   : > { %6020 = vmatprep.mubr.bf16.mxu1 %v15067_v23  ;;  %3979 = vmatprep.mubr.bf16.mxu0 %v15067_v23  ;;  %v15076_v23 = vld [vmem:[%s15351_s16 + $0x110] ss:$8 sps:$4 sm:$0xff]  }
 0x2de   : > { %6021 = vmatmul.mubr.bf16.gmra.mrb[40].mxu1 %v15068_v27  ;;  %3980 = vmatmul.mubr.bf16.gmra.mrb[40].mxu0 %v15068_v27  ;;  %v15077_v27 = vld [vmem:[%s15351_s16 + $0x124] ss:$8 sps:$4 sm:$0xff]  }
 0x2df   : > { %6028 = vmatprep.mubr.bf16.mxu1 %v15069_v33  ;;  %3989 = vmatprep.mubr.bf16.mxu0 %v15069_v33  ;;  %v15078_v33 = vld [vmem:[%s15351_s16 + $0x120] ss:$8 sps:$4 sm:$0xff]  }
 0x2e6   : > { %6029 = vmatmul.mubr.bf16.gmra.mrb[44].mxu1 %v15070_v37  ;;  %3990 = vmatmul.mubr.bf16.gmra.mrb[44].mxu0 %v15070_v37  ;;  %v15079_v37 = vld [vmem:[%s15351_s16 + $0x134] ss:$8 sps:$4 sm:$0xff]  }
 0x2e7   : > { %6036 = vmatprep.mubr.bf16.mxu1 %v15071_v51  ;;  %3999 = vmatprep.mubr.bf16.mxu0 %v15071_v51  ;;  %v14710_v51 = vld [vmem:[%s19475_s1 + $0x3a8] ss:$12 sps:$4 sm:$0xff]  }
 0x2e8   : > { %4594 = vmatpush1.bf16.msra.mxu0 %v14710_v51  ;;  %v15087_v51 = vld [vmem:[%s15351_s16 + $0x1a4] ss:$8 sps:$4 sm:$0xff]  }
 0x2ee   : > { %6037 = vmatmul.mubr.bf16.gmra.mrb[48].mxu1 %v15072_v8  ;;  %4000 = vmatmul.mubr.bf16.gmra.mrb[48].mxu0 %v15072_v8  ;;  %v14713_v8 = vld [vmem:[%s19475_s1 + $0x3b0] ss:$12 sps:$4 sm:$0xff]  }
 0x2ef   : > { %6044 = vmatprep.mubr.bf16.mxu1 %v15073_v11  ;;  %4009 = vmatprep.mubr.bf16.mxu0 %v15073_v11  ;;  %v14694_v11 = vld [vmem:[%s15351_s16 + $0x140] ss:$8 sps:$4 sm:$0xff]  }
 0x2f0   : > { %6525 = vmatpush1.bf16.msra.mxu1 %v14713_v8  ;;  %v15088_v8 = vld [vmem:[%s15351_s16 + $0x1a0] ss:$8 sps:$4 sm:$0xff]  }
 0x2f1   : > { %6526 = vmatprep.subr.bf16.mxu1 %v19484_v1 }
 0x2f6   : > { %6045 = vmatmul.mubr.bf16.gmra.mrb[52].mxu1 %v15074_v13  ;;  %4010 = vmatmul.mubr.bf16.gmra.mrb[52].mxu0 %v15074_v13  ;;  %v15081_v13 = vld [vmem:[%s15351_s16 + $0x174] ss:$8 sps:$4 sm:$0xff]  }
 0x2f7   : > { %6052 = vmatprep.mubr.bf16.mxu1 %v15075_v17  ;;  %4019 = vmatprep.mubr.bf16.mxu0 %v15075_v17  ;;  %v15082_v17 = vld [vmem:[%s15351_s16 + $0x170] ss:$8 sps:$4 sm:$0xff]  }
 0x2fe   : > { %6053 = vmatmul.mubr.bf16.gmra.mrb[56].mxu1 %v15076_v23  ;;  %4020 = vmatmul.mubr.bf16.gmra.mrb[56].mxu0 %v15076_v23  ;;  %v15083_v23 = vld [vmem:[%s15351_s16 + $0x184] ss:$8 sps:$4 sm:$0xff]  }
 0x2ff   : > { %6060 = vmatprep.mubr.bf16.mxu1 %v15077_v27  ;;  %4029 = vmatprep.mubr.bf16.mxu0 %v15077_v27  ;;  %v15084_v27 = vld [vmem:[%s15351_s16 + $0x180] ss:$8 sps:$4 sm:$0xff]  }
 0x306   : > { %6061 = vmatmul.mubr.bf16.gmra.mrb[60].mxu1 %v15078_v33  ;;  %4030 = vmatmul.mubr.bf16.gmra.mrb[60].mxu0 %v15078_v33  ;;  %v15085_v33 = vld [vmem:[%s15351_s16 + $0x194] ss:$8 sps:$4 sm:$0xff]  }
 0x307   : > { %6068 = vmatprep.mubr.bf16.mxu1 %v15079_v37  ;;  %4039 = vmatprep.mubr.bf16.mxu0 %v15079_v37  ;;  %v15086_v37 = vld [vmem:[%s15351_s16 + $0x190] ss:$8 sps:$4 sm:$0xff]  }
 0x30e   : > { %6069 = vmatmul.mubr.bf16.gmra.mrb[64].mxu1 %v15080_v7  ;;  %4040 = vmatmul.mubr.bf16.gmra.mrb[64].mxu0 %v15080_v7  ;;  %v14720_v7 = vld [vmem:[%s19475_s1 + $0x3c8] ss:$12 sps:$4 sm:$0xff]  }
 0x30f   : > { %6076 = vmatprep.mubr.bf16.mxu1 %v14692_v61  ;;  %4049 = vmatprep.mubr.bf16.mxu0 %v14692_v61  ;;  %v14719_v61 = vld [vmem:[%s19475_s1 + $0x3c4] ss:$12 sps:$4 sm:$0xff]  }
 0x310   : > { %4595 = vmatprep.subr.bf16.mxu0 %v14719_v61  ;;  %6527 = vmatpush1.bf16.msra.mxu1 %v14720_v7  ;;  %v14723_v61 = vld [vmem:[%s19475_s1 + $0x3dc] ss:$12 sps:$4 sm:$0xff]  }
 0x311   : > { %4596 = vmatpush1.bf16.msra.mxu0 %v14717_v60  ;;  %6528 = vmatprep.subr.bf16.mxu1 %v19484_v1  ;;  %v14721_v60 = vld [vmem:[%s19475_s1 + $0x3d8] ss:$12 sps:$4 sm:$0xff]   ;;  %v15096_v7 = vld [vmem:[%s15351_s16 + $0x1e0] ss:$8 sps:$4 sm:$0xff]  }
 0x312   : > { %4597 = vmatprep.subr.bf16.mxu0 %v14723_v61  ;;  %v14730_v61 = vld [vmem:[%s19475_s1 + $0x3f4] ss:$12 sps:$4 sm:$0xff]  }
 0x315   : > { %4598 = vmatpush1.bf16.msra.mxu0 %v14721_v60  ;;  %v14728_v60 = vld [vmem:[%s19475_s1 + $0x3f0] ss:$12 sps:$4 sm:$0xff]  }
 0x316   : > { %6077 = vmatmul.mubr.bf16.gmra.mrb[68].mxu1 %v14694_v11  ;;  %4050 = vmatmul.mubr.bf16.gmra.mrb[68].mxu0 %v14694_v11  ;;  %v15089_v11 = vld [vmem:[%s15351_s16 + $0x1b4] ss:$8 sps:$4 sm:$0xff]  }
 0x317   : > { %6083 = vmatprep.mubr.bf16.mxu1 %v15081_v13  ;;  %4056 = vmatprep.mubr.bf16.mxu0 %v15081_v13  ;;  %v15090_v13 = vld [vmem:[%s15351_s16 + $0x1b0] ss:$8 sps:$4 sm:$0xff]  }
 0x318   : > { %4599 = vmatprep.subr.bf16.mxu0 %v14730_v61  ;;  %v14714_v61 = vld [vmem:[%s15351_s16 + $0x2a4] ss:$8 sps:$4 sm:$0xff]  }
 0x319   : > { %4600 = vmatpush1.bf16.msra.mxu0 %v14728_v60  ;;  %v14734_v60 = vld [vmem:[%s19475_s1 + $0x40c] ss:$12 sps:$4 sm:$0xff]  }
 0x31a   : > { %4601 = vmatprep.subr.bf16.mxu0 %v14734_v60 }
 0x31e   : > { %6084 = vmatmul.mubr.bf16.gmra.mrb[72].mxu1 %v15082_v17  ;;  %4057 = vmatmul.mubr.bf16.gmra.mrb[72].mxu0 %v15082_v17  ;;  %v15091_v17 = vld [vmem:[%s15351_s16 + $0x1c4] ss:$8 sps:$4 sm:$0xff]  }
 0x31f   : > { %6091 = vmatprep.mubr.bf16.mxu1 %v15083_v23  ;;  %4066 = vmatprep.mubr.bf16.mxu0 %v15083_v23  ;;  %v15092_v23 = vld [vmem:[%s15351_s16 + $0x1c0] ss:$8 sps:$4 sm:$0xff]  }
 0x326   : > { %6092 = vmatmul.mubr.bf16.gmra.mrb[76].mxu1 %v15084_v27  ;;  %4067 = vmatmul.mubr.bf16.gmra.mrb[76].mxu0 %v15084_v27  ;;  %v15093_v27 = vld [vmem:[%s15351_s16 + $0x1d4] ss:$8 sps:$4 sm:$0xff]  }
 0x327   : > { %6099 = vmatprep.mubr.bf16.mxu1 %v15085_v33  ;;  %4076 = vmatprep.mubr.bf16.mxu0 %v15085_v33  ;;  %v15094_v33 = vld [vmem:[%s15351_s16 + $0x1d0] ss:$8 sps:$4 sm:$0xff]  }
 0x32e   : > { %6100 = vmatmul.mubr.bf16.gmra.mrb[80].mxu1 %v15086_v37  ;;  %4077 = vmatmul.mubr.bf16.gmra.mrb[80].mxu0 %v15086_v37  ;;  %v15095_v37 = vld [vmem:[%s15351_s16 + $0x1e4] ss:$8 sps:$4 sm:$0xff]  }
 0x32f   : > { %6107 = vmatprep.mubr.bf16.mxu1 %v15087_v51  ;;  %4086 = vmatprep.mubr.bf16.mxu0 %v15087_v51  ;;  %v14703_v51 = vld [vmem:[%s15351_s16 + $0x1f4] ss:$8 sps:$4 sm:$0xff]  }
 0x336   : > { %6108 = vmatmul.mubr.bf16.gmra.mrb[84].mxu1 %v15088_v8  ;;  %4087 = vmatmul.mubr.bf16.gmra.mrb[84].mxu0 %v15088_v8  ;;  %v14724_v8 = vld [vmem:[%s19475_s1 + $0x3e0] ss:$12 sps:$4 sm:$0xff]  }
 0x337   : > { %6115 = vmatprep.mubr.bf16.mxu1 %v15089_v11  ;;  %4096 = vmatprep.mubr.bf16.mxu0 %v15089_v11  ;;  %v14705_v11 = vld [vmem:[%s15351_s16 + $0x1f0] ss:$8 sps:$4 sm:$0xff]  }
 0x338   : > { %6529 = vmatpush1.bf16.msra.mxu1 %v14724_v8  ;;  %v15104_v8 = vld [vmem:[%s15351_s16 + $0x250] ss:$8 sps:$4 sm:$0xff]  }
 0x339   : > { %6530 = vmatprep.subr.bf16.mxu1 %v19484_v1 }
 0x33e   : > { %6116 = vmatmul.mubr.bf16.gmra.mrb[88].mxu1 %v15090_v13  ;;  %4097 = vmatmul.mubr.bf16.gmra.mrb[88].mxu0 %v15090_v13  ;;  %v15097_v13 = vld [vmem:[%s15351_s16 + $0x224] ss:$8 sps:$4 sm:$0xff]  }
 0x33f   : > { %6123 = vmatprep.mubr.bf16.mxu1 %v15091_v17  ;;  %4106 = vmatprep.mubr.bf16.mxu0 %v15091_v17  ;;  %v15098_v17 = vld [vmem:[%s15351_s16 + $0x220] ss:$8 sps:$4 sm:$0xff]  }
 0x346   : > { %6124 = vmatmul.mubr.bf16.gmra.mrb[92].mxu1 %v15092_v23  ;;  %4107 = vmatmul.mubr.bf16.gmra.mrb[92].mxu0 %v15092_v23  ;;  %v15099_v23 = vld [vmem:[%s15351_s16 + $0x234] ss:$8 sps:$4 sm:$0xff]  }
 0x347   : > { %6131 = vmatprep.mubr.bf16.mxu1 %v15093_v27  ;;  %4116 = vmatprep.mubr.bf16.mxu0 %v15093_v27  ;;  %v15100_v27 = vld [vmem:[%s15351_s16 + $0x230] ss:$8 sps:$4 sm:$0xff]  }
 0x34e   : > { %6132 = vmatmul.mubr.bf16.gmra.mrb[96].mxu1 %v15094_v33  ;;  %4117 = vmatmul.mubr.bf16.gmra.mrb[96].mxu0 %v15094_v33  ;;  %v15101_v33 = vld [vmem:[%s15351_s16 + $0x244] ss:$8 sps:$4 sm:$0xff]  }
 0x34f   : > { %6139 = vmatprep.mubr.bf16.mxu1 %v15095_v37  ;;  %4126 = vmatprep.mubr.bf16.mxu0 %v15095_v37  ;;  %v15102_v37 = vld [vmem:[%s15351_s16 + $0x240] ss:$8 sps:$4 sm:$0xff]  }
 0x356   : > { %6140 = vmatmul.mubr.bf16.gmra.mrb[100].mxu1 %v15096_v7  ;;  %4127 = vmatmul.mubr.bf16.gmra.mrb[100].mxu0 %v15096_v7  ;;  %v14731_v7 = vld [vmem:[%s19475_s1 + $0x3f8] ss:$12 sps:$4 sm:$0xff]  }
 0x357   : > { %6147 = vmatprep.mubr.bf16.mxu1 %v14703_v51  ;;  %4136 = vmatprep.mubr.bf16.mxu0 %v14703_v51  ;;  %v15103_v51 = vld [vmem:[%s15351_s16 + $0x254] ss:$8 sps:$4 sm:$0xff]  }
 0x358   : > { %6531 = vmatpush1.bf16.msra.mxu1 %v14731_v7  ;;  %v15112_v7 = vld [vmem:[%s15351_s16 + $0x290] ss:$8 sps:$4 sm:$0xff]  }
 0x359   : > { %6532 = vmatprep.subr.bf16.mxu1 %v19484_v1 }
 0x35e   : > { %6148 = vmatmul.mubr.bf16.gmra.mrb[104].mxu1 %v14705_v11  ;;  %4137 = vmatmul.mubr.bf16.gmra.mrb[104].mxu0 %v14705_v11  ;;  %v15105_v11 = vld [vmem:[%s15351_s16 + $0x264] ss:$8 sps:$4 sm:$0xff]  }
 0x35f   : > { %6154 = vmatprep.mubr.bf16.mxu1 %v15097_v13  ;;  %4143 = vmatprep.mubr.bf16.mxu0 %v15097_v13  ;;  %v15106_v13 = vld [vmem:[%s15351_s16 + $0x260] ss:$8 sps:$4 sm:$0xff]  }
 0x366   : > { %6155 = vmatmul.mubr.bf16.gmra.mrb[108].mxu1 %v15098_v17  ;;  %4144 = vmatmul.mubr.bf16.gmra.mrb[108].mxu0 %v15098_v17  ;;  %v15107_v17 = vld [vmem:[%s15351_s16 + $0x274] ss:$8 sps:$4 sm:$0xff]  }
 0x367   : > { %6162 = vmatprep.mubr.bf16.mxu1 %v15099_v23  ;;  %4153 = vmatprep.mubr.bf16.mxu0 %v15099_v23  ;;  %v15108_v23 = vld [vmem:[%s15351_s16 + $0x270] ss:$8 sps:$4 sm:$0xff]  }
 0x36e   : > { %6163 = vmatmul.mubr.bf16.gmra.mrb[112].mxu1 %v15100_v27  ;;  %4154 = vmatmul.mubr.bf16.gmra.mrb[112].mxu0 %v15100_v27  ;;  %v15109_v27 = vld [vmem:[%s15351_s16 + $0x284] ss:$8 sps:$4 sm:$0xff]  }
 0x36f   : > { %6170 = vmatprep.mubr.bf16.mxu1 %v15101_v33  ;;  %4163 = vmatprep.mubr.bf16.mxu0 %v15101_v33  ;;  %v15110_v33 = vld [vmem:[%s15351_s16 + $0x280] ss:$8 sps:$4 sm:$0xff]  }
 0x376   : > { %6171 = vmatmul.mubr.bf16.gmra.mrb[116].mxu1 %v15102_v37  ;;  %4164 = vmatmul.mubr.bf16.gmra.mrb[116].mxu0 %v15102_v37  ;;  %v15111_v37 = vld [vmem:[%s15351_s16 + $0x294] ss:$8 sps:$4 sm:$0xff]  }
 0x377   : > { %6178 = vmatprep.mubr.bf16.mxu1 %v15103_v51  ;;  %4173 = vmatprep.mubr.bf16.mxu0 %v15103_v51  ;;  %v14732_v51 = vld [vmem:[%s19475_s1 + $0x408] ss:$12 sps:$4 sm:$0xff]  }
 0x378   : > { %4602 = vmatpush1.bf16.msra.mxu0 %v14732_v51 }
 0x37e   : > { %6179 = vmatmul.mubr.bf16.gmra.mrb[120].mxu1 %v15104_v8  ;;  %4174 = vmatmul.mubr.bf16.gmra.mrb[120].mxu0 %v15104_v8  ;;  %v14735_v8 = vld [vmem:[%s19475_s1 + $0x410] ss:$12 sps:$4 sm:$0xff]  }
 0x37f   : > { %6186 = vmatprep.mubr.bf16.mxu1 %v15105_v11  ;;  %4183 = vmatprep.mubr.bf16.mxu0 %v15105_v11  ;;  %v14716_v11 = vld [vmem:[%s15351_s16 + $0x2a0] ss:$8 sps:$4 sm:$0xff]  }
 0x380   : > { %6533 = vmatpush1.bf16.msra.mxu1 %v14735_v8 }
 0x381   : > { %6534 = vmatprep.subr.bf16.mxu1 %v19484_v1 }
 0x386   : > { %6187 = vmatmul.mubr.bf16.gmra.mrb[124].mxu1 %v15106_v13  ;;  %4184 = vmatmul.mubr.bf16.gmra.mrb[124].mxu0 %v15106_v13  ;;  %v15113_v13 = vld [vmem:[%s15351_s16 + $0x2d4] ss:$8 sps:$4 sm:$0xff]  }
 0x387   : > { %6194 = vmatprep.mubr.bf16.mxu1 %v15107_v17  ;;  %4193 = vmatprep.mubr.bf16.mxu0 %v15107_v17  ;;  %v15114_v17 = vld [vmem:[%s15351_s16 + $0x2d0] ss:$8 sps:$4 sm:$0xff]  }
 0x38e   : > { %6195 = vmatmul.mubr.bf16.gmra.mrb[128].mxu1 %v15108_v23  ;;  %4194 = vmatmul.mubr.bf16.gmra.mrb[128].mxu0 %v15108_v23  ;;  %v15115_v23 = vld [vmem:[%s15351_s16 + $0x2e4] ss:$8 sps:$4 sm:$0xff]  }
 0x38f   : > { %6202 = vmatprep.mubr.bf16.mxu1 %v15109_v27  ;;  %4203 = vmatprep.mubr.bf16.mxu0 %v15109_v27 }
 0x396   : > { %6203 = vmatmul.mubr.bf16.gmra.mrb[132].mxu1 %v15110_v33  ;;  %4204 = vmatmul.mubr.bf16.gmra.mrb[132].mxu0 %v15110_v33 }
 0x397   : > { %6210 = vmatprep.mubr.bf16.mxu1 %v15111_v37  ;;  %4213 = vmatprep.mubr.bf16.mxu0 %v15111_v37 }
 0x39e   : > { %6211 = vmatmul.mubr.bf16.gmra.mrb[136].mxu1 %v15112_v7  ;;  %4214 = vmatmul.mubr.bf16.gmra.mrb[136].mxu0 %v15112_v7 }
 0x39f   : > { %6218 = vmatprep.mubr.bf16.mxu1 %v14714_v61  ;;  %4223 = vmatprep.mubr.bf16.mxu0 %v14714_v61 }
 0x3a6   : > { %6219 = vmatmul.mubr.bf16.gmra.mrb[140].mxu1 %v14716_v11  ;;  %4224 = vmatmul.mubr.bf16.gmra.mrb[140].mxu0 %v14716_v11  ;;  %v15116_v11 = vld [vmem:[%s15351_s16 + $0x2e0] ss:$8 sps:$4 sm:$0xff]  }
 0x3a7   : > { %6225 = vmatprep.mubr.bf16.mxu1 %v15113_v13  ;;  %4230 = vmatprep.mubr.bf16.mxu0 %v15113_v13  ;;  %v15117_v13 = vld [vmem:[%s15351_s16 + $0x2f4] ss:$8 sps:$4 sm:$0xff]  }
 0x3ae   : > { %6226 = vmatmul.mubr.bf16.gmra.mrb[144].mxu1 %v15114_v17  ;;  %4231 = vmatmul.mubr.bf16.gmra.mrb[144].mxu0 %v15114_v17 }
 0x3af   : > { %6233 = vmatprep.mubr.bf16.mxu1 %v15115_v23  ;;  %4240 = vmatprep.mubr.bf16.mxu0 %v15115_v23 }
 0x3b1   : > { %v16033_v27 = vpop.f32.mrb[40].mxu1  ;;  %v16035_v33 = vpop.f32.mrb[40].mxu0 }
 0x3b2   : > { %v6024_v37 = vpop.f32.mrb[41].mxu1  ;;  %v16037_v51 = vpop.f32.mrb[41].mxu0 }
 0x3b3   : > { %v16039_v60 = vpop.f32.mrb[42].mxu1  ;;  %v16041_v61 = vpop.f32.mrb[42].mxu0 }
 0x3b4   : > { %v6027_v7 = vpop.f32.mrb[43].mxu1  ;;  %v16043_v8 = vpop.f32.mrb[43].mxu0 }
 0x3b6   : > { %6234 = vmatmul.mubr.bf16.gmra.mrb[40].mxu1 %v15116_v11  ;;  %4241 = vmatmul.mubr.bf16.gmra.mrb[40].mxu0 %v15116_v11  ;;  %v15119_v11 = vld [vmem:[%s15351_s16 + $0x304] ss:$8 sps:$4 sm:$0xff]  }
 0x3b7   : > { %6241 = vmatprep.mubr.bf16.mxu1 %v15117_v13  ;;  %4250 = vmatprep.mubr.bf16.mxu0 %v15117_v13  ;;  %v14739_v13 = vld [vmem:[%s19475_s1 + $0x420] ss:$12 sps:$4 sm:$0xff]  }
 0x3b9   : > { %v16047_v17 = vpop.f32.mrb[44].mxu1  ;;  %v16049_v23 = vpop.f32.mrb[44].mxu0 }
 0x3ba   : > { %v6032_v37 = vpop.f32.mrb[45].mxu1  ;;  %v16051_v1 = vpop.f32.mrb[45].mxu0 }
 0x3bb   : > { %v16053_v3 = vpop.f32.mrb[46].mxu1  ;;  %v16055_v7 = vpop.f32.mrb[46].mxu0  ;;  %v14741_v37 = vld [vmem:[%s19475_s1 + $0x424] ss:$12 sps:$4 sm:$0xff]  }
 0x3bc   : > { %v6035_v56 = vpop.f32.mrb[47].mxu1  ;;  %v16057_v54 = vpop.f32.mrb[47].mxu0  ;;  %4603 = vmatprep.subr.bf16.mxu0 %v14741_v37  ;;  %v15121_v37 = vld [vmem:[%s15351_s16 + $0x314] ss:$8 sps:$4 sm:$0xff]  }
 0x3bd   : > { %v14742_v56 = vld [vmem:[%s19475_s1 + $0x428] ss:$12 sps:$4 sm:$0xff]   ;;  %4604 = vmatpush1.bf16.msra.mxu0 %v14739_v13 }
 0x3be   : > { %6242 = vmatmul.mubr.bf16.gmra.mrb[44].mxu1 %v15118_v50  ;;  %4251 = vmatmul.mubr.bf16.gmra.mrb[44].mxu0 %v15118_v50 }
 0x3bf   : > { %6249 = vmatprep.mubr.bf16.mxu1 %v15119_v11  ;;  %4260 = vmatprep.mubr.bf16.mxu0 %v15119_v11 }
 0x3c0   : > { %6535 = vmatpush1.bf16.msra.mxu1 %v14742_v56 }
 0x3c1   : > { %v16070_v44 = vpop.f32.mrb[48].mxu1  ;;  %v16072_v50 = vpop.f32.mrb[48].mxu0  ;;  %6536 = vmatprep.subr.bf16.mxu1 %v19672_v36 }
 0x3c2   : > { %v6040_v41 = vpop.f32.mrb[49].mxu1  ;;  %v16075_v35 = vpop.f32.mrb[49].mxu0 }
 0x3c3   : > { %v16077_v34 = vpop.f32.mrb[50].mxu1  ;;  %v16079_v32 = vpop.f32.mrb[50].mxu0 }
 0x3c4   : > { %v6043_v30 = vpop.f32.mrb[51].mxu1  ;;  %v16081_v11 = vpop.f32.mrb[51].mxu0 }
 0x3c6   : > { %6250 = vmatmul.mubr.bf16.gmra.mrb[48].mxu1 %v15120_v29  ;;  %4261 = vmatmul.mubr.bf16.gmra.mrb[48].mxu0 %v15120_v29  ;;  %v15123_v29 = vld [vmem:[%s15351_s16 + $0x324] ss:$8 sps:$4 sm:$0xff]  }
 0x3c7   : > { %6257 = vmatprep.mubr.bf16.mxu1 %v15121_v37  ;;  %4270 = vmatprep.mubr.bf16.mxu0 %v15121_v37 }
 0x3c9   : > { %v16085_v41 = vpop.f32.mrb[52].mxu1  ;;  %v16087_v13 = vpop.f32.mrb[52].mxu0 }
 0x3ca   : > { %v6048_v56 = vpop.f32.mrb[53].mxu1  ;;  %v16089_v26 = vpop.f32.mrb[53].mxu0 }
 0x3cb   : > { %v16091_v25 = vpop.f32.mrb[54].mxu1  ;;  %v16093_v30 = vpop.f32.mrb[54].mxu0 }
 0x3cc   : > { %v6051_v24 = vpop.f32.mrb[55].mxu1  ;;  %v16095_v22 = vpop.f32.mrb[55].mxu0 }
 0x3ce   : > { %6258 = vmatmul.mubr.bf16.gmra.mrb[52].mxu1 %v15122_v20  ;;  %4271 = vmatmul.mubr.bf16.gmra.mrb[52].mxu0 %v15122_v20  ;;  %v15125_v20 = vld [vmem:[%s15351_s16 + $0x334] ss:$8 sps:$4 sm:$0xff]  }
 0x3cf   : > { %6265 = vmatprep.mubr.bf16.mxu1 %v15123_v29  ;;  %4280 = vmatprep.mubr.bf16.mxu0 %v15123_v29 }
 0x3d1   : > { %v16099_v37 = vpop.f32.mrb[56].mxu1  ;;  %v16101_v56 = vpop.f32.mrb[56].mxu0 }
 0x3d2   : > { %v6056_v19 = vpop.f32.mrb[57].mxu1  ;;  %v16103_v16 = vpop.f32.mrb[57].mxu0 }
 0x3d3   : > { %v16105_v15 = vpop.f32.mrb[58].mxu1  ;;  %v16107_v24 = vpop.f32.mrb[58].mxu0 }
 0x3d4   : > { %v6059_v14 = vpop.f32.mrb[59].mxu1  ;;  %v16109_v12 = vpop.f32.mrb[59].mxu0 }
 0x3d6   : > { %6266 = vmatmul.mubr.bf16.gmra.mrb[56].mxu1 %v15124_v10  ;;  %4281 = vmatmul.mubr.bf16.gmra.mrb[56].mxu0 %v15124_v10  ;;  %v15127_v10 = vld [vmem:[%s15351_s16 + $0x344] ss:$8 sps:$4 sm:$0xff]  }
 0x3d7   : > { %6273 = vmatprep.mubr.bf16.mxu1 %v15125_v20  ;;  %4290 = vmatprep.mubr.bf16.mxu0 %v15125_v20  ;;  %v14745_v20 = vld [vmem:[%s19475_s1 + $0x43c] ss:$12 sps:$4 sm:$0xff]  }
 0x3d8   : > { %4605 = vmatprep.subr.bf16.mxu0 %v14745_v20 }
 0x3d9   : > { %v16113_v29 = vpop.f32.mrb[60].mxu1  ;;  %v16115_v19 = vpop.f32.mrb[60].mxu0 }
 0x3da   : > { %19673 = vst [vmem:[#allocation47_spill] sm:$0xff] %v16115_v19  ;;  %v6064_v9 = vpop.f32.mrb[61].mxu1  ;;  %v16117_v6 = vpop.f32.mrb[61].mxu0 }
 0x3db   : > { %19674 = vst [vmem:[#allocation48_spill] sm:$0xff] %v16117_v6  ;;  %v16119_v5 = vpop.f32.mrb[62].mxu1  ;;  %v16121_v14 = vpop.f32.mrb[62].mxu0  ;;  %v14743_v9 = vld [vmem:[%s19475_s1 + $0x438] ss:$12 sps:$4 sm:$0xff]  }
 0x3dc   : > { %19675 = vst [vmem:[#allocation49_spill] sm:$0xff] %v16119_v5  ;;  %19676 = vst [vmem:[#allocation50_spill] sm:$0xff] %v16121_v14  ;;  %v6067_v4 = vpop.f32.mrb[63].mxu1  ;;  %v16123_v2 = vpop.f32.mrb[63].mxu0  ;;  %4606 = vmatpush1.bf16.msra.mxu0 %v14743_v9 }
 0x3dd   : > { %19677 = vst [vmem:[#allocation51_spill] sm:$0xff] %v16123_v2  ;;  %v14855_v2 = vld [vmem:[%s15351_s16 + $0x260] ss:$8 sps:$4 sm:$0xff]  }
 0x3de   : > { %6274 = vmatmul.mubr.bf16.gmra.mrb[60].mxu1 %v15126_v63  ;;  %4291 = vmatmul.mubr.bf16.gmra.mrb[60].mxu0 %v15126_v63 }
 0x3df   : > { %6281 = vmatprep.mubr.bf16.mxu1 %v15127_v10  ;;  %4300 = vmatprep.mubr.bf16.mxu0 %v15127_v10 }
 0x3e1   : > { %v16133_v62 = vpop.f32.mrb[64].mxu1  ;;  %v16135_v4 = vpop.f32.mrb[64].mxu0 }
 0x3e2   : > { %19678 = vst [vmem:[#allocation52_spill] sm:$0xff] %v16133_v62  ;;  %19679 = vst [vmem:[#allocation53_spill] sm:$0xff] %v16135_v4  ;;  %v6072_v59 = vpop.f32.mrb[65].mxu1  ;;  %v16137_v63 = vpop.f32.mrb[65].mxu0 }
 0x3e3   : > { %19680 = vst [vmem:[#allocation54_spill] sm:$0xff] %v16137_v63  ;;  %v16139_v58 = vpop.f32.mrb[66].mxu1  ;;  %v16142_v55 = vpop.f32.mrb[66].mxu0  ;;  %v14746_v59 = vld [vmem:[%s19475_s1 + $0x440] ss:$12 sps:$4 sm:$0xff]  }
 0x3e4   : > { %19681 = vst [vmem:[#allocation55_spill] sm:$0xff] %v16139_v58  ;;  %19682 = vst [vmem:[#allocation56_spill] sm:$0xff] %v16142_v55  ;;  %v6075_v53 = vpop.f32.mrb[67].mxu1  ;;  %v16144_v52 = vpop.f32.mrb[67].mxu0  ;;  %6537 = vmatpush1.bf16.msra.mxu1 %v14746_v59  ;;  %v15130_v59 = vld [vmem:[%s15351_s16 + $0x380] ss:$8 sps:$4 sm:$0xff]  }
 0x3e5   : > { %19683 = vst [vmem:[#allocation57_spill] sm:$0xff] %v16144_v52  ;;  %v14725_v53 = vld [vmem:[%s15351_s16 + $0x350] ss:$8 sps:$4 sm:$0xff]   ;;  %6538 = vmatprep.subr.bf16.mxu1 %v19672_v36 }
 0x3e6   : > { %6282 = vmatmul.mubr.bf16.gmra.mrb[64].mxu1 %v15128_v49  ;;  %4301 = vmatmul.mubr.bf16.gmra.mrb[64].mxu0 %v15128_v49 }
 0x3e7   : > { %6289 = vmatprep.mubr.bf16.mxu1 %v14727_v57  ;;  %4310 = vmatprep.mubr.bf16.mxu0 %v14727_v57  ;;  %v15129_v57 = vld [vmem:[%s15351_s16 + $0x384] ss:$8 sps:$4 sm:$0xff]  }
 0x3e9   : > { %v16150_v10 = vpop.f32.mrb[68].mxu1  ;;  %v4051_v9 = vpop.f32.mrb[68].mxu0 }
 0x3ea   : > { %19684 = vst [vmem:[#allocation58_spill] sm:$0xff] %v16150_v10  ;;  %v6080_v20 = vpop.f32.mrb[69].mxu1  ;;  %v16154_v48 = vpop.f32.mrb[69].mxu0  ;;  %v15131_v9 = vld [vmem:[%s15351_s16 + $0x394] ss:$8 sps:$4 sm:$0xff]  }
 0x3eb   : > { %19685 = vst [vmem:[#allocation59_spill] sm:$0xff] %v16154_v48  ;;  %v6081_v49 = vpop.f32.mrb[70].mxu1  ;;  %v4054_v47 = vpop.f32.mrb[70].mxu0  ;;  %v15132_v20 = vld [vmem:[%s15351_s16 + $0x390] ss:$8 sps:$4 sm:$0xff]  }
 0x3ec   : > { %v6082_v45 = vpop.f32.mrb[71].mxu1  ;;  %v4055_v43 = vpop.f32.mrb[71].mxu0  ;;  %v15133_v47 = vld [vmem:[%s15351_s16 + $0x3a4] ss:$8 sps:$4 sm:$0xff]   ;;  %v14752_v49 = vld [vmem:[%s19475_s1 + $0x454] ss:$12 sps:$4 sm:$0xff]  }
 0x3ed   : > { %v15134_v43 = vld [vmem:[%s15351_s16 + $0x3a0] ss:$8 sps:$4 sm:$0xff]   ;;  %v15135_v45 = vld [vmem:[%s15351_s16 + $0x3b4] ss:$8 sps:$4 sm:$0xff]   ;;  %4607 = vmatprep.subr.bf16.mxu0 %v14752_v49 }
 0x3ee   : > { %6290 = vmatmul.mubr.bf16.gmra.mrb[68].mxu1 %v14725_v53  ;;  %4311 = vmatmul.mubr.bf16.gmra.mrb[68].mxu0 %v14725_v53  ;;  %v14750_v53 = vld [vmem:[%s19475_s1 + $0x450] ss:$12 sps:$4 sm:$0xff]   ;;  %v14754_v49 = vld [vmem:[%s19475_s1 + $0x468] ss:$12 sps:$4 sm:$0xff]  }
 0x3ef   : > { %6296 = vmatprep.mubr.bf16.mxu1 %v15129_v57  ;;  %4317 = vmatprep.mubr.bf16.mxu0 %v15129_v57  ;;  %v14753_v57 = vld [vmem:[%s19475_s1 + $0x458] ss:$12 sps:$4 sm:$0xff]  }
 0x3f0   : > { %6539 = vmatpush1.bf16.msra.mxu1 %v14753_v57  ;;  %4608 = vmatpush1.bf16.msra.mxu0 %v14750_v53  ;;  %v15143_v53 = vld [vmem:[%s15351_s16 + $0x3f4] ss:$8 sps:$4 sm:$0xff]   ;;  %v14756_v57 = vld [vmem:[%s19475_s1 + $0x46c] ss:$12 sps:$4 sm:$0xff]  }
 0x3f1   : > { %6540 = vmatprep.subr.bf16.mxu1 %v19672_v36  ;;  %v15141_v36 = vld [vmem:[%s15351_s16 + $0x3e4] ss:$8 sps:$4 sm:$0xff]   ;;  %4609 = vmatprep.subr.bf16.mxu0 %v14756_v57  ;;  %v15150_v57 = vld [vmem:[%s15351_s16 + $0x450] ss:$8 sps:$4 sm:$0xff]  }
 0x3f4   : > { %4610 = vmatpush1.bf16.msra.mxu0 %v14754_v49  ;;  %v15149_v49 = vld [vmem:[%s15351_s16 + $0x454] ss:$8 sps:$4 sm:$0xff]  }
 0x3f6   : > { %6297 = vmatmul.mubr.bf16.gmra.mrb[180].mxu1 %v15130_v59  ;;  %4318 = vmatmul.mubr.bf16.gmra.mrb[180].mxu0 %v15130_v59  ;;  %v15136_v59 = vld [vmem:[%s15351_s16 + $0x3b0] ss:$8 sps:$4 sm:$0xff]  }
 0x3f7   : > { %6304 = vmatprep.mubr.bf16.mxu1 %v15131_v9  ;;  %4327 = vmatprep.mubr.bf16.mxu0 %v15131_v9  ;;  %v15137_v9 = vld [vmem:[%s15351_s16 + $0x3c4] ss:$8 sps:$4 sm:$0xff]  }
 0x3fe   : > { %6305 = vmatmul.mubr.bf16.gmra.mrb[184].mxu1 %v15132_v20  ;;  %4328 = vmatmul.mubr.bf16.gmra.mrb[184].mxu0 %v15132_v20  ;;  %v15138_v20 = vld [vmem:[%s15351_s16 + $0x3c0] ss:$8 sps:$4 sm:$0xff]  }
 0x3ff   : > { %6312 = vmatprep.mubr.bf16.mxu1 %v15133_v47  ;;  %4337 = vmatprep.mubr.bf16.mxu0 %v15133_v47  ;;  %v15139_v47 = vld [vmem:[%s15351_s16 + $0x3d4] ss:$8 sps:$4 sm:$0xff]  }
 0x406   : > { %6313 = vmatmul.mubr.bf16.gmra.mrb[188].mxu1 %v15134_v43  ;;  %4338 = vmatmul.mubr.bf16.gmra.mrb[188].mxu0 %v15134_v43  ;;  %v15140_v43 = vld [vmem:[%s15351_s16 + $0x3d0] ss:$8 sps:$4 sm:$0xff]  }
 0x407   : > { %6320 = vmatprep.mubr.bf16.mxu1 %v15135_v45  ;;  %4347 = vmatprep.mubr.bf16.mxu0 %v15135_v45  ;;  %v15142_v45 = vld [vmem:[%s15351_s16 + $0x3e0] ss:$8 sps:$4 sm:$0xff]  }
 0x40e   : > { %6321 = vmatmul.mubr.bf16.gmra.mrb[192].mxu1 %v15136_v59  ;;  %4348 = vmatmul.mubr.bf16.gmra.mrb[192].mxu0 %v15136_v59  ;;  %v14736_v59 = vld [vmem:[%s15351_s16 + $0x404] ss:$8 sps:$4 sm:$0xff]  }
 0x40f   : > { %6328 = vmatprep.mubr.bf16.mxu1 %v15137_v9  ;;  %4357 = vmatprep.mubr.bf16.mxu0 %v15137_v9  ;;  %v15144_v9 = vld [vmem:[%s15351_s16 + $0x3f0] ss:$8 sps:$4 sm:$0xff]  }
 0x416   : > { %6329 = vmatmul.mubr.bf16.gmra.mrb[196].mxu1 %v15138_v20  ;;  %4358 = vmatmul.mubr.bf16.gmra.mrb[196].mxu0 %v15138_v20  ;;  %v14757_v20 = vld [vmem:[%s19475_s1 + $0x470] ss:$12 sps:$4 sm:$0xff]  }
 0x417   : > { %6336 = vmatprep.mubr.bf16.mxu1 %v15139_v47  ;;  %4367 = vmatprep.mubr.bf16.mxu0 %v15139_v47  ;;  %v14738_v47 = vld [vmem:[%s15351_s16 + $0x400] ss:$8 sps:$4 sm:$0xff]  }
 0x418   : > { %6541 = vmatpush1.bf16.msra.mxu1 %v14757_v20  ;;  %v15153_v20 = vld [vmem:[%s15351_s16 + $0x474] ss:$8 sps:$4 sm:$0xff]  }
 0x41e   : > { %6337 = vmatmul.mubr.bf16.gmra.mrb[200].mxu1 %v15140_v43  ;;  %4368 = vmatmul.mubr.bf16.gmra.mrb[200].mxu0 %v15140_v43  ;;  %v15145_v43 = vld [vmem:[%s15351_s16 + $0x434] ss:$8 sps:$4 sm:$0xff]  }
 0x41f   : > { %6344 = vmatprep.mubr.bf16.mxu1 %v15141_v36  ;;  %4377 = vmatprep.mubr.bf16.mxu0 %v15141_v36  ;;  %v15146_v36 = vld [vmem:[%s15351_s16 + $0x430] ss:$8 sps:$4 sm:$0xff]  }
 0x426   : > { %6345 = vmatmul.mubr.bf16.gmra.mrb[204].mxu1 %v15142_v45  ;;  %4378 = vmatmul.mubr.bf16.gmra.mrb[204].mxu0 %v15142_v45  ;;  %v15147_v45 = vld [vmem:[%s15351_s16 + $0x444] ss:$8 sps:$4 sm:$0xff]  }
 0x427   : > { %6352 = vmatprep.mubr.bf16.mxu1 %v15143_v53  ;;  %4387 = vmatprep.mubr.bf16.mxu0 %v15143_v53  ;;  %v15148_v53 = vld [vmem:[%s15351_s16 + $0x440] ss:$8 sps:$4 sm:$0xff]  }
 0x42e   : > { %6353 = vmatmul.mubr.bf16.gmra.mrb[208].mxu1 %v15144_v9  ;;  %4388 = vmatmul.mubr.bf16.gmra.mrb[208].mxu0 %v15144_v9  ;;  %v15152_v9 = vld [vmem:[%s15351_s16 + $0x460] ss:$8 sps:$4 sm:$0xff]  }
 0x42f   : > { %6360 = vmatprep.mubr.bf16.mxu1 %v14736_v59  ;;  %4397 = vmatprep.mubr.bf16.mxu0 %v14736_v59  ;;  %v15151_v59 = vld [vmem:[%s15351_s16 + $0x464] ss:$8 sps:$4 sm:$0xff]  }
 0x436   : > { %6361 = vmatmul.mubr.bf16.gmra.mrb[212].mxu1 %v14738_v47  ;;  %4398 = vmatmul.mubr.bf16.gmra.mrb[212].mxu0 %v14738_v47  ;;  %v15154_v47 = vld [vmem:[%s15351_s16 + $0x470] ss:$8 sps:$4 sm:$0xff]  }
 0x437   : > { %6367 = vmatprep.mubr.bf16.mxu1 %v15145_v43  ;;  %4404 = vmatprep.mubr.bf16.mxu0 %v15145_v43  ;;  %v15155_v43 = vld [vmem:[%s15351_s16 + $0x484] ss:$8 sps:$4 sm:$0xff]  }
 0x43e   : > { %6368 = vmatmul.mubr.bf16.gmra.mrb[216].mxu1 %v15146_v36  ;;  %4405 = vmatmul.mubr.bf16.gmra.mrb[216].mxu0 %v15146_v36  ;;  %v15156_v36 = vld [vmem:[%s15351_s16 + $0x480] ss:$8 sps:$4 sm:$0xff]  }
 0x43f   : > { %6375 = vmatprep.mubr.bf16.mxu1 %v15147_v45  ;;  %4414 = vmatprep.mubr.bf16.mxu0 %v15147_v45  ;;  %v15157_v45 = vld [vmem:[%s15351_s16 + $0x494] ss:$8 sps:$4 sm:$0xff]  }
 0x446   : > { %6376 = vmatmul.mubr.bf16.gmra.mrb[220].mxu1 %v15148_v53  ;;  %4415 = vmatmul.mubr.bf16.gmra.mrb[220].mxu0 %v15148_v53  ;;  %v15158_v53 = vld [vmem:[%s15351_s16 + $0x490] ss:$8 sps:$4 sm:$0xff]  }
 0x447   : > { %6383 = vmatprep.mubr.bf16.mxu1 %v15149_v49  ;;  %4424 = vmatprep.mubr.bf16.mxu0 %v15149_v49  ;;  %v15159_v49 = vld [vmem:[%s15351_s16 + $0x4a4] ss:$8 sps:$4 sm:$0xff]  }
 0x44e   : > { %6384 = vmatmul.mubr.bf16.gmra.mrb[224].mxu1 %v15150_v57  ;;  %4425 = vmatmul.mubr.bf16.gmra.mrb[224].mxu0 %v15150_v57  ;;  %v14747_v57 = vld [vmem:[%s15351_s16 + $0x4b4] ss:$8 sps:$4 sm:$0xff]  }
 0x44f   : > { %6391 = vmatprep.mubr.bf16.mxu1 %v15151_v59  ;;  %4434 = vmatprep.mubr.bf16.mxu0 %v15151_v59  ;;  %v15160_v59 = vld [vmem:[%s15351_s16 + $0x4a0] ss:$8 sps:$4 sm:$0xff]  }
 0x456   : > { %6392 = vmatmul.mubr.bf16.gmra.mrb[228].mxu1 %v15152_v9  ;;  %4435 = vmatmul.mubr.bf16.gmra.mrb[228].mxu0 %v15152_v9  ;;  %v14749_v9 = vld [vmem:[%s15351_s16 + $0x4b0] ss:$8 sps:$4 sm:$0xff]  }
 0x457   : > { %6399 = vmatprep.mubr.bf16.mxu1 %v15153_v20  ;;  %4444 = vmatprep.mubr.bf16.mxu0 %v15153_v20  ;;  %v15161_v20 = vld [vmem:[%s15351_s16 + $0x4e4] ss:$8 sps:$4 sm:$0xff]  }
 0x45e   : > { %6400 = vmatmul.mubr.bf16.gmra.mrb[232].mxu1 %v15154_v47  ;;  %4445 = vmatmul.mubr.bf16.gmra.mrb[232].mxu0 %v15154_v47  ;;  %v15162_v47 = vld [vmem:[%s15351_s16 + $0x4e0] ss:$8 sps:$4 sm:$0xff]  }
 0x45f   : > { %6407 = vmatprep.mubr.bf16.mxu1 %v15155_v43  ;;  %4454 = vmatprep.mubr.bf16.mxu0 %v15155_v43  ;;  %v15163_v43 = vld [vmem:[%s15351_s16 + $0x4f4] ss:$8 sps:$4 sm:$0xff]  }
 0x466   : > { %6408 = vmatmul.mubr.bf16.gmra.mrb[236].mxu1 %v15156_v36  ;;  %4455 = vmatmul.mubr.bf16.gmra.mrb[236].mxu0 %v15156_v36  ;;  %v15164_v36 = vld [vmem:[%s15351_s16 + $0x4f0] ss:$8 sps:$4 sm:$0xff]  }
 0x467   : > { %6415 = vmatprep.mubr.bf16.mxu1 %v15157_v45  ;;  %4464 = vmatprep.mubr.bf16.mxu0 %v15157_v45  ;;  %v15165_v45 = vld [vmem:[%s15351_s16 + $0x504] ss:$8 sps:$4 sm:$0xff]  }
 0x46e   : > { %6416 = vmatmul.mubr.bf16.gmra.mrb[240].mxu1 %v15158_v53  ;;  %4465 = vmatmul.mubr.bf16.gmra.mrb[240].mxu0 %v15158_v53  ;;  %v15166_v53 = vld [vmem:[%s15351_s16 + $0x500] ss:$8 sps:$4 sm:$0xff]  }
 0x46f   : > { %6423 = vmatprep.mubr.bf16.mxu1 %v15159_v49  ;;  %4474 = vmatprep.mubr.bf16.mxu0 %v15159_v49  ;;  %v15167_v49 = vld [vmem:[%s15351_s16 + $0x514] ss:$8 sps:$4 sm:$0xff]  }
 0x476   : > { %6424 = vmatmul.mubr.bf16.gmra.mrb[244].mxu1 %v15160_v59  ;;  %4475 = vmatmul.mubr.bf16.gmra.mrb[244].mxu0 %v15160_v59  ;;  %v15169_v59 = vld [vmem:[%s15351_s16 + $0x524] ss:$8 sps:$4 sm:$0xff]  }
 0x477   : > { %6431 = vmatprep.mubr.bf16.mxu1 %v14747_v57  ;;  %4484 = vmatprep.mubr.bf16.mxu0 %v14747_v57  ;;  %v15168_v57 = vld [vmem:[%s15351_s16 + $0x510] ss:$8 sps:$4 sm:$0xff]  }
 0x47e   : > { %6432 = vmatmul.mubr.bf16.gmra.mrb[248].mxu1 %v14749_v9  ;;  %4485 = vmatmul.mubr.bf16.gmra.mrb[248].mxu0 %v14749_v9  ;;  %v14769_v9 = vld [vmem:[%s15351_s16 + $0x40] ss:$8 sps:$4 sm:$0xff]  }
 0x47f   : > { %6438 = vmatprep.mubr.bf16.mxu1 %v15161_v20  ;;  %4491 = vmatprep.mubr.bf16.mxu0 %v15161_v20  ;;  %v14770_v20 = vld [vmem:[%s15351_s16 + $0x54] ss:$8 sps:$4 sm:$0xff]  }
 0x486   : > { %6439 = vmatmul.mubr.bf16.gmra.mrb[252].mxu1 %v15162_v47  ;;  %4492 = vmatmul.mubr.bf16.gmra.mrb[252].mxu0 %v15162_v47  ;;  %v14772_v47 = vld [vmem:[%s15351_s16 + $0x50] ss:$8 sps:$4 sm:$0xff]  }
 0x487   : > { %6446 = vmatprep.mubr.bf16.mxu1 %v15163_v43  ;;  %4501 = vmatprep.mubr.bf16.mxu0 %v15163_v43  ;;  %v14773_v43 = vld [vmem:[%s15351_s16 + $0x64] ss:$8 sps:$4 sm:$0xff]  }
 0x48e   : > { %6447 = vmatmul.mubr.bf16.gmra.mrb[148].mxu1 %v15164_v36  ;;  %4502 = vmatmul.mubr.bf16.gmra.mrb[148].mxu0 %v15164_v36  ;;  %v14775_v36 = vld [vmem:[%s15351_s16 + $0x60] ss:$8 sps:$4 sm:$0xff]  }
 0x48f   : > { %6454 = vmatprep.mubr.bf16.mxu1 %v15165_v45  ;;  %4511 = vmatprep.mubr.bf16.mxu0 %v15165_v45  ;;  %v14776_v45 = vld [vmem:[%s15351_s16 + $0x74] ss:$8 sps:$4 sm:$0xff]  }
 0x496   : > { %6455 = vmatmul.mubr.bf16.gmra.mrb[152].mxu1 %v15166_v53  ;;  %4512 = vmatmul.mubr.bf16.gmra.mrb[152].mxu0 %v15166_v53  ;;  %v14778_v53 = vld [vmem:[%s15351_s16 + $0x70] ss:$8 sps:$4 sm:$0xff]  }
 0x497   : > { %6462 = vmatprep.mubr.bf16.mxu1 %v15167_v49  ;;  %4521 = vmatprep.mubr.bf16.mxu0 %v15167_v49  ;;  %v14779_v49 = vld [vmem:[%s15351_s16 + $0x84] ss:$8 sps:$4 sm:$0xff]  }
 0x49e   : > { %6463 = vmatmul.mubr.bf16.gmra.mrb[156].mxu1 %v15168_v57  ;;  %4522 = vmatmul.mubr.bf16.gmra.mrb[156].mxu0 %v15168_v57  ;;  %v14781_v57 = vld [vmem:[%s15351_s16 + $0x80] ss:$8 sps:$4 sm:$0xff]  }
 0x49f   : > { %6470 = vmatprep.mubr.bf16.mxu1 %v15169_v59  ;;  %4531 = vmatprep.mubr.bf16.mxu0 %v15169_v59  ;;  %v14782_v59 = vld [vmem:[%s15351_s16 + $0x94] ss:$8 sps:$4 sm:$0xff]  }
 0x4a6   : > { %6471 = vmatmul.mubr.bf16.gmra.mrb[160].mxu1 %v15771_v18  ;;  %4532 = vmatmul.mubr.bf16.gmra.mrb[160].mxu0 %v15771_v18  ;;  %v14760_v18 = vld [vmem:[%s15351_s16 + $0x564] ss:$8 sps:$4 sm:$0xff]  }
 0x4a7   : > { %6478 = vmatprep.mubr.bf16.mxu1 %v15778_v21  ;;  %4541 = vmatprep.mubr.bf16.mxu0 %v15778_v21  ;;  %v14758_v21 = vld [vmem:[%s15351_s16 + $0x560] ss:$8 sps:$4 sm:$0xff]  }
 0x4ae   : > { %6479 = vmatmul.mubr.bf16.gmra.mrb[164].mxu1 %v15793_v28  ;;  %4542 = vmatmul.mubr.bf16.gmra.mrb[164].mxu0 %v15793_v28  ;;  %v14763_v28 = vld [vmem:[%s15351_s16 + $0x24] ss:$8 sps:$4 sm:$0xff]  }
 0x4af   : > { %6486 = vmatprep.mubr.bf16.mxu1 %v15800_v31  ;;  %4551 = vmatprep.mubr.bf16.mxu0 %v15800_v31  ;;  %v14761_v31 = vld [vmem:[%s15351_s16 + $0x20] ss:$8 sps:$4 sm:$0xff]  }
 0x4b6   : > { %6487 = vmatmul.mubr.bf16.gmra.mrb[168].mxu1 %v15815_v40  ;;  %4552 = vmatmul.mubr.bf16.gmra.mrb[168].mxu0 %v15815_v40  ;;  %v14764_v40 = vld [vmem:[%s15351_s16 + $0x34] ss:$8 sps:$4 sm:$0xff]  }
 0x4b7   : > { %6494 = vmatprep.mubr.bf16.mxu1 %v15822_v46  ;;  %4561 = vmatprep.mubr.bf16.mxu0 %v15822_v46  ;;  %v14766_v46 = vld [vmem:[%s15351_s16 + $0x30] ss:$8 sps:$4 sm:$0xff]  }
 0x4be   : > { %6495 = vmatmul.mubr.bf16.gmra.mrb[172].mxu1 %v15835_v0  ;;  %4562 = vmatmul.mubr.bf16.gmra.mrb[172].mxu0 %v15835_v0  ;;  %v14767_v0 = vld [vmem:[%s15351_s16 + $0x44] ss:$8 sps:$4 sm:$0xff]  }
 0x4bf   : > { %6502 = vmatprep.mubr.bf16.mxu1 %v14760_v18  ;;  %4571 = vmatprep.mubr.bf16.mxu0 %v14760_v18  ;;  %v14784_v18 = vld [vmem:[%s15351_s16 + $0x90] ss:$8 sps:$4 sm:$0xff]  }
 0x4c6   : > { %6503 = vmatmul.mubr.bf16.gmra.mrb[176].mxu1 %v14758_v21  ;;  %4572 = vmatmul.mubr.bf16.gmra.mrb[176].mxu0 %v14758_v21  ;;  %v14785_v21 = vld [vmem:[%s15351_s16 + $0xa4] ss:$8 sps:$4 sm:$0xff]  }
 0x4c7   : > { %6542 = vmatprep.mubr.bf16.mxu1 %v14763_v28  ;;  %4611 = vmatprep.mubr.bf16.mxu0 %v14763_v28  ;;  %v14787_v28 = vld [vmem:[%s15351_s16 + $0xa0] ss:$8 sps:$4 sm:$0xff]  }
 0x4ce   : > { %6543 = vmatmul.mubr.bf16.vlgmr.msra.gmra.mrb[0].mxu1 %v14761_v31  ;;  %4612 = vmatmul.mubr.bf16.vlgmr.msra.gmra.mrb[0].mxu0 %v14761_v31  ;;  %v14788_v31 = vld [vmem:[%s15351_s16 + $0xd4] ss:$8 sps:$4 sm:$0xff]  }
 0x4cf   : > { %6550 = vmatprep.mubr.bf16.mxu1 %v14764_v40  ;;  %4621 = vmatprep.mubr.bf16.mxu0 %v14764_v40  ;;  %v14836_v40 = vld [vmem:[%s19478_s4 + $0x40] sm:$0xff]  }
 0x4d0   : > { %13209 = vmatprep.subr.bf16.mxu1 %v14836_v40  ;;  %12689 = vmatprep.subr.bf16.mxu0 %v14836_v40  ;;  %v14794_v40 = vld [vmem:[%s15351_s16 + $0xf0] ss:$8 sps:$4 sm:$0xff]  }
 0x4d6   : > { %6551 = vmatmul.mubr.bf16.gmra.mrb[4].mxu1 %v14766_v46  ;;  %4622 = vmatmul.mubr.bf16.gmra.mrb[4].mxu0 %v14766_v46  ;;  %v14837_v46 = vld [vmem:[%s19478_s4] sm:$0xff]  }
 0x4d7   : > { %6558 = vmatprep.mubr.bf16.mxu1 %v14767_v0  ;;  %4631 = vmatprep.mubr.bf16.mxu0 %v14767_v0  ;;  %v14790_v0 = vld [vmem:[%s15351_s16 + $0xd0] ss:$8 sps:$4 sm:$0xff]  }
 0x4d8   : > { %13217 = vmatpush3.bf16.msra.mxu1 %v14837_v46  ;;  %12690 = vmatpush3.bf16.msra.mxu0 %v14837_v46 }
 0x4de   : > { %6559 = vmatmul.mubr.bf16.gmra.mrb[8].mxu1 %v14769_v9  ;;  %4632 = vmatmul.mubr.bf16.gmra.mrb[8].mxu0 %v14769_v9  ;;  %v14793_v9 = vld [vmem:[%s15351_s16 + $0xe4] ss:$8 sps:$4 sm:$0xff]  }
 0x4df   : > { %6566 = vmatprep.mubr.bf16.mxu1 %v14770_v20  ;;  %4641 = vmatprep.mubr.bf16.mxu0 %v14770_v20 }
 0x4e6   : > { %6567 = vmatmul.mubr.bf16.gmra.mrb[12].mxu1 %v14772_v47  ;;  %4642 = vmatmul.mubr.bf16.gmra.mrb[12].mxu0 %v14772_v47 }
 0x4e7   : > { %6574 = vmatprep.mubr.bf16.mxu1 %v14773_v43  ;;  %4651 = vmatprep.mubr.bf16.mxu0 %v14773_v43 }
 0x4ee   : > { %6575 = vmatmul.mubr.bf16.gmra.mrb[16].mxu1 %v14775_v36  ;;  %4652 = vmatmul.mubr.bf16.gmra.mrb[16].mxu0 %v14775_v36  ;;  %v14791_v36 = vld [vmem:[%s15351_s16 + $0xe0] ss:$8 sps:$4 sm:$0xff]  }
 0x4ef   : > { %6582 = vmatprep.mubr.bf16.mxu1 %v14776_v45  ;;  %4661 = vmatprep.mubr.bf16.mxu0 %v14776_v45 }
 0x4f6   : > { %6583 = vmatmul.mubr.bf16.gmra.mrb[20].mxu1 %v14778_v53  ;;  %4662 = vmatmul.mubr.bf16.gmra.mrb[20].mxu0 %v14778_v53 }
 0x4f7   : > { %6590 = vmatprep.mubr.bf16.mxu1 %v14779_v49  ;;  %4671 = vmatprep.mubr.bf16.mxu0 %v14779_v49  ;;  %v14796_v49 = vld [vmem:[%s15351_s16 + $0xf4] ss:$8 sps:$4 sm:$0xff]  }
 0x4fe   : > { %6591 = vmatmul.mubr.bf16.gmra.mrb[24].mxu1 %v14781_v57  ;;  %4672 = vmatmul.mubr.bf16.gmra.mrb[24].mxu0 %v14781_v57 }
 0x4ff   : > { %6598 = vmatprep.mubr.bf16.mxu1 %v14782_v59  ;;  %4681 = vmatprep.mubr.bf16.mxu0 %v14782_v59 }
 0x506   : > { %6599 = vmatmul.mubr.bf16.gmra.mrb[28].mxu1 %v14784_v18  ;;  %4682 = vmatmul.mubr.bf16.gmra.mrb[28].mxu0 %v14784_v18 }
 0x507   : > { %6606 = vmatprep.mubr.bf16.mxu1 %v14785_v21  ;;  %4691 = vmatprep.mubr.bf16.mxu0 %v14785_v21 }
 0x50e   : > { %6607 = vmatmul.mubr.bf16.gmra.mrb[32].mxu1 %v14787_v28  ;;  %4692 = vmatmul.mubr.bf16.gmra.mrb[32].mxu0 %v14787_v28 }
 0x50f   : > { %6613 = vmatprep.mubr.bf16.mxu1 %v14788_v31  ;;  %4698 = vmatprep.mubr.bf16.mxu0 %v14788_v31 }
 0x516   : > { %6614 = vmatmul.mubr.bf16.gmra.mrb[36].mxu1 %v14790_v0  ;;  %4699 = vmatmul.mubr.bf16.gmra.mrb[36].mxu0 %v14790_v0 }
 0x517   : > { %6621 = vmatprep.mubr.bf16.mxu1 %v14793_v9  ;;  %4708 = vmatprep.mubr.bf16.mxu0 %v14793_v9  ;;  %v14799_v9 = vld [vmem:[%s15351_s16 + $0x104] ss:$8 sps:$4 sm:$0xff]  }
 0x519   : > { %v16263_v20 = vpop.f32.mrb[220].mxu1  ;;  %v16265_v47 = vpop.f32.mrb[220].mxu0 }
 0x51a   : > { %19686 = vst [vmem:[#allocation60_spill] sm:$0xff] %v16263_v20  ;;  %19687 = vst [vmem:[#allocation61_spill] sm:$0xff] %v16265_v47  ;;  %v6379_v43 = vpop.f32.mrb[221].mxu1  ;;  %v16268_v45 = vpop.f32.mrb[221].mxu0 }
 0x51b   : > { %19688 = vst [vmem:[#allocation62_spill] sm:$0xff] %v16268_v45  ;;  %v16270_v53 = vpop.f32.mrb[222].mxu1  ;;  %v16273_v57 = vpop.f32.mrb[222].mxu0 }
 0x51c   : > { %19689 = vst [vmem:[#allocation63_spill] sm:$0xff] %v16270_v53  ;;  %19690 = vst [vmem:[#allocation64_spill] sm:$0xff] %v16273_v57  ;;  %v6382_v59 = vpop.f32.mrb[223].mxu1  ;;  %v16275_v18 = vpop.f32.mrb[223].mxu0 }
 0x51d   : > { %19691 = vst [vmem:[#allocation65_spill] sm:$0xff] %v16275_v18 }
 0x51e   : > { %6622 = vmatmul.mubr.bf16.gmra.mrb[220].mxu1 %v14791_v36  ;;  %4709 = vmatmul.mubr.bf16.gmra.mrb[220].mxu0 %v14791_v36 }
 0x51f   : > { %6629 = vmatprep.mubr.bf16.mxu1 %v14796_v49  ;;  %4718 = vmatprep.mubr.bf16.mxu0 %v14796_v49 }
 0x521   : > { %v16277_v21 = vpop.f32.mrb[224].mxu1  ;;  %v16279_v28 = vpop.f32.mrb[224].mxu0 }
 0x522   : > { %19692 = vst [vmem:[#allocation66_spill] sm:$0xff] %v16277_v21  ;;  %19693 = vst [vmem:[#allocation67_spill] sm:$0xff] %v16279_v28  ;;  %v6387_v31 = vpop.f32.mrb[225].mxu1  ;;  %v16282_v46 = vpop.f32.mrb[225].mxu0 }
 0x523   : > { %19694 = vst [vmem:[#allocation68_spill] sm:$0xff] %v16282_v46  ;;  %v16284_v0 = vpop.f32.mrb[226].mxu1  ;;  %v16287_v43 = vpop.f32.mrb[226].mxu0  ;;  %v14797_v46 = vld [vmem:[%s15351_s16 + $0x100] ss:$8 sps:$4 sm:$0xff]  }
 0x524   : > { %19695 = vst [vmem:[#allocation69_spill] sm:$0xff] %v16284_v0  ;;  %19696 = vst [vmem:[#allocation70_spill] sm:$0xff] %v16287_v43  ;;  %v6390_v59 = vpop.f32.mrb[227].mxu1  ;;  %v16289_v18 = vpop.f32.mrb[227].mxu0  ;;  %v14802_v43 = vld [vmem:[%s15351_s16 + $0x114] ss:$8 sps:$4 sm:$0xff]  }
 0x525   : > { %19697 = vst [vmem:[#allocation71_spill] sm:$0xff] %v16289_v18 }
 0x526   : > { %6630 = vmatmul.mubr.bf16.gmra.mrb[224].mxu1 %v14794_v40  ;;  %4719 = vmatmul.mubr.bf16.gmra.mrb[224].mxu0 %v14794_v40 }
 0x527   : > { %6637 = vmatprep.mubr.bf16.mxu1 %v14799_v9  ;;  %4728 = vmatprep.mubr.bf16.mxu0 %v14799_v9 }
 0x529   : > { %v16291_v36 = vpop.f32.mrb[228].mxu1  ;;  %v16293_v49 = vpop.f32.mrb[228].mxu0 }
 0x52a   : > { %19698 = vst [vmem:[#allocation72_spill] sm:$0xff] %v16291_v36  ;;  %19699 = vst [vmem:[#allocation73_spill] sm:$0xff] %v16293_v49  ;;  %v6395_v31 = vpop.f32.mrb[229].mxu1  ;;  %v16296_v28 = vpop.f32.mrb[229].mxu0 }
 0x52b   : > { %19700 = vst [vmem:[#allocation74_spill] sm:$0xff] %v16296_v28  ;;  %v16298_v0 = vpop.f32.mrb[230].mxu1  ;;  %v16301_v59 = vpop.f32.mrb[230].mxu0  ;;  %v14800_v28 = vld [vmem:[%s15351_s16 + $0x110] ss:$8 sps:$4 sm:$0xff]  }
 0x52c   : > { %19701 = vst [vmem:[#allocation75_spill] sm:$0xff] %v16298_v0  ;;  %19702 = vst [vmem:[#allocation76_spill] sm:$0xff] %v16301_v59  ;;  %v6398_v18 = vpop.f32.mrb[231].mxu1  ;;  %v16303_v21 = vpop.f32.mrb[231].mxu0  ;;  %v14805_v59 = vld [vmem:[%s15351_s16 + $0x124] ss:$8 sps:$4 sm:$0xff]  }
 0x52d   : > { %19703 = vst [vmem:[#allocation77_spill] sm:$0xff] %v16303_v21 }
 0x52e   : > { %6638 = vmatmul.mubr.bf16.gmra.mrb[228].mxu1 %v14797_v46  ;;  %4729 = vmatmul.mubr.bf16.gmra.mrb[228].mxu0 %v14797_v46 }
 0x52f   : > { %6645 = vmatprep.mubr.bf16.mxu1 %v14802_v43  ;;  %4738 = vmatprep.mubr.bf16.mxu0 %v14802_v43 }
 0x531   : > { %v16305_v40 = vpop.f32.mrb[232].mxu1  ;;  %v16307_v9 = vpop.f32.mrb[232].mxu0 }
 0x532   : > { %19704 = vst [vmem:[#allocation78_spill] sm:$0xff] %v16305_v40  ;;  %19705 = vst [vmem:[#allocation79_spill] sm:$0xff] %v16307_v9  ;;  %v6403_v31 = vpop.f32.mrb[233].mxu1  ;;  %v16310_v49 = vpop.f32.mrb[233].mxu0 }
 0x533   : > { %19706 = vst [vmem:[#allocation80_spill] sm:$0xff] %v16310_v49  ;;  %v16312_v0 = vpop.f32.mrb[234].mxu1  ;;  %v16315_v18 = vpop.f32.mrb[234].mxu0  ;;  %v14803_v49 = vld [vmem:[%s15351_s16 + $0x120] ss:$8 sps:$4 sm:$0xff]  }
 0x534   : > { %19707 = vst [vmem:[#allocation81_spill] sm:$0xff] %v16312_v0  ;;  %19708 = vst [vmem:[#allocation82_spill] sm:$0xff] %v16315_v18  ;;  %v6406_v21 = vpop.f32.mrb[235].mxu1  ;;  %v16317_v36 = vpop.f32.mrb[235].mxu0  ;;  %v14808_v18 = vld [vmem:[%s15351_s16 + $0x134] ss:$8 sps:$4 sm:$0xff]  }
 0x535   : > { %19709 = vst [vmem:[#allocation83_spill] sm:$0xff] %v16317_v36 }
 0x536   : > { %6646 = vmatmul.mubr.bf16.gmra.mrb[232].mxu1 %v14800_v28  ;;  %4739 = vmatmul.mubr.bf16.gmra.mrb[232].mxu0 %v14800_v28 }
 0x537   : > { %6653 = vmatprep.mubr.bf16.mxu1 %v14805_v59  ;;  %4748 = vmatprep.mubr.bf16.mxu0 %v14805_v59 }
 0x539   : > { %v16319_v46 = vpop.f32.mrb[236].mxu1  ;;  %v16321_v43 = vpop.f32.mrb[236].mxu0 }
 0x53a   : > { %19710 = vst [vmem:[#allocation84_spill] sm:$0xff] %v16319_v46  ;;  %19711 = vst [vmem:[#allocation85_spill] sm:$0xff] %v16321_v43  ;;  %v6411_v31 = vpop.f32.mrb[237].mxu1  ;;  %v16324_v9 = vpop.f32.mrb[237].mxu0 }
 0x53b   : > { %19712 = vst [vmem:[#allocation86_spill] sm:$0xff] %v16324_v9  ;;  %v16326_v0 = vpop.f32.mrb[238].mxu1  ;;  %v16329_v21 = vpop.f32.mrb[238].mxu0  ;;  %v14806_v9 = vld [vmem:[%s15351_s16 + $0x130] ss:$8 sps:$4 sm:$0xff]  }
 0x53c   : > { %19713 = vst [vmem:[#allocation87_spill] sm:$0xff] %v16326_v0  ;;  %19714 = vst [vmem:[#allocation88_spill] sm:$0xff] %v16329_v21  ;;  %v6414_v36 = vpop.f32.mrb[239].mxu1  ;;  %v16331_v40 = vpop.f32.mrb[239].mxu0  ;;  %v14811_v21 = vld [vmem:[%s15351_s16 + $0x144] ss:$8 sps:$4 sm:$0xff]  }
 0x53d   : > { %19715 = vst [vmem:[#allocation89_spill] sm:$0xff] %v16331_v40 }
 0x53e   : > { %6654 = vmatmul.mubr.bf16.gmra.mrb[236].mxu1 %v14803_v49  ;;  %4749 = vmatmul.mubr.bf16.gmra.mrb[236].mxu0 %v14803_v49 }
 0x53f   : > { %6661 = vmatprep.mubr.bf16.mxu1 %v14808_v18  ;;  %4758 = vmatprep.mubr.bf16.mxu0 %v14808_v18 }
 0x541   : > { %v16333_v28 = vpop.f32.mrb[240].mxu1  ;;  %v16335_v59 = vpop.f32.mrb[240].mxu0 }
 0x542   : > { %19716 = vst [vmem:[#allocation90_spill] sm:$0xff] %v16333_v28  ;;  %19717 = vst [vmem:[#allocation91_spill] sm:$0xff] %v16335_v59  ;;  %v6419_v31 = vpop.f32.mrb[241].mxu1  ;;  %v16338_v43 = vpop.f32.mrb[241].mxu0 }
 0x543   : > { %19718 = vst [vmem:[#allocation92_spill] sm:$0xff] %v16338_v43  ;;  %v16340_v0 = vpop.f32.mrb[242].mxu1  ;;  %v16343_v36 = vpop.f32.mrb[242].mxu0  ;;  %v14809_v43 = vld [vmem:[%s15351_s16 + $0x140] ss:$8 sps:$4 sm:$0xff]  }
 0x544   : > { %19719 = vst [vmem:[#allocation93_spill] sm:$0xff] %v16340_v0  ;;  %19720 = vst [vmem:[#allocation94_spill] sm:$0xff] %v16343_v36  ;;  %v6422_v40 = vpop.f32.mrb[243].mxu1  ;;  %v16345_v46 = vpop.f32.mrb[243].mxu0  ;;  %v14814_v36 = vld [vmem:[%s15351_s16 + $0x154] ss:$8 sps:$4 sm:$0xff]  }
 0x545   : > { %19721 = vst [vmem:[#allocation95_spill] sm:$0xff] %v16345_v46 }
 0x546   : > { %6662 = vmatmul.mubr.bf16.gmra.mrb[240].mxu1 %v14806_v9  ;;  %4759 = vmatmul.mubr.bf16.gmra.mrb[240].mxu0 %v14806_v9 }
 0x547   : > { %6669 = vmatprep.mubr.bf16.mxu1 %v14811_v21  ;;  %4768 = vmatprep.mubr.bf16.mxu0 %v14811_v21 }
 0x549   : > { %v16347_v49 = vpop.f32.mrb[244].mxu1  ;;  %v16349_v18 = vpop.f32.mrb[244].mxu0 }
 0x54a   : > { %19722 = vst [vmem:[#allocation96_spill] sm:$0xff] %v16347_v49  ;;  %19723 = vst [vmem:[#allocation97_spill] sm:$0xff] %v16349_v18  ;;  %v6427_v31 = vpop.f32.mrb[245].mxu1  ;;  %v16352_v59 = vpop.f32.mrb[245].mxu0 }
 0x54b   : > { %19724 = vst [vmem:[#allocation98_spill] sm:$0xff] %v16352_v59  ;;  %v16354_v0 = vpop.f32.mrb[246].mxu1  ;;  %v16357_v40 = vpop.f32.mrb[246].mxu0  ;;  %v14812_v59 = vld [vmem:[%s15351_s16 + $0x150] ss:$8 sps:$4 sm:$0xff]  }
 0x54c   : > { %19725 = vst [vmem:[#allocation99_spill] sm:$0xff] %v16354_v0  ;;  %19726 = vst [vmem:[#allocation100_spill] sm:$0xff] %v16357_v40  ;;  %v6430_v46 = vpop.f32.mrb[247].mxu1  ;;  %v16359_v28 = vpop.f32.mrb[247].mxu0  ;;  %v14815_v40 = vld [vmem:[%s15351_s16 + $0x184] ss:$8 sps:$4 sm:$0xff]  }
 0x54d   : > { %19727 = vst [vmem:[#allocation101_spill] sm:$0xff] %v16359_v28 }
 0x54e   : > { %6670 = vmatmul.mubr.bf16.gmra.mrb[244].mxu1 %v14809_v43  ;;  %4769 = vmatmul.mubr.bf16.gmra.mrb[244].mxu0 %v14809_v43  ;;  %v14817_v43 = vld [vmem:[%s15351_s16 + $0x180] ss:$8 sps:$4 sm:$0xff]  }
 0x54f   : > { %6677 = vmatprep.mubr.bf16.mxu1 %v14814_v36  ;;  %4778 = vmatprep.mubr.bf16.mxu0 %v14814_v36  ;;  %v14818_v36 = vld [vmem:[%s15351_s16 + $0x194] ss:$8 sps:$4 sm:$0xff]  }
 0x551   : > { %v16361_v9 = vpop.f32.mrb[248].mxu1  ;;  %v4486_v21 = vpop.f32.mrb[248].mxu0 }
 0x552   : > { %19728 = vst [vmem:[#allocation102_spill] sm:$0xff] %v16361_v9  ;;  %v6435_v31 = vpop.f32.mrb[249].mxu1  ;;  %v16364_v18 = vpop.f32.mrb[249].mxu0  ;;  %v14820_v21 = vld [vmem:[%s15351_s16 + $0x190] ss:$8 sps:$4 sm:$0xff]  }
 0x553   : > { %19729 = vst [vmem:[#allocation103_spill] sm:$0xff] %v16364_v18  ;;  %v6436_v0 = vpop.f32.mrb[250].mxu1  ;;  %v4489_v46 = vpop.f32.mrb[250].mxu0  ;;  %v14821_v31 = vld [vmem:[%s15351_s16 + $0x1a4] ss:$8 sps:$4 sm:$0xff]  }
 0x554   : > { %v6437_v49 = vpop.f32.mrb[251].mxu1  ;;  %v4490_v28 = vpop.f32.mrb[251].mxu0  ;;  %v14865_v0 = vld [vmem:[%s19478_s4 + $0x48] sm:$0xff]  }
 0x555   : > { %13210 = vmatprep.subr.bf16.mxu1 %v14865_v0  ;;  %12691 = vmatprep.subr.bf16.mxu0 %v14865_v0  ;;  %v14866_v28 = vld [vmem:[%s19478_s4 + $0x8] sm:$0xff]   ;;  %v14824_v49 = vld [vmem:[%s15351_s16 + $0x1b4] ss:$8 sps:$4 sm:$0xff]  }
 0x556   : > { %6678 = vmatmul.mubr.bf16.gmra.mrb[248].mxu1 %v14812_v59  ;;  %4779 = vmatmul.mubr.bf16.gmra.mrb[248].mxu0 %v14812_v59  ;;  %v14823_v59 = vld [vmem:[%s15351_s16 + $0x1a0] ss:$8 sps:$4 sm:$0xff]   ;;  %v14827_v46 = vld [vmem:[%s15351_s16 + $0x1c4] ss:$8 sps:$4 sm:$0xff]  }
 0x557   : > { %6684 = vmatprep.mubr.bf16.mxu1 %v14815_v40  ;;  %4785 = vmatprep.mubr.bf16.mxu0 %v14815_v40  ;;  %v14826_v40 = vld [vmem:[%s15351_s16 + $0x1b0] ss:$8 sps:$4 sm:$0xff]   ;;  %v14835_v0 = vld [vmem:[%s15351_s16 + $0x1e0] ss:$8 sps:$4 sm:$0xff]   ;;  %v14847_v18 = vld [vmem:[%s15351_s16 + $0x244] ss:$8 sps:$4 sm:$0xff]  }
 0x558   : > { %13218 = vmatpush3.bf16.msra.mxu1 %v14866_v28  ;;  %12692 = vmatpush3.bf16.msra.mxu0 %v14866_v28  ;;  %v14838_v28 = vld [vmem:[%s15351_s16 + $0x1f4] ss:$8 sps:$4 sm:$0xff]  }
 0x55e   : > { %6685 = vmatmul.mubr.bf16.gmra.mrb[72].mxu1 %v14817_v43  ;;  %4786 = vmatmul.mubr.bf16.gmra.mrb[72].mxu0 %v14817_v43  ;;  %v14829_v43 = vld [vmem:[%s15351_s16 + $0x1c0] ss:$8 sps:$4 sm:$0xff]  }
 0x55f   : > { %6692 = vmatprep.mubr.bf16.mxu1 %v14818_v36  ;;  %4795 = vmatprep.mubr.bf16.mxu0 %v14818_v36  ;;  %v14830_v36 = vld [vmem:[%s15351_s16 + $0x1d4] ss:$8 sps:$4 sm:$0xff]  }
 0x566   : > { %6693 = vmatmul.mubr.bf16.gmra.mrb[76].mxu1 %v14820_v21  ;;  %4796 = vmatmul.mubr.bf16.gmra.mrb[76].mxu0 %v14820_v21  ;;  %v14832_v21 = vld [vmem:[%s15351_s16 + $0x1d0] ss:$8 sps:$4 sm:$0xff]  }
 0x567   : > { %6700 = vmatprep.mubr.bf16.mxu1 %v14821_v31  ;;  %4805 = vmatprep.mubr.bf16.mxu0 %v14821_v31  ;;  %v14833_v31 = vld [vmem:[%s15351_s16 + $0x1e4] ss:$8 sps:$4 sm:$0xff]  }
 0x56e   : > { %6701 = vmatmul.mubr.bf16.gmra.mrb[80].mxu1 %v14823_v59  ;;  %4806 = vmatmul.mubr.bf16.gmra.mrb[80].mxu0 %v14823_v59  ;;  %v14840_v59 = vld [vmem:[%s15351_s16 + $0x1f0] ss:$8 sps:$4 sm:$0xff]  }
 0x56f   : > { %6708 = vmatprep.mubr.bf16.mxu1 %v14824_v49  ;;  %4815 = vmatprep.mubr.bf16.mxu0 %v14824_v49  ;;  %v14841_v49 = vld [vmem:[%s15351_s16 + $0x204] ss:$8 sps:$4 sm:$0xff]  }
 0x576   : > { %6709 = vmatmul.mubr.bf16.gmra.mrb[84].mxu1 %v14826_v40  ;;  %4816 = vmatmul.mubr.bf16.gmra.mrb[84].mxu0 %v14826_v40  ;;  %v14843_v40 = vld [vmem:[%s15351_s16 + $0x200] ss:$8 sps:$4 sm:$0xff]  }
 0x577   : > { %6716 = vmatprep.mubr.bf16.mxu1 %v14827_v46  ;;  %4825 = vmatprep.mubr.bf16.mxu0 %v14827_v46  ;;  %v14844_v46 = vld [vmem:[%s15351_s16 + $0x234] ss:$8 sps:$4 sm:$0xff]  }
 0x57e   : > { %6717 = vmatmul.mubr.bf16.gmra.mrb[88].mxu1 %v14829_v43  ;;  %4826 = vmatmul.mubr.bf16.gmra.mrb[88].mxu0 %v14829_v43 }
 0x57f   : > { %6724 = vmatprep.mubr.bf16.mxu1 %v14830_v36  ;;  %4835 = vmatprep.mubr.bf16.mxu0 %v14830_v36 }
 0x586   : > { %6725 = vmatmul.mubr.bf16.gmra.mrb[92].mxu1 %v14832_v21  ;;  %4836 = vmatmul.mubr.bf16.gmra.mrb[92].mxu0 %v14832_v21 }
 0x587   : > { %6732 = vmatprep.mubr.bf16.mxu1 %v14833_v31  ;;  %4845 = vmatprep.mubr.bf16.mxu0 %v14833_v31  ;;  %v14846_v31 = vld [vmem:[%s15351_s16 + $0x230] ss:$8 sps:$4 sm:$0xff]  }
 0x58e   : > { %6733 = vmatmul.mubr.bf16.gmra.mrb[96].mxu1 %v14835_v0  ;;  %4846 = vmatmul.mubr.bf16.gmra.mrb[96].mxu0 %v14835_v0 }
 0x58f   : > { %6740 = vmatprep.mubr.bf16.mxu1 %v14838_v28  ;;  %4855 = vmatprep.mubr.bf16.mxu0 %v14838_v28 }
 0x596   : > { %6741 = vmatmul.mubr.bf16.gmra.mrb[100].mxu1 %v14840_v59  ;;  %4856 = vmatmul.mubr.bf16.gmra.mrb[100].mxu0 %v14840_v59 }
 0x597   : > { %6748 = vmatprep.mubr.bf16.mxu1 %v14841_v49  ;;  %4865 = vmatprep.mubr.bf16.mxu0 %v14841_v49 }
 0x59e   : > { %6749 = vmatmul.mubr.bf16.gmra.mrb[104].mxu1 %v14843_v40  ;;  %4866 = vmatmul.mubr.bf16.gmra.mrb[104].mxu0 %v14843_v40 }
 0x59f   : > { %6755 = vmatprep.mubr.bf16.mxu1 %v14844_v46  ;;  %4872 = vmatprep.mubr.bf16.mxu0 %v14844_v46 }
 0x5a1   : > { %v6544_v43 = vpop.f32.mrb[0].mxu1  ;;  %v4613_v36 = vpop.f32.mrb[0].mxu0 }
 0x5a2   : > { %v6546_v21 = vpop.f32.mrb[1].mxu1  ;;  %v4615_v0 = vpop.f32.mrb[1].mxu0  ;;  %v7905_v9 = vrot.slane %v6544_v43, 2 }
 0x5a3   : > { %v6547_v28 = vpop.f32.mrb[2].mxu1  ;;  %v4617_v59 = vpop.f32.mrb[2].mxu0  ;;  %v7248_v45 = vrot.slane %v4615_v0, 1  ;;  %v14850_v0 = vld [vmem:[%s15351_s16 + $0x254] ss:$8 sps:$4 sm:$0xff]  }
 0x5a4   : > { %v7906_v57 = vrot.slane %v6547_v28, 2  ;;  %v6549_v53 = vpop.f32.mrb[3].mxu1  ;;  %v4619_v49 = vpop.f32.mrb[3].mxu0 }
 0x5a5   : > { %v7249_v46 = vrot.slane %v4619_v49, 1  ;;  %v14849_v53 = vld [vmem:[%s15351_s16 + $0x240] ss:$8 sps:$4 sm:$0xff]  }
 0x5a6   : > { %v7907_v40 = vsel %vm7904_vm0, %v7905_v9, %v7906_v57  ;;  %6756 = vmatmul.mubr.bf16.gmra.mrb[108].mxu1 %v14846_v31  ;;  %4873 = vmatmul.mubr.bf16.gmra.mrb[108].mxu0 %v14846_v31 }
 0x5a7   : > { %6763 = vmatprep.mubr.bf16.mxu1 %v14847_v18  ;;  %v7250_v21 = vsel %vm7247_vm1, %v7248_v45, %v7249_v46  ;;  %4882 = vmatprep.mubr.bf16.mxu0 %v14847_v18  ;;  %v14894_v45 = vld [vmem:[%s19478_s4 + $0x50] sm:$0xff]  }
 0x5a8   : > { %v7640_v47 = vadd.f32 %v7250_v21, %v4613_v36  ;;  %13211 = vmatprep.subr.bf16.mxu1 %v14894_v45  ;;  %v16413_v36 = vld [vmem:[%s19477_s3] ss:$0 sm:$0xff]  ;;  %12693 = vmatprep.subr.bf16.mxu0 %v14894_v45 }
 0x5a9   : > { %v6552_v20 = vpop.f32.mrb[4].mxu1  ;;  %v4623_v28 = vpop.f32.mrb[4].mxu0 }
 0x5aa   : > { %v7908_v43 = vrot.slane %v6552_v20, 2  ;;  %v6554_v42 = vpop.f32.mrb[5].mxu1  ;;  %v8297_v39 = vadd.f32 %v7907_v40, %v7640_v47  ;;  %v4625_v38 = vpop.f32.mrb[5].mxu0 }
 0x5ab   : > { %v6555_v48 = vpop.f32.mrb[6].mxu1  ;;  %v7251_v10 = vrot.slane %v4625_v38, 1  ;;  %v4627_v52 = vpop.f32.mrb[6].mxu0  ;;  %v16404_v42 = vld [vmem:[%s19476_s2] ss:$0 sm:$0xff] }
 0x5ac   : > { %v7909_v9 = vsel %vm7904_vm0, %v7906_v57, %v7908_v43  ;;  %v7910_v49 = vrot.slane %v6555_v48, 2  ;;  %v6557_v31 = vpop.f32.mrb[7].mxu1  ;;  %v4629_v55 = vpop.f32.mrb[7].mxu0  ;;  %v8432_v57 = vmul.f32 %v16404_v42, %v8297_v39 }
 0x5ad   : > { %v7252_v20 = vsel %vm7247_vm1, %v7249_v46, %v7251_v10  ;;  %v7253_v18 = vrot.slane %v4629_v55, 1 }
 0x5ae   : > { %v7911_v47 = vsel %vm7904_vm0, %v7908_v43, %v7910_v49  ;;  %6764 = vmatmul.mubr.bf16.gmra.mrb[112].mxu1 %v14849_v53  ;;  %v7641_v38 = vadd.f32 %v7252_v20, %v4617_v59  ;;  %4883 = vmatmul.mubr.bf16.gmra.mrb[112].mxu0 %v14849_v53  ;;  %v14895_v59 = vld [vmem:[%s19478_s4 + $0x10] sm:$0xff]   ;;  %v14853_v20 = vld [vmem:[%s15351_s16 + $0x264] ss:$8 sps:$4 sm:$0xff]   ;;  %v8567_v63 = vadd.f32 %v16413_v36, %v8432_v57 }
 0x5af   : > { %6771 = vmatprep.mubr.bf16.mxu1 %v14850_v0  ;;  %v7254_v48 = vsel %vm7247_vm1, %v7251_v10, %v7253_v18  ;;  %4892 = vmatprep.mubr.bf16.mxu0 %v14850_v0  ;;  %v14852_v53 = vld [vmem:[%s15351_s16 + $0x250] ss:$8 sps:$4 sm:$0xff]  }
 0x5b0   : > { %v8298_v40 = vadd.f32 %v7909_v9, %v7641_v38  ;;  %v7642_v46 = vadd.f32 %v7254_v48, %v4623_v28  ;;  %13219 = vmatpush3.bf16.msra.mxu1 %v14895_v59  ;;  %12694 = vmatpush3.bf16.msra.mxu0 %v14895_v59  ;;  %v8695_v57 = vmax.f32 %v8567_v63, 0.0 }
 0x5b1   : > { %v6560_v55 = vpop.f32.mrb[8].mxu1  ;;  %v4633_v10 = vpop.f32.mrb[8].mxu0 }
 0x5b2   : > { %v7912_v21 = vrot.slane %v6560_v55, 2  ;;  %v6562_v43 = vpop.f32.mrb[9].mxu1  ;;  %v8299_v0 = vadd.f32 %v7911_v47, %v7642_v46  ;;  %v4635_v31 = vpop.f32.mrb[9].mxu0  ;;  %v8433_v59 = vmul.f32 %v16404_v42, %v8298_v40 }
 0x5b3   : > { %v6563_v39 = vpop.f32.mrb[10].mxu1  ;;  %v7255_v9 = vrot.slane %v4635_v31, 1  ;;  %v4637_v38 = vpop.f32.mrb[10].mxu0 }
 0x5b4   : > { %v7913_v58 = vsel %vm7904_vm0, %v7910_v49, %v7912_v21  ;;  %v7914_v28 = vrot.slane %v6563_v39, 2  ;;  %v6565_v48 = vpop.f32.mrb[11].mxu1  ;;  %v8434_v45 = vmul.f32 %v16404_v42, %v8299_v0  ;;  %v4639_v55 = vpop.f32.mrb[11].mxu0  ;;  %v8568_v40 = vadd.f32 %v16413_v36, %v8433_v59 }
 0x5b5   : > { %v7256_v43 = vsel %vm7247_vm1, %v7253_v18, %v7255_v9  ;;  %v7257_v46 = vrot.slane %v4639_v55, 1 }
 0x5b6   : > { %v7915_v47 = vsel %vm7904_vm0, %v7912_v21, %v7914_v28  ;;  %6772 = vmatmul.mubr.bf16.gmra.mrb[116].mxu1 %v14852_v53  ;;  %v8569_v49 = vadd.f32 %v16413_v36, %v8434_v45  ;;  %v7643_v31 = vadd.f32 %v7256_v43, %v4627_v52  ;;  %4893 = vmatmul.mubr.bf16.gmra.mrb[116].mxu0 %v14852_v53 }
 0x5b7   : > { %6779 = vmatprep.mubr.bf16.mxu1 %v14853_v20  ;;  %v7258_v39 = vsel %vm7247_vm1, %v7255_v9, %v7257_v46  ;;  %4902 = vmatprep.mubr.bf16.mxu0 %v14853_v20  ;;  %v14856_v9 = vld [vmem:[%s15351_s16 + $0x274] ss:$8 sps:$4 sm:$0xff]  }
 0x5b8   : > { %v8697_v0 = vmax.f32 %v8569_v49, 0.0  ;;  %v8300_v48 = vadd.f32 %v7913_v58, %v7643_v31  ;;  %v7644_v18 = vadd.f32 %v7258_v39, %v4633_v10 }
 0x5b9   : > { %v6568_v4 = vpop.f32.mrb[12].mxu1  ;;  %v4643_v55 = vpop.f32.mrb[12].mxu0 }
 0x5ba   : > { %v7916_v21 = vrot.slane %v6568_v4, 2  ;;  %v6570_v62 = vpop.f32.mrb[13].mxu1  ;;  %v8823_v14 = vmax.f32 %v8695_v57, %v8697_v0  ;;  %v8435_v52 = vmul.f32 %v16404_v42, %v8300_v48  ;;  %v8301_v53 = vadd.f32 %v7915_v47, %v7644_v18  ;;  %v4645_v45 = vpop.f32.mrb[13].mxu0 }
 0x5bb   : > { %v6571_v43 = vpop.f32.mrb[14].mxu1  ;;  %v7259_v63 = vrot.slane %v4645_v45, 1  ;;  %v4647_v58 = vpop.f32.mrb[14].mxu0  ;;  %v8696_v47 = vmax.f32 %v8568_v40, 0.0 }
 0x5bc   : > { %v7917_v20 = vsel %vm7904_vm0, %v7914_v28, %v7916_v21  ;;  %v7918_v49 = vrot.slane %v6571_v43, 2  ;;  %v6573_v10 = vpop.f32.mrb[15].mxu1  ;;  %8887 = vst [vmem:[#allocation2] sm:$0xff] %v8823_v14  ;;  %v8570_v4 = vadd.f32 %v16413_v36, %v8435_v52  ;;  %v4649_v62 = vpop.f32.mrb[15].mxu0  ;;  %v8436_v48 = vmul.f32 %v16404_v42, %v8301_v53 }
 0x5bd   : > { %v7260_v31 = vsel %vm7247_vm1, %v7257_v46, %v7259_v63  ;;  %v7261_v39 = vrot.slane %v4649_v62, 1  ;;  %v14858_v10 = vld [vmem:[%s15351_s16 + $0x270] ss:$8 sps:$4 sm:$0xff]  }
 0x5be   : > { %v7919_v59 = vsel %vm7904_vm0, %v7916_v21, %v7918_v49  ;;  %6780 = vmatmul.mubr.bf16.gmra.mrb[120].mxu1 %v14855_v2  ;;  %v8698_v57 = vmax.f32 %v8570_v4, 0.0  ;;  %v7645_v0 = vadd.f32 %v7260_v31, %v4637_v38  ;;  %4903 = vmatmul.mubr.bf16.gmra.mrb[120].mxu0 %v14855_v2  ;;  %v14859_v2 = vld [vmem:[%s15351_s16 + $0x284] ss:$8 sps:$4 sm:$0xff]   ;;  %v8571_v53 = vadd.f32 %v16413_v36, %v8436_v48 }
 0x5bf   : > { %6787 = vmatprep.mubr.bf16.mxu1 %v14856_v9  ;;  %v7262_v28 = vsel %vm7247_vm1, %v7259_v63, %v7261_v39  ;;  %4912 = vmatprep.mubr.bf16.mxu0 %v14856_v9 }
 0x5c0   : > { %v8824_v14 = vmax.f32 %v8696_v47, %v8698_v57  ;;  %v8302_v18 = vadd.f32 %v7917_v20, %v7645_v0  ;;  %v7646_v52 = vadd.f32 %v7262_v28, %v4643_v55  ;;  %v8699_v48 = vmax.f32 %v8571_v53, 0.0 }
 0x5c1   : > { %v6576_v46 = vpop.f32.mrb[16].mxu1  ;;  %v4653_v21 = vpop.f32.mrb[16].mxu0 }
 0x5c2   : > { %v7920_v45 = vrot.slane %v6576_v46, 2  ;;  %v6578_v43 = vpop.f32.mrb[17].mxu1  ;;  %8888 = vst [vmem:[#allocation2 + $0x8] sm:$0xff] %v8824_v14  ;;  %v8303_v40 = vadd.f32 %v7919_v59, %v7646_v52  ;;  %v4655_v4 = vpop.f32.mrb[17].mxu0  ;;  %v8437_v59 = vmul.f32 %v16404_v42, %v8302_v18 }
 0x5c3   : > { %v6579_v38 = vpop.f32.mrb[18].mxu1  ;;  %v7263_v31 = vrot.slane %v4655_v4, 1  ;;  %v4657_v9 = vpop.f32.mrb[18].mxu0 }
 0x5c4   : > { %v7921_v62 = vsel %vm7904_vm0, %v7918_v49, %v7920_v45  ;;  %v7922_v63 = vrot.slane %v6579_v38, 2  ;;  %v6581_v47 = vpop.f32.mrb[19].mxu1  ;;  %v8438_v55 = vmul.f32 %v16404_v42, %v8303_v40  ;;  %v4659_v20 = vpop.f32.mrb[19].mxu0  ;;  %v8572_v18 = vadd.f32 %v16413_v36, %v8437_v59 }
 0x5c5   : > { %v7264_v57 = vsel %vm7247_vm1, %v7261_v39, %v7263_v31  ;;  %v7265_v28 = vrot.slane %v4659_v20, 1  ;;  %v14861_v47 = vld [vmem:[%s15351_s16 + $0x280] ss:$8 sps:$4 sm:$0xff]  }
 0x5c6   : > { %v7923_v0 = vsel %vm7904_vm0, %v7920_v45, %v7922_v63  ;;  %6788 = vmatmul.mubr.bf16.gmra.mrb[124].mxu1 %v14858_v10  ;;  %v8573_v49 = vadd.f32 %v16413_v36, %v8438_v55  ;;  %v7647_v14 = vadd.f32 %v7264_v57, %v4647_v58  ;;  %4913 = vmatmul.mubr.bf16.gmra.mrb[124].mxu0 %v14858_v10 }
 0x5c7   : > { %6795 = vmatprep.mubr.bf16.mxu1 %v14859_v2  ;;  %v7266_v52 = vsel %vm7247_vm1, %v7263_v31, %v7265_v28  ;;  %4922 = vmatprep.mubr.bf16.mxu0 %v14859_v2  ;;  %v14862_v31 = vld [vmem:[%s15351_s16 + $0x294] ss:$8 sps:$4 sm:$0xff]  }
 0x5c8   : > { %v8701_v46 = vmax.f32 %v8573_v49, 0.0  ;;  %v8304_v43 = vadd.f32 %v7921_v62, %v7647_v14  ;;  %v7648_v39 = vadd.f32 %v7266_v52, %v4653_v21 }
 0x5c9   : > { %v6584_v40 = vpop.f32.mrb[20].mxu1  ;;  %v4663_v4 = vpop.f32.mrb[20].mxu0 }
 0x5ca   : > { %v7924_v45 = vrot.slane %v6584_v40, 2  ;;  %v6586_v38 = vpop.f32.mrb[21].mxu1  ;;  %v8825_v20 = vmax.f32 %v8699_v48, %v8701_v46  ;;  %v8439_v58 = vmul.f32 %v16404_v42, %v8304_v43  ;;  %v8305_v10 = vadd.f32 %v7923_v0, %v7648_v39  ;;  %v4665_v55 = vpop.f32.mrb[21].mxu0 }
 0x5cb   : > { %v6587_v57 = vpop.f32.mrb[22].mxu1  ;;  %v7267_v53 = vrot.slane %v4665_v55, 1  ;;  %v4667_v62 = vpop.f32.mrb[22].mxu0  ;;  %v8700_v0 = vmax.f32 %v8572_v18, 0.0  ;;  %v14864_v55 = vld [vmem:[%s15351_s16 + $0x290] ss:$8 sps:$4 sm:$0xff]  }
 0x5cc   : > { %v7925_v2 = vsel %vm7904_vm0, %v7922_v63, %v7924_v45  ;;  %v7926_v49 = vrot.slane %v6587_v57, 2  ;;  %v6589_v21 = vpop.f32.mrb[23].mxu1  ;;  %8889 = vst [vmem:[#allocation2 + $0x10] sm:$0xff] %v8825_v20  ;;  %v8574_v14 = vadd.f32 %v16413_v36, %v8439_v58  ;;  %v4669_v52 = vpop.f32.mrb[23].mxu0  ;;  %v8440_v38 = vmul.f32 %v16404_v42, %v8305_v10 }
 0x5cd   : > { %v7268_v40 = vsel %vm7247_vm1, %v7265_v28, %v7267_v53  ;;  %v7269_v48 = vrot.slane %v4669_v52, 1  ;;  %v14867_v52 = vld [vmem:[%s15351_s16 + $0x2a4] ss:$8 sps:$4 sm:$0xff]  }
 0x5ce   : > { %v7927_v59 = vsel %vm7904_vm0, %v7924_v45, %v7926_v49  ;;  %6796 = vmatmul.mubr.bf16.gmra.mrb[128].mxu1 %v14861_v47  ;;  %v8702_v46 = vmax.f32 %v8574_v14, 0.0  ;;  %v7649_v43 = vadd.f32 %v7268_v40, %v4657_v9  ;;  %4923 = vmatmul.mubr.bf16.gmra.mrb[128].mxu0 %v14861_v47  ;;  %v8951_v47 = vld [vmem:[#allocation2] ss:$2 sm:$0xff]  ;;  %v9015_v40 = vld [vmem:[#allocation2 + $0x1] ss:$2 sm:$0xff] }
 0x5cf   : > { %6803 = vmatprep.mubr.bf16.mxu1 %v14862_v31  ;;  %v7270_v63 = vsel %vm7247_vm1, %v7267_v53, %v7269_v48  ;;  %4932 = vmatprep.mubr.bf16.mxu0 %v14862_v31 }
 0x5d0   : > { %v8826_v39 = vmax.f32 %v8700_v0, %v8702_v46  ;;  %v8306_v20 = vadd.f32 %v7925_v2, %v7649_v43  ;;  %v7650_v58 = vadd.f32 %v7270_v63, %v4663_v4  ;;  %v8575_v4 = vadd.f32 %v16413_v36, %v8440_v38 }
 0x5d1   : > { %v6592_v28 = vpop.f32.mrb[24].mxu1  ;;  %v4673_v45 = vpop.f32.mrb[24].mxu0 }
 0x5d2   : > { %v7928_v57 = vrot.slane %v6592_v28, 2  ;;  %v6594_v21 = vpop.f32.mrb[25].mxu1  ;;  %8890 = vst [vmem:[#allocation2 + $0x18] sm:$0xff] %v8826_v39  ;;  %v8307_v18 = vadd.f32 %v7927_v59, %v7650_v58  ;;  %v4675_v14 = vpop.f32.mrb[25].mxu0  ;;  %v16465_v58 = vmax.f32 %v8951_v47, %v9015_v40 }
 0x5d3   : > { %v6595_v9 = vpop.f32.mrb[26].mxu1  ;;  %v7271_v31 = vrot.slane %v4675_v14, 1  ;;  %v4677_v46 = vpop.f32.mrb[26].mxu0 }
 0x5d4   : > { %v7929_v53 = vsel %vm7904_vm0, %v7926_v49, %v7928_v57  ;;  %v7930_v0 = vrot.slane %v6595_v9, 2  ;;  %v6597_v10 = vpop.f32.mrb[27].mxu1  ;;  %v8442_v2 = vmul.f32 %v16404_v42, %v8307_v18  ;;  %v4679_v43 = vpop.f32.mrb[27].mxu0  ;;  %19730 = vst [vmem:[#allocation104_spill] sm:$0xff] %v16465_v58  ;;  %v8441_v49 = vmul.f32 %v16404_v42, %v8306_v20 }
 0x5d5   : > { %v7272_v63 = vsel %vm7247_vm1, %v7269_v48, %v7271_v31  ;;  %v7273_v59 = vrot.slane %v4679_v43, 1  ;;  %v19486_v18 = vmov 0.0   ;;  %v14869_v10 = vld [vmem:[%s15351_s16 + $0x2a0] ss:$8 sps:$4 sm:$0xff]  }
 0x5d6   : > { %v7931_v39 = vsel %vm7904_vm0, %v7928_v57, %v7930_v0  ;;  %6804 = vmatmul.mubr.bf16.gmra.mrb[132].mxu1 %v14864_v55  ;;  %v8577_v28 = vadd.f32 %v16413_v36, %v8442_v2  ;;  %v7651_v21 = vadd.f32 %v7272_v63, %v4667_v62  ;;  %4933 = vmatmul.mubr.bf16.gmra.mrb[132].mxu0 %v14864_v55  ;;  %v16471_v48 = vrot.slane %v19486_v18, 7 }
 0x5d7   : > { %6811 = vmatprep.mubr.bf16.mxu1 %v14867_v52  ;;  %v7274_v38 = vsel %vm7247_vm1, %v7271_v31, %v7273_v59  ;;  %4942 = vmatprep.mubr.bf16.mxu0 %v14867_v52  ;;  %v8703_v57 = vmax.f32 %v8575_v4, 0.0  ;;  %v9207_v62 = vrot.slane %v16465_v58, 7  ;;  %v8576_v31 = vadd.f32 %v16413_v36, %v8441_v49 }
 0x5d8   : > { %v8705_v14 = vmax.f32 %v8577_v28, 0.0  ;;  %v8308_v9 = vadd.f32 %v7929_v53, %v7651_v21  ;;  %v7652_v47 = vadd.f32 %v7274_v38, %v4673_v45  ;;  %v14870_v28 = vld [vmem:[%s15351_s16 + $0x2b4] ss:$8 sps:$4 sm:$0xff]  }
 0x5d9   : > { %v6600_v40 = vpop.f32.mrb[28].mxu1  ;;  %v4683_v43 = vpop.f32.mrb[28].mxu0  ;;  %v8953_v55 = vld [vmem:[#allocation2 + $0x10] ss:$2 sm:$0xff]  ;;  %v9017_v6 = vld [vmem:[#allocation2 + $0x11] ss:$2 sm:$0xff] }
 0x5da   : > { %v7932_v20 = vrot.slane %v6600_v40, 2  ;;  %v6602_v2 = vpop.f32.mrb[29].mxu1  ;;  %v8827_v52 = vmax.f32 %v8703_v57, %v8705_v14  ;;  %v8443_v63 = vmul.f32 %v16404_v42, %v8308_v9  ;;  %v8309_v18 = vadd.f32 %v7931_v39, %v7652_v47  ;;  %v4685_v5 = vpop.f32.mrb[29].mxu0 }
 0x5db   : > { %v6603_v4 = vpop.f32.mrb[30].mxu1  ;;  %v7275_v53 = vrot.slane %v4685_v5, 1  ;;  %v4687_v38 = vpop.f32.mrb[30].mxu0  ;;  %v16479_v2 = vmax.f32 %v8953_v55, %v9017_v6  ;;  %v19731_v57 = vmov 0.0   ;;  %v9366_v39 = vrot.slane %v16465_v58, 1 }
 0x5dc   : > { %v7933_v45 = vsel %vm7904_vm0, %v7930_v0, %v7932_v20  ;;  %v7934_v21 = vrot.slane %v6603_v4, 2  ;;  %v6605_v40 = vpop.f32.mrb[31].mxu1  ;;  %8891 = vst [vmem:[#allocation2 + $0x20] sm:$0xff] %v8827_v52  ;;  %v8578_v19 = vadd.f32 %v16413_v36, %v8443_v63  ;;  %v4689_v49 = vpop.f32.mrb[31].mxu0  ;;  %v16483_v14 = vrot.slane %v19731_v57, 1 }
 0x5dd   : > { %v7276_v9 = vsel %vm7247_vm1, %v7273_v59, %v7275_v53  ;;  %v7277_v5 = vrot.slane %v4689_v49, 1  ;;  %v19490_v47 = vrot.slane %v16479_v2, 7  ;;  %v8704_v6 = vmax.f32 %v8576_v31, 0.0  ;;  %v14872_v63 = vld [vmem:[%s15351_s16 + $0x2b0] ss:$8 sps:$4 sm:$0xff]  }
 0x5de   : > { %v7935_v0 = vsel %vm7904_vm0, %v7932_v20, %v7934_v21  ;;  %6812 = vmatmul.mubr.bf16.gmra.mrb[136].mxu1 %v14869_v10  ;;  %v8706_v55 = vmax.f32 %v8578_v19, 0.0  ;;  %v7653_v52 = vadd.f32 %v7276_v9, %v4677_v46  ;;  %4943 = vmatmul.mubr.bf16.gmra.mrb[136].mxu0 %v14869_v10  ;;  %v16494_v59 = vsel %vm9204_vm2, %v16471_v48, %v9207_v62 }
 0x5df   : > { %6819 = vmatprep.mubr.bf16.mxu1 %v14870_v28  ;;  %v7278_v4 = vsel %vm7247_vm1, %v7275_v53, %v7277_v5  ;;  %4952 = vmatprep.mubr.bf16.mxu0 %v14870_v28  ;;  %19732 = vst [vmem:[#allocation105_spill] sm:$0xff] %v16494_v59  ;;  %v16499_v20 = vsel %vm9204_vm2, %v9207_v62, %v19490_v47  ;;  %v19491_v19 = vrot.slane %v16479_v2, 1 }
 0x5e0   : > { %19733 = vst [vmem:[#allocation106_spill] sm:$0xff] %v16499_v20  ;;  %v8828_v46 = vmax.f32 %v8704_v6, %v8706_v55  ;;  %v8444_v10 = vmul.f32 %v16404_v42, %v8309_v18  ;;  %v8310_v31 = vadd.f32 %v7933_v45, %v7653_v52  ;;  %v7654_v40 = vadd.f32 %v7278_v4, %v4683_v43  ;;  %v14873_v55 = vld [vmem:[%s15351_s16 + $0x2e4] ss:$8 sps:$4 sm:$0xff]  }
 0x5e1   : > { %v6608_v49 = vpop.f32.mrb[32].mxu1  ;;  %v4693_v28 = vpop.f32.mrb[32].mxu0  ;;  %v16506_v58 = vsel %vm7247_vm1, %v16483_v14, %v9366_v39  ;;  %v16511_v62 = vsel %vm7247_vm1, %v9366_v39, %v19491_v19 }
 0x5e2   : > { %v7936_v53 = vrot.slane %v6608_v49, 2  ;;  %v6610_v9 = vpop.f32.mrb[33].mxu1  ;;  %19734 = vst [vmem:[#allocation107_spill] sm:$0xff] %v16506_v58  ;;  %19735 = vst [vmem:[#allocation108_spill] sm:$0xff] %v16511_v62  ;;  %v8311_v18 = vadd.f32 %v7935_v0, %v7654_v40  ;;  %v4694_v43 = vpop.f32.mrb[33].mxu0  ;;  %v8579_v47 = vadd.f32 %v16413_v36, %v8444_v10  ;;  %v8445_v0 = vmul.f32 %v16404_v42, %v8310_v31 }
 0x5e3   : > { %8892 = vst [vmem:[#allocation2 + $0x28] sm:$0xff] %v8828_v46  ;;  %v6611_v45 = vpop.f32.mrb[34].mxu1  ;;  %v7279_v49 = vrot.slane %v4694_v43, 1  ;;  %v4696_v28 = vpop.f32.mrb[34].mxu0 }
 0x5e4   : > { %v7937_v4 = vsel %vm7904_vm0, %v7934_v21, %v7936_v53  ;;  %v6612_v9 = vpop.f32.mrb[35].mxu1  ;;  %v8446_v39 = vmul.f32 %v16404_v42, %v8311_v18  ;;  %v4697_v19 = vpop.f32.mrb[35].mxu0  ;;  %v8707_v21 = vmax.f32 %v8579_v47, 0.0 }
 0x5e5   : > { %v7280_v46 = vsel %vm7247_vm1, %v7277_v5, %v7279_v49  ;;  %v14875_v9 = vld [vmem:[%s15351_s16 + $0x2e0] ss:$8 sps:$4 sm:$0xff]   ;;  %v8580_v5 = vadd.f32 %v16413_v36, %v8445_v0 }
 0x5e6   : > { %6820 = vmatmul.mubr.bf16.gmra.mrb[140].mxu1 %v14872_v63  ;;  %v8581_v40 = vadd.f32 %v16413_v36, %v8446_v39  ;;  %v7655_v45 = vadd.f32 %v7280_v46, %v4687_v38  ;;  %4953 = vmatmul.mubr.bf16.gmra.mrb[140].mxu0 %v14872_v63  ;;  %v14878_v38 = vld [vmem:[%s15351_s16 + $0x2f4] ss:$8 sps:$4 sm:$0xff]  }
 0x5e7   : > { %6826 = vmatprep.mubr.bf16.mxu1 %v14873_v55  ;;  %4959 = vmatprep.mubr.bf16.mxu0 %v14873_v55 }
 0x5e8   : > { %v8709_v53 = vmax.f32 %v8581_v40, 0.0  ;;  %v8312_v43 = vadd.f32 %v7937_v4, %v7655_v45 }
 0x5e9   : > { %v6615_v10 = vpop.f32.mrb[36].mxu1  ;;  %v4700_v28 = vpop.f32.mrb[36].mxu0 }
 0x5ea   : > { %v6617_v18 = vpop.f32.mrb[37].mxu1  ;;  %v8955_v19 = vld [vmem:[#allocation2 + $0x20] ss:$2 sm:$0xff]  ;;  %v8829_v49 = vmax.f32 %v8707_v21, %v8709_v53  ;;  %v8447_v31 = vmul.f32 %v16404_v42, %v8312_v43  ;;  %v4702_v52 = vpop.f32.mrb[37].mxu0  ;;  %v9019_v63 = vld [vmem:[#allocation2 + $0x21] ss:$2 sm:$0xff] }
 0x5eb   : > { %v6618_v39 = vpop.f32.mrb[38].mxu1  ;;  %v7938_v46 = vrot.slane %v6615_v10, 2  ;;  %v4704_v55 = vpop.f32.mrb[38].mxu0  ;;  %v16528_v40 = vmax.f32 %v8955_v19, %v9019_v63  ;;  %v7281_v18 = vrot.slane %v4702_v52, 1  ;;  %v8708_v53 = vmax.f32 %v8580_v5, 0.0 }
 0x5ec   : > { %v7939_v6 = vrot.slane %v6618_v39, 2  ;;  %v6620_v47 = vpop.f32.mrb[39].mxu1  ;;  %8893 = vst [vmem:[#allocation2 + $0x30] sm:$0xff] %v8829_v49  ;;  %v8582_v4 = vadd.f32 %v16413_v36, %v8447_v31  ;;  %v4706_v45 = vpop.f32.mrb[39].mxu0  ;;  %v19736_v52 = vrot.slane %v16479_v2, 1 }
 0x5ed   : > { %v7282_v21 = vrot.slane %v4706_v45, 1  ;;  %v19492_v10 = vrot.slane %v16528_v40, 1  ;;  %v14876_v47 = vld [vmem:[%s15351_s16 + $0x2f0] ss:$8 sps:$4 sm:$0xff]  }
 0x5ee   : > { %v7940_v0 = vsel %vm7904_vm0, %v7938_v46, %v7939_v6  ;;  %6827 = vmatmul.mubr.bf16.gmra.mrb[144].mxu1 %v14875_v9  ;;  %v8710_v43 = vmax.f32 %v8582_v4, 0.0  ;;  %4960 = vmatmul.mubr.bf16.gmra.mrb[144].mxu0 %v14875_v9 }
 0x5ef   : > { %6834 = vmatprep.mubr.bf16.mxu1 %v14878_v38  ;;  %v7283_v39 = vsel %vm7247_vm1, %v7281_v18, %v7282_v21  ;;  %4969 = vmatprep.mubr.bf16.mxu0 %v14878_v38  ;;  %v16539_v63 = vsel %vm7247_vm1, %v19736_v52, %v19492_v10 }
 0x5f0   : > { %v8830_v19 = vmax.f32 %v8708_v53, %v8710_v43  ;;  %v7656_v49 = vadd.f32 %v7283_v39, %v4700_v28  ;;  %19737 = vst [vmem:[#allocation109_spill] sm:$0xff] %v16539_v63  ;;  %v14881_v53 = vld [vmem:[%s15351_s16 + $0x304] ss:$8 sps:$4 sm:$0xff]   ;;  %v14923_v43 = vld [vmem:[%s19478_s4 + $0x58] sm:$0xff]  }
 0x5f1   : > { %v6623_v31 = vpop.f32.mrb[220].mxu1  ;;  %v4710_v9 = vpop.f32.mrb[220].mxu0  ;;  %13212 = vmatprep.subr.bf16.mxu1 %v14923_v43  ;;  %12695 = vmatprep.subr.bf16.mxu0 %v14923_v43  ;;  %v14879_v43 = vld [vmem:[%s15351_s16 + $0x300] ss:$8 sps:$4 sm:$0xff]  }
 0x5f2   : > { %v13312_v5 = vadd.f32 %v6623_v31, %v16033_v27  ;;  %v6625_v46 = vpop.f32.mrb[221].mxu1  ;;  %8894 = vst [vmem:[#allocation2 + $0x38] sm:$0xff] %v8830_v19  ;;  %v8313_v38 = vadd.f32 %v7940_v0, %v7656_v49  ;;  %v13225_v28 = vadd.f32 %v4710_v9, %v16035_v33  ;;  %v4712_v45 = vpop.f32.mrb[221].mxu0 }
 0x5f3   : > { %v6626_v18 = vpop.f32.mrb[222].mxu1  ;;  %v13226_v27 = vadd.f32 %v4712_v45, %v16037_v51  ;;  %v4714_v52 = vpop.f32.mrb[222].mxu0  ;;  %v14924_v51 = vld [vmem:[%s19478_s4 + $0x18] sm:$0xff]  }
 0x5f4   : > { %v7941_v39 = vrot.slane %v13312_v5, 2  ;;  %v13313_v31 = vadd.f32 %v6626_v18, %v16039_v60  ;;  %v6628_v46 = vpop.f32.mrb[223].mxu1  ;;  %v13227_v4 = vadd.f32 %v4714_v52, %v16041_v61  ;;  %v4716_v19 = vpop.f32.mrb[223].mxu0  ;;  %v8448_v60 = vmul.f32 %v16404_v42, %v8313_v38  ;;  %13220 = vmatpush3.bf16.msra.mxu1 %v14924_v51  ;;  %12696 = vmatpush3.bf16.msra.mxu0 %v14924_v51 }
 0x5f5   : > { %v7284_v0 = vrot.slane %v13226_v27, 1  ;;  %v13228_v9 = vadd.f32 %v4716_v19, %v16043_v8 }
 0x5f6   : > { %v7942_v33 = vsel %vm7904_vm0, %v7939_v6, %v7941_v39  ;;  %v7943_v49 = vrot.slane %v13313_v31, 2  ;;  %6835 = vmatmul.mubr.bf16.gmra.mrb[40].mxu1 %v14876_v47  ;;  %4970 = vmatmul.mubr.bf16.gmra.mrb[40].mxu0 %v14876_v47 }
 0x5f7   : > { %6842 = vmatprep.mubr.bf16.mxu1 %v14881_v53  ;;  %v7285_v61 = vsel %vm7247_vm1, %v7282_v21, %v7284_v0  ;;  %v7286_v45 = vrot.slane %v13228_v9, 1  ;;  %4979 = vmatprep.mubr.bf16.mxu0 %v14881_v53 }
 0x5f8   : > { %v7944_v5 = vsel %vm7904_vm0, %v7941_v39, %v7943_v49  ;;  %v7657_v6 = vadd.f32 %v7285_v61, %v4704_v55  ;;  %v14884_v55 = vld [vmem:[%s15351_s16 + $0x314] ss:$8 sps:$4 sm:$0xff]   ;;  %v8583_v61 = vadd.f32 %v16413_v36, %v8448_v60 }
 0x5f9   : > { %v6631_v18 = vpop.f32.mrb[224].mxu1  ;;  %v7287_v8 = vsel %vm7247_vm1, %v7284_v0, %v7286_v45  ;;  %v4720_v27 = vpop.f32.mrb[224].mxu0  ;;  %v8957_v52 = vld [vmem:[#allocation2 + $0x30] ss:$2 sm:$0xff]  ;;  %v9021_v38 = vld [vmem:[#allocation2 + $0x31] ss:$2 sm:$0xff] }
 0x5fa   : > { %v13314_v47 = vadd.f32 %v6631_v18, %v16047_v17  ;;  %v6633_v31 = vpop.f32.mrb[225].mxu1  ;;  %v8314_v46 = vadd.f32 %v7942_v33, %v7657_v6  ;;  %v7658_v21 = vadd.f32 %v13225_v28, %v7287_v8  ;;  %v13229_v39 = vadd.f32 %v4720_v27, %v16049_v23  ;;  %v4722_v19 = vpop.f32.mrb[225].mxu0 }
 0x5fb   : > { %v6634_v53 = vpop.f32.mrb[226].mxu1  ;;  %v16566_v9 = vmax.f32 %v8957_v52, %v9021_v38  ;;  %v13230_v0 = vadd.f32 %v4722_v19, %v16051_v1  ;;  %v4724_v18 = vpop.f32.mrb[226].mxu0  ;;  %v8711_v38 = vmax.f32 %v8583_v61, 0.0 }
 0x5fc   : > { %v7945_v51 = vrot.slane %v13314_v47, 2  ;;  %v13315_v17 = vadd.f32 %v6634_v53, %v16053_v3  ;;  %v6636_v31 = vpop.f32.mrb[227].mxu1  ;;  %v8449_v10 = vmul.f32 %v16404_v42, %v8314_v46  ;;  %v8315_v33 = vadd.f32 %v7944_v5, %v7658_v21  ;;  %v4726_v23 = vpop.f32.mrb[227].mxu0 }
 0x5fd   : > { %19738 = vst [vmem:[#allocation110_spill] sm:$0xff] %v16566_v9  ;;  %v16573_v28 = vadd.f32 %v4724_v18, %v16055_v7  ;;  %v19493_v6 = vrot.slane %v16566_v9, 1  ;;  %v7288_v27 = vrot.slane %v13230_v0, 1  ;;  %v13232_v47 = vadd.f32 %v4726_v23, %v16057_v54 }
 0x5fe   : > { %v7946_v8 = vsel %vm7904_vm0, %v7943_v49, %v7945_v51  ;;  %v7947_v60 = vrot.slane %v13315_v17, 2  ;;  %6843 = vmatmul.mubr.bf16.gmra.mrb[44].mxu1 %v14879_v43  ;;  %v8450_v1 = vmul.f32 %v16404_v42, %v8315_v33  ;;  %4980 = vmatmul.mubr.bf16.gmra.mrb[44].mxu0 %v14879_v43  ;;  %v19739_v3 = vrot.slane %v16528_v40, 1  ;;  %v14882_v17 = vld [vmem:[%s15351_s16 + $0x310] ss:$8 sps:$4 sm:$0xff]  }
 0x5ff   : > { %6850 = vmatprep.mubr.bf16.mxu1 %v14884_v55  ;;  %v7289_v5 = vsel %vm7247_vm1, %v7286_v45, %v7288_v27  ;;  %v7290_v52 = vrot.slane %v13232_v47, 1  ;;  %4989 = vmatprep.mubr.bf16.mxu0 %v14884_v55  ;;  %v9211_v54 = vrot.slane %v16528_v40, 7  ;;  %v8584_v53 = vadd.f32 %v16413_v36, %v8449_v10 }
 0x600   : > { %v16584_v7 = vsel %vm7247_vm1, %v19739_v3, %v19493_v6  ;;  %v7948_v49 = vsel %vm7904_vm0, %v7945_v51, %v7947_v60  ;;  %v8585_v43 = vadd.f32 %v16413_v36, %v8450_v1  ;;  %v7659_v46 = vadd.f32 %v13227_v4, %v7289_v5  ;;  %v14887_v1 = vld [vmem:[%s15351_s16 + $0x324] ss:$8 sps:$4 sm:$0xff]  }
 0x601   : > { %19740 = vst [vmem:[#allocation111_spill] sm:$0xff] %v16584_v7  ;;  %v6639_v21 = vpop.f32.mrb[228].mxu1  ;;  %v16592_v19 = vpack.c.bf16 %v16584_v7, %v16539_v63  ;;  %v7291_v45 = vsel %vm7247_vm1, %v7288_v27, %v7290_v52  ;;  %v4730_v0 = vpop.f32.mrb[228].mxu0  ;;  %v9494_v61 = vrot.slane %v16566_v9, 7  ;;  %v19808_v7 = vld [vmem:[#allocation11_spill] sm:$0xff]  ;;  %v19818_v9 = vld [vmem:[#allocation17_spill] sm:$0xff] }
 0x602   : > { %v13316_v51 = vadd.f32 %v6639_v21, %v16070_v44  ;;  %v6641_v55 = vpop.f32.mrb[229].mxu1  ;;  %v8713_v18 = vmax.f32 %v8585_v43, 0.0  ;;  %v8316_v31 = vadd.f32 %v7946_v8, %v7659_v46  ;;  %v7660_v4 = vadd.f32 %v13229_v39, %v7291_v45  ;;  %v4732_v23 = vpop.f32.mrb[229].mxu0 }
 0x603   : > { %19741 = vst [vmem:[#allocation112_spill] sm:$0xff] %v16592_v19  ;;  %v13233_v33 = vadd.f32 %v4730_v0, %v16072_v50  ;;  %v6642_v47 = vpop.f32.mrb[230].mxu1  ;;  %v13234_v10 = vadd.f32 %v4732_v23, %v16075_v35  ;;  %v4734_v5 = vpop.f32.mrb[230].mxu0  ;;  %v19742_v35 = vrot.slane %v16479_v2, 7 }
 0x604   : > { %v7949_v3 = vrot.slane %v13316_v51, 2  ;;  %v13317_v27 = vadd.f32 %v6642_v47, %v16077_v34  ;;  %v6644_v44 = vpop.f32.mrb[231].mxu1  ;;  %v8831_v21 = vmax.f32 %v8711_v38, %v8713_v18  ;;  %v8451_v55 = vmul.f32 %v16404_v42, %v8316_v31  ;;  %v4736_v8 = vpop.f32.mrb[231].mxu0 }
 0x605   : > { %v8317_v6 = vadd.f32 %v7948_v49, %v7660_v4  ;;  %v13235_v43 = vadd.f32 %v4734_v5, %v16079_v32  ;;  %v7292_v50 = vrot.slane %v13234_v10, 1  ;;  %v13236_v45 = vadd.f32 %v4736_v8, %v16081_v11 }
 0x606   : > { %v7950_v39 = vsel %vm7904_vm0, %v7947_v60, %v7949_v3  ;;  %v7951_v46 = vrot.slane %v13317_v27, 2  ;;  %6851 = vmatmul.mubr.bf16.gmra.mrb[48].mxu1 %v14882_v17  ;;  %v8712_v51 = vmax.f32 %v8584_v53, 0.0  ;;  %8895 = vst [vmem:[#allocation2 + $0x40] sm:$0xff] %v8831_v21  ;;  %v8586_v34 = vadd.f32 %v16413_v36, %v8451_v55  ;;  %4990 = vmatmul.mubr.bf16.gmra.mrb[48].mxu0 %v14882_v17 }
 0x607   : > { %6858 = vmatprep.mubr.bf16.mxu1 %v14887_v1  ;;  %v16611_v49 = vsel %vm9204_vm2, %v19742_v35, %v9211_v54  ;;  %v16614_v32 = vsel %vm9204_vm2, %v9211_v54, %v9494_v61  ;;  %v7293_v60 = vsel %vm7247_vm1, %v7290_v52, %v7292_v50  ;;  %v7294_v38 = vrot.slane %v13236_v45, 1  ;;  %4999 = vmatprep.mubr.bf16.mxu0 %v14887_v1  ;;  %v14885_v1 = vld [vmem:[%s15351_s16 + $0x320] ss:$8 sps:$4 sm:$0xff]  }
 0x608   : > { %19743 = vst [vmem:[#allocation113_spill] sm:$0xff] %v16611_v49  ;;  %19744 = vst [vmem:[#allocation114_spill] sm:$0xff] %v16614_v32  ;;  %v7952_v11 = vsel %vm7904_vm0, %v7949_v3, %v7951_v46  ;;  %v16620_v53 = vsel %vm9204_vm2, %v9494_v61, %v16471_v48  ;;  %v8714_v0 = vmax.f32 %v8586_v34, 0.0  ;;  %v8452_v17 = vmul.f32 %v16404_v42, %v8317_v6  ;;  %v14917_v61 = vld [vmem:[%s15351_s16 + $0x3e4] ss:$8 sps:$4 sm:$0xff]  }
 0x609   : > { %19745 = vst [vmem:[#allocation115_spill] sm:$0xff] %v16620_v53  ;;  %v7661_v18 = vadd.f32 %v16573_v28, %v7293_v60  ;;  %v6647_v31 = vpop.f32.mrb[232].mxu1  ;;  %v7295_v52 = vsel %vm7247_vm1, %v7292_v50, %v7294_v38  ;;  %v4740_v23 = vpop.f32.mrb[232].mxu0  ;;  %v14890_v28 = vld [vmem:[%s15351_s16 + $0x334] ss:$8 sps:$4 sm:$0xff]   ;;  %v19781_v32 = vmov 0 }
 0x60a   : > { %v13318_v4 = vadd.f32 %v6647_v31, %v16085_v41  ;;  %v6649_v47 = vpop.f32.mrb[233].mxu1  ;;  %v8832_v3 = vmax.f32 %v8712_v51, %v8714_v0  ;;  %v7662_v27 = vadd.f32 %v13233_v33, %v7295_v52  ;;  %v4742_v6 = vpop.f32.mrb[233].mxu0  ;;  %v13237_v21 = vadd.f32 %v4740_v23, %v16087_v13 }
 0x60b   : > { %v8318_v10 = vadd.f32 %v7950_v39, %v7661_v18  ;;  %v6650_v5 = vpop.f32.mrb[234].mxu1  ;;  %v13238_v55 = vadd.f32 %v4742_v6, %v16089_v26  ;;  %v4744_v41 = vpop.f32.mrb[234].mxu0  ;;  %v8587_v45 = vadd.f32 %v16413_v36, %v8452_v17  ;;  %v14888_v47 = vld [vmem:[%s15351_s16 + $0x330] ss:$8 sps:$4 sm:$0xff]  }
 0x60c   : > { %v7953_v44 = vrot.slane %v13318_v4, 2  ;;  %v13319_v8 = vadd.f32 %v6650_v5, %v16091_v25  ;;  %v6652_v50 = vpop.f32.mrb[235].mxu1  ;;  %8896 = vst [vmem:[#allocation2 + $0x48] sm:$0xff] %v8832_v3  ;;  %v8319_v34 = vadd.f32 %v7952_v11, %v7662_v27  ;;  %v13239_v51 = vadd.f32 %v4744_v41, %v16093_v30  ;;  %v4746_v39 = vpop.f32.mrb[235].mxu0  ;;  %v14893_v5 = vld [vmem:[%s15351_s16 + $0x344] ss:$8 sps:$4 sm:$0xff]  }
 0x60d   : > { %v7296_v35 = vrot.slane %v13238_v55, 1  ;;  %v13240_v0 = vadd.f32 %v4746_v39, %v16095_v22  ;;  %v8453_v25 = vmul.f32 %v16404_v42, %v8318_v10  ;;  %v8715_v22 = vmax.f32 %v8587_v45, 0.0 }
 0x60e   : > { %v7954_v33 = vsel %vm7904_vm0, %v7951_v46, %v7953_v44  ;;  %v7955_v60 = vrot.slane %v13319_v8, 2  ;;  %6859 = vmatmul.mubr.bf16.gmra.mrb[52].mxu1 %v14885_v1  ;;  %v8454_v26 = vmul.f32 %v16404_v42, %v8319_v34  ;;  %5000 = vmatmul.mubr.bf16.gmra.mrb[52].mxu0 %v14885_v1 }
 0x60f   : > { %6866 = vmatprep.mubr.bf16.mxu1 %v14890_v28  ;;  %v7297_v13 = vsel %vm7247_vm1, %v7294_v38, %v7296_v35  ;;  %v7298_v30 = vrot.slane %v13240_v0, 1  ;;  %5009 = vmatprep.mubr.bf16.mxu0 %v14890_v28  ;;  %v8588_v28 = vadd.f32 %v16413_v36, %v8453_v25 }
 0x610   : > { %v7956_v11 = vsel %vm7904_vm0, %v7953_v44, %v7955_v60  ;;  %v8589_v46 = vadd.f32 %v16413_v36, %v8454_v26  ;;  %v7663_v17 = vadd.f32 %v13235_v43, %v7297_v13  ;;  %v14891_v13 = vld [vmem:[%s15351_s16 + $0x340] ss:$8 sps:$4 sm:$0xff]  }
 0x611   : > { %v6655_v18 = vpop.f32.mrb[236].mxu1  ;;  %v7299_v31 = vsel %vm7247_vm1, %v7296_v35, %v7298_v30  ;;  %v4750_v4 = vpop.f32.mrb[236].mxu0 }
 0x612   : > { %v13320_v52 = vadd.f32 %v6655_v18, %v16099_v37  ;;  %v6657_v23 = vpop.f32.mrb[237].mxu1  ;;  %v8717_v1 = vmax.f32 %v8589_v46, 0.0  ;;  %v8320_v3 = vadd.f32 %v7954_v33, %v7663_v17  ;;  %v7664_v38 = vadd.f32 %v13237_v21, %v7299_v31  ;;  %v4752_v27 = vpop.f32.mrb[237].mxu0 }
 0x613   : > { %v13241_v10 = vadd.f32 %v4750_v4, %v16101_v56  ;;  %v6658_v6 = vpop.f32.mrb[238].mxu1  ;;  %v13242_v44 = vadd.f32 %v4752_v27, %v16103_v16  ;;  %v4754_v8 = vpop.f32.mrb[238].mxu0  ;;  %v8959_v18 = vld [vmem:[#allocation2 + $0x40] ss:$2 sm:$0xff] }
 0x614   : > { %v7957_v43 = vrot.slane %v13320_v52, 2  ;;  %v13321_v55 = vadd.f32 %v6658_v6, %v16105_v15  ;;  %v6660_v37 = vpop.f32.mrb[239].mxu1  ;;  %v8833_v41 = vmax.f32 %v8715_v22, %v8717_v1  ;;  %v8455_v50 = vmul.f32 %v16404_v42, %v8320_v3  ;;  %v4756_v34 = vpop.f32.mrb[239].mxu0  ;;  %v9023_v22 = vld [vmem:[#allocation2 + $0x41] ss:$2 sm:$0xff] }
 0x615   : > { %v8321_v45 = vadd.f32 %v7956_v11, %v7664_v38  ;;  %v13243_v21 = vadd.f32 %v4754_v8, %v16107_v24  ;;  %v7300_v39 = vrot.slane %v13242_v44, 1  ;;  %v13244_v35 = vadd.f32 %v4756_v34, %v16109_v12  ;;  %v14898_v1 = vld [vmem:[%s15351_s16 + $0x354] ss:$8 sps:$4 sm:$0xff]   ;;  %v19746_v38 = vld [vmem:[#allocation47_spill] sm:$0xff] }
 0x616   : > { %v7958_v56 = vsel %vm7904_vm0, %v7955_v60, %v7957_v43  ;;  %v7959_v33 = vrot.slane %v13321_v55, 2  ;;  %6867 = vmatmul.mubr.bf16.gmra.mrb[56].mxu1 %v14888_v47  ;;  %8897 = vst [vmem:[#allocation2 + $0x50] sm:$0xff] %v8833_v41  ;;  %v8590_v15 = vadd.f32 %v16413_v36, %v8455_v50  ;;  %5010 = vmatmul.mubr.bf16.gmra.mrb[56].mxu0 %v14888_v47  ;;  %v8716_v24 = vmax.f32 %v8588_v28, 0.0  ;;  %v16662_v60 = vld [vmem:[%s19476_s2] ss:$0 sm:$0xff]  ;;  %v19749_v8 = vld [vmem:[#allocation50_spill] sm:$0xff] }
 0x617   : > { %6874 = vmatprep.mubr.bf16.mxu1 %v14893_v5  ;;  %v7301_v16 = vsel %vm7247_vm1, %v7298_v30, %v7300_v39  ;;  %v7302_v0 = vrot.slane %v13244_v35, 1  ;;  %5019 = vmatprep.mubr.bf16.mxu0 %v14893_v5  ;;  %v8456_v12 = vmul.f32 %v16662_v60, %v8321_v45  ;;  %v19748_v5 = vld [vmem:[#allocation49_spill] sm:$0xff]  ;;  %v16681_v50 = vmax.f32 %v8959_v18, %v9023_v22 }
 0x618   : > { %v7960_v42 = vsel %vm7904_vm0, %v7957_v43, %v7959_v33  ;;  %v8718_v26 = vmax.f32 %v8590_v15, 0.0  ;;  %v7665_v25 = vadd.f32 %v13239_v51, %v7301_v16  ;;  %v19747_v51 = vld [vmem:[#allocation48_spill] sm:$0xff]  ;;  %v14896_v22 = vld [vmem:[%s15351_s16 + $0x350] ss:$8 sps:$4 sm:$0xff]  }
 0x619   : > { %v6663_v36 = vpop.f32.mrb[240].mxu1  ;;  %v7303_v11 = vsel %vm7247_vm1, %v7300_v39, %v7302_v0  ;;  %v4760_v46 = vpop.f32.mrb[240].mxu0  ;;  %v19750_v39 = vld [vmem:[#allocation51_spill] sm:$0xff] }
 0x61a   : > { %v13322_v30 = vadd.f32 %v6663_v36, %v16113_v29  ;;  %v6665_v17 = vpop.f32.mrb[241].mxu1  ;;  %v8834_v31 = vmax.f32 %v8716_v24, %v8718_v26  ;;  %v8322_v52 = vadd.f32 %v7958_v56, %v7665_v25  ;;  %v7666_v4 = vadd.f32 %v13241_v10, %v7303_v11  ;;  %v4762_v23 = vpop.f32.mrb[241].mxu0  ;;  %v16675_v29 = vld [vmem:[%s19477_s3] ss:$0 sm:$0xff] }
 0x61b   : > { %v6666_v47 = vpop.f32.mrb[242].mxu1  ;;  %v13245_v27 = vadd.f32 %v4760_v46, %v19746_v38  ;;  %v13246_v6 = vadd.f32 %v4762_v23, %v19747_v51  ;;  %v4764_v43 = vpop.f32.mrb[242].mxu0  ;;  %v8591_v10 = vadd.f32 %v16675_v29, %v8456_v12  ;;  %v9213_v36 = vrot.slane %v16681_v50, 7  ;;  %v19752_v23 = vld [vmem:[#allocation53_spill] sm:$0xff] }
 0x61c   : > { %v7961_v3 = vrot.slane %v13322_v30, 2  ;;  %v13323_v28 = vadd.f32 %v6666_v47, %v19748_v5  ;;  %v6668_v44 = vpop.f32.mrb[243].mxu1  ;;  %8898 = vst [vmem:[#allocation2 + $0x58] sm:$0xff] %v8834_v31  ;;  %v8323_v55 = vadd.f32 %v7960_v42, %v7666_v4  ;;  %v16679_v37 = vadd.f32 %v4764_v43, %v19749_v8  ;;  %v4766_v41 = vpop.f32.mrb[243].mxu0  ;;  %v19751_v30 = vld [vmem:[#allocation52_spill] sm:$0xff] }
 0x61d   : > { %v7304_v34 = vrot.slane %v13246_v6, 1  ;;  %v13248_v35 = vadd.f32 %v4766_v41, %v19750_v39  ;;  %v8457_v16 = vmul.f32 %v16662_v60, %v8322_v52  ;;  %v8719_v11 = vmax.f32 %v8591_v10, 0.0  ;;  %v19753_v6 = vld [vmem:[#allocation54_spill] sm:$0xff] }
 0x61e   : > { %v7962_v45 = vsel %vm7904_vm0, %v7959_v33, %v7961_v3  ;;  %v7963_v56 = vrot.slane %v13323_v28, 2  ;;  %6875 = vmatmul.mubr.bf16.gmra.mrb[60].mxu1 %v14891_v13  ;;  %v8458_v15 = vmul.f32 %v16662_v60, %v8323_v55  ;;  %5020 = vmatmul.mubr.bf16.gmra.mrb[60].mxu0 %v14891_v13  ;;  %v19754_v28 = vld [vmem:[#allocation55_spill] sm:$0xff] }
 0x61f   : > { %6882 = vmatprep.mubr.bf16.mxu1 %v14898_v1  ;;  %v7305_v42 = vsel %vm7247_vm1, %v7302_v0, %v7304_v34  ;;  %v7306_v26 = vrot.slane %v13248_v35, 1  ;;  %5029 = vmatprep.mubr.bf16.mxu0 %v14898_v1  ;;  %v9374_v0 = vrot.slane %v16681_v50, 1  ;;  %v8592_v38 = vadd.f32 %v16675_v29, %v8457_v16  ;;  %v19756_v16 = vld [vmem:[#allocation57_spill] sm:$0xff] }
 0x620   : > { %v7964_v24 = vsel %vm7904_vm0, %v7961_v3, %v7963_v56  ;;  %v8593_v33 = vadd.f32 %v16675_v29, %v8458_v15  ;;  %v7667_v12 = vadd.f32 %v13243_v21, %v7305_v42  ;;  %v14901_v3 = vld [vmem:[%s15351_s16 + $0x364] ss:$8 sps:$4 sm:$0xff]  }
 0x621   : > { %v6671_v25 = vpop.f32.mrb[244].mxu1  ;;  %v7307_v13 = vsel %vm7247_vm1, %v7304_v34, %v7306_v26  ;;  %v4770_v17 = vpop.f32.mrb[244].mxu0 }
 0x622   : > { %v13324_v46 = vadd.f32 %v6671_v25, %v19751_v30  ;;  %v6673_v18 = vpop.f32.mrb[245].mxu1  ;;  %v8721_v31 = vmax.f32 %v8593_v33, 0.0  ;;  %v8324_v52 = vadd.f32 %v7962_v45, %v7667_v12  ;;  %v7668_v4 = vadd.f32 %v13245_v27, %v7307_v13  ;;  %v4772_v21 = vpop.f32.mrb[245].mxu0  ;;  %v19755_v45 = vld [vmem:[#allocation56_spill] sm:$0xff] }
 0x623   : > { %v13249_v47 = vadd.f32 %v4770_v17, %v19752_v23  ;;  %v6674_v1 = vpop.f32.mrb[246].mxu1  ;;  %v13250_v5 = vadd.f32 %v4772_v21, %v19753_v6  ;;  %v4774_v44 = vpop.f32.mrb[246].mxu0  ;;  %v8961_v39 = vld [vmem:[#allocation2 + $0x50] ss:$2 sm:$0xff]  ;;  %v9025_v12 = vld [vmem:[#allocation2 + $0x51] ss:$2 sm:$0xff] }
 0x624   : > { %v7965_v51 = vrot.slane %v13324_v46, 2  ;;  %v13325_v43 = vadd.f32 %v6674_v1, %v19754_v28  ;;  %v6676_v10 = vpop.f32.mrb[247].mxu1  ;;  %v8835_v55 = vmax.f32 %v8719_v11, %v8721_v31  ;;  %v8459_v8 = vmul.f32 %v16662_v60, %v8324_v52  ;;  %v4776_v34 = vpop.f32.mrb[247].mxu0  ;;  %v19759_v23 = vld [vmem:[#allocation58_spill] sm:$0xff] }
 0x625   : > { %v8325_v41 = vadd.f32 %v7964_v24, %v7668_v4  ;;  %v13251_v27 = vadd.f32 %v4774_v44, %v19755_v45  ;;  %v7308_v15 = vrot.slane %v13250_v5, 1  ;;  %v13252_v33 = vadd.f32 %v4776_v34, %v19756_v16  ;;  %v14902_v10 = vld [vmem:[%s15351_s16 + $0x394] ss:$8 sps:$4 sm:$0xff]  }
 0x626   : > { %v7966_v35 = vsel %vm7904_vm0, %v7963_v56, %v7965_v51  ;;  %v7967_v42 = vrot.slane %v13325_v43, 2  ;;  %6883 = vmatmul.mubr.bf16.gmra.mrb[64].mxu1 %v14896_v22  ;;  %8899 = vst [vmem:[#allocation2 + $0x60] sm:$0xff] %v8835_v55  ;;  %v8594_v25 = vadd.f32 %v16675_v29, %v8459_v8  ;;  %5030 = vmatmul.mubr.bf16.gmra.mrb[64].mxu0 %v14896_v22  ;;  %v8720_v17 = vmax.f32 %v8592_v38, 0.0  ;;  %v19760_v8 = vld [vmem:[#allocation59_spill] sm:$0xff] }
 0x627   : > { %6890 = vmatprep.mubr.bf16.mxu1 %v14901_v3  ;;  %v16709_v24 = vsel %vm9204_vm2, %v16471_v48, %v9213_v36  ;;  %v16711_v11 = vmax.f32 %v8961_v39, %v9025_v12  ;;  %v7309_v56 = vsel %vm7247_vm1, %v7306_v26, %v7308_v15  ;;  %v7310_v30 = vrot.slane %v13252_v33, 1  ;;  %5039 = vmatprep.mubr.bf16.mxu0 %v14901_v3 }
 0x628   : > { %19757 = vst [vmem:[#allocation47_spill] sm:$0xff] %v16709_v24  ;;  %v7968_v13 = vsel %vm7904_vm0, %v7965_v51, %v7967_v42  ;;  %v16717_v46 = vsel %vm7247_vm1, %v16483_v14, %v9374_v0  ;;  %v8722_v18 = vmax.f32 %v8594_v25, 0.0  ;;  %v7669_v22 = vadd.f32 %v16679_v37, %v7309_v56  ;;  %v14899_v51 = vld [vmem:[%s15351_s16 + $0x360] ss:$8 sps:$4 sm:$0xff]  }
 0x629   : > { %19758 = vst [vmem:[#allocation48_spill] sm:$0xff] %v16717_v46  ;;  %v6679_v31 = vpop.f32.mrb[248].mxu1  ;;  %v9215_v52 = vrot.slane %v16711_v11, 7  ;;  %v7311_v4 = vsel %vm7247_vm1, %v7308_v15, %v7310_v30  ;;  %v4780_v21 = vpop.f32.mrb[248].mxu0  ;;  %v9376_v6 = vrot.slane %v16711_v11, 1  ;;  %v8460_v5 = vmul.f32 %v16662_v60, %v8325_v41 }
 0x62a   : > { %v13326_v26 = vadd.f32 %v6679_v31, %v19759_v23  ;;  %v6681_v1 = vpop.f32.mrb[249].mxu1  ;;  %v8836_v38 = vmax.f32 %v8720_v17, %v8722_v18  ;;  %v8326_v37 = vadd.f32 %v7966_v35, %v7669_v22  ;;  %v7670_v28 = vadd.f32 %v13249_v47, %v7311_v4  ;;  %v4781_v43 = vpop.f32.mrb[249].mxu0  ;;  %v14904_v4 = vld [vmem:[%s15351_s16 + $0x390] ss:$8 sps:$4 sm:$0xff]  }
 0x62b   : > { %v6682_v44 = vpop.f32.mrb[250].mxu1  ;;  %v13253_v45 = vadd.f32 %v4781_v43, %v19760_v8  ;;  %v4783_v34 = vpop.f32.mrb[250].mxu0  ;;  %v16735_v15 = vsel %vm9204_vm2, %v9213_v36, %v9215_v52  ;;  %v16740_v41 = vsel %vm7247_vm1, %v9374_v0, %v9376_v6  ;;  %v8595_v36 = vadd.f32 %v16675_v29, %v8460_v5 }
 0x62c   : > { %v7969_v55 = vrot.slane %v13326_v26, 2  ;;  %v6683_v39 = vpop.f32.mrb[251].mxu1  ;;  %19761 = vst [vmem:[#allocation49_spill] sm:$0xff] %v16735_v15  ;;  %19762 = vst [vmem:[#allocation50_spill] sm:$0xff] %v16740_v41  ;;  %v8327_v47 = vadd.f32 %v7968_v13, %v7670_v28  ;;  %v4784_v35 = vpop.f32.mrb[251].mxu0  ;;  %v8461_v13 = vmul.f32 %v16662_v60, %v8326_v37 }
 0x62d   : > { %8900 = vst [vmem:[#allocation2 + $0x68] sm:$0xff] %v8836_v38  ;;  %v7312_v25 = vrot.slane %v13253_v45, 1  ;;  %v8723_v23 = vmax.f32 %v8595_v36, 0.0 }
 0x62e   : > { %v7970_v12 = vsel %vm7904_vm0, %v7967_v42, %v7969_v55  ;;  %6891 = vmatmul.mubr.bf16.gmra.mrb[68].mxu1 %v14899_v51  ;;  %v8462_v56 = vmul.f32 %v16662_v60, %v8327_v47  ;;  %5040 = vmatmul.mubr.bf16.gmra.mrb[68].mxu0 %v14899_v51  ;;  %v14905_v51 = vld [vmem:[%s15351_s16 + $0x3a4] ss:$8 sps:$4 sm:$0xff]   ;;  %v8596_v44 = vadd.f32 %v16675_v29, %v8461_v13 }
 0x62f   : > { %6897 = vmatprep.mubr.bf16.mxu1 %v14902_v10  ;;  %v7313_v0 = vsel %vm7247_vm1, %v7310_v30, %v7312_v25  ;;  %5046 = vmatprep.mubr.bf16.mxu0 %v14902_v10 }
 0x630   : > { %v8597_v17 = vadd.f32 %v16675_v29, %v8462_v56  ;;  %v7671_v18 = vadd.f32 %v13251_v27, %v7313_v0  ;;  %v8724_v25 = vmax.f32 %v8596_v44, 0.0 }
 0x631   : > { %v6686_v22 = vpop.f32.mrb[72].mxu1  ;;  %v4787_v31 = vpop.f32.mrb[72].mxu0 }
 0x632   : > { %v6688_v42 = vpop.f32.mrb[73].mxu1  ;;  %v8725_v26 = vmax.f32 %v8597_v17, 0.0  ;;  %v8328_v21 = vadd.f32 %v7970_v12, %v7671_v18  ;;  %v4789_v1 = vpop.f32.mrb[73].mxu0  ;;  %v7971_v5 = vrot.slane %v6686_v22, 2  ;;  %v14907_v22 = vld [vmem:[%s15351_s16 + $0x3a0] ss:$8 sps:$4 sm:$0xff]  }
 0x633   : > { %v6689_v38 = vpop.f32.mrb[74].mxu1  ;;  %v4791_v43 = vpop.f32.mrb[74].mxu0  ;;  %v7314_v8 = vrot.slane %v4789_v1, 1  ;;  %v14908_v1 = vld [vmem:[%s15351_s16 + $0x3b4] ss:$8 sps:$4 sm:$0xff]  }
 0x634   : > { %v7972_v28 = vrot.slane %v6689_v38, 2  ;;  %v6691_v30 = vpop.f32.mrb[75].mxu1  ;;  %v8837_v37 = vmax.f32 %v8723_v23, %v8725_v26  ;;  %v8463_v10 = vmul.f32 %v16662_v60, %v8328_v21  ;;  %v4793_v27 = vpop.f32.mrb[75].mxu0  ;;  %v8963_v55 = vld [vmem:[#allocation2 + $0x60] ss:$2 sm:$0xff] }
 0x635   : > { %v7315_v34 = vrot.slane %v4793_v27, 1  ;;  %v9027_v39 = vld [vmem:[#allocation2 + $0x61] ss:$2 sm:$0xff] }
 0x636   : > { %v7973_v45 = vsel %vm7904_vm0, %v7971_v5, %v7972_v28  ;;  %6898 = vmatmul.mubr.bf16.gmra.mrb[180].mxu1 %v14904_v4  ;;  %8901 = vst [vmem:[#allocation2 + $0x70] sm:$0xff] %v8837_v37  ;;  %v8598_v47 = vadd.f32 %v16675_v29, %v8463_v10  ;;  %5047 = vmatmul.mubr.bf16.gmra.mrb[180].mxu0 %v14904_v4  ;;  %v14952_v38 = vld [vmem:[%s19478_s4 + $0x60] sm:$0xff]  }
 0x637   : > { %6905 = vmatprep.mubr.bf16.mxu1 %v14905_v51  ;;  %v16758_v35 = vmax.f32 %v8963_v55, %v9027_v39  ;;  %v7316_v12 = vsel %vm7247_vm1, %v7314_v8, %v7315_v34  ;;  %5056 = vmatprep.mubr.bf16.mxu0 %v14905_v51  ;;  %v14953_v39 = vld [vmem:[%s19478_s4 + $0x20] sm:$0xff]  }
 0x638   : > { %v8726_v36 = vmax.f32 %v8598_v47, 0.0  ;;  %v7672_v56 = vadd.f32 %v7316_v12, %v4787_v31  ;;  %13213 = vmatprep.subr.bf16.mxu1 %v14952_v38  ;;  %12697 = vmatprep.subr.bf16.mxu0 %v14952_v38 }
 0x639   : > { %v6694_v0 = vpop.f32.mrb[76].mxu1  ;;  %v4797_v17 = vpop.f32.mrb[76].mxu0  ;;  %v9378_v42 = vrot.slane %v16758_v35, 1  ;;  %13221 = vmatpush3.bf16.msra.mxu1 %v14953_v39  ;;  %12698 = vmatpush3.bf16.msra.mxu0 %v14953_v39 }
 0x63a   : > { %v7974_v13 = vrot.slane %v6694_v0, 2  ;;  %v6696_v18 = vpop.f32.mrb[77].mxu1  ;;  %v8838_v23 = vmax.f32 %v8724_v25, %v8726_v36  ;;  %v8329_v26 = vadd.f32 %v7973_v45, %v7672_v56  ;;  %v4799_v4 = vpop.f32.mrb[77].mxu0  ;;  %v14910_v0 = vld [vmem:[%s15351_s16 + $0x3b0] ss:$8 sps:$4 sm:$0xff]  }
 0x63b   : > { %v6697_v21 = vpop.f32.mrb[78].mxu1  ;;  %v7317_v5 = vrot.slane %v4799_v4, 1  ;;  %v4801_v30 = vpop.f32.mrb[78].mxu0  ;;  %v16773_v10 = vsel %vm7247_vm1, %v9376_v6, %v9378_v42 }
 0x63c   : > { %v7975_v51 = vsel %vm7904_vm0, %v7972_v28, %v7974_v13  ;;  %v7976_v31 = vrot.slane %v6697_v21, 2  ;;  %v6699_v44 = vpop.f32.mrb[79].mxu1  ;;  %8902 = vst [vmem:[#allocation2 + $0x78] sm:$0xff] %v8838_v23  ;;  %v4803_v37 = vpop.f32.mrb[79].mxu0  ;;  %19763 = vst [vmem:[#allocation51_spill] sm:$0xff] %v16773_v10  ;;  %v8464_v6 = vmul.f32 %v16662_v60, %v8329_v26 }
 0x63d   : > { %v7318_v27 = vsel %vm7247_vm1, %v7315_v34, %v7317_v5  ;;  %v7319_v28 = vrot.slane %v4803_v37, 1  ;;  %v14911_v23 = vld [vmem:[%s15351_s16 + $0x3c4] ss:$8 sps:$4 sm:$0xff]  }
 0x63e   : > { %v7977_v55 = vsel %vm7904_vm0, %v7974_v13, %v7976_v31  ;;  %6906 = vmatmul.mubr.bf16.gmra.mrb[184].mxu1 %v14907_v22  ;;  %v7673_v45 = vadd.f32 %v7318_v27, %v4791_v43  ;;  %5057 = vmatmul.mubr.bf16.gmra.mrb[184].mxu0 %v14907_v22  ;;  %v8599_v4 = vadd.f32 %v16675_v29, %v8464_v6 }
 0x63f   : > { %6913 = vmatprep.mubr.bf16.mxu1 %v14908_v1  ;;  %v7320_v34 = vsel %vm7247_vm1, %v7317_v5, %v7319_v28  ;;  %5066 = vmatprep.mubr.bf16.mxu0 %v14908_v1 }
 0x640   : > { %v8330_v47 = vadd.f32 %v7975_v51, %v7673_v45  ;;  %v7674_v12 = vadd.f32 %v7320_v34, %v4797_v17 }
 0x641   : > { %v6702_v25 = vpop.f32.mrb[80].mxu1  ;;  %v4807_v56 = vpop.f32.mrb[80].mxu0 }
 0x642   : > { %v7978_v36 = vrot.slane %v6702_v25, 2  ;;  %v6704_v43 = vpop.f32.mrb[81].mxu1  ;;  %v8331_v13 = vadd.f32 %v7977_v55, %v7674_v12  ;;  %v4809_v18 = vpop.f32.mrb[81].mxu0  ;;  %v8465_v37 = vmul.f32 %v16662_v60, %v8330_v47  ;;  %v8727_v12 = vmax.f32 %v8599_v4, 0.0 }
 0x643   : > { %v6705_v22 = vpop.f32.mrb[82].mxu1  ;;  %v7321_v21 = vrot.slane %v4809_v18, 1  ;;  %v4811_v1 = vpop.f32.mrb[82].mxu0  ;;  %v8965_v44 = vld [vmem:[#allocation2 + $0x70] ss:$2 sm:$0xff]  ;;  %v9217_v47 = vrot.slane %v16758_v35, 7 }
 0x644   : > { %v7979_v26 = vsel %vm7904_vm0, %v7976_v31, %v7978_v36  ;;  %v7980_v38 = vrot.slane %v6705_v22, 2  ;;  %v6707_v51 = vpop.f32.mrb[83].mxu1  ;;  %v8466_v17 = vmul.f32 %v16662_v60, %v8331_v13  ;;  %v4813_v5 = vpop.f32.mrb[83].mxu0  ;;  %v9029_v39 = vld [vmem:[#allocation2 + $0x71] ss:$2 sm:$0xff]  ;;  %v8600_v4 = vadd.f32 %v16675_v29, %v8465_v37 }
 0x645   : > { %v7322_v27 = vsel %vm7247_vm1, %v7319_v28, %v7321_v21  ;;  %v7323_v45 = vrot.slane %v4813_v5, 1  ;;  %v16793_v34 = vmax.f32 %v8965_v44, %v9029_v39  ;;  %v14914_v39 = vld [vmem:[%s15351_s16 + $0x3d4] ss:$8 sps:$4 sm:$0xff]   ;;  %v16808_v37 = vsel %vm9204_vm2, %v9215_v52, %v9217_v47 }
 0x646   : > { %v7981_v55 = vsel %vm7904_vm0, %v7978_v36, %v7980_v38  ;;  %6914 = vmatmul.mubr.bf16.gmra.mrb[188].mxu1 %v14910_v0  ;;  %v8601_v6 = vadd.f32 %v16675_v29, %v8466_v17  ;;  %v7675_v31 = vadd.f32 %v7322_v27, %v4801_v30  ;;  %5067 = vmatmul.mubr.bf16.gmra.mrb[188].mxu0 %v14910_v0  ;;  %v14913_v0 = vld [vmem:[%s15351_s16 + $0x3c0] ss:$8 sps:$4 sm:$0xff]  }
 0x647   : > { %6921 = vmatprep.mubr.bf16.mxu1 %v14911_v23  ;;  %19764 = vst [vmem:[#allocation52_spill] sm:$0xff] %v16793_v34  ;;  %v7324_v25 = vsel %vm7247_vm1, %v7321_v21, %v7323_v45  ;;  %5076 = vmatprep.mubr.bf16.mxu0 %v14911_v23  ;;  %v19494_v18 = vrot.slane %v16793_v34, 1  ;;  %v9496_v17 = vrot.slane %v16793_v34, 7  ;;  %19765 = vst [vmem:[#allocation53_spill] sm:$0xff] %v16808_v37 }
 0x648   : > { %v8729_v28 = vmax.f32 %v8601_v6, 0.0  ;;  %v8332_v36 = vadd.f32 %v7979_v26, %v7675_v31  ;;  %v7676_v43 = vadd.f32 %v7324_v25, %v4807_v56 }
 0x649   : > { %v6710_v13 = vpop.f32.mrb[84].mxu1  ;;  %v4817_v30 = vpop.f32.mrb[84].mxu0 }
 0x64a   : > { %v7982_v22 = vrot.slane %v6710_v13, 2  ;;  %v6712_v51 = vpop.f32.mrb[85].mxu1  ;;  %v8839_v5 = vmax.f32 %v8727_v12, %v8729_v28  ;;  %v8467_v23 = vmul.f32 %v16662_v60, %v8332_v36  ;;  %v8333_v21 = vadd.f32 %v7981_v55, %v7676_v43  ;;  %v4819_v44 = vpop.f32.mrb[85].mxu0 }
 0x64b   : > { %v6713_v27 = vpop.f32.mrb[86].mxu1  ;;  %v7325_v26 = vrot.slane %v4819_v44, 1  ;;  %v4821_v31 = vpop.f32.mrb[86].mxu0  ;;  %v16815_v55 = vsel %vm7247_vm1, %v9378_v42, %v19494_v18  ;;  %v16820_v36 = vsel %vm9204_vm2, %v9217_v47, %v9496_v17  ;;  %v8728_v43 = vmax.f32 %v8600_v4, 0.0 }
 0x64c   : > { %v7983_v56 = vsel %vm7904_vm0, %v7980_v38, %v7982_v22  ;;  %v7984_v6 = vrot.slane %v6713_v27, 2  ;;  %v6715_v25 = vpop.f32.mrb[87].mxu1  ;;  %8903 = vst [vmem:[#allocation2 + $0x80] sm:$0xff] %v8839_v5  ;;  %v8602_v13 = vadd.f32 %v16675_v29, %v8467_v23  ;;  %v4823_v51 = vpop.f32.mrb[87].mxu0  ;;  %19766 = vst [vmem:[#allocation54_spill] sm:$0xff] %v16815_v55  ;;  %v16824_v23 = vsel %vm9204_vm2, %v9496_v17, %v16471_v48 }
 0x64d   : > { %v7326_v38 = vsel %vm7247_vm1, %v7323_v45, %v7325_v26  ;;  %v7327_v28 = vrot.slane %v4823_v51, 1  ;;  %19767 = vst [vmem:[#allocation55_spill] sm:$0xff] %v16820_v36  ;;  %19768 = vst [vmem:[#allocation56_spill] sm:$0xff] %v16824_v23  ;;  %v14916_v25 = vld [vmem:[%s15351_s16 + $0x3d0] ss:$8 sps:$4 sm:$0xff]  }
 0x64e   : > { %v7985_v12 = vsel %vm7904_vm0, %v7982_v22, %v7984_v6  ;;  %6922 = vmatmul.mubr.bf16.gmra.mrb[192].mxu1 %v14913_v0  ;;  %v8730_v5 = vmax.f32 %v8602_v13, 0.0  ;;  %v7677_v52 = vadd.f32 %v7326_v38, %v4811_v1  ;;  %5077 = vmatmul.mubr.bf16.gmra.mrb[192].mxu0 %v14913_v0  ;;  %v16833_v1 = vpack.c.bf16 %v16815_v55, %v16773_v10  ;;  %v14942_v23 = vld [vmem:[%s15351_s16 + $0x474] ss:$8 sps:$4 sm:$0xff]   ;;  %v14945_v36 = vld [vmem:[%s15351_s16 + $0x484] ss:$8 sps:$4 sm:$0xff]  }
 0x64f   : > { %6929 = vmatprep.mubr.bf16.mxu1 %v14914_v39  ;;  %v7328_v42 = vsel %vm7247_vm1, %v7325_v26, %v7327_v28  ;;  %5086 = vmatprep.mubr.bf16.mxu0 %v14914_v39  ;;  %v8468_v0 = vmul.f32 %v16662_v60, %v8333_v21  ;;  %v14946_v55 = vld [vmem:[%s15351_s16 + $0x490] ss:$8 sps:$4 sm:$0xff]  }
 0x650   : > { %19769 = vst [vmem:[#allocation57_spill] sm:$0xff] %v16833_v1  ;;  %v8840_v22 = vmax.f32 %v8728_v43, %v8730_v5  ;;  %v8334_v4 = vadd.f32 %v7983_v56, %v7677_v52  ;;  %v7678_v17 = vadd.f32 %v7328_v42, %v4817_v30 }
 0x651   : > { %v6718_v44 = vpop.f32.mrb[88].mxu1  ;;  %v4827_v26 = vpop.f32.mrb[88].mxu0  ;;  %v8603_v21 = vadd.f32 %v16675_v29, %v8468_v0 }
 0x652   : > { %v7986_v27 = vrot.slane %v6718_v44, 2  ;;  %v6720_v39 = vpop.f32.mrb[89].mxu1  ;;  %8904 = vst [vmem:[#allocation2 + $0x88] sm:$0xff] %v8840_v22  ;;  %v8335_v13 = vadd.f32 %v7985_v12, %v7678_v17  ;;  %v4829_v51 = vpop.f32.mrb[89].mxu0  ;;  %v8469_v12 = vmul.f32 %v16662_v60, %v8334_v4 }
 0x653   : > { %v6721_v38 = vpop.f32.mrb[90].mxu1  ;;  %v7329_v45 = vrot.slane %v4829_v51, 1  ;;  %v4831_v33 = vpop.f32.mrb[90].mxu0  ;;  %v8731_v0 = vmax.f32 %v8603_v21, 0.0 }
 0x654   : > { %v7987_v47 = vsel %vm7904_vm0, %v7984_v6, %v7986_v27  ;;  %v7988_v16 = vrot.slane %v6721_v38, 2  ;;  %v6723_v43 = vpop.f32.mrb[91].mxu1  ;;  %v8470_v30 = vmul.f32 %v16662_v60, %v8335_v13  ;;  %v4833_v56 = vpop.f32.mrb[91].mxu0  ;;  %v8604_v4 = vadd.f32 %v16675_v29, %v8469_v12 }
 0x655   : > { %v7330_v5 = vsel %vm7247_vm1, %v7327_v28, %v7329_v45  ;;  %v7331_v42 = vrot.slane %v4833_v56, 1  ;;  %v14919_v43 = vld [vmem:[%s15351_s16 + $0x3e0] ss:$8 sps:$4 sm:$0xff]  }
 0x656   : > { %v7989_v52 = vsel %vm7904_vm0, %v7986_v27, %v7988_v16  ;;  %6930 = vmatmul.mubr.bf16.gmra.mrb[196].mxu1 %v14916_v25  ;;  %v8605_v6 = vadd.f32 %v16675_v29, %v8470_v30  ;;  %v7679_v22 = vadd.f32 %v7330_v5, %v4821_v31  ;;  %5087 = vmatmul.mubr.bf16.gmra.mrb[196].mxu0 %v14916_v25 }
 0x657   : > { %6937 = vmatprep.mubr.bf16.mxu1 %v14917_v61  ;;  %v7332_v17 = vsel %vm7247_vm1, %v7329_v45, %v7331_v42  ;;  %5096 = vmatprep.mubr.bf16.mxu0 %v14917_v61  ;;  %v14920_v45 = vld [vmem:[%s15351_s16 + $0x3f4] ss:$8 sps:$4 sm:$0xff]  }
 0x658   : > { %v8733_v44 = vmax.f32 %v8605_v6, 0.0  ;;  %v8336_v39 = vadd.f32 %v7987_v47, %v7679_v22  ;;  %v7680_v28 = vadd.f32 %v7332_v17, %v4827_v26 }
 0x659   : > { %v6726_v13 = vpop.f32.mrb[92].mxu1  ;;  %v4837_v51 = vpop.f32.mrb[92].mxu0 }
 0x65a   : > { %v7990_v27 = vrot.slane %v6726_v13, 2  ;;  %v6728_v38 = vpop.f32.mrb[93].mxu1  ;;  %v8841_v56 = vmax.f32 %v8731_v0, %v8733_v44  ;;  %v8471_v31 = vmul.f32 %v16662_v60, %v8336_v39  ;;  %v8337_v25 = vadd.f32 %v7989_v52, %v7680_v28  ;;  %v4839_v30 = vpop.f32.mrb[93].mxu0 }
 0x65b   : > { %v6729_v5 = vpop.f32.mrb[94].mxu1  ;;  %v7333_v21 = vrot.slane %v4839_v30, 1  ;;  %v4841_v47 = vpop.f32.mrb[94].mxu0  ;;  %v8732_v52 = vmax.f32 %v8604_v4, 0.0  ;;  %v14922_v30 = vld [vmem:[%s15351_s16 + $0x3f0] ss:$8 sps:$4 sm:$0xff]  }
 0x65c   : > { %v7991_v61 = vsel %vm7904_vm0, %v7988_v16, %v7990_v27  ;;  %v7992_v6 = vrot.slane %v6729_v5, 2  ;;  %v6731_v26 = vpop.f32.mrb[95].mxu1  ;;  %8905 = vst [vmem:[#allocation2 + $0x90] sm:$0xff] %v8841_v56  ;;  %v8606_v22 = vadd.f32 %v16675_v29, %v8471_v31  ;;  %v4843_v17 = vpop.f32.mrb[95].mxu0  ;;  %v8472_v38 = vmul.f32 %v16662_v60, %v8337_v25 }
 0x65d   : > { %v7334_v13 = vsel %vm7247_vm1, %v7331_v42, %v7333_v21  ;;  %v7335_v0 = vrot.slane %v4843_v17, 1  ;;  %v14925_v17 = vld [vmem:[%s15351_s16 + $0x404] ss:$8 sps:$4 sm:$0xff]  }
 0x65e   : > { %v7993_v12 = vsel %vm7904_vm0, %v7990_v27, %v7992_v6  ;;  %6938 = vmatmul.mubr.bf16.gmra.mrb[200].mxu1 %v14919_v43  ;;  %v8734_v44 = vmax.f32 %v8606_v22, 0.0  ;;  %v7681_v39 = vadd.f32 %v7334_v13, %v4831_v33  ;;  %5097 = vmatmul.mubr.bf16.gmra.mrb[200].mxu0 %v14919_v43  ;;  %v8967_v43 = vld [vmem:[#allocation2 + $0x80] ss:$2 sm:$0xff]  ;;  %v9031_v13 = vld [vmem:[#allocation2 + $0x81] ss:$2 sm:$0xff] }
 0x65f   : > { %6945 = vmatprep.mubr.bf16.mxu1 %v14920_v45  ;;  %v7336_v16 = vsel %vm7247_vm1, %v7333_v21, %v7335_v0  ;;  %5106 = vmatprep.mubr.bf16.mxu0 %v14920_v45 }
 0x660   : > { %v8842_v28 = vmax.f32 %v8732_v52, %v8734_v44  ;;  %v8338_v56 = vadd.f32 %v7991_v61, %v7681_v39  ;;  %v7682_v31 = vadd.f32 %v7336_v16, %v4837_v51  ;;  %v8607_v51 = vadd.f32 %v16675_v29, %v8472_v38 }
 0x661   : > { %v6734_v42 = vpop.f32.mrb[96].mxu1  ;;  %v4847_v27 = vpop.f32.mrb[96].mxu0 }
 0x662   : > { %v7994_v5 = vrot.slane %v6734_v42, 2  ;;  %v6736_v26 = vpop.f32.mrb[97].mxu1  ;;  %8906 = vst [vmem:[#allocation2 + $0x98] sm:$0xff] %v8842_v28  ;;  %v8339_v4 = vadd.f32 %v7993_v12, %v7682_v31  ;;  %v4849_v22 = vpop.f32.mrb[97].mxu0  ;;  %v16863_v31 = vmax.f32 %v8967_v43, %v9031_v13 }
 0x663   : > { %v6737_v33 = vpop.f32.mrb[98].mxu1  ;;  %v7337_v45 = vrot.slane %v4849_v22, 1  ;;  %v4851_v44 = vpop.f32.mrb[98].mxu0 }
 0x664   : > { %v7995_v21 = vsel %vm7904_vm0, %v7992_v6, %v7994_v5  ;;  %v7996_v52 = vrot.slane %v6737_v33, 2  ;;  %v6739_v25 = vpop.f32.mrb[99].mxu1  ;;  %v8474_v61 = vmul.f32 %v16662_v60, %v8339_v4  ;;  %v4853_v39 = vpop.f32.mrb[99].mxu0  ;;  %v8473_v6 = vmul.f32 %v16662_v60, %v8338_v56 }
 0x665   : > { %v7338_v16 = vsel %vm7247_vm1, %v7335_v0, %v7337_v45  ;;  %v7339_v12 = vrot.slane %v4853_v39, 1  ;;  %v8735_v4 = vmax.f32 %v8607_v51, 0.0  ;;  %v14927_v25 = vld [vmem:[%s15351_s16 + $0x400] ss:$8 sps:$4 sm:$0xff]   ;;  %v9219_v56 = vrot.slane %v16863_v31, 7 }
 0x666   : > { %v7997_v28 = vsel %vm7904_vm0, %v7994_v5, %v7996_v52  ;;  %6946 = vmatmul.mubr.bf16.gmra.mrb[204].mxu1 %v14922_v30  ;;  %v8609_v42 = vadd.f32 %v16675_v29, %v8474_v61  ;;  %v7683_v26 = vadd.f32 %v7338_v16, %v4841_v47  ;;  %5107 = vmatmul.mubr.bf16.gmra.mrb[204].mxu0 %v14922_v30  ;;  %v14928_v16 = vld [vmem:[%s15351_s16 + $0x414] ss:$8 sps:$4 sm:$0xff]  }
 0x667   : > { %6953 = vmatprep.mubr.bf16.mxu1 %v14925_v17  ;;  %v7340_v38 = vsel %vm7247_vm1, %v7337_v45, %v7339_v12  ;;  %5116 = vmatprep.mubr.bf16.mxu0 %v14925_v17  ;;  %v8608_v47 = vadd.f32 %v16675_v29, %v8473_v6 }
 0x668   : > { %v8737_v22 = vmax.f32 %v8609_v42, 0.0  ;;  %v8340_v0 = vadd.f32 %v7995_v21, %v7683_v26  ;;  %v7684_v5 = vadd.f32 %v7340_v38, %v4847_v27 }
 0x669   : > { %v6742_v33 = vpop.f32.mrb[100].mxu1  ;;  %v4857_v43 = vpop.f32.mrb[100].mxu0  ;;  %v8969_v54 = vld [vmem:[#allocation2 + $0x90] ss:$2 sm:$0xff]  ;;  %v9033_v42 = vld [vmem:[#allocation2 + $0x91] ss:$2 sm:$0xff] }
 0x66a   : > { %v7998_v39 = vrot.slane %v6742_v33, 2  ;;  %v6744_v13 = vpop.f32.mrb[101].mxu1  ;;  %v8843_v30 = vmax.f32 %v8735_v4, %v8737_v22  ;;  %v8475_v61 = vmul.f32 %v16662_v60, %v8340_v0  ;;  %v8341_v45 = vadd.f32 %v7997_v28, %v7684_v5  ;;  %v4859_v17 = vpop.f32.mrb[101].mxu0 }
 0x66b   : > { %v6745_v51 = vpop.f32.mrb[102].mxu1  ;;  %v7341_v21 = vrot.slane %v4859_v17, 1  ;;  %v4861_v38 = vpop.f32.mrb[102].mxu0  ;;  %v16874_v13 = vmax.f32 %v8969_v54, %v9033_v42  ;;  %v9382_v4 = vrot.slane %v16863_v31, 1  ;;  %v8736_v5 = vmax.f32 %v8608_v47, 0.0 }
 0x66c   : > { %v7999_v27 = vsel %vm7904_vm0, %v7996_v52, %v7998_v39  ;;  %v8000_v26 = vrot.slane %v6745_v51, 2  ;;  %v6747_v33 = vpop.f32.mrb[103].mxu1  ;;  %8907 = vst [vmem:[#allocation2 + $0xa0] sm:$0xff] %v8843_v30  ;;  %v8610_v3 = vadd.f32 %v16675_v29, %v8475_v61  ;;  %v4863_v6 = vpop.f32.mrb[103].mxu0 }
 0x66d   : > { %v7342_v28 = vsel %vm7247_vm1, %v7339_v12, %v7341_v21  ;;  %v7343_v0 = vrot.slane %v4863_v6, 1  ;;  %v19495_v52 = vrot.slane %v16874_v13, 7  ;;  %v16886_v12 = vsel %vm9204_vm2, %v16471_v48, %v9219_v56  ;;  %v14930_v6 = vld [vmem:[%s15351_s16 + $0x410] ss:$8 sps:$4 sm:$0xff]  }
 0x66e   : > { %v8001_v22 = vsel %vm7904_vm0, %v7998_v39, %v8000_v26  ;;  %6954 = vmatmul.mubr.bf16.gmra.mrb[208].mxu1 %v14927_v25  ;;  %v8738_v17 = vmax.f32 %v8610_v3, 0.0  ;;  %v7685_v51 = vadd.f32 %v7342_v28, %v4851_v44  ;;  %5117 = vmatmul.mubr.bf16.gmra.mrb[208].mxu0 %v14927_v25  ;;  %19770 = vst [vmem:[#allocation58_spill] sm:$0xff] %v16886_v12  ;;  %v9384_v3 = vrot.slane %v16874_v13, 1 }
 0x66f   : > { %6961 = vmatprep.mubr.bf16.mxu1 %v14928_v16  ;;  %v7344_v30 = vsel %vm7247_vm1, %v7341_v21, %v7343_v0  ;;  %5126 = vmatprep.mubr.bf16.mxu0 %v14928_v16  ;;  %v16891_v39 = vsel %vm9204_vm2, %v9219_v56, %v19495_v52  ;;  %v8476_v25 = vmul.f32 %v16662_v60, %v8341_v45 }
 0x670   : > { %19771 = vst [vmem:[#allocation59_spill] sm:$0xff] %v16891_v39  ;;  %v8844_v44 = vmax.f32 %v8736_v5, %v8738_v17  ;;  %v8342_v47 = vadd.f32 %v7999_v27, %v7685_v51  ;;  %v7686_v61 = vadd.f32 %v7344_v30, %v4857_v43  ;;  %v16898_v28 = vsel %vm7247_vm1, %v16483_v14, %v9382_v4  ;;  %v14931_v17 = vld [vmem:[%s15351_s16 + $0x444] ss:$8 sps:$4 sm:$0xff]  }
 0x671   : > { %v6750_v42 = vpop.f32.mrb[104].mxu1  ;;  %v4867_v16 = vpop.f32.mrb[104].mxu0  ;;  %19772 = vst [vmem:[#allocation116_spill] sm:$0xff] %v16898_v28  ;;  %v16903_v56 = vsel %vm7247_vm1, %v9382_v4, %v9384_v3  ;;  %v8611_v54 = vadd.f32 %v16675_v29, %v8476_v25 }
 0x672   : > { %v8002_v21 = vrot.slane %v6750_v42, 2  ;;  %v6752_v33 = vpop.f32.mrb[105].mxu1  ;;  %19773 = vst [vmem:[#allocation117_spill] sm:$0xff] %v16903_v56  ;;  %8908 = vst [vmem:[#allocation2 + $0xa8] sm:$0xff] %v8844_v44  ;;  %v8343_v45 = vadd.f32 %v8001_v22, %v7686_v61  ;;  %v4868_v43 = vpop.f32.mrb[105].mxu0  ;;  %v8477_v22 = vmul.f32 %v16662_v60, %v8342_v47 }
 0x673   : > { %v6753_v27 = vpop.f32.mrb[106].mxu1  ;;  %v7345_v42 = vrot.slane %v4868_v43, 1  ;;  %v4870_v16 = vpop.f32.mrb[106].mxu0 }
 0x674   : > { %v8003_v30 = vsel %vm7904_vm0, %v8000_v26, %v8002_v21  ;;  %v6754_v33 = vpop.f32.mrb[107].mxu1  ;;  %v8478_v4 = vmul.f32 %v16662_v60, %v8343_v45  ;;  %v4871_v8 = vpop.f32.mrb[107].mxu0  ;;  %v8739_v26 = vmax.f32 %v8611_v54, 0.0 }
 0x675   : > { %v7346_v44 = vsel %vm7247_vm1, %v7343_v0, %v7345_v42  ;;  %v14933_v33 = vld [vmem:[%s15351_s16 + $0x440] ss:$8 sps:$4 sm:$0xff]   ;;  %v8612_v0 = vadd.f32 %v16675_v29, %v8477_v22 }
 0x676   : > { %6962 = vmatmul.mubr.bf16.gmra.mrb[212].mxu1 %v14930_v6  ;;  %v8613_v61 = vadd.f32 %v16675_v29, %v8478_v4  ;;  %v7687_v27 = vadd.f32 %v7346_v44, %v4861_v38  ;;  %5127 = vmatmul.mubr.bf16.gmra.mrb[212].mxu0 %v14930_v6  ;;  %v14936_v38 = vld [vmem:[%s15351_s16 + $0x454] ss:$8 sps:$4 sm:$0xff]  }
 0x677   : > { %6968 = vmatprep.mubr.bf16.mxu1 %v14931_v17  ;;  %5133 = vmatprep.mubr.bf16.mxu0 %v14931_v17 }
 0x678   : > { %v8741_v21 = vmax.f32 %v8613_v61, 0.0  ;;  %v8344_v43 = vadd.f32 %v8003_v30, %v7687_v27 }
 0x679   : > { %v6757_v25 = vpop.f32.mrb[108].mxu1  ;;  %v4874_v16 = vpop.f32.mrb[108].mxu0  ;;  %v8971_v8 = vld [vmem:[#allocation2 + $0xa0] ss:$2 sm:$0xff]  ;;  %v9035_v6 = vld [vmem:[#allocation2 + $0xa1] ss:$2 sm:$0xff] }
 0x67a   : > { %v6759_v45 = vpop.f32.mrb[109].mxu1  ;;  %v8845_v42 = vmax.f32 %v8739_v26, %v8741_v21  ;;  %v8479_v47 = vmul.f32 %v16662_v60, %v8344_v43  ;;  %v4876_v51 = vpop.f32.mrb[109].mxu0  ;;  %v8004_v44 = vrot.slane %v6757_v25, 2  ;;  %v16920_v61 = vmax.f32 %v8971_v8, %v9035_v6  ;;  %v14934_v6 = vld [vmem:[%s15351_s16 + $0x450] ss:$8 sps:$4 sm:$0xff]  }
 0x67b   : > { %v6760_v4 = vpop.f32.mrb[110].mxu1  ;;  %v4878_v17 = vpop.f32.mrb[110].mxu0  ;;  %v7347_v45 = vrot.slane %v4876_v51, 1  ;;  %v8740_v60 = vmax.f32 %v8612_v0, 0.0  ;;  %v14981_v0 = vld [vmem:[%s19478_s4 + $0x68] sm:$0xff]  }
 0x67c   : > { %v8005_v5 = vrot.slane %v6760_v4, 2  ;;  %v6762_v54 = vpop.f32.mrb[111].mxu1  ;;  %8909 = vst [vmem:[#allocation2 + $0xb0] sm:$0xff] %v8845_v42  ;;  %v8614_v30 = vadd.f32 %v16675_v29, %v8479_v47  ;;  %v4880_v27 = vpop.f32.mrb[111].mxu0  ;;  %v19496_v43 = vrot.slane %v16920_v61, 1  ;;  %13214 = vmatprep.subr.bf16.mxu1 %v14981_v0  ;;  %12699 = vmatprep.subr.bf16.mxu0 %v14981_v0  ;;  %v14990_v0 = vld [vmem:[%s19478_s4 + $0x30] sm:$0xff]  }
 0x67d   : > { %v7348_v26 = vrot.slane %v4880_v27, 1  ;;  %v14939_v54 = vld [vmem:[%s15351_s16 + $0x464] ss:$8 sps:$4 sm:$0xff]   ;;  %v9110_v27 = vlaneseq }
 0x67e   : > { %v8006_v22 = vsel %vm7904_vm0, %v8004_v44, %v8005_v5  ;;  %6969 = vmatmul.mubr.bf16.gmra.mrb[216].mxu1 %v14933_v33  ;;  %v8742_v21 = vmax.f32 %v8614_v30, 0.0  ;;  %5134 = vmatmul.mubr.bf16.gmra.mrb[216].mxu0 %v14933_v33  ;;  %v16935_v33 = vsel %vm7247_vm1, %v9384_v3, %v19496_v43  ;;  %v14982_v30 = vld [vmem:[%s19478_s4 + $0x28] sm:$0xff]  }
 0x67f   : > { %6976 = vmatprep.mubr.bf16.mxu1 %v14936_v38  ;;  %v7349_v25 = vsel %vm7247_vm1, %v7347_v45, %v7348_v26  ;;  %5143 = vmatprep.mubr.bf16.mxu0 %v14936_v38  ;;  %19774 = vst [vmem:[#allocation118_spill] sm:$0xff] %v16935_v33  ;;  %v14989_v45 = vld [vmem:[%s19478_s4 + $0x70] sm:$0xff]  }
 0x680   : > { %v8846_v8 = vmax.f32 %v8740_v60, %v8742_v21  ;;  %v7688_v42 = vadd.f32 %v7349_v25, %v4874_v16  ;;  %13222 = vmatpush3.bf16.msra.mxu1 %v14982_v30  ;;  %12700 = vmatpush3.bf16.msra.mxu0 %v14982_v30 }
 0x681   : > { %v6765_v29 = vpop.f32.mrb[112].mxu1  ;;  %v4884_v51 = vpop.f32.mrb[112].mxu0  ;;  %12701 = vmatprep.subr.bf16.mxu0 %v14989_v45  ;;  %13215 = vmatprep.subr.bf16.mxu1 %v14989_v45 }
 0x682   : > { %v8007_v47 = vrot.slane %v6765_v29, 2  ;;  %v6767_v4 = vpop.f32.mrb[113].mxu1  ;;  %8910 = vst [vmem:[#allocation2 + $0xb8] sm:$0xff] %v8846_v8  ;;  %v8345_v38 = vadd.f32 %v8006_v22, %v7688_v42  ;;  %v4886_v44 = vpop.f32.mrb[113].mxu0 }
 0x683   : > { %v6768_v16 = vpop.f32.mrb[114].mxu1  ;;  %v7350_v21 = vrot.slane %v4886_v44, 1  ;;  %v4888_v29 = vpop.f32.mrb[114].mxu0  ;;  %v16952_v44 = vshrl.u32 %v9110_v27, 7 }
 0x684   : > { %v8008_v60 = vsel %vm7904_vm0, %v8005_v5, %v8007_v47  ;;  %v8009_v25 = vrot.slane %v6768_v16, 2  ;;  %v6770_v3 = vpop.f32.mrb[115].mxu1  ;;  %v4890_v22 = vpop.f32.mrb[115].mxu0  ;;  %12702 = vmatpush3.bf16.msra.mxu0 %v14990_v0  ;;  %13223 = vmatpush3.bf16.msra.mxu1 %v14990_v0 }
 0x685   : > { %v7351_v8 = vsel %vm7247_vm1, %v7348_v26, %v7350_v21  ;;  %v7352_v4 = vrot.slane %v4890_v22, 1  ;;  %19775 = vst [vmem:[#allocation119_spill] sm:$0xff] %v16952_v44  ;;  %v16957_v26 = vld [vmem:[%s19476_s2] ss:$0 sm:$0xff] }
 0x686   : > { %v8010_v42 = vsel %vm7904_vm0, %v8007_v47, %v8009_v25  ;;  %6977 = vmatmul.mubr.bf16.gmra.mrb[0].mxu1 %v14934_v6  ;;  %v7689_v5 = vadd.f32 %v7351_v8, %v4878_v17  ;;  %5144 = vmatmul.mubr.bf16.gmra.mrb[0].mxu0 %v14934_v6  ;;  %v8480_v47 = vmul.f32 %v16957_v26, %v8345_v38  ;;  %v14937_v8 = vld [vmem:[%s15351_s16 + $0x460] ss:$8 sps:$4 sm:$0xff]   ;;  %v9112_v38 = vadd.s32 8, %v16952_v44 }
 0x687   : > { %6984 = vmatprep.mubr.bf16.mxu1 %v14939_v54  ;;  %v7353_v16 = vsel %vm7247_vm1, %v7350_v21, %v7352_v4  ;;  %5153 = vmatprep.mubr.bf16.mxu0 %v14939_v54  ;;  %v14991_v54 = vld [vmem:[%s19478_s4 + $0x78] sm:$0xff]  }
 0x688   : > { %v8346_v17 = vadd.f32 %v8008_v60, %v7689_v5  ;;  %v7690_v6 = vadd.f32 %v7353_v16, %v4884_v51  ;;  %v16970_v51 = vld [vmem:[%s19477_s3] ss:$0 sm:$0xff]  ;;  %v14992_v16 = vld [vmem:[%s19478_s4 + $0x38] sm:$0xff]   ;;  %12703 = vmatprep.subr.bf16.mxu0 %v14991_v54  ;;  %13216 = vmatprep.subr.bf16.mxu1 %v14991_v54  ;;  %v16983_v54 = vand.u32 7, %v9112_v38 }
 0x689   : > { %v6773_v30 = vpop.f32.mrb[116].mxu1  ;;  %v4894_v27 = vpop.f32.mrb[116].mxu0  ;;  %v8615_v45 = vadd.f32 %v16970_v51, %v8480_v47  ;;  %12704 = vmatpush3.bf16.msra.mxu0 %v14992_v16  ;;  %13224 = vmatpush3.bf16.msra.mxu1 %v14992_v16  ;;  %v9037_v46 = vld [vmem:[#allocation2 + $0xb1] ss:$2 sm:$0xff] }
 0x68a   : > { %v8011_v3 = vrot.slane %v6773_v30, 2  ;;  %v6775_v22 = vpop.f32.mrb[117].mxu1  ;;  %v8347_v18 = vadd.f32 %v8010_v42, %v7690_v6  ;;  %v4896_v52 = vpop.f32.mrb[117].mxu0  ;;  %vm9310_vm3 = vcmp.le.s32.totalorder %v16983_v54, 3 }
 0x68b   : > { %v6776_v43 = vpop.f32.mrb[118].mxu1  ;;  %v7354_v21 = vrot.slane %v4896_v52, 1  ;;  %v4898_v5 = vpop.f32.mrb[118].mxu0  ;;  %v8481_v52 = vmul.f32 %v16957_v26, %v8346_v17  ;;  %v9113_v17 = vadd.s32 16, %v16952_v44 }
 0x68c   : > { %v8012_v60 = vsel %vm7904_vm0, %v8009_v25, %v8011_v3  ;;  %v8013_v42 = vrot.slane %v6776_v43, 2  ;;  %v6778_v0 = vpop.f32.mrb[119].mxu1  ;;  %v8482_v6 = vmul.f32 %v16957_v26, %v8347_v18  ;;  %v4900_v30 = vpop.f32.mrb[119].mxu0 }
 0x68d   : > { %v7355_v22 = vsel %vm7247_vm1, %v7352_v4, %v7354_v21  ;;  %v7356_v47 = vrot.slane %v4900_v30, 1  ;;  %v8743_v0 = vmax.f32 %v8615_v45, 0.0  ;;  %v8616_v45 = vadd.f32 %v16970_v51, %v8481_v52 }
 0x68e   : > { %v8014_v53 = vsel %vm7904_vm0, %v8011_v3, %v8013_v42  ;;  %6985 = vmatmul.mubr.bf16.gmra.mrb[4].mxu1 %v14937_v8  ;;  %v8617_v43 = vadd.f32 %v16970_v51, %v8482_v6  ;;  %v7691_v25 = vadd.f32 %v7355_v22, %v4888_v29  ;;  %5154 = vmatmul.mubr.bf16.gmra.mrb[4].mxu0 %v14937_v8  ;;  %v14940_v22 = vld [vmem:[%s15351_s16 + $0x470] ss:$8 sps:$4 sm:$0xff]   ;;  %v9114_v8 = vadd.s32 24, %v16952_v44 }
 0x68f   : > { %6992 = vmatprep.mubr.bf16.mxu1 %v14942_v23  ;;  %v7357_v18 = vsel %vm7247_vm1, %v7354_v21, %v7356_v47  ;;  %5163 = vmatprep.mubr.bf16.mxu0 %v14942_v23 }
 0x690   : > { %v8745_v4 = vmax.f32 %v8617_v43, 0.0  ;;  %v8348_v3 = vadd.f32 %v8012_v60, %v7691_v25  ;;  %v7692_v30 = vadd.f32 %v7357_v18, %v4894_v27  ;;  %v8973_v60 = vld [vmem:[#allocation2 + $0xb0] ss:$2 sm:$0xff] }
 0x691   : > { %v6781_v28 = vpop.f32.mrb[120].mxu1  ;;  %v4904_v6 = vpop.f32.mrb[120].mxu0 }
 0x692   : > { %v8015_v1 = vrot.slane %v6781_v28, 2  ;;  %v6783_v29 = vpop.f32.mrb[121].mxu1  ;;  %v8847_v21 = vmax.f32 %v8743_v0, %v8745_v4  ;;  %v8483_v23 = vmul.f32 %v16957_v26, %v8348_v3  ;;  %v8349_v38 = vadd.f32 %v8014_v53, %v7692_v30  ;;  %v4906_v16 = vpop.f32.mrb[121].mxu0 }
 0x693   : > { %v6784_v43 = vpop.f32.mrb[122].mxu1  ;;  %v7358_v25 = vrot.slane %v4906_v16, 1  ;;  %v16992_v28 = vpop.f32.mrb[122].mxu0  ;;  %v16996_v0 = vand.u32 7, %v16952_v44  ;;  %v16998_v53 = vand.u32 7, %v9113_v17  ;;  %v17003_v30 = vand.u32 7, %v9114_v8 }
 0x694   : > { %v8016_v27 = vsel %vm7904_vm0, %v8013_v42, %v8015_v1  ;;  %v8017_v18 = vrot.slane %v6784_v43, 2  ;;  %v6786_v29 = vpop.f32.mrb[123].mxu1  ;;  %8911 = vst [vmem:[#allocation2 + $0xc0] sm:$0xff] %v8847_v21  ;;  %v8618_v19 = vadd.f32 %v16970_v51, %v8483_v23  ;;  %v4910_v52 = vpop.f32.mrb[123].mxu0  ;;  %v8744_v16 = vmax.f32 %v8616_v45, 0.0 }
 0x695   : > { %19776 = vst [vmem:[#allocation120_spill] sm:$0xff] %v16998_v53  ;;  %v7359_v4 = vsel %vm7247_vm1, %v7356_v47, %v7358_v25  ;;  %v7360_v3 = vrot.slane %v4910_v52, 1  ;;  %v17005_v43 = vmax.f32 %v8973_v60, %v9037_v46  ;;  %vm9309_vm4 = vcmp.le.s32.totalorder %v16996_v0, 3 }
 0x696   : > { %v8018_v42 = vsel %vm7904_vm0, %v8015_v1, %v8017_v18  ;;  %6993 = vmatmul.mubr.bf16.gmra.mrb[8].mxu1 %v14940_v22  ;;  %v8746_v21 = vmax.f32 %v8618_v19, 0.0  ;;  %v7693_v23 = vadd.f32 %v7359_v4, %v4898_v5  ;;  %5164 = vmatmul.mubr.bf16.gmra.mrb[8].mxu0 %v14940_v22  ;;  %v9341_v47 = vadd.s32 1, %v16996_v0  ;;  %v14943_v22 = vld [vmem:[%s15351_s16 + $0x480] ss:$8 sps:$4 sm:$0xff]   ;;  %vm17019_vm6 = vmpackc.low %vm9310_vm3, %vm9309_vm4 }
 0x697   : > { %7000 = vmatprep.mubr.bf16.mxu1 %v14945_v36  ;;  %19777 = vst [vmem:[#allocation121_spill] sm:$0xff] %v17005_v43  ;;  %v7361_v17 = vsel %vm7247_vm1, %v7358_v25, %v7360_v3  ;;  %5173 = vmatprep.mubr.bf16.mxu0 %v14945_v36  ;;  %v9342_v1 = vadd.s32 1, %v16983_v54  ;;  %v8484_v8 = vmul.f32 %v16957_v26, %v8349_v38  ;;  %v9343_v25 = vadd.s32 1, %v16998_v53  ;;  %vm17378_vm4 = vmpackc.low %vm9310_vm3, %vm19562_vm15 }
 0x698   : > { %v8848_v29 = vmax.f32 %v8744_v16, %v8746_v21  ;;  %v8350_v45 = vadd.f32 %v8016_v27, %v7693_v23  ;;  %v7694_v19 = vadd.f32 %v7361_v17, %v4904_v6  ;;  %v9344_v36 = vadd.s32 1, %v17003_v30  ;;  %v14948_v16 = vld [vmem:[%s15351_s16 + $0x494] ss:$8 sps:$4 sm:$0xff]  }
 0x699   : > { %v6789_v5 = vpop.f32.mrb[124].mxu1  ;;  %v4914_v46 = vpop.f32.mrb[124].mxu0  ;;  %vm9349_vm5 = vcmp.le.s32.totalorder %v9341_v47, 3  ;;  %v19778_v4 = vmov 0  ;;  %vm9350_vm7 = vcmp.le.s32.totalorder %v9342_v1, 3  ;;  %v9223_v21 = vrot.slane %v16920_v61, 7 }
 0x69a   : > { %v8019_v52 = vrot.slane %v6789_v5, 2  ;;  %v6791_v60 = vpop.f32.mrb[125].mxu1  ;;  %v19779_v4 = vsel %vm17019_vm6, 4294967295, %v19778_v4  ;;  %8912 = vst [vmem:[#allocation2 + $0xc8] sm:$0xff] %v8848_v29  ;;  %v8351_v6 = vadd.f32 %v8018_v42, %v7694_v19  ;;  %v4916_v38 = vpop.f32.mrb[125].mxu0  ;;  %vm9351_vm8 = vcmp.le.s32.totalorder %v9343_v25, 3  ;;  %vm17027_vm9 = vmpackc.low %vm9350_vm7, %vm9349_vm5 }
 0x69b   : > { %19780 = vst [vmem:[#allocation122_spill] sm:$0xff] %v19779_v4  ;;  %v6792_v27 = vpop.f32.mrb[126].mxu1  ;;  %v7362_v17 = vrot.slane %v4916_v38, 1  ;;  %v4918_v60 = vpop.f32.mrb[126].mxu0  ;;  %v19782_v32 = vsel %vm17027_vm9, 4294967295, %v19781_v32  ;;  %v8619_v42 = vadd.f32 %v16970_v51, %v8484_v8  ;;  %vm9352_vm10 = vcmp.le.s32.totalorder %v9344_v36, 3 }
 0x69c   : > { %v8020_v23 = vsel %vm7904_vm0, %v8017_v18, %v8019_v52  ;;  %v8021_v5 = vrot.slane %v6792_v27, 2  ;;  %v6794_v44 = vpop.f32.mrb[127].mxu1  ;;  %19783 = vst [vmem:[#allocation123_spill] sm:$0xff] %v19782_v32  ;;  %v8486_v29 = vmul.f32 %v16957_v26, %v8351_v6  ;;  %v4920_v19 = vpop.f32.mrb[127].mxu0  ;;  %v19509_v1 = vrot.slane %v17005_v43, 1  ;;  %vm17037_vm11 = vmpackc.low %vm9352_vm10, %vm9351_vm8  ;;  %v19809_v32 = vld [vmem:[#allocation12_spill] sm:$0xff] }
 0x69d   : > { %v8485_v18 = vmul.f32 %v16957_v26, %v8350_v45  ;;  %v7363_v38 = vsel %vm7247_vm1, %v7360_v3, %v7362_v17  ;;  %v7364_v25 = vrot.slane %v4920_v19, 1  ;;  %v19784_v47 = vmov 0 }
 0x69e   : > { %v8022_v44 = vsel %vm7904_vm0, %v8019_v52, %v8021_v5  ;;  %7001 = vmatmul.mubr.bf16.gmra.mrb[12].mxu1 %v14943_v22  ;;  %v19785_v47 = vsel %vm17037_vm11, 4294967295, %v19784_v47  ;;  %v8621_v8 = vadd.f32 %v16970_v51, %v8486_v29  ;;  %v7695_v6 = vadd.f32 %v7363_v38, %v16992_v28  ;;  %5174 = vmatmul.mubr.bf16.gmra.mrb[12].mxu0 %v14943_v22 }
 0x69f   : > { %19786 = vst [vmem:[#allocation124_spill] sm:$0xff] %v19785_v47  ;;  %7008 = vmatprep.mubr.bf16.mxu1 %v14948_v16  ;;  %v19787_v45 = vrot.slane %v16920_v61, 1  ;;  %v7365_v52 = vsel %vm7247_vm1, %v7362_v17, %v7364_v25  ;;  %5183 = vmatprep.mubr.bf16.mxu0 %v14948_v16  ;;  %v19789_v36 = vrot.slane %v16874_v13, 7  ;;  %v9498_v22 = vrot.slane %v17005_v43, 7 }
 0x6a0   : > { %v8747_v29 = vmax.f32 %v8619_v42, 0.0  ;;  %v8749_v19 = vmax.f32 %v8621_v8, 0.0  ;;  %v8352_v38 = vadd.f32 %v8020_v23, %v7695_v6  ;;  %v8620_v17 = vadd.f32 %v16970_v51, %v8485_v18  ;;  %v14951_v6 = vld [vmem:[%s15351_s16 + $0x4a4] ss:$8 sps:$4 sm:$0xff]  }
 0x6a1   : > { %v17048_v3 = vsel %vm7247_vm1, %v19787_v45, %v19509_v1  ;;  %v17054_v27 = vsel %vm9204_vm2, %v19789_v36, %v9223_v21  ;;  %v7696_v45 = vadd.f32 %v7365_v52, %v4914_v46  ;;  %v6797_v1 = vpop.f32.mrb[128].mxu1  ;;  %v4924_v58 = vpop.f32.mrb[128].mxu0  ;;  %v17064_v36 = vsel %vm9204_vm2, %v9223_v21, %v9498_v22 }
 0x6a2   : > { %19788 = vst [vmem:[#allocation125_spill] sm:$0xff] %v17048_v3  ;;  %19790 = vst [vmem:[#allocation126_spill] sm:$0xff] %v17054_v27  ;;  %v17058_v28 = vpack.c.bf16 %v17048_v3, %v16935_v33  ;;  %v8023_v16 = vrot.slane %v6797_v1, 2  ;;  %v6799_v56 = vpop.f32.mrb[129].mxu1  ;;  %v8849_v3 = vmax.f32 %v8747_v29, %v8749_v19  ;;  %v8487_v42 = vmul.f32 %v16957_v26, %v8352_v38  ;;  %v4926_v23 = vpop.f32.mrb[129].mxu0 }
 0x6a3   : > { %19792 = vst [vmem:[#allocation128_spill] sm:$0xff] %v17064_v36  ;;  %v8353_v8 = vadd.f32 %v8022_v44, %v7696_v45  ;;  %v6800_v46 = vpop.f32.mrb[130].mxu1  ;;  %v7366_v18 = vrot.slane %v4926_v23, 1  ;;  %v4928_v21 = vpop.f32.mrb[130].mxu0  ;;  %v8748_v45 = vmax.f32 %v8620_v17, 0.0 }
 0x6a4   : > { %19791 = vst [vmem:[#allocation127_spill] sm:$0xff] %v17058_v28  ;;  %v17068_v28 = vsel %vm9204_vm2, %v9498_v22, %v16471_v48  ;;  %v8024_v56 = vsel %vm7904_vm0, %v8021_v5, %v8023_v16  ;;  %v8025_v52 = vrot.slane %v6800_v46, 2  ;;  %v6802_v33 = vpop.f32.mrb[131].mxu1  ;;  %8913 = vst [vmem:[#allocation2 + $0xd0] sm:$0xff] %v8849_v3  ;;  %v8622_v22 = vadd.f32 %v16970_v51, %v8487_v42  ;;  %v4930_v43 = vpop.f32.mrb[131].mxu0 }
 0x6a5   : > { %19793 = vst [vmem:[#allocation129_spill] sm:$0xff] %v17068_v28  ;;  %v7367_v44 = vsel %vm7247_vm1, %v7364_v25, %v7366_v18  ;;  %v7368_v38 = vrot.slane %v4930_v43, 1  ;;  %v8488_v42 = vmul.f32 %v16957_v26, %v8353_v8  ;;  %v14949_v1 = vld [vmem:[%s15351_s16 + $0x4a0] ss:$8 sps:$4 sm:$0xff]   ;;  %v14956_v36 = vld [vmem:[%s15351_s16 + $0x4b4] ss:$8 sps:$4 sm:$0xff]  }
 0x6a6   : > { %v8026_v19 = vsel %vm7904_vm0, %v8023_v16, %v8025_v52  ;;  %7009 = vmatmul.mubr.bf16.gmra.mrb[16].mxu1 %v14946_v55  ;;  %v8750_v5 = vmax.f32 %v8622_v22, 0.0  ;;  %v7697_v23 = vadd.f32 %v7367_v44, %v4918_v60  ;;  %5184 = vmatmul.mubr.bf16.gmra.mrb[16].mxu0 %v14946_v55  ;;  %v8975_v55 = vld [vmem:[#allocation2 + $0xc0] ss:$2 sm:$0xff]  ;;  %v9039_v44 = vld [vmem:[#allocation2 + $0xc1] ss:$2 sm:$0xff] }
 0x6a7   : > { %7016 = vmatprep.mubr.bf16.mxu1 %v14951_v6  ;;  %v7369_v33 = vsel %vm7247_vm1, %v7366_v18, %v7368_v38  ;;  %5193 = vmatprep.mubr.bf16.mxu0 %v14951_v6 }
 0x6a8   : > { %v8850_v3 = vmax.f32 %v8748_v45, %v8750_v5  ;;  %v8354_v46 = vadd.f32 %v8024_v56, %v7697_v23  ;;  %v7698_v29 = vadd.f32 %v7369_v33, %v4924_v58  ;;  %v8623_v58 = vadd.f32 %v16970_v51, %v8488_v42 }
 0x6a9   : > { %v6805_v25 = vpop.f32.mrb[132].mxu1  ;;  %v4934_v16 = vpop.f32.mrb[132].mxu0 }
 0x6aa   : > { %v8027_v28 = vrot.slane %v6805_v25, 2  ;;  %v6807_v43 = vpop.f32.mrb[133].mxu1  ;;  %8914 = vst [vmem:[#allocation2 + $0xd8] sm:$0xff] %v8850_v3  ;;  %v8355_v17 = vadd.f32 %v8026_v19, %v7698_v29  ;;  %v4936_v22 = vpop.f32.mrb[133].mxu0  ;;  %v17089_v19 = vmax.f32 %v8975_v55, %v9039_v44 }
 0x6ab   : > { %v6808_v60 = vpop.f32.mrb[134].mxu1  ;;  %v7370_v6 = vrot.slane %v4936_v22, 1  ;;  %v4938_v5 = vpop.f32.mrb[134].mxu0 }
 0x6ac   : > { %v8028_v18 = vsel %vm7904_vm0, %v8025_v52, %v8027_v28  ;;  %v8029_v45 = vrot.slane %v6808_v60, 2  ;;  %v6810_v8 = vpop.f32.mrb[135].mxu1  ;;  %v8490_v56 = vmul.f32 %v16957_v26, %v8355_v17  ;;  %v4940_v23 = vpop.f32.mrb[135].mxu0  ;;  %v8489_v52 = vmul.f32 %v16957_v26, %v8354_v46 }
 0x6ad   : > { %v7371_v33 = vsel %vm7247_vm1, %v7368_v38, %v7370_v6  ;;  %v7372_v29 = vrot.slane %v4940_v23, 1  ;;  %v8751_v17 = vmax.f32 %v8623_v58, 0.0  ;;  %v14954_v8 = vld [vmem:[%s15351_s16 + $0x4b0] ss:$8 sps:$4 sm:$0xff]   ;;  %v9225_v46 = vrot.slane %v17089_v19, 7 }
 0x6ae   : > { %v8030_v3 = vsel %vm7904_vm0, %v8027_v28, %v8029_v45  ;;  %7017 = vmatmul.mubr.bf16.gmra.mrb[20].mxu1 %v14949_v1  ;;  %v8625_v25 = vadd.f32 %v16970_v51, %v8490_v56  ;;  %v7699_v43 = vadd.f32 %v7371_v33, %v4928_v21  ;;  %5194 = vmatmul.mubr.bf16.gmra.mrb[20].mxu0 %v14949_v1  ;;  %v14959_v33 = vld [vmem:[%s15351_s16 + $0x4c4] ss:$8 sps:$4 sm:$0xff]  }
 0x6af   : > { %7024 = vmatprep.mubr.bf16.mxu1 %v14956_v36  ;;  %v7373_v42 = vsel %vm7247_vm1, %v7370_v6, %v7372_v29  ;;  %5203 = vmatprep.mubr.bf16.mxu0 %v14956_v36  ;;  %v8624_v21 = vadd.f32 %v16970_v51, %v8489_v52 }
 0x6b0   : > { %v8753_v22 = vmax.f32 %v8625_v25, 0.0  ;;  %v8356_v38 = vadd.f32 %v8028_v18, %v7699_v43  ;;  %v7700_v28 = vadd.f32 %v7373_v42, %v4934_v16 }
 0x6b1   : > { %v6813_v60 = vpop.f32.mrb[136].mxu1  ;;  %v4944_v55 = vpop.f32.mrb[136].mxu0  ;;  %v8977_v41 = vld [vmem:[#allocation2 + $0xd0] ss:$2 sm:$0xff]  ;;  %v9041_v25 = vld [vmem:[#allocation2 + $0xd1] ss:$2 sm:$0xff] }
 0x6b2   : > { %v8031_v23 = vrot.slane %v6813_v60, 2  ;;  %v6815_v44 = vpop.f32.mrb[137].mxu1  ;;  %v8851_v1 = vmax.f32 %v8751_v17, %v8753_v22  ;;  %v8491_v56 = vmul.f32 %v16957_v26, %v8356_v38  ;;  %v8357_v6 = vadd.f32 %v8030_v3, %v7700_v28  ;;  %v4946_v36 = vpop.f32.mrb[137].mxu0 }
 0x6b3   : > { %v6816_v58 = vpop.f32.mrb[138].mxu1  ;;  %v7374_v18 = vrot.slane %v4946_v36, 1  ;;  %v4948_v42 = vpop.f32.mrb[138].mxu0  ;;  %v17100_v44 = vmax.f32 %v8977_v41, %v9041_v25  ;;  %v9390_v17 = vrot.slane %v17089_v19, 1  ;;  %v8752_v28 = vmax.f32 %v8624_v21, 0.0 }
 0x6b4   : > { %v8032_v16 = vsel %vm7904_vm0, %v8029_v45, %v8031_v23  ;;  %v8033_v43 = vrot.slane %v6816_v58, 2  ;;  %v6818_v60 = vpop.f32.mrb[139].mxu1  ;;  %8915 = vst [vmem:[#allocation2 + $0xe0] sm:$0xff] %v8851_v1  ;;  %v8626_v10 = vadd.f32 %v16970_v51, %v8491_v56  ;;  %v4950_v52 = vpop.f32.mrb[139].mxu0 }
 0x6b5   : > { %v7375_v3 = vsel %vm7247_vm1, %v7372_v29, %v7374_v18  ;;  %v7376_v38 = vrot.slane %v4950_v52, 1  ;;  %v19525_v45 = vrot.slane %v17100_v44, 7  ;;  %v17112_v29 = vsel %vm9204_vm2, %v16471_v48, %v9225_v46  ;;  %v14957_v52 = vld [vmem:[%s15351_s16 + $0x4c0] ss:$8 sps:$4 sm:$0xff]  }
 0x6b6   : > { %v8034_v22 = vsel %vm7904_vm0, %v8031_v23, %v8033_v43  ;;  %7025 = vmatmul.mubr.bf16.gmra.mrb[24].mxu1 %v14954_v8  ;;  %v8754_v36 = vmax.f32 %v8626_v10, 0.0  ;;  %v7701_v58 = vadd.f32 %v7375_v3, %v4938_v5  ;;  %5204 = vmatmul.mubr.bf16.gmra.mrb[24].mxu0 %v14954_v8  ;;  %19794 = vst [vmem:[#allocation130_spill] sm:$0xff] %v17112_v29  ;;  %v9392_v10 = vrot.slane %v17100_v44, 1 }
 0x6b7   : > { %7032 = vmatprep.mubr.bf16.mxu1 %v14959_v33  ;;  %v7377_v1 = vsel %vm7247_vm1, %v7374_v18, %v7376_v38  ;;  %5213 = vmatprep.mubr.bf16.mxu0 %v14959_v33  ;;  %v17117_v23 = vsel %vm9204_vm2, %v9225_v46, %v19525_v45  ;;  %v8492_v8 = vmul.f32 %v16957_v26, %v8357_v6 }
 0x6b8   : > { %19795 = vst [vmem:[#allocation131_spill] sm:$0xff] %v17117_v23  ;;  %v8852_v5 = vmax.f32 %v8752_v28, %v8754_v36  ;;  %v8358_v21 = vadd.f32 %v8032_v16, %v7701_v58  ;;  %v7702_v56 = vadd.f32 %v7377_v1, %v4944_v55  ;;  %v17124_v3 = vsel %vm7247_vm1, %v16483_v14, %v9390_v17  ;;  %v14960_v36 = vld [vmem:[%s15351_s16 + $0x4f4] ss:$8 sps:$4 sm:$0xff]  }
 0x6b9   : > { %v6821_v25 = vpop.f32.mrb[140].mxu1  ;;  %v4954_v33 = vpop.f32.mrb[140].mxu0  ;;  %19796 = vst [vmem:[#allocation132_spill] sm:$0xff] %v17124_v3  ;;  %v17129_v46 = vsel %vm7247_vm1, %v9390_v17, %v9392_v10  ;;  %v8627_v41 = vadd.f32 %v16970_v51, %v8492_v8  ;;  %v19802_v3 = vld [vmem:[#allocation5_spill] sm:$0xff]  ;;  %v19819_v23 = vld [vmem:[#allocation18_spill] sm:$0xff] }
 0x6ba   : > { %v8035_v18 = vrot.slane %v6821_v25, 2  ;;  %v6823_v60 = vpop.f32.mrb[141].mxu1  ;;  %19797 = vst [vmem:[#allocation133_spill] sm:$0xff] %v17129_v46  ;;  %8916 = vst [vmem:[#allocation2 + $0xe8] sm:$0xff] %v8852_v5  ;;  %v8359_v6 = vadd.f32 %v8034_v22, %v7702_v56  ;;  %v4955_v55 = vpop.f32.mrb[141].mxu0  ;;  %v8493_v22 = vmul.f32 %v16957_v26, %v8358_v21 }
 0x6bb   : > { %v6824_v16 = vpop.f32.mrb[142].mxu1  ;;  %v7378_v25 = vrot.slane %v4955_v55, 1  ;;  %v4957_v33 = vpop.f32.mrb[142].mxu0 }
 0x6bc   : > { %v8036_v1 = vsel %vm7904_vm0, %v8033_v43, %v8035_v18  ;;  %v6825_v60 = vpop.f32.mrb[143].mxu1  ;;  %v8494_v17 = vmul.f32 %v16957_v26, %v8359_v6  ;;  %v4958_v45 = vpop.f32.mrb[143].mxu0  ;;  %v8755_v43 = vmax.f32 %v8627_v41, 0.0 }
 0x6bd   : > { %v7379_v5 = vsel %vm7247_vm1, %v7376_v38, %v7378_v25  ;;  %v14962_v60 = vld [vmem:[%s15351_s16 + $0x4f0] ss:$8 sps:$4 sm:$0xff]   ;;  %v8628_v38 = vadd.f32 %v16970_v51, %v8493_v22 }
 0x6be   : > { %7033 = vmatmul.mubr.bf16.gmra.mrb[28].mxu1 %v14957_v52  ;;  %v8629_v56 = vadd.f32 %v16970_v51, %v8494_v17  ;;  %v7703_v16 = vadd.f32 %v7379_v5, %v4948_v42  ;;  %5214 = vmatmul.mubr.bf16.gmra.mrb[28].mxu0 %v14957_v52  ;;  %v14965_v42 = vld [vmem:[%s15351_s16 + $0x504] ss:$8 sps:$4 sm:$0xff]  }
 0x6bf   : > { %7039 = vmatprep.mubr.bf16.mxu1 %v14960_v36  ;;  %5220 = vmatprep.mubr.bf16.mxu0 %v14960_v36 }
 0x6c0   : > { %v8757_v18 = vmax.f32 %v8629_v56, 0.0  ;;  %v8360_v55 = vadd.f32 %v8036_v1, %v7703_v16 }
 0x6c1   : > { %v6828_v8 = vpop.f32.mrb[144].mxu1  ;;  %v4961_v33 = vpop.f32.mrb[144].mxu0  ;;  %v8979_v45 = vld [vmem:[#allocation2 + $0xe0] ss:$2 sm:$0xff]  ;;  %v9043_v52 = vld [vmem:[#allocation2 + $0xe1] ss:$2 sm:$0xff] }
 0x6c2   : > { %v6830_v6 = vpop.f32.mrb[145].mxu1  ;;  %v8853_v25 = vmax.f32 %v8755_v43, %v8757_v18  ;;  %v8495_v21 = vmul.f32 %v16957_v26, %v8360_v55  ;;  %v4963_v58 = vpop.f32.mrb[145].mxu0  ;;  %v8037_v5 = vrot.slane %v6828_v8, 2  ;;  %v17146_v56 = vmax.f32 %v8979_v45, %v9043_v52 }
 0x6c3   : > { %v6831_v17 = vpop.f32.mrb[146].mxu1  ;;  %v4965_v36 = vpop.f32.mrb[146].mxu0  ;;  %v7380_v6 = vrot.slane %v4963_v58, 1  ;;  %v8756_v18 = vmax.f32 %v8628_v38, 0.0  ;;  %v19800_v38 = vld [vmem:[#allocation3_spill] sm:$0xff] }
 0x6c4   : > { %v8038_v28 = vrot.slane %v6831_v17, 2  ;;  %v6833_v41 = vpop.f32.mrb[147].mxu1  ;;  %19798 = vst [vmem:[#allocation134_spill] sm:$0xff] %v17146_v56  ;;  %8917 = vst [vmem:[#allocation2 + $0xf0] sm:$0xff] %v8853_v25  ;;  %v8630_v1 = vadd.f32 %v16970_v51, %v8495_v21  ;;  %v4967_v16 = vpop.f32.mrb[147].mxu0  ;;  %v19529_v8 = vrot.slane %v17146_v56, 1 }
 0x6c5   : > { %v7381_v43 = vrot.slane %v4967_v16, 1  ;;  %v14963_v41 = vld [vmem:[%s15351_s16 + $0x500] ss:$8 sps:$4 sm:$0xff]  }
 0x6c6   : > { %v8039_v22 = vsel %vm7904_vm0, %v8037_v5, %v8038_v28  ;;  %7040 = vmatmul.mubr.bf16.gmra.mrb[252].mxu1 %v14962_v60  ;;  %v8758_v55 = vmax.f32 %v8630_v1, 0.0  ;;  %5221 = vmatmul.mubr.bf16.gmra.mrb[252].mxu0 %v14962_v60  ;;  %v17157_v58 = vsel %vm7247_vm1, %v9392_v10, %v19529_v8  ;;  %v19801_v16 = vld [vmem:[#allocation4_spill] sm:$0xff]  ;;  %v19803_v10 = vld [vmem:[#allocation6_spill] sm:$0xff] }
 0x6c7   : > { %7047 = vmatprep.mubr.bf16.mxu1 %v14965_v42  ;;  %v7382_v17 = vsel %vm7247_vm1, %v7380_v6, %v7381_v43  ;;  %5230 = vmatprep.mubr.bf16.mxu0 %v14965_v42  ;;  %19799 = vst [vmem:[#allocation135_spill] sm:$0xff] %v17157_v58 }
 0x6c8   : > { %v8854_v45 = vmax.f32 %v8756_v18, %v8758_v55  ;;  %v7704_v25 = vadd.f32 %v7382_v17, %v4961_v33  ;;  %v14968_v55 = vld [vmem:[%s15351_s16 + $0x514] ss:$8 sps:$4 sm:$0xff]  }
 0x6c9   : > { %v6836_v21 = vpop.f32.mrb[40].mxu1  ;;  %v4971_v60 = vpop.f32.mrb[40].mxu0 }
 0x6ca   : > { %v13327_v52 = vadd.f32 %v6836_v21, %v19800_v38  ;;  %v6838_v5 = vpop.f32.mrb[41].mxu1  ;;  %8918 = vst [vmem:[#allocation2 + $0xf8] sm:$0xff] %v8854_v45  ;;  %v8361_v42 = vadd.f32 %v8039_v22, %v7704_v25  ;;  %v13254_v33 = vadd.f32 %v4971_v60, %v19801_v16  ;;  %v4973_v6 = vpop.f32.mrb[41].mxu0  ;;  %v19804_v38 = vld [vmem:[#allocation7_spill] sm:$0xff]  ;;  %v19805_v25 = vld [vmem:[#allocation8_spill] sm:$0xff] }
 0x6cb   : > { %v6839_v18 = vpop.f32.mrb[42].mxu1  ;;  %v13255_v34 = vadd.f32 %v4973_v6, %v19802_v3  ;;  %v4975_v47 = vpop.f32.mrb[42].mxu0 }
 0x6cc   : > { %v8040_v17 = vrot.slane %v13327_v52, 2  ;;  %v13328_v8 = vadd.f32 %v6839_v18, %v19803_v10  ;;  %v6841_v21 = vpop.f32.mrb[43].mxu1  ;;  %v13256_v5 = vadd.f32 %v4975_v47, %v19804_v38  ;;  %v4977_v4 = vpop.f32.mrb[43].mxu0  ;;  %v8496_v47 = vmul.f32 %v16957_v26, %v8361_v42  ;;  %v14966_v10 = vld [vmem:[%s15351_s16 + $0x510] ss:$8 sps:$4 sm:$0xff]  }
 0x6cd   : > { %v7383_v45 = vrot.slane %v13255_v34, 1  ;;  %v13257_v60 = vadd.f32 %v4977_v4, %v19805_v25 }
 0x6ce   : > { %v8041_v1 = vsel %vm7904_vm0, %v8038_v28, %v8040_v17  ;;  %v8042_v22 = vrot.slane %v13328_v8, 2  ;;  %7048 = vmatmul.mubr.bf16.gmra.mrb[148].mxu1 %v14963_v41  ;;  %5231 = vmatmul.mubr.bf16.gmra.mrb[148].mxu0 %v14963_v41  ;;  %v19806_v28 = vld [vmem:[#allocation9_spill] sm:$0xff]  ;;  %v8631_v63 = vadd.f32 %v16970_v51, %v8496_v47 }
 0x6cf   : > { %7055 = vmatprep.mubr.bf16.mxu1 %v14968_v55  ;;  %v7384_v52 = vsel %vm7247_vm1, %v7381_v43, %v7383_v45  ;;  %v7385_v16 = vrot.slane %v13257_v60, 1  ;;  %5240 = vmatprep.mubr.bf16.mxu0 %v14968_v55  ;;  %v14993_v43 = vld [vmem:[%s19478_s4 + $0x140] sm:$0xff]   ;;  %v19807_v55 = vld [vmem:[#allocation10_spill] sm:$0xff] }
 0x6d0   : > { %v8043_v3 = vsel %vm7904_vm0, %v8040_v17, %v8042_v22  ;;  %v7705_v6 = vadd.f32 %v7384_v52, %v4965_v36  ;;  %v14971_v36 = vld [vmem:[%s15351_s16 + $0x524] ss:$8 sps:$4 sm:$0xff]   ;;  %12913 = vmatprep.subr.bf16.mxu0 %v14993_v43 }
 0x6d1   : > { %v6844_v18 = vpop.f32.mrb[44].mxu1  ;;  %v7386_v34 = vsel %vm7247_vm1, %v7383_v45, %v7385_v16  ;;  %v4981_v4 = vpop.f32.mrb[44].mxu0  ;;  %v8981_v41 = vld [vmem:[#allocation2 + $0xf0] ss:$2 sm:$0xff]  ;;  %v9045_v52 = vld [vmem:[#allocation2 + $0xf1] ss:$2 sm:$0xff] }
 0x6d2   : > { %v13329_v8 = vadd.f32 %v6844_v18, %v19806_v28  ;;  %v6846_v21 = vpop.f32.mrb[45].mxu1  ;;  %v8362_v17 = vadd.f32 %v8041_v1, %v7705_v6  ;;  %v7706_v38 = vadd.f32 %v13254_v33, %v7386_v34  ;;  %v13258_v25 = vadd.f32 %v4981_v4, %v19807_v55  ;;  %v4983_v60 = vpop.f32.mrb[45].mxu0  ;;  %v19811_v6 = vld [vmem:[#allocation13_spill] sm:$0xff] }
 0x6d3   : > { %v6847_v42 = vpop.f32.mrb[46].mxu1  ;;  %v13259_v45 = vadd.f32 %v4983_v60, %v19808_v7  ;;  %v4985_v28 = vpop.f32.mrb[46].mxu0  ;;  %v17183_v62 = vmax.f32 %v8981_v41, %v9045_v52  ;;  %v19812_v60 = vld [vmem:[#allocation14_spill] sm:$0xff] }
 0x6d4   : > { %v8044_v46 = vrot.slane %v13329_v8, 2  ;;  %v13330_v18 = vadd.f32 %v6847_v42, %v19809_v32  ;;  %v6849_v21 = vpop.f32.mrb[47].mxu1  ;;  %v8497_v1 = vmul.f32 %v16957_v26, %v8362_v17  ;;  %v8363_v33 = vadd.f32 %v8043_v3, %v7706_v38  ;;  %v4987_v4 = vpop.f32.mrb[47].mxu0 }
 0x6d5   : > { %19810 = vst [vmem:[#allocation3_spill] sm:$0xff] %v17183_v62  ;;  %v17188_v34 = vadd.f32 %v4985_v28, %v19811_v6  ;;  %v7387_v55 = vrot.slane %v13259_v45, 1  ;;  %v13261_v32 = vadd.f32 %v4987_v4, %v19812_v60  ;;  %v19542_v47 = vrot.slane %v17183_v62, 1 }
 0x6d6   : > { %v8045_v8 = vsel %vm7904_vm0, %v8042_v22, %v8044_v46  ;;  %v8046_v7 = vrot.slane %v13330_v18, 2  ;;  %7056 = vmatmul.mubr.bf16.gmra.mrb[152].mxu1 %v14966_v10  ;;  %v8498_v43 = vmul.f32 %v16957_v26, %v8363_v33  ;;  %5241 = vmatmul.mubr.bf16.gmra.mrb[152].mxu0 %v14966_v10  ;;  %v9229_v22 = vrot.slane %v17146_v56, 7  ;;  %v14969_v33 = vld [vmem:[%s15351_s16 + $0x520] ss:$8 sps:$4 sm:$0xff]  }
 0x6d7   : > { %7063 = vmatprep.mubr.bf16.mxu1 %v14971_v36  ;;  %v7388_v3 = vsel %vm7247_vm1, %v7385_v16, %v7387_v55  ;;  %v7389_v17 = vrot.slane %v13261_v32, 1  ;;  %5250 = vmatprep.mubr.bf16.mxu0 %v14971_v36  ;;  %v8759_v38 = vmax.f32 %v8631_v63, 0.0  ;;  %v19813_v10 = vrot.slane %v17146_v56, 1  ;;  %v19815_v36 = vld [vmem:[#allocation15_spill] sm:$0xff]  ;;  %v19817_v32 = vld [vmem:[#allocation16_spill] sm:$0xff] }
 0x6d8   : > { %v8047_v41 = vsel %vm7904_vm0, %v8044_v46, %v8046_v7  ;;  %v8633_v42 = vadd.f32 %v16970_v51, %v8498_v43  ;;  %v7707_v52 = vadd.f32 %v13256_v5, %v7388_v3  ;;  %v8632_v16 = vadd.f32 %v16970_v51, %v8497_v1 }
 0x6d9   : > { %v6852_v45 = vpop.f32.mrb[48].mxu1  ;;  %v17203_v18 = vsel %vm7247_vm1, %v19813_v10, %v19542_v47  ;;  %v7390_v46 = vsel %vm7247_vm1, %v7387_v55, %v7389_v17  ;;  %v4991_v21 = vpop.f32.mrb[48].mxu0  ;;  %v14974_v47 = vld [vmem:[%s15351_s16 + $0x534] ss:$8 sps:$4 sm:$0xff]   ;;  %v9500_v56 = vrot.slane %v17183_v62, 7 }
 0x6da   : > { %19814 = vst [vmem:[#allocation4_spill] sm:$0xff] %v17203_v18  ;;  %v13331_v28 = vadd.f32 %v6852_v45, %v19815_v36  ;;  %v6854_v63 = vpop.f32.mrb[49].mxu1  ;;  %v17211_v5 = vpack.c.bf16 %v17203_v18, %v17157_v58  ;;  %v8761_v6 = vmax.f32 %v8633_v42, 0.0  ;;  %v8364_v4 = vadd.f32 %v8045_v8, %v7707_v52  ;;  %v4993_v3 = vpop.f32.mrb[49].mxu0  ;;  %v19820_v8 = vld [vmem:[#allocation19_spill] sm:$0xff]  ;;  %v19848_v58 = vld [vmem:[#allocation42_spill] sm:$0xff] }
 0x6db   : > { %v7708_v60 = vadd.f32 %v13258_v25, %v7390_v46  ;;  %v13262_v43 = vadd.f32 %v4991_v21, %v19817_v32  ;;  %v6855_v10 = vpop.f32.mrb[50].mxu1  ;;  %v13263_v55 = vadd.f32 %v4993_v3, %v19818_v9  ;;  %v4995_v36 = vpop.f32.mrb[50].mxu0  ;;  %v8760_v9 = vmax.f32 %v8632_v16, 0.0 }
 0x6dc   : > { %19816 = vst [vmem:[#allocation5_spill] sm:$0xff] %v17211_v5  ;;  %v8048_v1 = vrot.slane %v13331_v28, 2  ;;  %v13332_v45 = vadd.f32 %v6855_v10, %v19819_v23  ;;  %v6857_v63 = vpop.f32.mrb[51].mxu1  ;;  %v8855_v29 = vmax.f32 %v8759_v38, %v8761_v6  ;;  %v8499_v5 = vmul.f32 %v16957_v26, %v8364_v4  ;;  %v4997_v52 = vpop.f32.mrb[51].mxu0  ;;  %v19821_v28 = vld [vmem:[#allocation20_spill] sm:$0xff]  ;;  %v19826_v10 = vld [vmem:[#allocation21_spill] sm:$0xff] }
 0x6dd   : > { %v8365_v42 = vadd.f32 %v8047_v41, %v7708_v60  ;;  %v13264_v25 = vadd.f32 %v4995_v36, %v19820_v8  ;;  %v7391_v21 = vrot.slane %v13263_v55, 1  ;;  %v13265_v18 = vadd.f32 %v4997_v52, %v19821_v28  ;;  %v14972_v55 = vld [vmem:[%s15351_s16 + $0x530] ss:$8 sps:$4 sm:$0xff]  }
 0x6de   : > { %v8049_v46 = vsel %vm7904_vm0, %v8046_v7, %v8048_v1  ;;  %v8050_v32 = vrot.slane %v13332_v45, 2  ;;  %7064 = vmatmul.mubr.bf16.gmra.mrb[156].mxu1 %v14969_v33  ;;  %8919 = vst [vmem:[#allocation2 + $0x100] sm:$0xff] %v8855_v29  ;;  %v8634_v23 = vadd.f32 %v16970_v51, %v8499_v5  ;;  %5251 = vmatmul.mubr.bf16.gmra.mrb[156].mxu0 %v14969_v33  ;;  %v19822_v38 = vrot.slane %v17100_v44, 7  ;;  %v19827_v28 = vld [vmem:[#allocation22_spill] sm:$0xff]  ;;  %v19830_v45 = vld [vmem:[#allocation25_spill] sm:$0xff] }
 0x6df   : > { %7071 = vmatprep.mubr.bf16.mxu1 %v14974_v47  ;;  %v7392_v6 = vsel %vm7247_vm1, %v7389_v17, %v7391_v21  ;;  %v7393_v4 = vrot.slane %v13265_v18, 1  ;;  %5260 = vmatprep.mubr.bf16.mxu0 %v14974_v47  ;;  %v17231_v60 = vsel %vm9204_vm2, %v9229_v22, %v9500_v56  ;;  %v8500_v16 = vmul.f32 %v16957_v26, %v8365_v42 }
 0x6e0   : > { %v17226_v41 = vsel %vm9204_vm2, %v19822_v38, %v9229_v22  ;;  %v8051_v7 = vsel %vm7904_vm0, %v8048_v1, %v8050_v32  ;;  %19824 = vst [vmem:[#allocation7_spill] sm:$0xff] %v17231_v60  ;;  %v8762_v29 = vmax.f32 %v8634_v23, 0.0  ;;  %v7709_v33 = vadd.f32 %v17188_v34, %v7392_v6  ;;  %v19828_v23 = vld [vmem:[#allocation23_spill] sm:$0xff]  ;;  %v19829_v6 = vld [vmem:[#allocation24_spill] sm:$0xff]  ;;  %v19847_v60 = vld [vmem:[#allocation41_spill] sm:$0xff] }
 0x6e1   : > { %19823 = vst [vmem:[#allocation6_spill] sm:$0xff] %v17226_v41  ;;  %v6860_v5 = vpop.f32.mrb[52].mxu1  ;;  %v17237_v3 = vsel %vm9204_vm2, %v9500_v56, %v16471_v48  ;;  %v7394_v17 = vsel %vm7247_vm1, %v7391_v21, %v7393_v4  ;;  %v5001_v18 = vpop.f32.mrb[52].mxu0  ;;  %v14977_v56 = vld [vmem:[%s15351_s16 + $0x544] ss:$8 sps:$4 sm:$0xff]   ;;  %v8635_v22 = vadd.f32 %v16970_v51, %v8500_v16 }
 0x6e2   : > { %19825 = vst [vmem:[#allocation8_spill] sm:$0xff] %v17237_v3  ;;  %v13333_v1 = vadd.f32 %v6860_v5, %v19826_v10  ;;  %v6862_v47 = vpop.f32.mrb[53].mxu1  ;;  %v8856_v36 = vmax.f32 %v8760_v9, %v8762_v29  ;;  %v8366_v34 = vadd.f32 %v8049_v46, %v7709_v33  ;;  %v7710_v63 = vadd.f32 %v13262_v43, %v7394_v17  ;;  %v5003_v42 = vpop.f32.mrb[53].mxu0  ;;  %v19831_v17 = vld [vmem:[#allocation26_spill] sm:$0xff] }
 0x6e3   : > { %v6863_v8 = vpop.f32.mrb[54].mxu1  ;;  %v13266_v21 = vadd.f32 %v5001_v18, %v19827_v28  ;;  %v13267_v38 = vadd.f32 %v5003_v42, %v19828_v23  ;;  %v5005_v10 = vpop.f32.mrb[54].mxu0 }
 0x6e4   : > { %v8052_v52 = vrot.slane %v13333_v1, 2  ;;  %v13334_v5 = vadd.f32 %v6863_v8, %v19829_v6  ;;  %v6865_v47 = vpop.f32.mrb[55].mxu1  ;;  %8920 = vst [vmem:[#allocation2 + $0x108] sm:$0xff] %v8856_v36  ;;  %v8367_v62 = vadd.f32 %v8051_v7, %v7710_v63  ;;  %v13268_v9 = vadd.f32 %v5005_v10, %v19830_v45  ;;  %v5007_v46 = vpop.f32.mrb[55].mxu0  ;;  %v14975_v6 = vld [vmem:[%s15351_s16 + $0x540] ss:$8 sps:$4 sm:$0xff]  }
 0x6e5   : > { %v7395_v29 = vrot.slane %v13267_v38, 1  ;;  %v13269_v1 = vadd.f32 %v5007_v46, %v19831_v17  ;;  %v8501_v36 = vmul.f32 %v16957_v26, %v8366_v34  ;;  %v8763_v8 = vmax.f32 %v8635_v22, 0.0  ;;  %v14980_v47 = vld [vmem:[%s15351_s16 + $0x554] ss:$8 sps:$4 sm:$0xff]  }
 0x6e6   : > { %v8053_v43 = vsel %vm7904_vm0, %v8050_v32, %v8052_v52  ;;  %v8054_v33 = vrot.slane %v13334_v5, 2  ;;  %7072 = vmatmul.mubr.bf16.gmra.mrb[160].mxu1 %v14972_v55  ;;  %v8502_v18 = vmul.f32 %v16957_v26, %v8367_v62  ;;  %5261 = vmatmul.mubr.bf16.gmra.mrb[160].mxu0 %v14972_v55  ;;  %v19832_v62 = vld [vmem:[#allocation27_spill] sm:$0xff]  ;;  %v19833_v5 = vld [vmem:[#allocation28_spill] sm:$0xff]  ;;  %v19834_v17 = vld [vmem:[#allocation29_spill] sm:$0xff] }
 0x6e7   : > { %7079 = vmatprep.mubr.bf16.mxu1 %v14977_v56  ;;  %v7396_v16 = vsel %vm7247_vm1, %v7393_v4, %v7395_v29  ;;  %v7397_v45 = vrot.slane %v13269_v1, 1  ;;  %5270 = vmatprep.mubr.bf16.mxu0 %v14977_v56  ;;  %v8636_v46 = vadd.f32 %v16970_v51, %v8501_v36  ;;  %v19835_v1 = vld [vmem:[#allocation30_spill] sm:$0xff] }
 0x6e8   : > { %v8055_v7 = vsel %vm7904_vm0, %v8052_v52, %v8054_v33  ;;  %v8637_v32 = vadd.f32 %v16970_v51, %v8502_v18  ;;  %v7711_v63 = vadd.f32 %v13264_v25, %v7396_v16 }
 0x6e9   : > { %v6868_v42 = vpop.f32.mrb[56].mxu1  ;;  %v7398_v28 = vsel %vm7247_vm1, %v7395_v29, %v7397_v45  ;;  %v5011_v55 = vpop.f32.mrb[56].mxu0 }
 0x6ea   : > { %v13335_v23 = vadd.f32 %v6868_v42, %v19832_v62  ;;  %v6870_v38 = vpop.f32.mrb[57].mxu1  ;;  %v8765_v26 = vmax.f32 %v8637_v32, 0.0  ;;  %v8368_v34 = vadd.f32 %v8053_v43, %v7711_v63  ;;  %v7712_v4 = vadd.f32 %v13266_v21, %v7398_v28  ;;  %v5013_v10 = vpop.f32.mrb[57].mxu0  ;;  %v17270_v43 = vld [vmem:[%s19476_s2] ss:$0 sm:$0xff] }
 0x6eb   : > { %v13270_v52 = vadd.f32 %v5011_v55, %v19833_v5  ;;  %v6871_v56 = vpop.f32.mrb[58].mxu1  ;;  %v13271_v22 = vadd.f32 %v5013_v10, %v19834_v17  ;;  %v5015_v18 = vpop.f32.mrb[58].mxu0  ;;  %v19836_v63 = vld [vmem:[#allocation31_spill] sm:$0xff]  ;;  %v19837_v38 = vld [vmem:[#allocation32_spill] sm:$0xff] }
 0x6ec   : > { %v8056_v25 = vrot.slane %v13335_v23, 2  ;;  %v13336_v29 = vadd.f32 %v6871_v56, %v19835_v1  ;;  %v6873_v16 = vpop.f32.mrb[59].mxu1  ;;  %v8857_v42 = vmax.f32 %v8763_v8, %v8765_v26  ;;  %v8503_v21 = vmul.f32 %v17270_v43, %v8368_v34  ;;  %v5017_v62 = vpop.f32.mrb[59].mxu0 }
 0x6ed   : > { %v8369_v32 = vadd.f32 %v8055_v7, %v7712_v4  ;;  %v13272_v28 = vadd.f32 %v5015_v18, %v19836_v63  ;;  %v7399_v23 = vrot.slane %v13271_v22, 1  ;;  %v13273_v5 = vadd.f32 %v5017_v62, %v19837_v38  ;;  %v14978_v22 = vld [vmem:[%s15351_s16 + $0x550] ss:$8 sps:$4 sm:$0xff]   ;;  %v8983_v16 = vld [vmem:[#allocation2 + $0x100] ss:$2 sm:$0xff] }
 0x6ee   : > { %v8057_v36 = vsel %vm7904_vm0, %v8054_v33, %v8056_v25  ;;  %v8058_v55 = vrot.slane %v13336_v29, 2  ;;  %7080 = vmatmul.mubr.bf16.gmra.mrb[164].mxu1 %v14975_v6  ;;  %8921 = vst [vmem:[#allocation2 + $0x110] sm:$0xff] %v8857_v42  ;;  %v8638_v8 = vadd.f32 %v16970_v51, %v8503_v21  ;;  %5271 = vmatmul.mubr.bf16.gmra.mrb[164].mxu0 %v14975_v6  ;;  %v8764_v4 = vmax.f32 %v8636_v46, 0.0  ;;  %v19838_v29 = vld [vmem:[#allocation33_spill] sm:$0xff]  ;;  %v14985_v63 = vld [vmem:[%s15351_s16 + $0x564] ss:$8 sps:$4 sm:$0xff]  }
 0x6ef   : > { %7087 = vmatprep.mubr.bf16.mxu1 %v14980_v47  ;;  %v7400_v26 = vsel %vm7247_vm1, %v7397_v45, %v7399_v23  ;;  %v7401_v34 = vrot.slane %v13273_v5, 1  ;;  %5280 = vmatprep.mubr.bf16.mxu0 %v14980_v47  ;;  %v8504_v33 = vmul.f32 %v17270_v43, %v8369_v32  ;;  %v9047_v45 = vld [vmem:[#allocation2 + $0x101] ss:$2 sm:$0xff]  ;;  %v19839_v38 = vld [vmem:[#allocation34_spill] sm:$0xff] }
 0x6f0   : > { %v8059_v7 = vsel %vm7904_vm0, %v8056_v25, %v8058_v55  ;;  %v8766_v10 = vmax.f32 %v8638_v8, 0.0  ;;  %v7713_v56 = vadd.f32 %v13268_v9, %v7400_v26  ;;  %v19840_v9 = vld [vmem:[#allocation35_spill] sm:$0xff]  ;;  %v19841_v8 = vld [vmem:[#allocation36_spill] sm:$0xff] }
 0x6f1   : > { %v6876_v17 = vpop.f32.mrb[60].mxu1  ;;  %v7402_v1 = vsel %vm7247_vm1, %v7399_v23, %v7401_v34  ;;  %v5021_v6 = vpop.f32.mrb[60].mxu0 }
 0x6f2   : > { %v13337_v51 = vadd.f32 %v6876_v17, %v19838_v29  ;;  %v6878_v18 = vpop.f32.mrb[61].mxu1  ;;  %v8858_v42 = vmax.f32 %v8764_v4, %v8766_v10  ;;  %v8370_v25 = vadd.f32 %v8057_v36, %v7713_v56  ;;  %v7714_v21 = vadd.f32 %v13270_v52, %v7402_v1  ;;  %v5023_v47 = vpop.f32.mrb[61].mxu0  ;;  %v17290_v17 = vld [vmem:[%s19477_s3] ss:$0 sm:$0xff]  ;;  %v19842_v4 = vld [vmem:[#allocation37_spill] sm:$0xff] }
 0x6f3   : > { %v6879_v46 = vpop.f32.mrb[62].mxu1  ;;  %v13274_v32 = vadd.f32 %v5021_v6, %v19839_v38  ;;  %v13275_v5 = vadd.f32 %v5023_v47, %v19840_v9  ;;  %v5025_v23 = vpop.f32.mrb[62].mxu0  ;;  %v8639_v52 = vadd.f32 %v17290_v17, %v8504_v33  ;;  %v17296_v1 = vmax.f32 %v8983_v16, %v9047_v45 }
 0x6f4   : > { %v8060_v62 = vrot.slane %v13337_v51, 2  ;;  %v13338_v26 = vadd.f32 %v6879_v46, %v19841_v8  ;;  %v6881_v3 = vpop.f32.mrb[63].mxu1  ;;  %8922 = vst [vmem:[#allocation2 + $0x118] sm:$0xff] %v8858_v42  ;;  %v8371_v36 = vadd.f32 %v8059_v7, %v7714_v21  ;;  %v17294_v10 = vadd.f32 %v5025_v23, %v19842_v4  ;;  %v5027_v56 = vpop.f32.mrb[63].mxu0  ;;  %v19844_v7 = vld [vmem:[#allocation104_spill] sm:$0xff] }
 0x6f5   : > { %v7403_v51 = vrot.slane %v13275_v5, 1  ;;  %v19843_v3 = vld [vmem:[#allocation38_spill] sm:$0xff]  ;;  %v17302_v33 = vadd.s32 4294967295, %v16996_v0  ;;  %v17306_v21 = vpack.c.bf16 %v19844_v7, %v19731_v57  ;;  %v8505_v16 = vmul.f32 %v17270_v43, %v8370_v25  ;;  %v19845_v25 = vld [vmem:[#allocation39_spill] sm:$0xff] }
 0x6f6   : > { %v8061_v29 = vsel %vm7904_vm0, %v8058_v55, %v8060_v62  ;;  %v8062_v6 = vrot.slane %v13338_v26, 2  ;;  %v13277_v18 = vadd.f32 %v5027_v56, %v19843_v3  ;;  %7088 = vmatmul.mubr.bf16.gmra.mrb[168].mxu1 %v14978_v22  ;;  %v8506_v42 = vmul.f32 %v17270_v43, %v8371_v36  ;;  %5281 = vmatmul.mubr.bf16.gmra.mrb[168].mxu0 %v14978_v22  ;;  %v19846_v56 = vld [vmem:[#allocation40_spill] sm:$0xff] }
 0x6f7   : > { %7095 = vmatprep.mubr.bf16.mxu1 %v14985_v63  ;;  %v7404_v55 = vsel %vm7247_vm1, %v7401_v34, %v7403_v51  ;;  %5290 = vmatprep.mubr.bf16.mxu0 %v14985_v63  ;;  %v17313_v0 = vadd.s32 4294967295, %v16983_v54  ;;  %v8767_v5 = vmax.f32 %v8639_v52, 0.0  ;;  %v19561_v63 = vrot.slane %v17296_v1, 1 }
 0x6f8   : > { %v8063_v45 = vsel %vm7904_vm0, %v8060_v62, %v8062_v6  ;;  %v7405_v47 = vrot.slane %v13277_v18, 1  ;;  %v8641_v46 = vadd.f32 %v17290_v17, %v8506_v42  ;;  %v7715_v22 = vadd.f32 %v13272_v28, %v7404_v55  ;;  %v14983_v62 = vld [vmem:[%s15351_s16 + $0x560] ss:$8 sps:$4 sm:$0xff]   ;;  %v14988_v55 = vld [vmem:[%s15351_s16 + $0x574] ss:$8 sps:$4 sm:$0xff]  }
 0x6f9   : > { %v6884_v38 = vpop.f32.mrb[64].mxu1  ;;  %v5031_v34 = vpop.f32.mrb[64].mxu0  ;;  %v8640_v9 = vadd.f32 %v17290_v17, %v8505_v16  ;;  %vm9167_vm12 = vcmp.ge.s32.totalorder %v17302_v33, 0  ;;  %vm9168_vm13 = vcmp.ge.s32.totalorder %v17313_v0, 0  ;;  %vm9171_vm14 = vcmp.le.s32.totalorder %v17302_v33, 3 }
 0x6fa   : > { %v7406_v8 = vsel %vm7247_vm1, %v7403_v51, %v7405_v47  ;;  %v13339_v26 = vadd.f32 %v6884_v38, %v19845_v25  ;;  %v6886_v23 = vpop.f32.mrb[65].mxu1  ;;  %v8769_v36 = vmax.f32 %v8641_v46, 0.0  ;;  %v8372_v4 = vadd.f32 %v8061_v29, %v7715_v22  ;;  %v5033_v18 = vpop.f32.mrb[65].mxu0  ;;  %vm17397_vm3 = vmand %vm9167_vm12, %vm9171_vm14 }
 0x6fb   : > { %v7716_v28 = vadd.f32 %v13274_v32, %v7406_v8  ;;  %v13278_v3 = vadd.f32 %v5031_v34, %v19846_v56  ;;  %v6887_v42 = vpop.f32.mrb[66].mxu1  ;;  %v13279_v51 = vadd.f32 %v5033_v18, %v19847_v60  ;;  %v5035_v25 = vpop.f32.mrb[66].mxu0  ;;  %v8985_v7 = vld [vmem:[#allocation2 + $0x110] ss:$2 sm:$0xff]  ;;  %v19849_v32 = vld [vmem:[#allocation43_spill] sm:$0xff]  ;;  %v19850_v56 = vld [vmem:[#allocation44_spill] sm:$0xff] }
 0x6fc   : > { %v8064_v52 = vrot.slane %v13339_v26, 2  ;;  %v13340_v38 = vadd.f32 %v6887_v42, %v19848_v58  ;;  %v6889_v23 = vpop.f32.mrb[67].mxu1  ;;  %v8859_v41 = vmax.f32 %v8767_v5, %v8769_v36  ;;  %v8507_v46 = vmul.f32 %v17270_v43, %v8372_v4  ;;  %v5037_v8 = vpop.f32.mrb[67].mxu0  ;;  %v9049_v34 = vld [vmem:[#allocation2 + $0x111] ss:$2 sm:$0xff] }
 0x6fd   : > { %v8373_v29 = vadd.f32 %v8063_v45, %v7716_v28  ;;  %v17327_v22 = vadd.f32 %v5035_v25, %v19849_v32  ;;  %v7407_v26 = vrot.slane %v13279_v51, 1  ;;  %v13281_v58 = vadd.f32 %v5037_v8, %v19850_v56 }
 0x6fe   : > { %v8065_v16 = vsel %vm7904_vm0, %v8062_v6, %v8064_v52  ;;  %v8066_v60 = vrot.slane %v13340_v38, 2  ;;  %7096 = vmatmul.mubr.bf16.gmra.mrb[172].mxu1 %v14983_v62  ;;  %8923 = vst [vmem:[#allocation2 + $0x120] sm:$0xff] %v8859_v41  ;;  %v8642_v5 = vadd.f32 %v17290_v17, %v8507_v46  ;;  %5291 = vmatmul.mubr.bf16.gmra.mrb[172].mxu0 %v14983_v62  ;;  %v19851_v45 = vrot.slane %v17296_v1, 7 }
 0x6ff   : > { %7103 = vmatprep.mubr.bf16.mxu1 %v14988_v55  ;;  %v17340_v6 = vmax.f32 %v8985_v7, %v9049_v34  ;;  %v7408_v4 = vsel %vm7247_vm1, %v7405_v47, %v7407_v26  ;;  %v7409_v41 = vrot.slane %v13281_v58, 1  ;;  %5300 = vmatprep.mubr.bf16.mxu0 %v14988_v55  ;;  %v17348_v62 = vsel %vm7247_vm1, %v16483_v14, %v19561_v63  ;;  %v19854_v47 = vld [vmem:[#allocation45_spill] sm:$0xff] }
 0x700   : > { %v17338_v36 = vsel %vm9204_vm2, %v16471_v48, %v19851_v45  ;;  %v8067_v28 = vsel %vm7904_vm0, %v8064_v52, %v8066_v60  ;;  %19853 = vst [vmem:[#allocation10_spill] sm:$0xff] %v17348_v62  ;;  %v8768_v18 = vmax.f32 %v8640_v9, 0.0  ;;  %v8770_v42 = vmax.f32 %v8642_v5, 0.0  ;;  %v14986_v55 = vld [vmem:[%s15351_s16 + $0x570] ss:$8 sps:$4 sm:$0xff]  }
 0x701   : > { %19852 = vst [vmem:[#allocation9_spill] sm:$0xff] %v17338_v36  ;;  %v7717_v51 = vadd.f32 %v17294_v10, %v7408_v4  ;;  %v6892_v38 = vpop.f32.mrb[68].mxu1  ;;  %v19563_v7 = vrot.slane %v17340_v6, 7  ;;  %v7410_v25 = vsel %vm7247_vm1, %v7407_v26, %v7409_v41  ;;  %v5041_v52 = vpop.f32.mrb[68].mxu0  ;;  %v9400_v8 = vrot.slane %v17340_v6, 1  ;;  %v19855_v4 = vld [vmem:[#allocation46_spill] sm:$0xff] }
 0x702   : > { %v13341_v23 = vadd.f32 %v6892_v38, %v19854_v47  ;;  %v6894_v46 = vpop.f32.mrb[69].mxu1  ;;  %v8860_v34 = vmax.f32 %v8768_v18, %v8770_v42  ;;  %v8508_v9 = vmul.f32 %v17270_v43, %v8373_v29  ;;  %v7718_v10 = vadd.f32 %v13278_v3, %v7410_v25  ;;  %v5042_v58 = vpop.f32.mrb[69].mxu0 }
 0x703   : > { %v8374_v56 = vadd.f32 %v8065_v16, %v7717_v51  ;;  %v6895_v5 = vpop.f32.mrb[70].mxu1  ;;  %v13282_v26 = vadd.f32 %v5042_v58, %v19855_v4  ;;  %v5044_v63 = vpop.f32.mrb[70].mxu0  ;;  %v19856_v47 = vrot.slane %v17296_v1, 7  ;;  %v19858_v29 = vrot.slane %v17296_v1, 1 }
 0x704   : > { %v8068_v45 = vrot.slane %v13341_v23, 2  ;;  %v6896_v38 = vpop.f32.mrb[71].mxu1  ;;  %8924 = vst [vmem:[#allocation2 + $0x128] sm:$0xff] %v8860_v34  ;;  %v8375_v16 = vadd.f32 %v8067_v28, %v7718_v10  ;;  %v5045_v18 = vpop.f32.mrb[71].mxu0  ;;  %v9165_v23 = vadd.s32 4294967295, %v16998_v53  ;;  %vm9172_vm5 = vcmp.le.s32.totalorder %v17313_v0, 3 }
 0x705   : > { %v17365_v52 = vsel %vm9204_vm2, %v19856_v47, %v19563_v7  ;;  %v17372_v3 = vsel %vm7247_vm1, %v19858_v29, %v9400_v8  ;;  %v7411_v28 = vrot.slane %v13282_v26, 1  ;;  %v8643_v54 = vadd.f32 %v17290_v17, %v8508_v9  ;;  %vm17409_vm7 = vmand %vm9168_vm13, %vm9172_vm5  ;;  %v14994_v0 = vld [vmem:[%s19478_s4 + $0x100] sm:$0xff]  }
 0x706   : > { %19857 = vst [vmem:[#allocation11_spill] sm:$0xff] %v17365_v52  ;;  %v8069_v25 = vsel %vm7904_vm0, %v8066_v60, %v8068_v45  ;;  %7104 = vmatmul.mubr.bf16.gmra.mrb[176].mxu1 %v14986_v55  ;;  %v8510_v46 = vmul.f32 %v17270_v43, %v8375_v16  ;;  %5301 = vmatmul.mubr.bf16.gmra.mrb[176].mxu0 %v14986_v55  ;;  %v9166_v34 = vadd.s32 4294967295, %v17003_v30  ;;  %vm9169_vm8 = vcmp.ge.s32.totalorder %v9165_v23, 0  ;;  %vm17422_vm13 = vmpackc.low %vm17409_vm7, %vm17397_vm3 }
 0x707   : > { %v7412_v10 = vsel %vm7247_vm1, %v7409_v41, %v7411_v28  ;;  %12254 = vmatprep.mubr.msk.bf16.mxu0 %vm17378_vm4, %v17306_v21  ;;  %v8509_v9 = vmul.f32 %v17270_v43, %v8374_v56  ;;  %vm9173_vm10 = vcmp.le.s32.totalorder %v9165_v23, 3  ;;  %vm9311_vm12 = vcmp.le.s32.totalorder %v16998_v53, 3 }
 0x708   : > { %v8645_v55 = vadd.f32 %v17290_v17, %v8510_v46  ;;  %v7719_v58 = vadd.f32 %v17327_v22, %v7412_v10  ;;  %vm9312_vm14 = vcmp.le.s32.totalorder %v17003_v30, 3  ;;  %v8771_v56 = vmax.f32 %v8643_v54, 0.0  ;;  %vm17453_vm7 = vmand %vm9169_vm8, %vm9173_vm10 }
 0x709   : > { %v6899_v33 = vpop.f32.mrb[180].mxu1  ;;  %v5048_v21 = vpop.f32.mrb[180].mxu0  ;;  %vm9170_vm15 = vcmp.ge.s32.totalorder %v9166_v34, 0  ;;  %v12256_v47 = vpack.c.bf16 %v16494_v59, %v16471_v48  ;;  %v17430_v28 = vpack.c.bf16 %v16528_v40, %v16479_v2  ;;  %v8644_v46 = vadd.f32 %v17290_v17, %v8509_v9  ;;  %vm17438_vm3 = vmpackc.low %vm9312_vm14, %vm9311_vm12 }
 0x70a   : > { %v6901_v5 = vpop.f32.mrb[181].mxu1  ;;  %v8773_v45 = vmax.f32 %v8645_v55, 0.0  ;;  %v8376_v4 = vadd.f32 %v8069_v25, %v7719_v58  ;;  %v5050_v22 = vpop.f32.mrb[181].mxu0  ;;  %v8070_v29 = vrot.slane %v6899_v33, 2  ;;  %vm9174_vm5 = vcmp.le.s32.totalorder %v9166_v34, 3  ;;  %v14995_v33 = vld [vmem:[%s19478_s4 + $0x148] sm:$0xff]  }
 0x70b   : > { %v6902_v26 = vpop.f32.mrb[182].mxu1  ;;  %v5052_v18 = vpop.f32.mrb[182].mxu0  ;;  %19867 = vst [vmem:[#allocation12_spill] sm:$0xff] %v17430_v28  ;;  %v8987_v54 = vld [vmem:[#allocation2 + $0x120] ss:$2 sm:$0xff]  ;;  %v7413_v5 = vrot.slane %v5050_v22, 1  ;;  %vm9178_vm8 = vmand %vm9170_vm15, %vm9174_vm5  ;;  %v17525_v7 = vpack.c.bf16 %v16758_v35, %v16711_v11 }
 0x70c   : > { %v8071_v16 = vrot.slane %v6902_v26, 2  ;;  %v6904_v25 = vpop.f32.mrb[183].mxu1  ;;  %v8861_v10 = vmax.f32 %v8771_v56, %v8773_v45  ;;  %v8511_v60 = vmul.f32 %v17270_v43, %v8376_v4  ;;  %v5054_v58 = vpop.f32.mrb[183].mxu0  ;;  %v9051_v41 = vld [vmem:[#allocation2 + $0x121] ss:$2 sm:$0xff]  ;;  %vm17481_vm15 = vmpackc.low %vm9178_vm8, %vm17453_vm7  ;;  %vm11648_vm10 = vcmask 1044484  }
 0x70d   : > { %v7414_v56 = vrot.slane %v5054_v58, 1  ;;  %v17446_v45 = vmax.f32 %v8987_v54, %v9051_v41  ;;  %v14996_v22 = vld [vmem:[%s19478_s4 + $0x108] sm:$0xff]   ;;  %19875 = vst [vmem:[#allocation14_spill] sm:$0xff] %v17525_v7  ;;  %vm11652_vm14 = vcmask 1046534  }
 0x70e   : > { %v8072_v9 = vsel %vm7904_vm0, %v8070_v29, %v8071_v16  ;;  %8925 = vst [vmem:[#allocation2 + $0x130] sm:$0xff] %v8861_v10  ;;  %v8646_v4 = vadd.f32 %v17290_v17, %v8511_v60  ;;  %12257 = vmatmul.mubr.msk.bf16.vlgmr.msra.gmra.mrb[32].mxu0 %vm17422_vm13, %v12256_v47  ;;  %v8772_v47 = vmax.f32 %v8644_v46, 0.0  ;;  %v14997_v10 = vld [vmem:[%s19478_s4 + $0x150] sm:$0xff]  }
 0x70f   : > { %v7415_v26 = vsel %vm7247_vm1, %v7413_v5, %v7414_v56  ;;  %12260 = vmatprep.mubr.msk.bf16.mxu0 %vm17438_vm3, %v17430_v28  ;;  %12914 = vmatpush3.bf16.msra.mxu0 %v14994_v0  ;;  %v19564_v29 = vrot.slane %v17446_v45, 1 }
 0x710   : > { %v8774_v25 = vmax.f32 %v8646_v4, 0.0  ;;  %v7720_v23 = vadd.f32 %v7415_v26, %v5048_v21  ;;  %12915 = vmatprep.subr.bf16.mxu0 %v14995_v33  ;;  %v15002_v33 = vld [vmem:[%s19478_s4 + $0x120] sm:$0xff]  }
 0x711   : > { %v6907_v54 = vpop.f32.mrb[184].mxu1  ;;  %v5058_v0 = vpop.f32.mrb[184].mxu0  ;;  %v17475_v46 = vsel %vm7247_vm1, %v9400_v8, %v19564_v29 }
 0x712   : > { %v8073_v60 = vrot.slane %v6907_v54, 2  ;;  %v6909_v58 = vpop.f32.mrb[185].mxu1  ;;  %v8862_v41 = vmax.f32 %v8772_v47, %v8774_v25  ;;  %v8377_v34 = vadd.f32 %v8072_v9, %v7720_v23  ;;  %v5060_v5 = vpop.f32.mrb[185].mxu0  ;;  %v14998_v9 = vld [vmem:[%s19478_s4 + $0x110] sm:$0xff]   ;;  %v17491_v47 = vpack.c.bf16 %v16611_v49, %v16499_v20 }
 0x713   : > { %v6910_v21 = vpop.f32.mrb[186].mxu1  ;;  %v7416_v54 = vrot.slane %v5060_v5, 1  ;;  %v5062_v42 = vpop.f32.mrb[186].mxu0  ;;  %12916 = vmatpush3.bf16.msra.mxu0 %v14996_v22  ;;  %v12265_v5 = vpack.c.bf16 %v16681_v50, %v19731_v57 }
 0x714   : > { %v8074_v26 = vsel %vm7904_vm0, %v8071_v16, %v8073_v60  ;;  %v8075_v58 = vrot.slane %v6910_v21, 2  ;;  %v6912_v8 = vpop.f32.mrb[187].mxu1  ;;  %8926 = vst [vmem:[#allocation2 + $0x138] sm:$0xff] %v8862_v41  ;;  %19874 = vst [vmem:[#allocation13_spill] sm:$0xff] %v17491_v47  ;;  %v5064_v30 = vpop.f32.mrb[187].mxu0  ;;  %12917 = vmatprep.subr.bf16.mxu0 %v14997_v10  ;;  %v14999_v16 = vld [vmem:[%s19478_s4 + $0x158] sm:$0xff]   ;;  %v8512_v10 = vmul.f32 %v17270_v43, %v8377_v34 }
 0x715   : > { %v7417_v25 = vsel %vm7247_vm1, %v7414_v56, %v7416_v54  ;;  %v7418_v22 = vrot.slane %v5064_v30, 1  ;;  %v15000_v56 = vld [vmem:[%s19478_s4 + $0x118] sm:$0xff]  }
 0x716   : > { %v8076_v23 = vsel %vm7904_vm0, %v8073_v60, %v8075_v58  ;;  %v7721_v21 = vadd.f32 %v7417_v25, %v5052_v18  ;;  %12263 = vmatmul.mubr.msk.bf16.gmra.mrb[36].mxu0 %vm17481_vm15, %v17491_v47  ;;  %v15001_v18 = vld [vmem:[%s19478_s4 + $0x160] sm:$0xff]  }
 0x717   : > { %v7419_v41 = vsel %vm7247_vm1, %v7416_v54, %v7418_v22  ;;  %12266 = vmatprep.mubr.msk.bf16.mxu0 %vm17378_vm4, %v12265_v5  ;;  %12918 = vmatpush3.bf16.msra.mxu0 %v14998_v9 }
 0x718   : > { %v8378_v60 = vadd.f32 %v8074_v26, %v7721_v21  ;;  %v7722_v8 = vadd.f32 %v7419_v41, %v5058_v0  ;;  %12919 = vmatprep.subr.bf16.mxu0 %v14999_v16 }
 0x719   : > { %v6915_v30 = vpop.f32.mrb[188].mxu1  ;;  %v5068_v54 = vpop.f32.mrb[188].mxu0 }
 0x71a   : > { %v8077_v25 = vrot.slane %v6915_v30, 2  ;;  %v6917_v51 = vpop.f32.mrb[189].mxu1  ;;  %v8379_v32 = vadd.f32 %v8076_v23, %v7722_v8  ;;  %v5070_v5 = vpop.f32.mrb[189].mxu0  ;;  %v8647_v30 = vadd.f32 %v17290_v17, %v8512_v10  ;;  %v12268_v23 = vpack.c.bf16 %v16709_v24, %v16471_v48 }
 0x71b   : > { %v6918_v9 = vpop.f32.mrb[190].mxu1  ;;  %v7420_v26 = vrot.slane %v5070_v5, 1  ;;  %v17517_v21 = vpop.f32.mrb[190].mxu0  ;;  %12920 = vmatpush3.bf16.msra.mxu0 %v15000_v56  ;;  %v8989_v41 = vld [vmem:[#allocation2 + $0x130] ss:$2 sm:$0xff] }
 0x71c   : > { %v8078_v34 = vsel %vm7904_vm0, %v8075_v58, %v8077_v25  ;;  %v8079_v0 = vrot.slane %v6918_v9, 2  ;;  %v6920_v16 = vpop.f32.mrb[191].mxu1  ;;  %v8514_v51 = vmul.f32 %v17270_v43, %v8379_v32  ;;  %v5074_v8 = vpop.f32.mrb[191].mxu0  ;;  %12921 = vmatprep.subr.bf16.mxu0 %v15001_v18  ;;  %v15003_v58 = vld [vmem:[%s19478_s4 + $0x168] sm:$0xff]   ;;  %v9053_v5 = vld [vmem:[#allocation2 + $0x131] ss:$2 sm:$0xff] }
 0x71d   : > { %v7421_v56 = vsel %vm7247_vm1, %v7418_v22, %v7420_v26  ;;  %v7422_v9 = vrot.slane %v5074_v8, 1  ;;  %v17532_v32 = vmax.f32 %v8989_v41, %v9053_v5  ;;  %v8513_v16 = vmul.f32 %v17270_v43, %v8378_v60  ;;  %v15005_v5 = vld [vmem:[%s19478_s4 + $0x170] sm:$0xff]  }
 0x71e   : > { %v8080_v10 = vsel %vm7904_vm0, %v8077_v25, %v8079_v0  ;;  %v8649_v29 = vadd.f32 %v17290_v17, %v8514_v51  ;;  %v7723_v47 = vadd.f32 %v7421_v56, %v5062_v42  ;;  %12269 = vmatmul.mubr.msk.bf16.gmra.mrb[220].mxu0 %vm17422_vm13, %v12268_v23  ;;  %v9235_v22 = vrot.slane %v17446_v45, 7  ;;  %v15004_v25 = vld [vmem:[%s19478_s4 + $0x128] sm:$0xff]  }
 0x71f   : > { %19876 = vst [vmem:[#allocation15_spill] sm:$0xff] %v17532_v32  ;;  %v7423_v18 = vsel %vm7247_vm1, %v7420_v26, %v7422_v9  ;;  %12272 = vmatprep.mubr.msk.bf16.mxu0 %vm17438_vm3, %v17525_v7  ;;  %12922 = vmatpush3.bf16.msra.mxu0 %v15002_v33  ;;  %v19573_v60 = vrot.slane %v17532_v32, 1  ;;  %v9502_v42 = vrot.slane %v17532_v32, 7  ;;  %v8775_v41 = vmax.f32 %v8647_v30, 0.0 }
 0x720   : > { %v8777_v51 = vmax.f32 %v8649_v29, 0.0  ;;  %v8380_v23 = vadd.f32 %v8078_v34, %v7723_v47  ;;  %v7724_v8 = vadd.f32 %v7423_v18, %v5068_v54  ;;  %12923 = vmatprep.subr.bf16.mxu0 %v15003_v58  ;;  %v17553_v33 = vpack.c.bf16 %v16808_v37, %v16735_v15 }
 0x721   : > { %v6923_v26 = vpop.f32.mrb[192].mxu1  ;;  %v5078_v7 = vpop.f32.mrb[192].mxu0  ;;  %v19878_v30 = vrot.slane %v17446_v45, 1  ;;  %v17563_v47 = vsel %vm9204_vm2, %v9235_v22, %v9502_v42  ;;  %v8648_v54 = vadd.f32 %v17290_v17, %v8513_v16  ;;  %v15006_v16 = vld [vmem:[%s19478_s4 + $0x130] sm:$0xff]  }
 0x722   : > { %19877 = vst [vmem:[#allocation16_spill] sm:$0xff] %v17553_v33  ;;  %v8081_v56 = vrot.slane %v6923_v26, 2  ;;  %v6925_v53 = vpop.f32.mrb[193].mxu1  ;;  %19879 = vst [vmem:[#allocation17_spill] sm:$0xff] %v17563_v47  ;;  %v8863_v34 = vmax.f32 %v8775_v41, %v8777_v51  ;;  %v8515_v58 = vmul.f32 %v17270_v43, %v8380_v23  ;;  %v8381_v18 = vadd.f32 %v8080_v10, %v7724_v8  ;;  %v5080_v28 = vpop.f32.mrb[193].mxu0 }
 0x723   : > { %v17560_v29 = vsel %vm7247_vm1, %v19878_v30, %v19573_v60  ;;  %v6926_v26 = vpop.f32.mrb[194].mxu1  ;;  %v7424_v62 = vrot.slane %v5080_v28, 1  ;;  %v5082_v24 = vpop.f32.mrb[194].mxu0  ;;  %v12277_v30 = vpack.c.bf16 %v16863_v31, %v19731_v57  ;;  %12924 = vmatpush3.bf16.msra.mxu0 %v15004_v25  ;;  %v19880_v51 = vrot.slane %v17340_v6, 7 }
 0x724   : > { %v8082_v53 = vsel %vm7904_vm0, %v8079_v0, %v8081_v56  ;;  %v8083_v37 = vrot.slane %v6926_v26, 2  ;;  %v6928_v15 = vpop.f32.mrb[195].mxu1  ;;  %8927 = vst [vmem:[#allocation2 + $0x140] sm:$0xff] %v8863_v34  ;;  %v8650_v41 = vadd.f32 %v17290_v17, %v8515_v58  ;;  %v5084_v10 = vpop.f32.mrb[195].mxu0  ;;  %12925 = vmatprep.subr.bf16.mxu0 %v15005_v5  ;;  %v17584_v28 = vpack.c.bf16 %v17560_v29, %v17475_v46 }
 0x725   : > { %v17577_v0 = vsel %vm9204_vm2, %v19880_v51, %v9235_v22  ;;  %v15007_v15 = vld [vmem:[%s19478_s4 + $0x178] sm:$0xff]   ;;  %v17588_v25 = vsel %vm9204_vm2, %v9502_v42, %v16471_v48  ;;  %v7425_v23 = vsel %vm7247_vm1, %v7422_v9, %v7424_v62  ;;  %v7426_v34 = vrot.slane %v5084_v10, 1 }
 0x726   : > { %19881 = vst [vmem:[#allocation18_spill] sm:$0xff] %v17577_v0  ;;  %19882 = vst [vmem:[#allocation19_spill] sm:$0xff] %v17584_v28  ;;  %v8084_v8 = vsel %vm7904_vm0, %v8081_v56, %v8083_v37  ;;  %v8776_v5 = vmax.f32 %v8648_v54, 0.0  ;;  %v8778_v58 = vmax.f32 %v8650_v41, 0.0  ;;  %v7725_v26 = vadd.f32 %v7425_v23, %v17517_v21  ;;  %12275 = vmatmul.mubr.msk.bf16.gmra.mrb[224].mxu0 %vm17481_vm15, %v17553_v33  ;;  %v15008_v9 = vld [vmem:[%s19478_s4 + $0x138] sm:$0xff]  }
 0x727   : > { %19883 = vst [vmem:[#allocation20_spill] sm:$0xff] %v17588_v25  ;;  %v7427_v51 = vsel %vm7247_vm1, %v7424_v62, %v7426_v34  ;;  %12278 = vmatprep.mubr.msk.bf16.mxu0 %vm17378_vm4, %v12277_v30  ;;  %12926 = vmatpush3.bf16.msra.mxu0 %v15006_v16  ;;  %v8516_v21 = vmul.f32 %v17270_v43, %v8381_v18 }
 0x728   : > { %v8864_v56 = vmax.f32 %v8776_v5, %v8778_v58  ;;  %v8382_v54 = vadd.f32 %v8082_v53, %v7725_v26  ;;  %v7726_v41 = vadd.f32 %v7427_v51, %v5078_v7  ;;  %12927 = vmatprep.subr.bf16.mxu0 %v15007_v15  ;;  %v12280_v53 = vpack.c.bf16 %v16886_v12, %v16471_v48 }
 0x729   : > { %v6931_v10 = vpop.f32.mrb[196].mxu1  ;;  %v5088_v22 = vpop.f32.mrb[196].mxu0  ;;  %v8651_v18 = vadd.f32 %v17290_v17, %v8516_v21 }
 0x72a   : > { %v8085_v23 = vrot.slane %v6931_v10, 2  ;;  %v6933_v42 = vpop.f32.mrb[197].mxu1  ;;  %8928 = vst [vmem:[#allocation2 + $0x148] sm:$0xff] %v8864_v56  ;;  %v8383_v62 = vadd.f32 %v8084_v8, %v7726_v41  ;;  %v5090_v60 = vpop.f32.mrb[197].mxu0 }
 0x72b   : > { %v6934_v25 = vpop.f32.mrb[198].mxu1  ;;  %v7428_v16 = vrot.slane %v5090_v60, 1  ;;  %v5092_v47 = vpop.f32.mrb[198].mxu0  ;;  %12928 = vmatpush3.bf16.msra.mxu0 %v15008_v9  ;;  %v8517_v60 = vmul.f32 %v17270_v43, %v8382_v54 }
 0x72c   : > { %v8086_v30 = vsel %vm7904_vm0, %v8083_v37, %v8085_v23  ;;  %v8087_v33 = vrot.slane %v6934_v25, 2  ;;  %v6936_v28 = vpop.f32.mrb[199].mxu1  ;;  %v8518_v7 = vmul.f32 %v17270_v43, %v8383_v62  ;;  %v5094_v15 = vpop.f32.mrb[199].mxu0  ;;  %v17616_v37 = vpack.c.bf16 %v16920_v61, %v16874_v13 }
 0x72d   : > { %v7429_v5 = vsel %vm7247_vm1, %v7426_v34, %v7428_v16  ;;  %v7430_v58 = vrot.slane %v5094_v15, 1  ;;  %v8779_v34 = vmax.f32 %v8651_v18, 0.0  ;;  %v8652_v10 = vadd.f32 %v17290_v17, %v8517_v60 }
 0x72e   : > { %v8088_v8 = vsel %vm7904_vm0, %v8085_v23, %v8087_v33  ;;  %19884 = vst [vmem:[#allocation21_spill] sm:$0xff] %v17616_v37  ;;  %v8653_v28 = vadd.f32 %v17290_v17, %v8518_v7  ;;  %v7727_v25 = vadd.f32 %v7429_v5, %v5082_v24  ;;  %12281 = vmatmul.mubr.msk.bf16.gmra.mrb[228].mxu0 %vm17422_vm13, %v12280_v53 }
 0x72f   : > { %v7431_v26 = vsel %vm7247_vm1, %v7428_v16, %v7430_v58  ;;  %12284 = vmatprep.mubr.msk.bf16.mxu0 %vm17438_vm3, %v17616_v37 }
 0x730   : > { %v8781_v42 = vmax.f32 %v8653_v28, 0.0  ;;  %v8384_v51 = vadd.f32 %v8086_v30, %v7727_v25  ;;  %v7728_v9 = vadd.f32 %v7431_v26, %v5088_v22  ;;  %v17632_v30 = vpack.c.bf16 %v17054_v27, %v16891_v39  ;;  %v19921_v39 = vld [vmem:[#allocation69_spill] sm:$0xff] }
 0x731   : > { %v6939_v56 = vpop.f32.mrb[200].mxu1  ;;  %v5098_v41 = vpop.f32.mrb[200].mxu0 }
 0x732   : > { %v8089_v21 = vrot.slane %v6939_v56, 2  ;;  %v6941_v54 = vpop.f32.mrb[201].mxu1  ;;  %v8865_v24 = vmax.f32 %v8779_v34, %v8781_v42  ;;  %v8519_v23 = vmul.f32 %v17270_v43, %v8384_v51  ;;  %v8385_v62 = vadd.f32 %v8088_v8, %v7728_v9  ;;  %v5100_v7 = vpop.f32.mrb[201].mxu0  ;;  %19885 = vst [vmem:[#allocation22_spill] sm:$0xff] %v17632_v30 }
 0x733   : > { %v6942_v16 = vpop.f32.mrb[202].mxu1  ;;  %v7432_v15 = vrot.slane %v5100_v7, 1  ;;  %v5102_v18 = vpop.f32.mrb[202].mxu0  ;;  %v8780_v34 = vmax.f32 %v8652_v10, 0.0 }
 0x734   : > { %v8090_v53 = vsel %vm7904_vm0, %v8087_v33, %v8089_v21  ;;  %v8091_v5 = vrot.slane %v6942_v16, 2  ;;  %v6944_v28 = vpop.f32.mrb[203].mxu1  ;;  %8929 = vst [vmem:[#allocation2 + $0x150] sm:$0xff] %v8865_v24  ;;  %v8654_v22 = vadd.f32 %v17290_v17, %v8519_v23  ;;  %v5104_v60 = vpop.f32.mrb[203].mxu0  ;;  %v12289_v33 = vpack.c.bf16 %v17089_v19, %v19731_v57 }
 0x735   : > { %v7433_v25 = vsel %vm7247_vm1, %v7430_v58, %v7432_v15  ;;  %v7434_v26 = vrot.slane %v5104_v60, 1  ;;  %v8520_v58 = vmul.f32 %v17270_v43, %v8385_v62  ;;  %v9055_v60 = vld [vmem:[#allocation2 + $0x141] ss:$2 sm:$0xff] }
 0x736   : > { %v8092_v8 = vsel %vm7904_vm0, %v8089_v21, %v8091_v5  ;;  %v8782_v42 = vmax.f32 %v8654_v22, 0.0  ;;  %v7729_v51 = vadd.f32 %v7433_v25, %v5092_v47  ;;  %12287 = vmatmul.mubr.msk.bf16.gmra.mrb[232].mxu0 %vm17481_vm15, %v17632_v30  ;;  %v8991_v22 = vld [vmem:[#allocation2 + $0x140] ss:$2 sm:$0xff] }
 0x737   : > { %v7435_v9 = vsel %vm7247_vm1, %v7432_v15, %v7434_v26  ;;  %12290 = vmatprep.mubr.msk.bf16.mxu0 %vm17378_vm4, %v12289_v33  ;;  %v8655_v62 = vadd.f32 %v17290_v17, %v8520_v58 }
 0x738   : > { %v8866_v56 = vmax.f32 %v8780_v34, %v8782_v42  ;;  %v8386_v21 = vadd.f32 %v8090_v53, %v7729_v51  ;;  %v7730_v54 = vadd.f32 %v7435_v9, %v5098_v41  ;;  %v19886_v53 = vld [vmem:[#allocation130_spill] sm:$0xff] }
 0x739   : > { %v6947_v24 = vpop.f32.mrb[204].mxu1  ;;  %v5108_v7 = vpop.f32.mrb[204].mxu0  ;;  %v12292_v42 = vpack.c.bf16 %v19886_v53, %v16471_v48 }
 0x73a   : > { %v8093_v23 = vrot.slane %v6947_v24, 2  ;;  %v6949_v10 = vpop.f32.mrb[205].mxu1  ;;  %8930 = vst [vmem:[#allocation2 + $0x158] sm:$0xff] %v8866_v56  ;;  %v8387_v47 = vadd.f32 %v8092_v8, %v7730_v54  ;;  %v5110_v16 = vpop.f32.mrb[205].mxu0  ;;  %v19887_v8 = vld [vmem:[#allocation134_spill] sm:$0xff]  ;;  %v17656_v24 = vmax.f32 %v8991_v22, %v9055_v60 }
 0x73b   : > { %v6950_v28 = vpop.f32.mrb[206].mxu1  ;;  %v7436_v25 = vrot.slane %v5110_v16, 1  ;;  %v5112_v33 = vpop.f32.mrb[206].mxu0  ;;  %v17652_v9 = vpack.c.bf16 %v19887_v8, %v17100_v44  ;;  %v8521_v10 = vmul.f32 %v17270_v43, %v8386_v21 }
 0x73c   : > { %v8094_v15 = vsel %vm7904_vm0, %v8091_v5, %v8093_v23  ;;  %v8095_v30 = vrot.slane %v6950_v28, 2  ;;  %v6952_v34 = vpop.f32.mrb[207].mxu1  ;;  %v8522_v41 = vmul.f32 %v17270_v43, %v8387_v47  ;;  %v5114_v51 = vpop.f32.mrb[207].mxu0  ;;  %19889 = vst [vmem:[#allocation24_spill] sm:$0xff] %v17656_v24 }
 0x73d   : > { %19888 = vst [vmem:[#allocation23_spill] sm:$0xff] %v17652_v9  ;;  %v7437_v56 = vsel %vm7247_vm1, %v7434_v26, %v7436_v25  ;;  %v7438_v54 = vrot.slane %v5114_v51, 1  ;;  %v8783_v26 = vmax.f32 %v8655_v62, 0.0 }
 0x73e   : > { %v8096_v5 = vsel %vm7904_vm0, %v8093_v23, %v8095_v30  ;;  %v8657_v58 = vadd.f32 %v17290_v17, %v8522_v41  ;;  %v7731_v47 = vadd.f32 %v7437_v56, %v5102_v18  ;;  %12293 = vmatmul.mubr.msk.bf16.gmra.mrb[236].mxu0 %vm17422_vm13, %v12292_v42  ;;  %v9237_v41 = vrot.slane %v17656_v24, 7 }
 0x73f   : > { %v7439_v16 = vsel %vm7247_vm1, %v7436_v25, %v7438_v54  ;;  %12296 = vmatprep.mubr.msk.bf16.mxu0 %vm17438_vm3, %v17652_v9  ;;  %v8656_v56 = vadd.f32 %v17290_v17, %v8521_v10  ;;  %v19892_v10 = vld [vmem:[#allocation6_spill] sm:$0xff] }
 0x740   : > { %v8785_v28 = vmax.f32 %v8657_v58, 0.0  ;;  %v8388_v23 = vadd.f32 %v8094_v15, %v7731_v47  ;;  %v7732_v34 = vadd.f32 %v7439_v16, %v5108_v7 }
 0x741   : > { %v6955_v22 = vpop.f32.mrb[208].mxu1  ;;  %v5118_v51 = vpop.f32.mrb[208].mxu0  ;;  %v8993_v18 = vld [vmem:[#allocation2 + $0x150] ss:$2 sm:$0xff]  ;;  %v9057_v9 = vld [vmem:[#allocation2 + $0x151] ss:$2 sm:$0xff] }
 0x742   : > { %v8097_v60 = vrot.slane %v6955_v22, 2  ;;  %v6957_v21 = vpop.f32.mrb[209].mxu1  ;;  %v8867_v42 = vmax.f32 %v8783_v26, %v8785_v28  ;;  %v8523_v25 = vmul.f32 %v17270_v43, %v8388_v23  ;;  %v8389_v37 = vadd.f32 %v8096_v5, %v7732_v34  ;;  %v5120_v53 = vpop.f32.mrb[209].mxu0 }
 0x743   : > { %v6958_v27 = vpop.f32.mrb[210].mxu1  ;;  %v7440_v15 = vrot.slane %v5120_v53, 1  ;;  %v5122_v58 = vpop.f32.mrb[210].mxu0  ;;  %v17670_v16 = vmax.f32 %v8993_v18, %v9057_v9  ;;  %v19891_v21 = vld [vmem:[#allocation131_spill] sm:$0xff]  ;;  %v12301_v5 = vpack.c.bf16 %v17296_v1, %v19731_v57  ;;  %v9406_v23 = vrot.slane %v17656_v24, 1 }
 0x744   : > { %v8098_v62 = vsel %vm7904_vm0, %v8095_v30, %v8097_v60  ;;  %v8099_v7 = vrot.slane %v6958_v27, 2  ;;  %v6960_v47 = vpop.f32.mrb[211].mxu1  ;;  %8931 = vst [vmem:[#allocation2 + $0x160] sm:$0xff] %v8867_v42  ;;  %v8658_v22 = vadd.f32 %v17290_v17, %v8523_v25  ;;  %v17675_v26 = vpack.c.bf16 %v19892_v10, %v19891_v21  ;;  %v5124_v28 = vpop.f32.mrb[211].mxu0 }
 0x745   : > { %19890 = vst [vmem:[#allocation25_spill] sm:$0xff] %v17670_v16  ;;  %v7441_v30 = vsel %vm7247_vm1, %v7438_v54, %v7440_v15  ;;  %v7442_v53 = vrot.slane %v5124_v28, 1  ;;  %v19584_v9 = vrot.slane %v17670_v16, 7  ;;  %v8784_v34 = vmax.f32 %v8656_v56, 0.0 }
 0x746   : > { %19893 = vst [vmem:[#allocation26_spill] sm:$0xff] %v17675_v26  ;;  %v8100_v27 = vsel %vm7904_vm0, %v8097_v60, %v8099_v7  ;;  %v8786_v18 = vmax.f32 %v8658_v22, 0.0  ;;  %v7733_v42 = vadd.f32 %v7441_v30, %v5112_v33  ;;  %12299 = vmatmul.mubr.msk.bf16.gmra.mrb[240].mxu0 %vm17481_vm15, %v17675_v26  ;;  %v17693_v54 = vsel %vm9204_vm2, %v16471_v48, %v9237_v41 }
 0x747   : > { %v7443_v47 = vsel %vm7247_vm1, %v7440_v15, %v7442_v53  ;;  %12302 = vmatprep.mubr.msk.bf16.mxu0 %vm17378_vm4, %v12301_v5  ;;  %19894 = vst [vmem:[#allocation27_spill] sm:$0xff] %v17693_v54  ;;  %v17698_v33 = vsel %vm9204_vm2, %v9237_v41, %v19584_v9  ;;  %v19585_v60 = vrot.slane %v17670_v16, 1  ;;  %v8524_v22 = vmul.f32 %v17270_v43, %v8389_v37 }
 0x748   : > { %19895 = vst [vmem:[#allocation28_spill] sm:$0xff] %v17698_v33  ;;  %v8868_v56 = vmax.f32 %v8784_v34, %v8786_v18  ;;  %v8390_v28 = vadd.f32 %v8098_v62, %v7733_v42  ;;  %v7734_v30 = vadd.f32 %v7443_v47, %v5118_v51  ;;  %v17704_v10 = vsel %vm7247_vm1, %v16483_v14, %v9406_v23 }
 0x749   : > { %v6963_v15 = vpop.f32.mrb[212].mxu1  ;;  %v5128_v26 = vpop.f32.mrb[212].mxu0  ;;  %19896 = vst [vmem:[#allocation29_spill] sm:$0xff] %v17704_v10  ;;  %v17709_v41 = vsel %vm7247_vm1, %v9406_v23, %v19585_v60  ;;  %v12304_v9 = vpack.c.bf16 %v17338_v36, %v16471_v48  ;;  %v19906_v10 = vld [vmem:[#allocation63_spill] sm:$0xff] }
 0x74a   : > { %v8101_v25 = vrot.slane %v6963_v15, 2  ;;  %v6965_v5 = vpop.f32.mrb[213].mxu1  ;;  %19897 = vst [vmem:[#allocation30_spill] sm:$0xff] %v17709_v41  ;;  %8932 = vst [vmem:[#allocation2 + $0x168] sm:$0xff] %v8868_v56  ;;  %v8391_v37 = vadd.f32 %v8100_v27, %v7734_v30  ;;  %v5129_v62 = vpop.f32.mrb[213].mxu0  ;;  %v17723_v56 = vpack.c.bf16 %v17446_v45, %v17340_v6  ;;  %v8525_v30 = vmul.f32 %v17270_v43, %v8390_v28  ;;  %v19935_v41 = vld [vmem:[#allocation75_spill] sm:$0xff] }
 0x74b   : > { %v6966_v51 = vpop.f32.mrb[214].mxu1  ;;  %v7444_v42 = vrot.slane %v5129_v62, 1  ;;  %v5131_v47 = vpop.f32.mrb[214].mxu0  ;;  %v8659_v5 = vadd.f32 %v17290_v17, %v8524_v22 }
 0x74c   : > { %v8102_v18 = vsel %vm7904_vm0, %v8099_v7, %v8101_v25  ;;  %v6967_v15 = vpop.f32.mrb[215].mxu1  ;;  %v8526_v23 = vmul.f32 %v17270_v43, %v8391_v37  ;;  %v5132_v34 = vpop.f32.mrb[215].mxu0  ;;  %19898 = vst [vmem:[#allocation31_spill] sm:$0xff] %v17723_v56  ;;  %v8660_v47 = vadd.f32 %v17290_v17, %v8525_v30 }
 0x74d   : > { %v7445_v27 = vsel %vm7247_vm1, %v7442_v53, %v7444_v42  ;;  %v8787_v22 = vmax.f32 %v8659_v5, 0.0 }
 0x74e   : > { %v8661_v7 = vadd.f32 %v17290_v17, %v8526_v23  ;;  %v7735_v25 = vadd.f32 %v7445_v27, %v5122_v58  ;;  %12305 = vmatmul.mubr.msk.bf16.gmra.mrb[244].mxu0 %vm17422_vm13, %v12304_v9  ;;  %v17736_v58 = vld [vmem:[%s19476_s2] ss:$0 sm:$0xff] }
 0x74f   : > { %12308 = vmatprep.mubr.msk.bf16.mxu0 %vm17438_vm3, %v17723_v56 }
 0x750   : > { %v8789_v34 = vmax.f32 %v8661_v7, 0.0  ;;  %v8392_v37 = vadd.f32 %v8102_v18, %v7735_v25 }
 0x751   : > { %v6970_v53 = vpop.f32.mrb[216].mxu1  ;;  %v5135_v62 = vpop.f32.mrb[216].mxu0  ;;  %v8995_v42 = vld [vmem:[#allocation2 + $0x160] ss:$2 sm:$0xff]  ;;  %v9059_v23 = vld [vmem:[#allocation2 + $0x161] ss:$2 sm:$0xff] }
 0x752   : > { %v6972_v51 = vpop.f32.mrb[217].mxu1  ;;  %v8869_v43 = vmax.f32 %v8787_v22, %v8789_v34  ;;  %v8527_v9 = vmul.f32 %v17736_v58, %v8392_v37  ;;  %v5137_v28 = vpop.f32.mrb[217].mxu0  ;;  %v8103_v5 = vrot.slane %v6970_v53, 2  ;;  %v17739_v25 = vmax.f32 %v8995_v42, %v9059_v23 }
 0x753   : > { %v6973_v15 = vpop.f32.mrb[218].mxu1  ;;  %v5139_v18 = vpop.f32.mrb[218].mxu0  ;;  %v17744_v22 = vpack.c.bf16 %v17577_v0, %v17365_v52  ;;  %v7446_v51 = vrot.slane %v5137_v28, 1  ;;  %v12313_v53 = vpack.c.bf16 %v17656_v24, %v19731_v57  ;;  %v19901_v23 = vrot.slane %v17670_v16, 1  ;;  %v19917_v52 = vld [vmem:[#allocation67_spill] sm:$0xff] }
 0x754   : > { %v8104_v27 = vrot.slane %v6973_v15, 2  ;;  %v6975_v7 = vpop.f32.mrb[219].mxu1  ;;  %19899 = vst [vmem:[#allocation32_spill] sm:$0xff] %v17739_v25  ;;  %8933 = vst [vmem:[#allocation2 + $0x170] sm:$0xff] %v8869_v43  ;;  %v8662_v30 = vadd.f32 %v17290_v17, %v8527_v9  ;;  %v5141_v34 = vpop.f32.mrb[219].mxu0  ;;  %v8788_v15 = vmax.f32 %v8660_v47, 0.0 }
 0x755   : > { %19900 = vst [vmem:[#allocation33_spill] sm:$0xff] %v17744_v22  ;;  %v7447_v26 = vrot.slane %v5141_v34, 1  ;;  %v19588_v17 = vrot.slane %v17739_v25, 1 }
 0x756   : > { %v8105_v37 = vsel %vm7904_vm0, %v8103_v5, %v8104_v27  ;;  %v8790_v60 = vmax.f32 %v8662_v30, 0.0  ;;  %12311 = vmatmul.mubr.msk.bf16.gmra.mrb[248].mxu0 %vm17481_vm15, %v17744_v22  ;;  %v19903_v5 = vld [vmem:[#allocation60_spill] sm:$0xff] }
 0x757   : > { %v7448_v42 = vsel %vm7247_vm1, %v7446_v51, %v7447_v26  ;;  %12314 = vmatprep.mubr.msk.bf16.mxu0 %vm17378_vm4, %v12313_v53  ;;  %v17761_v47 = vsel %vm7247_vm1, %v19901_v23, %v19588_v17  ;;  %v19904_v53 = vld [vmem:[#allocation61_spill] sm:$0xff]  ;;  %v19905_v23 = vld [vmem:[#allocation62_spill] sm:$0xff]  ;;  %v12316_v51 = vpack.c.bf16 %v17693_v54, %v16471_v48 }
 0x758   : > { %v8870_v43 = vmax.f32 %v8788_v15, %v8790_v60  ;;  %v7736_v9 = vadd.f32 %v7448_v42, %v5135_v62  ;;  %19902 = vst [vmem:[#allocation34_spill] sm:$0xff] %v17761_v47  ;;  %v15009_v42 = vld [vmem:[%s19478_s4 + $0xc0] sm:$0xff]   ;;  %v19914_v54 = vld [vmem:[#allocation110_spill] sm:$0xff] }
 0x759   : > { %v6978_v28 = vpop.f32.mrb[0].mxu1  ;;  %v5145_v30 = vpop.f32.mrb[0].mxu0  ;;  %12801 = vmatprep.subr.bf16.mxu1 %v15009_v42 }
 0x75a   : > { %v13342_v7 = vadd.f32 %v6978_v28, %v19903_v5  ;;  %v6980_v34 = vpop.f32.mrb[1].mxu1  ;;  %8934 = vst [vmem:[#allocation2 + $0x178] sm:$0xff] %v8870_v43  ;;  %v8393_v22 = vadd.f32 %v8105_v37, %v7736_v9  ;;  %v13283_v60 = vadd.f32 %v5145_v30, %v19904_v53  ;;  %v5147_v62 = vpop.f32.mrb[1].mxu0  ;;  %v19907_v43 = vld [vmem:[#allocation64_spill] sm:$0xff]  ;;  %v17778_v53 = vpack.c.bf16 %v17739_v25, %v17670_v16 }
 0x75b   : > { %v6981_v15 = vpop.f32.mrb[2].mxu1  ;;  %v13284_v17 = vadd.f32 %v5147_v62, %v19905_v23  ;;  %v5149_v5 = vpop.f32.mrb[2].mxu0 }
 0x75c   : > { %v8106_v56 = vrot.slane %v13342_v7, 2  ;;  %v13343_v28 = vadd.f32 %v6981_v15, %v19906_v10  ;;  %v6983_v34 = vpop.f32.mrb[3].mxu1  ;;  %v13285_v37 = vadd.f32 %v5149_v5, %v19907_v43  ;;  %v5151_v9 = vpop.f32.mrb[3].mxu0  ;;  %19908 = vst [vmem:[#allocation35_spill] sm:$0xff] %v17778_v53  ;;  %v19909_v10 = vld [vmem:[#allocation65_spill] sm:$0xff]  ;;  %v8528_v42 = vmul.f32 %v17736_v58, %v8393_v22 }
 0x75d   : > { %v7449_v62 = vrot.slane %v13284_v17, 1  ;;  %v13286_v15 = vadd.f32 %v5151_v9, %v19909_v10  ;;  %v19911_v17 = vrot.slane %v17670_v16, 7  ;;  %v19913_v9 = vld [vmem:[#allocation66_spill] sm:$0xff] }
 0x75e   : > { %v8107_v7 = vsel %vm7904_vm0, %v8104_v27, %v8106_v56  ;;  %v8108_v23 = vrot.slane %v13343_v28, 2  ;;  %12317 = vmatmul.mubr.msk.bf16.gmra.mrb[72].mxu0 %vm17422_vm13, %v12316_v51  ;;  %v19910_v27 = vrot.slane %v17739_v25, 7 }
 0x75f   : > { %v7450_v34 = vsel %vm7247_vm1, %v7447_v26, %v7449_v62  ;;  %v7451_v43 = vrot.slane %v13286_v15, 1  ;;  %12320 = vmatprep.mubr.msk.bf16.mxu0 %vm17438_vm3, %v17778_v53  ;;  %v19915_v53 = vrot.slane %v19914_v54, 1 }
 0x760   : > { %v8109_v5 = vsel %vm7904_vm0, %v8106_v56, %v8108_v23  ;;  %v7737_v30 = vadd.f32 %v7450_v34, %v5139_v18  ;;  %v17795_v28 = vsel %vm9204_vm2, %v19911_v17, %v19910_v27 }
 0x761   : > { %19912 = vst [vmem:[#allocation36_spill] sm:$0xff] %v17795_v28  ;;  %v6986_v51 = vpop.f32.mrb[4].mxu1  ;;  %v7452_v26 = vsel %vm7247_vm1, %v7449_v62, %v7451_v43  ;;  %v5155_v10 = vpop.f32.mrb[4].mxu0  ;;  %v17803_v22 = vsel %vm7247_vm1, %v19915_v53, %v16483_v14  ;;  %v8997_v18 = vld [vmem:[#allocation2 + $0x170] ss:$2 sm:$0xff]  ;;  %v17810_v62 = vpack.c.bf16 %v17795_v28, %v17698_v33  ;;  %v19930_v33 = vld [vmem:[#allocation111_spill] sm:$0xff] }
 0x762   : > { %v13344_v56 = vadd.f32 %v6986_v51, %v19913_v9  ;;  %v6988_v15 = vpop.f32.mrb[5].mxu1  ;;  %19916 = vst [vmem:[#allocation37_spill] sm:$0xff] %v17803_v22  ;;  %v9061_v34 = vld [vmem:[#allocation2 + $0x171] ss:$2 sm:$0xff]  ;;  %v8394_v0 = vadd.f32 %v8107_v7, %v7737_v30  ;;  %v7738_v36 = vadd.f32 %v13283_v60, %v7452_v26  ;;  %v13287_v27 = vadd.f32 %v5155_v10, %v19917_v52  ;;  %v5157_v17 = vpop.f32.mrb[5].mxu0  ;;  %v19920_v9 = vld [vmem:[#allocation68_spill] sm:$0xff] }
 0x763   : > { %v6989_v21 = vpop.f32.mrb[6].mxu1  ;;  %v17806_v12 = vmax.f32 %v8997_v18, %v9061_v34  ;;  %19919 = vst [vmem:[#allocation39_spill] sm:$0xff] %v17810_v62  ;;  %v13288_v15 = vadd.f32 %v5157_v17, %v19920_v9  ;;  %v5159_v49 = vpop.f32.mrb[6].mxu0  ;;  %v17817_v60 = vld [vmem:[%s19477_s3] ss:$0 sm:$0xff]  ;;  %v19922_v7 = vld [vmem:[#allocation70_spill] sm:$0xff] }
 0x764   : > { %v8110_v51 = vrot.slane %v13344_v56, 2  ;;  %v13345_v53 = vadd.f32 %v6989_v21, %v19921_v39  ;;  %v6991_v59 = vpop.f32.mrb[7].mxu1  ;;  %v8663_v52 = vadd.f32 %v17817_v60, %v8528_v42  ;;  %v8395_v30 = vadd.f32 %v8109_v5, %v7738_v36  ;;  %v5161_v10 = vpop.f32.mrb[7].mxu0  ;;  %v19923_v39 = vld [vmem:[#allocation71_spill] sm:$0xff] }
 0x765   : > { %19918 = vst [vmem:[#allocation38_spill] sm:$0xff] %v17806_v12  ;;  %v13289_v26 = vadd.f32 %v5159_v49, %v19922_v7  ;;  %v19601_v18 = vrot.slane %v17806_v12, 1  ;;  %v7453_v34 = vrot.slane %v13288_v15, 1  ;;  %v13290_v21 = vadd.f32 %v5161_v10, %v19923_v39  ;;  %v19926_v15 = vld [vmem:[#allocation109_spill] sm:$0xff] }
 0x766   : > { %v8111_v56 = vsel %vm7904_vm0, %v8108_v23, %v8110_v51  ;;  %v8112_v17 = vrot.slane %v13345_v53, 2  ;;  %v8530_v59 = vmul.f32 %v17736_v58, %v8395_v30  ;;  %12323 = vmatmul.mubr.msk.bf16.gmra.mrb[76].mxu0 %vm17481_vm15, %v17810_v62  ;;  %v19924_v36 = vrot.slane %v17739_v25, 1  ;;  %v19927_v53 = vld [vmem:[#allocation108_spill] sm:$0xff] }
 0x767   : > { %v8529_v5 = vmul.f32 %v17736_v58, %v8394_v0  ;;  %v7454_v23 = vsel %vm7247_vm1, %v7451_v43, %v7453_v34  ;;  %v7455_v9 = vrot.slane %v13290_v21, 1  ;;  %v19928_v30 = vpack.c.bf16 %v19926_v15, %v19927_v53  ;;  %v19931_v43 = vld [vmem:[#allocation72_spill] sm:$0xff] }
 0x768   : > { %v17833_v49 = vsel %vm7247_vm1, %v19924_v36, %v19601_v18  ;;  %v8113_v42 = vsel %vm7904_vm0, %v8110_v51, %v8112_v17  ;;  %v8665_v10 = vadd.f32 %v17817_v60, %v8530_v59  ;;  %v7739_v39 = vadd.f32 %v13285_v37, %v7454_v23  ;;  %v19933_v59 = vld [vmem:[#allocation73_spill] sm:$0xff] }
 0x769   : > { %19925 = vst [vmem:[#allocation40_spill] sm:$0xff] %v17833_v49  ;;  %12446 = vmatprep.mubr.msk.bf16.mxu0 %vm17027_vm9, %v19928_v30  ;;  %v6994_v62 = vpop.f32.mrb[8].mxu1  ;;  %v12451_v36 = vpack.c.bf16 %v17803_v22, %v19930_v33  ;;  %v8791_v18 = vmax.f32 %v8663_v52, 0.0  ;;  %v7456_v0 = vsel %vm7247_vm1, %v7453_v34, %v7455_v9  ;;  %v5165_v51 = vpop.f32.mrb[8].mxu0  ;;  %v17850_v15 = vpack.c.bf16 %v17833_v49, %v17761_v47  ;;  %v19934_v22 = vld [vmem:[#allocation74_spill] sm:$0xff]  ;;  %v19948_v49 = vld [vmem:[#allocation81_spill] sm:$0xff] }
 0x76a   : > { %v13346_v20 = vadd.f32 %v6994_v62, %v19931_v43  ;;  %v6996_v21 = vpop.f32.mrb[9].mxu1  ;;  %v8793_v53 = vmax.f32 %v8665_v10, 0.0  ;;  %v8396_v30 = vadd.f32 %v8111_v56, %v7739_v39  ;;  %v7740_v24 = vadd.f32 %v13287_v27, %v7456_v0  ;;  %v5167_v23 = vpop.f32.mrb[9].mxu0  ;;  %v19936_v39 = vld [vmem:[#allocation76_spill] sm:$0xff] }
 0x76b   : > { %19932 = vst [vmem:[#allocation41_spill] sm:$0xff] %v17850_v15  ;;  %v13291_v37 = vadd.f32 %v5165_v51, %v19933_v59  ;;  %v6997_v16 = vpop.f32.mrb[10].mxu1  ;;  %v8664_v33 = vadd.f32 %v17817_v60, %v8529_v5  ;;  %v13292_v34 = vadd.f32 %v5167_v23, %v19934_v22  ;;  %v5169_v43 = vpop.f32.mrb[10].mxu0  ;;  %v15019_v15 = vld [vmem:[%s19478_s4 + $0x200] sm:$0xff]   ;;  %v19937_v5 = vld [vmem:[#allocation77_spill] sm:$0xff] }
 0x76c   : > { %v8114_v52 = vrot.slane %v13346_v20, 2  ;;  %v13347_v62 = vadd.f32 %v6997_v16, %v19935_v41  ;;  %v6999_v21 = vpop.f32.mrb[11].mxu1  ;;  %v8871_v10 = vmax.f32 %v8791_v18, %v8793_v53  ;;  %v8531_v27 = vmul.f32 %v17736_v58, %v8396_v30  ;;  %v5171_v51 = vpop.f32.mrb[11].mxu0  ;;  %v15022_v20 = vld [vmem:[%s19478_s4 + $0x208] sm:$0xff]   ;;  %13161 = vmatprep.subr.bf16.mxu0 %v15019_v15 }
 0x76d   : > { %v8397_v56 = vadd.f32 %v8113_v42, %v7740_v24  ;;  %v17861_v0 = vadd.f32 %v5169_v43, %v19936_v39  ;;  %v7457_v41 = vrot.slane %v13292_v34, 1  ;;  %v13294_v59 = vadd.f32 %v5171_v51, %v19937_v5  ;;  %v19938_v24 = vld [vmem:[#allocation104_spill] sm:$0xff]  ;;  %v15025_v39 = vld [vmem:[%s19478_s4 + $0x210] sm:$0xff]   ;;  %v19944_v51 = vld [vmem:[#allocation78_spill] sm:$0xff] }
 0x76e   : > { %v8115_v16 = vsel %vm7904_vm0, %v8112_v17, %v8114_v52  ;;  %v8116_v22 = vrot.slane %v13347_v62, 2  ;;  %8935 = vst [vmem:[#allocation2 + $0x180] sm:$0xff] %v8871_v10  ;;  %v8666_v18 = vadd.f32 %v17817_v60, %v8531_v27  ;;  %v19939_v42 = vpack.c.bf16 %v16479_v2, %v19938_v24  ;;  %v20093_v62 = vld [vmem:[#allocation110_spill] sm:$0xff] }
 0x76f   : > { %v9504_v30 = vrot.slane %v17806_v12, 7  ;;  %v8792_v23 = vmax.f32 %v8664_v33, 0.0  ;;  %v7458_v43 = vsel %vm7247_vm1, %v7455_v9, %v7457_v41  ;;  %v7459_v34 = vrot.slane %v13294_v59, 1 }
 0x770   : > { %12449 = vmatmul.mubr.msk.bf16.vlgmr.msra.gmra.mrb[80].mxu0 %vm17019_vm6, %v19939_v42  ;;  %v8117_v17 = vsel %vm7904_vm0, %v8114_v52, %v8116_v22  ;;  %v8794_v21 = vmax.f32 %v8666_v18, 0.0  ;;  %v8532_v10 = vmul.f32 %v17736_v58, %v8397_v56  ;;  %v7741_v27 = vadd.f32 %v13289_v26, %v7458_v43 }
 0x771   : > { %12452 = vmatprep.mubr.msk.bf16.mxu0 %vm17037_vm11, %v12451_v36  ;;  %13162 = vmatpush3.bf16.msra.mxu0 %v15019_v15  ;;  %v7002_v2 = vpop.f32.mrb[12].mxu1  ;;  %v19942_v33 = vrot.slane %v17739_v25, 7  ;;  %v7460_v52 = vsel %vm7247_vm1, %v7457_v41, %v7459_v34  ;;  %v5175_v15 = vpop.f32.mrb[12].mxu0  ;;  %v17892_v26 = vsel %vm9204_vm2, %v9504_v30, %v16471_v48  ;;  %v12454_v42 = vpack.c.bf16 %v19914_v54, %v16528_v40  ;;  %v19946_v25 = vld [vmem:[#allocation79_spill] sm:$0xff] }
 0x772   : > { %13163 = vmatprep.subr.bf16.mxu0 %v15022_v20  ;;  %v13348_v36 = vadd.f32 %v7002_v2, %v19944_v51  ;;  %v7004_v5 = vpop.f32.mrb[13].mxu1  ;;  %19945 = vst [vmem:[#allocation43_spill] sm:$0xff] %v17892_v26  ;;  %v8872_v59 = vmax.f32 %v8792_v23, %v8794_v21  ;;  %v8398_v18 = vadd.f32 %v8115_v16, %v7741_v27  ;;  %v5177_v43 = vpop.f32.mrb[13].mxu0  ;;  %v19947_v51 = vld [vmem:[#allocation80_spill] sm:$0xff] }
 0x773   : > { %v17886_v9 = vsel %vm9204_vm2, %v19942_v33, %v9504_v30  ;;  %v7742_v24 = vadd.f32 %v13291_v37, %v7460_v52  ;;  %v7005_v33 = vpop.f32.mrb[14].mxu1  ;;  %v13295_v2 = vadd.f32 %v5175_v15, %v19946_v25  ;;  %v13296_v5 = vadd.f32 %v5177_v43, %v19947_v51  ;;  %v5179_v30 = vpop.f32.mrb[14].mxu0  ;;  %v19949_v37 = vld [vmem:[#allocation82_spill] sm:$0xff]  ;;  %v19950_v52 = vld [vmem:[#allocation83_spill] sm:$0xff] }
 0x774   : > { %19943 = vst [vmem:[#allocation42_spill] sm:$0xff] %v17886_v9  ;;  %v8118_v41 = vrot.slane %v13348_v36, 2  ;;  %v13349_v12 = vadd.f32 %v7005_v33, %v19948_v49  ;;  %v7007_v47 = vpop.f32.mrb[15].mxu1  ;;  %8936 = vst [vmem:[#allocation2 + $0x188] sm:$0xff] %v8872_v59  ;;  %v8667_v23 = vadd.f32 %v17817_v60, %v8532_v10  ;;  %v17903_v21 = vadd.f32 %v5179_v30, %v19949_v37  ;;  %v5181_v40 = vpop.f32.mrb[15].mxu0  ;;  %v15028_v25 = vld [vmem:[%s19478_s4 + $0x218] sm:$0xff]  }
 0x775   : > { %13164 = vmatpush3.bf16.msra.mxu0 %v15022_v20  ;;  %v8399_v16 = vadd.f32 %v8117_v17, %v7742_v24  ;;  %v7461_v47 = vrot.slane %v13296_v5, 1  ;;  %v13298_v36 = vadd.f32 %v5181_v40, %v19950_v52  ;;  %v19951_v10 = vld [vmem:[#allocation52_spill] sm:$0xff]  ;;  %v8533_v24 = vmul.f32 %v17736_v58, %v8398_v18  ;;  %v19953_v33 = vld [vmem:[#allocation51_spill] sm:$0xff]  ;;  %v19954_v51 = vld [vmem:[#allocation50_spill] sm:$0xff] }
 0x776   : > { %13165 = vmatprep.subr.bf16.mxu0 %v15025_v39  ;;  %v8119_v49 = vsel %vm7904_vm0, %v8116_v22, %v8118_v41  ;;  %v8120_v20 = vrot.slane %v13349_v12, 2  ;;  %v19952_v15 = vrot.slane %v19951_v10, 1  ;;  %v19955_v5 = vpack.c.bf16 %v19953_v33, %v19954_v51  ;;  %v19956_v37 = vld [vmem:[#allocation84_spill] sm:$0xff] }
 0x777   : > { %v8534_v17 = vmul.f32 %v17736_v58, %v8399_v16  ;;  %v7462_v43 = vsel %vm7247_vm1, %v7459_v34, %v7461_v47  ;;  %v7463_v12 = vrot.slane %v13298_v36, 1  ;;  %v15031_v34 = vld [vmem:[%s19478_s4 + $0x220] sm:$0xff]   ;;  %v8795_v18 = vmax.f32 %v8667_v23, 0.0  ;;  %v19959_v23 = vld [vmem:[#allocation86_spill] sm:$0xff] }
 0x778   : > { %12455 = vmatmul.mubr.msk.bf16.gmra.mrb[84].mxu0 %vm17438_vm3, %v12454_v42  ;;  %v17919_v59 = vsel %vm7247_vm1, %v19952_v15, %v16483_v14  ;;  %v8121_v22 = vsel %vm7904_vm0, %v8118_v41, %v8120_v20  ;;  %v7743_v30 = vadd.f32 %v17861_v0, %v7462_v43  ;;  %v19957_v15 = vld [vmem:[#allocation54_spill] sm:$0xff]  ;;  %v19958_v0 = vld [vmem:[#allocation85_spill] sm:$0xff]  ;;  %v8668_v26 = vadd.f32 %v17817_v60, %v8533_v24 }
 0x779   : > { %12458 = vmatprep.mubr.msk.bf16.mxu0 %vm17027_vm9, %v19955_v5  ;;  %13166 = vmatpush3.bf16.msra.mxu0 %v15025_v39  ;;  %v8669_v42 = vadd.f32 %v17817_v60, %v8534_v17  ;;  %v7010_v16 = vpop.f32.mrb[16].mxu1  ;;  %v7464_v41 = vsel %vm7247_vm1, %v7461_v47, %v7463_v12  ;;  %v5185_v52 = vpop.f32.mrb[16].mxu0  ;;  %v12463_v39 = vpack.c.bf16 %v17919_v59, %v19957_v15  ;;  %v19960_v47 = vld [vmem:[#allocation87_spill] sm:$0xff] }
 0x77a   : > { %13167 = vmatprep.subr.bf16.mxu0 %v15028_v25  ;;  %v13350_v40 = vadd.f32 %v7010_v16, %v19956_v37  ;;  %v7012_v36 = vpop.f32.mrb[17].mxu1  ;;  %v8400_v17 = vadd.f32 %v8119_v49, %v7743_v30  ;;  %v7744_v5 = vadd.f32 %v13295_v2, %v7464_v41  ;;  %v13299_v43 = vadd.f32 %v5185_v52, %v19958_v0  ;;  %v5187_v27 = vpop.f32.mrb[17].mxu0 }
 0x77b   : > { %v8797_v33 = vmax.f32 %v8669_v42, 0.0  ;;  %v7013_v56 = vpop.f32.mrb[18].mxu1  ;;  %v13300_v28 = vadd.f32 %v5187_v27, %v19959_v23  ;;  %v5189_v16 = vpop.f32.mrb[18].mxu0  ;;  %v8999_v36 = vld [vmem:[#allocation2 + $0x180] ss:$2 sm:$0xff] }
 0x77c   : > { %v8122_v54 = vrot.slane %v13350_v40, 2  ;;  %v17942_v9 = vadd.f32 %v7013_v56, %v19960_v47  ;;  %v7015_v37 = vpop.f32.mrb[19].mxu1  ;;  %v8535_v49 = vmul.f32 %v17736_v58, %v8400_v17  ;;  %v8401_v2 = vadd.f32 %v8121_v22, %v7744_v5  ;;  %v19961_v42 = vld [vmem:[#allocation88_spill] sm:$0xff]  ;;  %v5191_v41 = vpop.f32.mrb[19].mxu0 }
 0x77d   : > { %13168 = vmatpush3.bf16.msra.mxu0 %v15028_v25  ;;  %v8873_v15 = vmax.f32 %v8795_v18, %v8797_v33  ;;  %v17946_v30 = vadd.f32 %v5189_v16, %v19961_v42  ;;  %v9063_v52 = vld [vmem:[#allocation2 + $0x181] ss:$2 sm:$0xff]  ;;  %v7465_v24 = vrot.slane %v13300_v28, 1  ;;  %v19962_v25 = vld [vmem:[#allocation89_spill] sm:$0xff]  ;;  %v19963_v33 = vpack.c.bf16 %v16711_v11, %v16681_v50 }
 0x77e   : > { %13169 = vmatprep.subr.bf16.mxu0 %v15031_v34  ;;  %v15032_v27 = vld [vmem:[%s19478_s4 + $0x228] sm:$0xff]   ;;  %v8123_v56 = vsel %vm7904_vm0, %v8120_v20, %v8122_v54  ;;  %v8124_v40 = vrot.slane %v17942_v9, 2  ;;  %v13302_v18 = vadd.f32 %v5191_v41, %v19962_v25  ;;  %v8670_v22 = vadd.f32 %v17817_v60, %v8535_v49  ;;  %v19965_v41 = vld [vmem:[#allocation121_spill] sm:$0xff] }
 0x77f   : > { %8937 = vst [vmem:[#allocation2 + $0x190] sm:$0xff] %v8873_v15  ;;  %v17960_v17 = vmax.f32 %v8999_v36, %v9063_v52  ;;  %v8796_v5 = vmax.f32 %v8668_v26, 0.0  ;;  %v7466_v0 = vsel %vm7247_vm1, %v7463_v12, %v7465_v24  ;;  %v8536_v23 = vmul.f32 %v17736_v58, %v8401_v2  ;;  %v15033_v26 = vld [vmem:[%s19478_s4 + $0x230] sm:$0xff]  }
 0x780   : > { %12461 = vmatmul.mubr.msk.bf16.gmra.mrb[88].mxu0 %vm17019_vm6, %v19963_v33  ;;  %v8125_v28 = vsel %vm7904_vm0, %v8122_v54, %v8124_v40  ;;  %v7467_v20 = vrot.slane %v13302_v18, 1  ;;  %v8798_v9 = vmax.f32 %v8670_v22, 0.0  ;;  %v7745_v50 = vadd.f32 %v17903_v21, %v7466_v0  ;;  %v19969_v18 = vld [vmem:[#allocation92_spill] sm:$0xff]  ;;  %v15010_v0 = vld [vmem:[%s19478_s4 + $0x80] sm:$0xff]  }
 0x781   : > { %12464 = vmatprep.mubr.msk.bf16.mxu0 %vm17037_vm11, %v12463_v39  ;;  %13170 = vmatpush3.bf16.msra.mxu0 %v15031_v34  ;;  %v7018_v11 = vpop.f32.mrb[20].mxu1  ;;  %v19619_v47 = vrot.slane %v17960_v17, 7  ;;  %v12466_v12 = vpack.c.bf16 %v19951_v10, %v16758_v35  ;;  %v19964_v39 = vld [vmem:[#allocation90_spill] sm:$0xff]  ;;  %v12325_v16 = vpack.c.bf16 %v17960_v17, %v19731_v57  ;;  %v5195_v37 = vpop.f32.mrb[20].mxu0  ;;  %v19966_v52 = vrot.slane %v19965_v41, 1 }
 0x782   : > { %13171 = vmatprep.subr.bf16.mxu0 %v15032_v27  ;;  %v7468_v54 = vsel %vm7247_vm1, %v7465_v24, %v7467_v20  ;;  %v13352_v34 = vadd.f32 %v7018_v11, %v19964_v39  ;;  %v7020_v21 = vpop.f32.mrb[21].mxu1  ;;  %v8874_v36 = vmax.f32 %v8796_v5, %v8798_v9  ;;  %v8402_v15 = vadd.f32 %v8123_v56, %v7745_v50  ;;  %v5197_v2 = vpop.f32.mrb[21].mxu0  ;;  %v19968_v56 = vld [vmem:[#allocation91_spill] sm:$0xff] }
 0x783   : > { %v7746_v49 = vadd.f32 %v13299_v43, %v7468_v54  ;;  %v7021_v42 = vpop.f32.mrb[22].mxu1  ;;  %v17982_v24 = vsel %vm7247_vm1, %v19966_v52, %v16483_v14  ;;  %v17988_v35 = vsel %vm9204_vm2, %v16471_v48, %v19619_v47  ;;  %12326 = vmatprep.mubr.msk.bf16.mxu1 %vm17378_vm4, %v12325_v16  ;;  %v13303_v43 = vadd.f32 %v5195_v37, %v19968_v56  ;;  %v5199_v33 = vpop.f32.mrb[22].mxu0  ;;  %v19970_v54 = vld [vmem:[#allocation93_spill] sm:$0xff]  ;;  %v15011_v16 = vld [vmem:[%s19478_s4 + $0xc8] sm:$0xff]  }
 0x784   : > { %19967 = vst [vmem:[#allocation44_spill] sm:$0xff] %v17982_v24  ;;  %v8126_v25 = vrot.slane %v13352_v34, 2  ;;  %v13304_v22 = vadd.f32 %v5197_v2, %v19969_v18  ;;  %v7023_v5 = vpop.f32.mrb[23].mxu1  ;;  %8938 = vst [vmem:[#allocation2 + $0x198] sm:$0xff] %v8874_v36  ;;  %v8671_v9 = vadd.f32 %v17817_v60, %v8536_v23  ;;  %v12328_v11 = vpack.c.bf16 %v17988_v35, %v16471_v48  ;;  %v5201_v34 = vpop.f32.mrb[23].mxu0  ;;  %v19971_v2 = vld [vmem:[#allocation94_spill] sm:$0xff] }
 0x785   : > { %13172 = vmatpush3.bf16.msra.mxu0 %v15032_v27  ;;  %v8403_v50 = vadd.f32 %v8125_v28, %v7746_v49  ;;  %v13353_v39 = vadd.f32 %v7021_v42, %v19970_v54  ;;  %v18006_v27 = vadd.f32 %v5199_v33, %v19971_v2  ;;  %v19972_v36 = vld [vmem:[#allocation95_spill] sm:$0xff]  ;;  %v15034_v28 = vld [vmem:[%s19478_s4 + $0x238] sm:$0xff]   ;;  %v19976_v5 = vld [vmem:[#allocation125_spill] sm:$0xff] }
 0x786   : > { %13173 = vmatprep.subr.bf16.mxu0 %v15033_v26  ;;  %v8127_v37 = vsel %vm7904_vm0, %v8124_v40, %v8126_v25  ;;  %v7469_v21 = vrot.slane %v13304_v22, 1  ;;  %v13306_v23 = vadd.f32 %v5201_v34, %v19972_v36  ;;  %12329 = vmatmul.mubr.msk.bf16.vlgmr.msra.gmra.mrb[32].mxu1 %vm17422_vm13, %v12328_v11  ;;  %v8537_v40 = vmul.f32 %v17736_v58, %v8402_v15  ;;  %v19973_v18 = vld [vmem:[#allocation118_spill] sm:$0xff]  ;;  %v19974_v22 = vld [vmem:[#allocation117_spill] sm:$0xff]  ;;  %v15012_v11 = vld [vmem:[%s19478_s4 + $0x88] sm:$0xff]  }
 0x787   : > { %v8538_v49 = vmul.f32 %v17736_v58, %v8403_v50  ;;  %v8128_v42 = vrot.slane %v13353_v39, 2  ;;  %v19975_v33 = vpack.c.bf16 %v19973_v18, %v19974_v22  ;;  %v12475_v50 = vpack.c.bf16 %v17982_v24, %v19976_v5  ;;  %12802 = vmatpush3.bf16.msra.mxu1 %v15010_v0  ;;  %v15013_v39 = vld [vmem:[%s19478_s4 + $0xd0] sm:$0xff]   ;;  %v19977_v2 = vld [vmem:[#allocation96_spill] sm:$0xff] }
 0x788   : > { %12467 = vmatmul.mubr.msk.bf16.gmra.mrb[92].mxu0 %vm17438_vm3, %v12466_v12  ;;  %v7470_v52 = vsel %vm7247_vm1, %v7467_v20, %v7469_v21  ;;  %v7471_v56 = vrot.slane %v13306_v23, 1  ;;  %12803 = vmatprep.subr.bf16.mxu1 %v15011_v16  ;;  %v8799_v34 = vmax.f32 %v8671_v9, 0.0  ;;  %v8672_v10 = vadd.f32 %v17817_v60, %v8537_v40  ;;  %v19979_v9 = vld [vmem:[#allocation98_spill] sm:$0xff] }
 0x789   : > { %12470 = vmatprep.mubr.msk.bf16.mxu0 %vm17027_vm9, %v19975_v33  ;;  %v8673_v12 = vadd.f32 %v17817_v60, %v8538_v49  ;;  %v7747_v15 = vadd.f32 %v17946_v30, %v7470_v52  ;;  %v8129_v20 = vsel %vm7904_vm0, %v8126_v25, %v8128_v42  ;;  %v7026_v54 = vpop.f32.mrb[24].mxu1  ;;  %13174 = vmatpush3.bf16.msra.mxu0 %v15033_v26  ;;  %v5205_v23 = vpop.f32.mrb[24].mxu0  ;;  %v9414_v49 = vrot.slane %v17960_v17, 1  ;;  %v19978_v33 = vld [vmem:[#allocation97_spill] sm:$0xff] }
 0x78a   : > { %v7472_v0 = vsel %vm7247_vm1, %v7469_v21, %v7471_v56  ;;  %v13354_v36 = vadd.f32 %v7026_v54, %v19977_v2  ;;  %v7028_v18 = vpop.f32.mrb[25].mxu1  ;;  %13175 = vmatprep.subr.bf16.mxu0 %v15034_v28  ;;  %v13307_v16 = vadd.f32 %v5205_v23, %v19978_v33  ;;  %v5207_v5 = vpop.f32.mrb[25].mxu0  ;;  %v19980_v21 = vld [vmem:[#allocation99_spill] sm:$0xff] }
 0x78b   : > { %v8801_v30 = vmax.f32 %v8673_v12, 0.0  ;;  %v8404_v52 = vadd.f32 %v8127_v37, %v7747_v15  ;;  %v7748_v25 = vadd.f32 %v13303_v43, %v7472_v0  ;;  %v7029_v47 = vpop.f32.mrb[26].mxu1  ;;  %v13308_v22 = vadd.f32 %v5207_v5, %v19979_v9  ;;  %v5209_v54 = vpop.f32.mrb[26].mxu0  ;;  %v9001_v18 = vld [vmem:[#allocation2 + $0x190] ss:$2 sm:$0xff]  ;;  %12804 = vmatpush3.bf16.msra.mxu1 %v15012_v11  ;;  %v19981_v0 = vld [vmem:[#allocation100_spill] sm:$0xff] }
 0x78c   : > { %v8130_v26 = vrot.slane %v13354_v36, 2  ;;  %v18042_v24 = vadd.f32 %v7029_v47, %v19980_v21  ;;  %v7031_v2 = vpop.f32.mrb[27].mxu1  ;;  %v15014_v43 = vld [vmem:[%s19478_s4 + $0x90] sm:$0xff]   ;;  %v18049_v40 = vadd.f32 %v5209_v54, %v19981_v0  ;;  %v5211_v36 = vpop.f32.mrb[27].mxu0  ;;  %12805 = vmatprep.subr.bf16.mxu1 %v15013_v39  ;;  %v15015_v47 = vld [vmem:[%s19478_s4 + $0xd8] sm:$0xff]  }
 0x78d   : > { %v8875_v37 = vmax.f32 %v8799_v34, %v8801_v30  ;;  %v8539_v12 = vmul.f32 %v17736_v58, %v8404_v52  ;;  %v8405_v15 = vadd.f32 %v8129_v20, %v7748_v25  ;;  %v9065_v23 = vld [vmem:[#allocation2 + $0x191] ss:$2 sm:$0xff]  ;;  %v7473_v33 = vrot.slane %v13308_v22, 1  ;;  %13176 = vmatpush3.bf16.msra.mxu0 %v15034_v28 }
 0x78e   : > { %v8131_v11 = vsel %vm7904_vm0, %v8128_v42, %v8130_v26  ;;  %v8132_v5 = vrot.slane %v18042_v24, 2  ;;  %v19982_v9 = vld [vmem:[#allocation101_spill] sm:$0xff]  ;;  %v19983_v30 = vpack.c.bf16 %v16874_v13, %v16863_v31  ;;  %v18063_v39 = vmax.f32 %v9001_v18, %v9065_v23  ;;  %v15016_v24 = vld [vmem:[%s19478_s4 + $0x98] sm:$0xff]  }
 0x78f   : > { %v13310_v34 = vadd.f32 %v5211_v36, %v19982_v9  ;;  %8939 = vst [vmem:[#allocation2 + $0x1a0] sm:$0xff] %v8875_v37  ;;  %v8674_v20 = vadd.f32 %v17817_v60, %v8539_v12  ;;  %v7474_v52 = vsel %vm7247_vm1, %v7471_v56, %v7473_v33  ;;  %12806 = vmatpush3.bf16.msra.mxu1 %v15014_v43  ;;  %v8800_v28 = vmax.f32 %v8672_v10, 0.0  ;;  %v15017_v56 = vld [vmem:[%s19478_s4 + $0xe0] sm:$0xff]  }
 0x790   : > { %12473 = vmatmul.mubr.msk.bf16.gmra.mrb[96].mxu0 %vm17019_vm6, %v19983_v30  ;;  %v8133_v42 = vsel %vm7904_vm0, %v8130_v26, %v8132_v5  ;;  %v7749_v13 = vadd.f32 %v18006_v27, %v7474_v52  ;;  %v9245_v21 = vrot.slane %v18063_v39, 7  ;;  %12807 = vmatprep.subr.bf16.mxu1 %v15015_v47  ;;  %v18083_v10 = vsel %vm7247_vm1, %v16483_v14, %v9414_v49 }
 0x791   : > { %v7475_v22 = vrot.slane %v13310_v34, 1  ;;  %12476 = vmatprep.mubr.msk.bf16.mxu0 %vm17037_vm11, %v12475_v50  ;;  %v8802_v31 = vmax.f32 %v8674_v20, 0.0  ;;  %v7034_v25 = vpop.f32.mrb[28].mxu1  ;;  %v19984_v50 = vld [vmem:[#allocation102_spill] sm:$0xff]  ;;  %v5215_v2 = vpop.f32.mrb[28].mxu0  ;;  %v9416_v27 = vrot.slane %v18063_v39, 1  ;;  %v8540_v37 = vmul.f32 %v17736_v58, %v8405_v15 }
 0x792   : > { %v13356_v54 = vadd.f32 %v7034_v25, %v19984_v50  ;;  %v7036_v18 = vpop.f32.mrb[29].mxu1  ;;  %v8406_v12 = vadd.f32 %v8131_v11, %v7749_v13  ;;  %v5216_v36 = vpop.f32.mrb[29].mxu0  ;;  %v19986_v30 = vrot.slane %v17960_v17, 7  ;;  %v15018_v15 = vld [vmem:[%s19478_s4 + $0xa0] sm:$0xff]  }
 0x793   : > { %v7476_v26 = vsel %vm7247_vm1, %v7473_v33, %v7475_v22  ;;  %v8876_v43 = vmax.f32 %v8800_v28, %v8802_v31  ;;  %v7037_v23 = vpop.f32.mrb[30].mxu1  ;;  %v19985_v33 = vld [vmem:[#allocation103_spill] sm:$0xff]  ;;  %v5218_v34 = vpop.f32.mrb[30].mxu0  ;;  %12808 = vmatpush3.bf16.msra.mxu1 %v15016_v24  ;;  %v12478_v28 = vpack.c.bf16 %v19965_v41, %v16920_v61 }
 0x794   : > { %v7750_v0 = vadd.f32 %v13307_v16, %v7476_v26  ;;  %v8134_v47 = vrot.slane %v13356_v54, 2  ;;  %v13311_v9 = vadd.f32 %v5216_v36, %v19985_v33  ;;  %v7038_v20 = vpop.f32.mrb[31].mxu1  ;;  %v18093_v52 = vsel %vm9204_vm2, %v19986_v30, %v9245_v21  ;;  %v5219_v31 = vpop.f32.mrb[31].mxu0  ;;  %12809 = vmatprep.subr.bf16.mxu1 %v15017_v56  ;;  %v19987_v56 = vld [vmem:[#allocation135_spill] sm:$0xff]  ;;  %v19988_v54 = vld [vmem:[#allocation133_spill] sm:$0xff] }
 0x795   : > { %v18100_v16 = vsel %vm7247_vm1, %v9414_v49, %v9416_v27  ;;  %8940 = vst [vmem:[#allocation2 + $0x1a8] sm:$0xff] %v8876_v43  ;;  %v15020_v49 = vld [vmem:[%s19478_s4 + $0xe8] sm:$0xff]   ;;  %v19989_v2 = vpack.c.bf16 %v19987_v56, %v19988_v54  ;;  %v8541_v18 = vmul.f32 %v17736_v58, %v8406_v12 }
 0x796   : > { %v8407_v11 = vadd.f32 %v8133_v42, %v7750_v0  ;;  %v8135_v25 = vsel %vm7904_vm0, %v8132_v5, %v8134_v47  ;;  %v7477_v26 = vrot.slane %v13311_v9, 1  ;;  %v8675_v42 = vadd.f32 %v17817_v60, %v8540_v37  ;;  %v15021_v5 = vld [vmem:[%s19478_s4 + $0xa8] sm:$0xff]   ;;  %v19990_v47 = vld [vmem:[#allocation3_spill] sm:$0xff] }
 0x797   : > { %12810 = vmatpush3.bf16.msra.mxu1 %v15018_v15  ;;  %v19991_v33 = vrot.slane %v19990_v47, 1 }
 0x798   : > { %v8542_v50 = vmul.f32 %v17736_v58, %v8407_v11  ;;  %12479 = vmatmul.mubr.msk.bf16.gmra.mrb[100].mxu0 %vm17438_vm3, %v12478_v28  ;;  %v7478_v61 = vsel %vm7247_vm1, %v7475_v22, %v7477_v26  ;;  %12811 = vmatprep.subr.bf16.mxu1 %v15020_v49  ;;  %v15023_v22 = vld [vmem:[%s19478_s4 + $0xf0] sm:$0xff]   ;;  %v8803_v34 = vmax.f32 %v8675_v42, 0.0 }
 0x799   : > { %12482 = vmatprep.mubr.msk.bf16.mxu0 %vm17027_vm9, %v19989_v2  ;;  %v7751_v37 = vadd.f32 %v18049_v40, %v7478_v61  ;;  %v7041_v0 = vpop.f32.mrb[252].mxu1  ;;  %v5222_v36 = vpop.f32.mrb[252].mxu0  ;;  %v18138_v9 = vsel %vm7247_vm1, %v19991_v33, %v16483_v14  ;;  %v15024_v40 = vld [vmem:[%s19478_s4 + $0xb0] sm:$0xff]   ;;  %v19992_v2 = vld [vmem:[#allocation4_spill] sm:$0xff] }
 0x79a   : > { %v8677_v43 = vadd.f32 %v17817_v60, %v8542_v50  ;;  %v7043_v23 = vpop.f32.mrb[253].mxu1  ;;  %v5224_v30 = vpop.f32.mrb[253].mxu0  ;;  %v8136_v11 = vrot.slane %v7041_v0, 2  ;;  %v8676_v50 = vadd.f32 %v17817_v60, %v8541_v18 }
 0x79b   : > { %v8408_v20 = vadd.f32 %v8135_v25, %v7751_v37  ;;  %v7044_v15 = vpop.f32.mrb[254].mxu1  ;;  %v5226_v31 = vpop.f32.mrb[254].mxu0  ;;  %12812 = vmatpush3.bf16.msra.mxu1 %v15021_v5  ;;  %v12487_v25 = vpack.c.bf16 %v18138_v9, %v19992_v2  ;;  %v15026_v37 = vld [vmem:[%s19478_s4 + $0xf8] sm:$0xff]   ;;  %v7479_v0 = vrot.slane %v5224_v30, 1 }
 0x79c   : > { %v8805_v12 = vmax.f32 %v8677_v43, 0.0  ;;  %v8137_v28 = vrot.slane %v7044_v15, 2  ;;  %v7046_v49 = vpop.f32.mrb[255].mxu1  ;;  %v9003_v26 = vld [vmem:[#allocation2 + $0x1a0] ss:$2 sm:$0xff]  ;;  %v5228_v42 = vpop.f32.mrb[255].mxu0  ;;  %12813 = vmatprep.subr.bf16.mxu1 %v15023_v22 }
 0x79d   : > { %v8543_v56 = vmul.f32 %v17736_v58, %v8408_v20  ;;  %v9067_v43 = vld [vmem:[#allocation2 + $0x1a1] ss:$2 sm:$0xff]  ;;  %v7480_v33 = vrot.slane %v5228_v42, 1  ;;  %v15027_v30 = vld [vmem:[%s19478_s4 + $0xb8] sm:$0xff]  }
 0x79e   : > { %v8877_v61 = vmax.f32 %v8803_v34, %v8805_v12  ;;  %v8138_v23 = vsel %vm7904_vm0, %v8136_v11, %v8137_v28  ;;  %v18151_v5 = vmax.f32 %v9003_v26, %v9067_v43  ;;  %v19993_v34 = vpack.c.bf16 %v17100_v44, %v17089_v19  ;;  %v15029_v49 = vld [vmem:[%s19478_s4 + $0x1c0] sm:$0xff]  }
 0x79f   : > { %v8678_v18 = vadd.f32 %v17817_v60, %v8543_v56  ;;  %v7481_v22 = vsel %vm7247_vm1, %v7479_v0, %v7480_v33  ;;  %12814 = vmatpush3.bf16.msra.mxu1 %v15024_v40  ;;  %v8804_v19 = vmax.f32 %v8676_v50, 0.0 }
 0x7a0   : > { %8941 = vst [vmem:[#allocation2 + $0x1b0] sm:$0xff] %v8877_v61  ;;  %12485 = vmatmul.mubr.msk.bf16.gmra.mrb[104].mxu0 %vm17019_vm6, %v19993_v34  ;;  %v9247_v12 = vrot.slane %v18151_v5, 7  ;;  %v18165_v20 = vpack.c.bf16 %v18151_v5, %v18063_v39  ;;  %v7752_v15 = vadd.f32 %v7481_v22, %v5222_v36  ;;  %12815 = vmatprep.subr.bf16.mxu1 %v15026_v37 }
 0x7a1   : > { %12488 = vmatprep.mubr.msk.bf16.mxu0 %vm17037_vm11, %v12487_v25  ;;  %v8806_v44 = vmax.f32 %v8678_v18, 0.0  ;;  %v7049_v11 = vpop.f32.mrb[148].mxu1  ;;  %v5232_v50 = vpop.f32.mrb[148].mxu0  ;;  %v12490_v34 = vpack.c.bf16 %v19990_v47, %v19887_v8  ;;  %v19996_v8 = vpack.c.bf16 %v17475_v46, %v17372_v3 }
 0x7a2   : > { %19994 = vst [vmem:[#allocation45_spill] sm:$0xff] %v18165_v20  ;;  %v8139_v26 = vrot.slane %v7049_v11, 2  ;;  %v18178_v40 = vsel %vm9204_vm2, %v9245_v21, %v9247_v12  ;;  %12332 = vmatprep.mubr.msk.bf16.mxu1 %vm17438_vm3, %v18165_v20  ;;  %v7051_v36 = vpop.f32.mrb[149].mxu1  ;;  %v8409_v56 = vadd.f32 %v8138_v23, %v7752_v15  ;;  %v5234_v2 = vpop.f32.mrb[149].mxu0 }
 0x7a3   : > { %v8878_v61 = vmax.f32 %v8804_v19, %v8806_v44  ;;  %v18185_v42 = vpack.c.bf16 %v18178_v40, %v18093_v52  ;;  %v7052_v25 = vpop.f32.mrb[150].mxu1  ;;  %v7482_v37 = vrot.slane %v5234_v2, 1  ;;  %v5236_v21 = vpop.f32.mrb[150].mxu0  ;;  %12816 = vmatpush3.bf16.msra.mxu1 %v15027_v30 }
 0x7a4   : > { %v8140_v43 = vsel %vm7904_vm0, %v8137_v28, %v8139_v26  ;;  %v8141_v0 = vrot.slane %v7052_v25, 2  ;;  %v7054_v18 = vpop.f32.mrb[151].mxu1  ;;  %v5238_v23 = vpop.f32.mrb[151].mxu0  ;;  %13025 = vmatprep.subr.bf16.mxu1 %v15029_v49  ;;  %v8544_v15 = vmul.f32 %v17736_v58, %v8409_v56 }
 0x7a5   : > { %19995 = vst [vmem:[#allocation46_spill] sm:$0xff] %v18185_v42  ;;  %8942 = vst [vmem:[#allocation2 + $0x1b8] sm:$0xff] %v8878_v61  ;;  %12335 = vmatmul.mubr.msk.bf16.gmra.mrb[36].mxu1 %vm17481_vm15, %v18185_v42  ;;  %v7483_v22 = vsel %vm7247_vm1, %v7480_v33, %v7482_v37  ;;  %v7484_v28 = vrot.slane %v5238_v23, 1 }
 0x7a6   : > { %v8142_v19 = vsel %vm7904_vm0, %v8139_v26, %v8141_v0  ;;  %v7753_v44 = vadd.f32 %v7483_v22, %v5226_v31  ;;  %v19997_v31 = vrot.slane %v17532_v32, 1  ;;  %v8679_v22 = vadd.f32 %v17817_v60, %v8544_v15 }
 0x7a7   : > { %v7485_v30 = vsel %vm7247_vm1, %v7482_v37, %v7484_v28  ;;  %v19998_v15 = vpack.c.bf16 %v17340_v6, %v17296_v1 }
 0x7a8   : > { %12491 = vmatmul.mubr.msk.bf16.gmra.mrb[108].mxu0 %vm17438_vm3, %v12490_v34  ;;  %v8410_v11 = vadd.f32 %v8140_v43, %v7753_v44  ;;  %v7754_v49 = vadd.f32 %v7485_v30, %v5232_v50  ;;  %v18208_v2 = vsel %vm7247_vm1, %v19997_v31, %v16483_v14 }
 0x7a9   : > { %12494 = vmatprep.mubr.msk.bf16.mxu0 %vm17027_vm9, %v19996_v8  ;;  %v7057_v33 = vpop.f32.mrb[152].mxu1  ;;  %v5242_v26 = vpop.f32.mrb[152].mxu0  ;;  %v12499_v8 = vpack.c.bf16 %v18208_v2, %v17560_v29 }
 0x7aa   : > { %v8143_v36 = vrot.slane %v7057_v33, 2  ;;  %v7059_v61 = vpop.f32.mrb[153].mxu1  ;;  %v8411_v25 = vadd.f32 %v8142_v19, %v7754_v49  ;;  %v5244_v37 = vpop.f32.mrb[153].mxu0  ;;  %v8545_v31 = vmul.f32 %v17736_v58, %v8410_v11 }
 0x7ab   : > { %v7060_v46 = vpop.f32.mrb[154].mxu1  ;;  %v7486_v34 = vrot.slane %v5244_v37, 1  ;;  %v5246_v56 = vpop.f32.mrb[154].mxu0 }
 0x7ac   : > { %v8144_v18 = vsel %vm7904_vm0, %v8141_v0, %v8143_v36  ;;  %v8145_v23 = vrot.slane %v7060_v46, 2  ;;  %v7062_v43 = vpop.f32.mrb[155].mxu1  ;;  %v9005_v50 = vld [vmem:[#allocation2 + $0x1b0] ss:$2 sm:$0xff]  ;;  %v8546_v44 = vmul.f32 %v17736_v58, %v8411_v25  ;;  %v5248_v30 = vpop.f32.mrb[155].mxu0  ;;  %v8807_v25 = vmax.f32 %v8679_v22, 0.0 }
 0x7ad   : > { %v9069_v33 = vld [vmem:[#allocation2 + $0x1b1] ss:$2 sm:$0xff]  ;;  %v7487_v19 = vsel %vm7247_vm1, %v7484_v28, %v7486_v34  ;;  %v7488_v61 = vrot.slane %v5248_v30, 1  ;;  %v9418_v28 = vrot.slane %v18151_v5, 1 }
 0x7ae   : > { %v8146_v49 = vsel %vm7904_vm0, %v8143_v36, %v8145_v23  ;;  %v18217_v0 = vmax.f32 %v9005_v50, %v9069_v33  ;;  %v8681_v37 = vadd.f32 %v17817_v60, %v8546_v44  ;;  %v7755_v46 = vadd.f32 %v7487_v19, %v5236_v21 }
 0x7af   : > { %v7489_v29 = vsel %vm7247_vm1, %v7486_v34, %v7488_v61  ;;  %v8680_v33 = vadd.f32 %v17817_v60, %v8545_v31  ;;  %v18248_v13 = vsel %vm7247_vm1, %v9416_v27, %v9418_v28 }
 0x7b0   : > { %12497 = vmatmul.mubr.msk.bf16.gmra.mrb[112].mxu0 %vm17019_vm6, %v19998_v15  ;;  %v19622_v36 = vrot.slane %v18217_v0, 1  ;;  %v9506_v11 = vrot.slane %v18217_v0, 7  ;;  %v8809_v43 = vmax.f32 %v8681_v37, 0.0  ;;  %v8412_v21 = vadd.f32 %v8144_v18, %v7755_v46 }
 0x7b1   : > { %12500 = vmatprep.mubr.msk.bf16.mxu0 %vm17037_vm11, %v12499_v8  ;;  %v7756_v50 = vadd.f32 %v7489_v29, %v5242_v26  ;;  %v7065_v44 = vpop.f32.mrb[156].mxu1  ;;  %v5252_v6 = vpop.f32.mrb[156].mxu0 }
 0x7b2   : > { %v8147_v1 = vrot.slane %v7065_v44, 2  ;;  %v7067_v30 = vpop.f32.mrb[157].mxu1  ;;  %v18235_v34 = vsel %vm7247_vm1, %v9418_v28, %v19622_v36  ;;  %v18240_v8 = vsel %vm9204_vm2, %v9247_v12, %v9506_v11  ;;  %v8879_v22 = vmax.f32 %v8807_v25, %v8809_v43  ;;  %v5254_v19 = vpop.f32.mrb[157].mxu0 }
 0x7b3   : > { %v8547_v18 = vmul.f32 %v17736_v58, %v8412_v21  ;;  %v8413_v26 = vadd.f32 %v8146_v49, %v7756_v50  ;;  %v7068_v37 = vpop.f32.mrb[158].mxu1  ;;  %v7490_v15 = vrot.slane %v5254_v19, 1  ;;  %v5256_v44 = vpop.f32.mrb[158].mxu0  ;;  %v12502_v58 = vpack.c.bf16 %v17532_v32, %v17446_v45  ;;  %v20001_v19 = vld [vmem:[#allocation30_spill] sm:$0xff] }
 0x7b4   : > { %v8148_v46 = vsel %vm7904_vm0, %v8145_v23, %v8147_v1  ;;  %v8149_v29 = vrot.slane %v7068_v37, 2  ;;  %v7070_v30 = vpop.f32.mrb[159].mxu1  ;;  %8943 = vst [vmem:[#allocation2 + $0x1c0] sm:$0xff] %v8879_v22  ;;  %v5258_v49 = vpop.f32.mrb[159].mxu0  ;;  %v18255_v31 = vpack.c.bf16 %v18235_v34, %v18248_v13  ;;  %v18259_v23 = vsel %vm9204_vm2, %v9506_v11, %v16471_v48 }
 0x7b5   : > { %v8682_v12 = vadd.f32 %v17817_v60, %v8547_v18  ;;  %19999 = vst [vmem:[#allocation134_spill] sm:$0xff] %v18259_v23  ;;  %v7491_v25 = vsel %vm7247_vm1, %v7488_v61, %v7490_v15  ;;  %v7492_v28 = vrot.slane %v5258_v49, 1  ;;  %v8808_v21 = vmax.f32 %v8680_v33, 0.0  ;;  %v20000_v18 = vld [vmem:[#allocation34_spill] sm:$0xff]  ;;  %v18278_v33 = vld [vmem:[%s19476_s2] ss:$0 sm:$0xff] }
 0x7b6   : > { %v8150_v27 = vsel %vm7904_vm0, %v8147_v1, %v8149_v29  ;;  %v7757_v45 = vadd.f32 %v7491_v25, %v5246_v56  ;;  %v20002_v61 = vpack.c.bf16 %v20000_v18, %v20001_v19  ;;  %v8548_v56 = vmul.f32 %v18278_v33, %v8413_v26 }
 0x7b7   : > { %v8810_v50 = vmax.f32 %v8682_v12, 0.0  ;;  %v7493_v11 = vsel %vm7247_vm1, %v7490_v15, %v7492_v28 }
 0x7b8   : > { %12503 = vmatmul.mubr.msk.bf16.gmra.mrb[116].mxu0 %vm17438_vm3, %v12502_v58  ;;  %v8414_v37 = vadd.f32 %v8148_v46, %v7757_v45  ;;  %v7758_v30 = vadd.f32 %v7493_v11, %v5252_v6  ;;  %v8683_v45 = vadd.f32 %v17817_v60, %v8548_v56 }
 0x7b9   : > { %12506 = vmatprep.mubr.msk.bf16.mxu0 %vm17027_vm9, %v20002_v61  ;;  %v8880_v1 = vmax.f32 %v8808_v21, %v8810_v50  ;;  %v7073_v12 = vpop.f32.mrb[160].mxu1  ;;  %v5262_v49 = vpop.f32.mrb[160].mxu0  ;;  %v20003_v61 = vld [vmem:[#allocation38_spill] sm:$0xff] }
 0x7ba   : > { %v8151_v58 = vrot.slane %v7073_v12, 2  ;;  %v7075_v15 = vpop.f32.mrb[161].mxu1  ;;  %v8415_v25 = vadd.f32 %v8150_v27, %v7758_v30  ;;  %v5264_v18 = vpop.f32.mrb[161].mxu0  ;;  %v20004_v21 = vrot.slane %v20003_v61, 1  ;;  %v8549_v36 = vmul.f32 %v18278_v33, %v8414_v37 }
 0x7bb   : > { %8944 = vst [vmem:[#allocation2 + $0x1c8] sm:$0xff] %v8880_v1  ;;  %v7076_v22 = vpop.f32.mrb[162].mxu1  ;;  %v7494_v24 = vrot.slane %v5264_v18, 1  ;;  %v5266_v46 = vpop.f32.mrb[162].mxu0  ;;  %v20005_v15 = vld [vmem:[#allocation40_spill] sm:$0xff]  ;;  %v20006_v18 = vld [vmem:[#allocation25_spill] sm:$0xff] }
 0x7bc   : > { %v18285_v50 = vsel %vm7247_vm1, %v20004_v21, %v16483_v14  ;;  %v8152_v43 = vsel %vm7904_vm0, %v8149_v29, %v8151_v58  ;;  %v8153_v26 = vrot.slane %v7076_v22, 2  ;;  %v7078_v6 = vpop.f32.mrb[163].mxu1  ;;  %v8550_v11 = vmul.f32 %v18278_v33, %v8415_v25  ;;  %v5268_v1 = vpop.f32.mrb[163].mxu0 }
 0x7bd   : > { %v7495_v27 = vsel %vm7247_vm1, %v7492_v28, %v7494_v24  ;;  %v7496_v12 = vrot.slane %v5268_v1, 1  ;;  %v12511_v21 = vpack.c.bf16 %v18285_v50, %v20005_v15  ;;  %v20007_v6 = vld [vmem:[#allocation24_spill] sm:$0xff]  ;;  %v8811_v28 = vmax.f32 %v8683_v45, 0.0 }
 0x7be   : > { %v8154_v30 = vsel %vm7904_vm0, %v8151_v58, %v8153_v26  ;;  %v8685_v29 = vadd.f32 %v17817_v60, %v8550_v11  ;;  %v7759_v22 = vadd.f32 %v7495_v27, %v5256_v44  ;;  %v20008_v23 = vpack.c.bf16 %v20006_v18, %v20007_v6 }
 0x7bf   : > { %v7497_v56 = vsel %vm7247_vm1, %v7494_v24, %v7496_v12  ;;  %v8684_v27 = vadd.f32 %v17817_v60, %v8549_v36 }
 0x7c0   : > { %12509 = vmatmul.mubr.msk.bf16.gmra.mrb[120].mxu0 %vm17019_vm6, %v20008_v23  ;;  %v8813_v58 = vmax.f32 %v8685_v29, 0.0  ;;  %v8416_v25 = vadd.f32 %v8152_v43, %v7759_v22  ;;  %v7760_v1 = vadd.f32 %v7497_v56, %v5262_v49 }
 0x7c1   : > { %12512 = vmatprep.mubr.msk.bf16.mxu0 %vm17037_vm11, %v12511_v21  ;;  %v7081_v15 = vpop.f32.mrb[164].mxu1  ;;  %v5272_v42 = vpop.f32.mrb[164].mxu0 }
 0x7c2   : > { %v8155_v37 = vrot.slane %v7081_v15, 2  ;;  %v7083_v11 = vpop.f32.mrb[165].mxu1  ;;  %v9007_v44 = vld [vmem:[#allocation2 + $0x1c0] ss:$2 sm:$0xff]  ;;  %v8881_v18 = vmax.f32 %v8811_v28, %v8813_v58  ;;  %v8551_v6 = vmul.f32 %v18278_v33, %v8416_v25  ;;  %v8417_v23 = vadd.f32 %v8154_v30, %v7760_v1  ;;  %v5274_v20 = vpop.f32.mrb[165].mxu0 }
 0x7c3   : > { %v7084_v24 = vpop.f32.mrb[166].mxu1  ;;  %v9071_v32 = vld [vmem:[#allocation2 + $0x1c1] ss:$2 sm:$0xff]  ;;  %v7498_v45 = vrot.slane %v5274_v20, 1  ;;  %v5276_v43 = vpop.f32.mrb[166].mxu0  ;;  %v12517_v30 = vpack.c.bf16 %v18248_v13, %v18100_v16  ;;  %v8812_v1 = vmax.f32 %v8684_v27, 0.0 }
 0x7c4   : > { %v8156_v21 = vsel %vm7904_vm0, %v8153_v26, %v8155_v37  ;;  %v8157_v29 = vrot.slane %v7084_v24, 2  ;;  %v7086_v49 = vpop.f32.mrb[167].mxu1  ;;  %v18307_v22 = vmax.f32 %v9007_v44, %v9071_v32  ;;  %8945 = vst [vmem:[#allocation2 + $0x1d0] sm:$0xff] %v8881_v18  ;;  %v8686_v56 = vadd.f32 %v17817_v60, %v8551_v6  ;;  %v20009_v15 = vld [vmem:[#allocation32_spill] sm:$0xff]  ;;  %v5278_v28 = vpop.f32.mrb[167].mxu0 }
 0x7c5   : > { %v12514_v36 = vpack.c.bf16 %v20003_v61, %v20009_v15  ;;  %v7499_v58 = vsel %vm7247_vm1, %v7496_v12, %v7498_v45  ;;  %v7500_v20 = vrot.slane %v5278_v28, 1  ;;  %v20010_v28 = vrot.slane %v18217_v0, 1 }
 0x7c6   : > { %v8158_v26 = vsel %vm7904_vm0, %v8155_v37, %v8157_v29  ;;  %v9249_v25 = vrot.slane %v18307_v22, 7  ;;  %v8814_v32 = vmax.f32 %v8686_v56, 0.0  ;;  %v7761_v11 = vadd.f32 %v7499_v58, %v5266_v46 }
 0x7c7   : > { %v12337_v60 = vpack.c.bf16 %v18307_v22, %v19731_v57  ;;  %v7501_v44 = vsel %vm7247_vm1, %v7498_v45, %v7500_v20  ;;  %v8552_v46 = vmul.f32 %v18278_v33, %v8417_v23  ;;  %v18339_v23 = vsel %vm7247_vm1, %v20010_v28, %v16483_v14 }
 0x7c8   : > { %12515 = vmatmul.mubr.msk.bf16.gmra.mrb[124].mxu0 %vm17438_vm3, %v12514_v36  ;;  %v18326_v13 = vsel %vm9204_vm2, %v16471_v48, %v9249_v25  ;;  %v8882_v12 = vmax.f32 %v8812_v1, %v8814_v32  ;;  %v8418_v37 = vadd.f32 %v8156_v21, %v7761_v11  ;;  %v7762_v27 = vadd.f32 %v7501_v44, %v5272_v42  ;;  %v18349_v1 = vld [vmem:[%s19477_s3] ss:$0 sm:$0xff] }
 0x7c9   : > { %12518 = vmatprep.mubr.msk.bf16.mxu0 %vm17027_vm9, %v12517_v30  ;;  %12338 = vmatprep.mubr.msk.bf16.mxu1 %vm17378_vm4, %v12337_v60  ;;  %v7089_v18 = vpop.f32.mrb[168].mxu1  ;;  %v12340_v6 = vpack.c.bf16 %v18326_v13, %v16471_v48  ;;  %v5282_v45 = vpop.f32.mrb[168].mxu0  ;;  %v8687_v32 = vadd.f32 %v18349_v1, %v8552_v46  ;;  %vm11646_vm4 = vcmask 1043459  }
 0x7ca   : > { %v8159_v24 = vrot.slane %v7089_v18, 2  ;;  %v7091_v49 = vpop.f32.mrb[169].mxu1  ;;  %8946 = vst [vmem:[#allocation2 + $0x1d8] sm:$0xff] %v8882_v12  ;;  %v8419_v56 = vadd.f32 %v8158_v26, %v7762_v27  ;;  %v5284_v15 = vpop.f32.mrb[169].mxu0  ;;  %v12520_v26 = vpack.c.bf16 %v18063_v39, %v17960_v17  ;;  %v12523_v27 = vpack.c.bf16 %v18339_v23, %v18235_v34 }
 0x7cb   : > { %v7092_v36 = vpop.f32.mrb[170].mxu1  ;;  %12341 = vmatmul.mubr.msk.bf16.gmra.mrb[220].mxu1 %vm17422_vm13, %v12340_v6  ;;  %v7502_v42 = vrot.slane %v5284_v15, 1  ;;  %v5286_v30 = vpop.f32.mrb[170].mxu0  ;;  %v8553_v17 = vmul.f32 %v18278_v33, %v8418_v37 }
 0x7cc   : > { %v8160_v63 = vsel %vm7904_vm0, %v8157_v29, %v8159_v24  ;;  %v8161_v21 = vrot.slane %v7092_v36, 2  ;;  %v7094_v58 = vpop.f32.mrb[171].mxu1  ;;  %v8554_v11 = vmul.f32 %v18278_v33, %v8419_v56  ;;  %v5288_v29 = vpop.f32.mrb[171].mxu0 }
 0x7cd   : > { %v7503_v60 = vsel %vm7247_vm1, %v7500_v20, %v7502_v42  ;;  %v7504_v12 = vrot.slane %v5288_v29, 1  ;;  %v8815_v20 = vmax.f32 %v8687_v32, 0.0  ;;  %v8688_v28 = vadd.f32 %v18349_v1, %v8553_v17 }
 0x7ce   : > { %v8162_v44 = vsel %vm7904_vm0, %v8159_v24, %v8161_v21  ;;  %v8689_v39 = vadd.f32 %v18349_v1, %v8554_v11  ;;  %v7763_v18 = vadd.f32 %v7503_v60, %v5276_v43  ;;  %v12526_v17 = vpack.c.bf16 %v18217_v0, %v18151_v5 }
 0x7cf   : > { %v7505_v46 = vsel %vm7247_vm1, %v7502_v42, %v7504_v12 }
 0x7d0   : > { %12521 = vmatmul.mubr.msk.bf16.gmra.mrb[128].mxu0 %vm17019_vm6, %v12520_v26  ;;  %v8817_v6 = vmax.f32 %v8689_v39, 0.0  ;;  %v8420_v24 = vadd.f32 %v8160_v63, %v7763_v18  ;;  %v7764_v49 = vadd.f32 %v7505_v46, %v5282_v45 }
 0x7d1   : > { %12524 = vmatprep.mubr.msk.bf16.mxu0 %vm17037_vm11, %v12523_v27  ;;  %v7097_v56 = vpop.f32.mrb[172].mxu1  ;;  %v5292_v34 = vpop.f32.mrb[172].mxu0  ;;  %v9009_v37 = vld [vmem:[#allocation2 + $0x1d0] ss:$2 sm:$0xff]  ;;  %v9073_v29 = vld [vmem:[#allocation2 + $0x1d1] ss:$2 sm:$0xff] }
 0x7d2   : > { %v8163_v15 = vrot.slane %v7097_v56, 2  ;;  %v7099_v36 = vpop.f32.mrb[173].mxu1  ;;  %v8883_v43 = vmax.f32 %v8815_v20, %v8817_v6  ;;  %v8555_v58 = vmul.f32 %v18278_v33, %v8420_v24  ;;  %v8421_v26 = vadd.f32 %v8162_v44, %v7764_v49  ;;  %v5294_v11 = vpop.f32.mrb[173].mxu0 }
 0x7d3   : > { %v7100_v42 = vpop.f32.mrb[174].mxu1  ;;  %v7506_v32 = vrot.slane %v5294_v11, 1  ;;  %v5296_v63 = vpop.f32.mrb[174].mxu0  ;;  %v18367_v39 = vmax.f32 %v9009_v37, %v9073_v29  ;;  %v9422_v44 = vrot.slane %v18307_v22, 1  ;;  %v8816_v49 = vmax.f32 %v8688_v28, 0.0 }
 0x7d4   : > { %v8164_v60 = vsel %vm7904_vm0, %v8161_v21, %v8163_v15  ;;  %v8165_v27 = vrot.slane %v7100_v42, 2  ;;  %v7102_v45 = vpop.f32.mrb[175].mxu1  ;;  %8947 = vst [vmem:[#allocation2 + $0x1e0] sm:$0xff] %v8883_v43  ;;  %v8690_v18 = vadd.f32 %v18349_v1, %v8555_v58  ;;  %v5298_v46 = vpop.f32.mrb[175].mxu0 }
 0x7d5   : > { %v7507_v20 = vsel %vm7247_vm1, %v7504_v12, %v7506_v32  ;;  %v7508_v21 = vrot.slane %v5298_v46, 1  ;;  %v9251_v24 = vrot.slane %v18367_v39, 7  ;;  %v9424_v12 = vrot.slane %v18367_v39, 1 }
 0x7d6   : > { %v8166_v6 = vsel %vm7904_vm0, %v8163_v15, %v8165_v27  ;;  %v8818_v56 = vmax.f32 %v8690_v18, 0.0  ;;  %v7765_v36 = vadd.f32 %v7507_v20, %v5286_v30  ;;  %v8556_v15 = vmul.f32 %v18278_v33, %v8421_v26 }
 0x7d7   : > { %v7509_v37 = vsel %vm7247_vm1, %v7506_v32, %v7508_v21  ;;  %v18382_v5 = vsel %vm9204_vm2, %v9249_v25, %v9251_v24  ;;  %v18388_v45 = vsel %vm7247_vm1, %v16483_v14, %v9422_v44  ;;  %v18391_v32 = vsel %vm7247_vm1, %v9422_v44, %v9424_v12 }
 0x7d8   : > { %12527 = vmatmul.mubr.msk.bf16.gmra.mrb[132].mxu0 %vm17438_vm3, %v12526_v17  ;;  %v8884_v43 = vmax.f32 %v8816_v49, %v8818_v56  ;;  %v8422_v58 = vadd.f32 %v8164_v60, %v7765_v36  ;;  %v7766_v11 = vadd.f32 %v7509_v37, %v5292_v34  ;;  %v8691_v56 = vadd.f32 %v18349_v1, %v8556_v15 }
 0x7d9   : > { %v7105_v28 = vpop.f32.mrb[176].mxu1  ;;  %v5302_v30 = vpop.f32.mrb[176].mxu0 }
 0x7da   : > { %v8167_v42 = vrot.slane %v7105_v28, 2  ;;  %v7107_v29 = vpop.f32.mrb[177].mxu1  ;;  %8948 = vst [vmem:[#allocation2 + $0x1e8] sm:$0xff] %v8884_v43  ;;  %v8423_v18 = vadd.f32 %v8166_v6, %v7766_v11  ;;  %v5303_v17 = vpop.f32.mrb[177].mxu0  ;;  %v8557_v43 = vmul.f32 %v18278_v33, %v8422_v58  ;;  %v8819_v28 = vmax.f32 %v8691_v56, 0.0 }
 0x7db   : > { %v7108_v26 = vpop.f32.mrb[178].mxu1  ;;  %v7510_v46 = vrot.slane %v5303_v17, 1  ;;  %v5305_v20 = vpop.f32.mrb[178].mxu0 }
 0x7dc   : > { %v8168_v60 = vsel %vm7904_vm0, %v8165_v27, %v8167_v42  ;;  %v7109_v49 = vpop.f32.mrb[179].mxu1  ;;  %v8558_v44 = vmul.f32 %v18278_v33, %v8423_v18  ;;  %v5306_v36 = vpop.f32.mrb[179].mxu0  ;;  %v8692_v17 = vadd.f32 %v18349_v1, %v8557_v43  ;;  %vm20090_vm0 = vmmov 1  }
 0x7dd   : > { %v7511_v37 = vsel %vm7247_vm1, %v7508_v21, %v7510_v46 }
 0x7de   : > { %v8693_v6 = vadd.f32 %v18349_v1, %v8558_v44  ;;  %v7767_v11 = vadd.f32 %v7511_v37, %v5296_v63 }
 0x7e0   : > { %v8821_v30 = vmax.f32 %v8693_v6, 0.0  ;;  %v8424_v29 = vadd.f32 %v8168_v60, %v7767_v11 }
 0x7e1   : > { %v12705_v26 = vpop.f32.mrb[32].mxu0  ;;  %v9011_v27 = vld [vmem:[#allocation2 + $0x1e0] ss:$2 sm:$0xff]  ;;  %v9075_v42 = vld [vmem:[#allocation2 + $0x1e1] ss:$2 sm:$0xff] }
 0x7e2   : > { %v8885_v20 = vmax.f32 %v8819_v28, %v8821_v30  ;;  %v8559_v15 = vmul.f32 %v18278_v33, %v8424_v29  ;;  %v12706_v18 = vpop.f32.mrb[33].mxu0  ;;  %v18405_v49 = vmax.f32 %v9011_v27, %v9075_v42  ;;  %v8820_v33 = vmax.f32 %v8692_v17, 0.0  ;;  %v20011_v29 = vld [vmem:[#allocation106_spill] sm:$0xff] }
 0x7e3   : > { %v18407_v21 = vadd.f32 %v12706_v18, %v12705_v26  ;;  %v12708_v58 = vpop.f32.mrb[34].mxu0  ;;  %v12532_v30 = vpack.c.bf16 %v18367_v39, %v18307_v22  ;;  %v20012_v26 = vld [vmem:[#allocation105_spill] sm:$0xff] }
 0x7e4   : > { %8949 = vst [vmem:[#allocation2 + $0x1f0] sm:$0xff] %v8885_v20  ;;  %v8694_v63 = vadd.f32 %v18349_v1, %v8559_v15  ;;  %v12709_v46 = vpop.f32.mrb[35].mxu0  ;;  %v9253_v60 = vrot.slane %v18405_v49, 7  ;;  %v18413_v56 = vpack.c.bf16 %v18405_v49, %v18367_v39  ;;  %v9426_v44 = vrot.slane %v18405_v49, 1  ;;  %v15030_v20 = vld [vmem:[%s19478_s4 + $0x180] sm:$0xff]   ;;  %v15035_v15 = vld [vmem:[%s19478_s4 + $0x1c8] sm:$0xff]  }
 0x7e5   : > { %v18416_v36 = vadd.f32 %v12709_v46, %v12708_v58  ;;  %v20013_v27 = vpack.c.bf16 %v20011_v29, %v20012_v26  ;;  %v20014_v58 = vld [vmem:[#allocation108_spill] sm:$0xff] }
 0x7e6   : > { %v8822_v37 = vmax.f32 %v8694_v63, 0.0  ;;  %v18419_v43 = vsel %vm9204_vm2, %v9251_v24, %v9253_v60  ;;  %12344 = vmatprep.mubr.msk.bf16.mxu1 %vm17438_vm3, %v18413_v56  ;;  %v18425_v1 = vsel %vm7247_vm1, %v9424_v12, %v9426_v44  ;;  %v20015_v63 = vld [vmem:[#allocation107_spill] sm:$0xff]  ;;  %v15036_v29 = vld [vmem:[%s19478_s4 + $0x188] sm:$0xff]  }
 0x7e7   : > { %v18429_v6 = vpack.c.bf16 %v18419_v43, %v18382_v5  ;;  %v12529_v11 = vpack.c.bf16 %v18425_v1, %v18391_v32  ;;  %v20016_v46 = vpack.c.bf16 %v20014_v58, %v20015_v63 }
 0x7e8   : > { %v8886_v28 = vmax.f32 %v8820_v33, %v8822_v37 }
 0x7e9   : > { %v12711_v24 = vpop.f32.mrb[36].mxu0  ;;  %12347 = vmatmul.mubr.msk.bf16.gmra.mrb[224].mxu1 %vm17481_vm15, %v18429_v6  ;;  %12530 = vmatprep.mubr.msk.bf16.mxu0 %vm17027_vm9, %v12529_v11 }
 0x7ea   : > { %8950 = vst [vmem:[#allocation2 + $0x1f8] sm:$0xff] %v8886_v28  ;;  %v12712_v12 = vpop.f32.mrb[37].mxu0  ;;  %12350 = vmatprep.mubr.msk.bf16.mxu1 %vm17422_vm13, %v20013_v27  ;;  %12533 = vmatmul.mubr.msk.bf16.gmra.mrb[136].mxu0 %vm17019_vm6, %v12532_v30  ;;  %v20017_v28 = vld [vmem:[#allocation114_spill] sm:$0xff]  ;;  %v20018_v30 = vld [vmem:[#allocation113_spill] sm:$0xff] }
 0x7eb   : > { %v18447_v22 = vadd.f32 %v12712_v12, %v12711_v24  ;;  %v12714_v39 = vpop.f32.mrb[38].mxu0  ;;  %v20019_v24 = vpack.c.bf16 %v20017_v28, %v20018_v30 }
 0x7ec   : > { %v12715_v42 = vpop.f32.mrb[39].mxu0 }
 0x7ed   : > { %v18449_v17 = vadd.f32 %v12715_v42, %v12714_v39  ;;  %v15037_v39 = vld [vmem:[%s19478_s4 + $0x1d0] sm:$0xff]  }
 0x7f1   : > { %v12717_v18 = vpop.f32.mrb[220].mxu0  ;;  %12353 = vmatmul.mubr.msk.bf16.vlgmr.msra.gmra.mrb[228].mxu1 %vm17027_vm9, %v20016_v46  ;;  %v9013_v33 = vld [vmem:[#allocation2 + $0x1f0] ss:$2 sm:$0xff]  ;;  %v9077_v37 = vld [vmem:[#allocation2 + $0x1f1] ss:$2 sm:$0xff] }
 0x7f2   : > { %v12718_v11 = vpop.f32.mrb[221].mxu0  ;;  %12356 = vmatprep.mubr.msk.bf16.mxu1 %vm17481_vm15, %v20019_v24  ;;  %13026 = vmatpush3.bf16.msra.mxu1 %v15030_v20  ;;  %v18467_v12 = vmax.f32 %v9013_v33, %v9077_v37 }
 0x7f3   : > { %v18472_v26 = vadd.f32 %v12718_v11, %v12717_v18  ;;  %v12720_v27 = vpop.f32.mrb[222].mxu0  ;;  %13027 = vmatprep.subr.bf16.mxu1 %v15035_v15  ;;  %v20031_v11 = vld [vmem:[#allocation57_spill] sm:$0xff] }
 0x7f4   : > { %v12721_v42 = vpop.f32.mrb[223].mxu0  ;;  %v9428_v58 = vrot.slane %v18467_v12, 1  ;;  %v9508_v63 = vrot.slane %v18467_v12, 7  ;;  %v12538_v30 = vpack.c.bf16 %v18467_v12, %v18405_v49 }
 0x7f5   : > { %v18479_v20 = vadd.f32 %v12721_v42, %v12720_v27  ;;  %v20023_v42 = vld [vmem:[#allocation47_spill] sm:$0xff] }
 0x7f6   : > { %v18482_v46 = vsel %vm7247_vm1, %v9426_v44, %v9428_v58  ;;  %v18486_v18 = vsel %vm7247_vm1, %v9428_v58, %v16483_v14  ;;  %13028 = vmatpush3.bf16.msra.mxu1 %v15036_v29  ;;  %v18489_v15 = vsel %vm9204_vm2, %v9253_v60, %v9508_v63  ;;  %v18493_v33 = vsel %vm9204_vm2, %v9508_v63, %v16471_v48  ;;  %v15038_v44 = vld [vmem:[%s19478_s4 + $0x190] sm:$0xff]   ;;  %v15039_v60 = vld [vmem:[%s19478_s4 + $0x1d8] sm:$0xff]   ;;  %v20021_v29 = vld [vmem:[#allocation112_spill] sm:$0xff] }
 0x7f7   : > { %20020 = vst [vmem:[#allocation60_spill] sm:$0xff] %v18493_v33  ;;  %v12535_v37 = vpack.c.bf16 %v18486_v18, %v18482_v46  ;;  %13029 = vmatprep.subr.bf16.mxu1 %v15037_v39  ;;  %v20022_v39 = vld [vmem:[#allocation49_spill] sm:$0xff]  ;;  %vm18799_vm1 = vmpackc.low %vm20090_vm0, %vm9311_vm12  ;;  %vm11650_vm12 = vcmask 1045509  }
 0x7f8   : > { %v20024_v58 = vpack.c.bf16 %v20022_v39, %v20023_v42  ;;  %v15041_v39 = vld [vmem:[%s19478_s4 + $0x1e0] sm:$0xff]  }
 0x7f9   : > { %v12723_v24 = vpop.f32.mrb[224].mxu0  ;;  %12359 = vmatmul.mubr.msk.bf16.gmra.mrb[232].mxu1 %vm17037_vm11, %v20021_v29  ;;  %12536 = vmatprep.mubr.msk.bf16.mxu0 %vm17037_vm11, %v12535_v37  ;;  %v15040_v37 = vld [vmem:[%s19478_s4 + $0x198] sm:$0xff]  }
 0x7fa   : > { %v12724_v27 = vpop.f32.mrb[225].mxu0  ;;  %12362 = vmatprep.mubr.msk.bf16.mxu1 %vm17422_vm13, %v20024_v58  ;;  %12539 = vmatmul.mubr.msk.bf16.gmra.mrb[140].mxu0 %vm17438_vm3, %v12538_v30  ;;  %v15042_v30 = vld [vmem:[%s19478_s4 + $0x1a0] sm:$0xff]  }
 0x7fb   : > { %v18521_v49 = vadd.f32 %v12724_v27, %v12723_v24  ;;  %v12726_v63 = vpop.f32.mrb[226].mxu0  ;;  %13177 = vmatprep.mubr.msk.bf16.mxu0 %vm17027_vm9, %v20021_v29  ;;  %13030 = vmatpush3.bf16.msra.mxu1 %v15038_v44  ;;  %v20025_v24 = vld [vmem:[#allocation37_spill] sm:$0xff]  ;;  %v15043_v29 = vld [vmem:[%s19478_s4 + $0x1e8] sm:$0xff]   ;;  %v20028_v58 = vld [vmem:[#allocation55_spill] sm:$0xff] }
 0x7fc   : > { %v12727_v48 = vpop.f32.mrb[227].mxu0  ;;  %13031 = vmatprep.subr.bf16.mxu1 %v15039_v60  ;;  %v12640_v44 = vpack.c.bf16 %v16483_v14, %v20025_v24  ;;  %v20026_v27 = vld [vmem:[#allocation48_spill] sm:$0xff] }
 0x7fd   : > { %v18532_v55 = vadd.f32 %v12727_v48, %v12726_v63  ;;  %v20027_v42 = vpack.c.bf16 %v19954_v51, %v20026_v27  ;;  %v20029_v63 = vld [vmem:[#allocation53_spill] sm:$0xff]  ;;  %v15044_v51 = vld [vmem:[%s19478_s4 + $0x1a8] sm:$0xff]  }
 0x7ff   : > { %13032 = vmatpush3.bf16.msra.mxu1 %v15040_v37  ;;  %v20030_v37 = vpack.c.bf16 %v20028_v58, %v20029_v63 }
 0x800   : > { %13033 = vmatprep.subr.bf16.mxu1 %v15041_v39 }
 0x801   : > { %v12729_v60 = vpop.f32.mrb[228].mxu0  ;;  %12365 = vmatmul.mubr.msk.bf16.gmra.mrb[236].mxu1 %vm17027_vm9, %v20027_v42  ;;  %v15045_v42 = vld [vmem:[%s19478_s4 + $0x1f0] sm:$0xff]  }
 0x802   : > { %v12730_v48 = vpop.f32.mrb[229].mxu0  ;;  %12368 = vmatprep.mubr.msk.bf16.mxu1 %vm17481_vm15, %v20030_v37  ;;  %13178 = vmatmul.mubr.msk.bf16.vlgmr.msra.gmra.mrb[144].mxu0 %vm17037_vm11, %v12640_v44  ;;  %v15046_v44 = vld [vmem:[%s19478_s4 + $0x1b0] sm:$0xff]   ;;  %v20033_v37 = vld [vmem:[#allocation59_spill] sm:$0xff] }
 0x803   : > { %v18554_v39 = vadd.f32 %v12730_v48, %v12729_v60  ;;  %v12732_v24 = vpop.f32.mrb[230].mxu0  ;;  %13181 = vmatprep.mubr.msk.bf16.mxu0 %vm17027_vm9, %v20031_v11  ;;  %13034 = vmatpush3.bf16.msra.mxu1 %v15042_v30  ;;  %v12646_v30 = vpack.c.bf16 %v16483_v14, %v17919_v59  ;;  %v15047_v60 = vld [vmem:[%s19478_s4 + $0x1f8] sm:$0xff]  }
 0x804   : > { %v12733_v27 = vpop.f32.mrb[231].mxu0  ;;  %13035 = vmatprep.subr.bf16.mxu1 %v15043_v29 }
 0x805   : > { %v18565_v63 = vadd.f32 %v12733_v27, %v12732_v24  ;;  %v20034_v24 = vld [vmem:[#allocation58_spill] sm:$0xff] }
 0x807   : > { %20032 = vst [vmem:[#allocation61_spill] sm:$0xff] %v18565_v63  ;;  %13036 = vmatpush3.bf16.msra.mxu1 %v15044_v51  ;;  %v20035_v51 = vpack.c.bf16 %v20033_v37, %v20034_v24  ;;  %v20038_v24 = vld [vmem:[#allocation44_spill] sm:$0xff]  ;;  %v20043_v63 = vld [vmem:[#allocation126_spill] sm:$0xff] }
 0x808   : > { %13037 = vmatprep.subr.bf16.mxu1 %v15045_v42  ;;  %v20037_v42 = vld [vmem:[#allocation127_spill] sm:$0xff] }
 0x809   : > { %v12735_v29 = vpop.f32.mrb[232].mxu0  ;;  %12371 = vmatmul.mubr.msk.bf16.gmra.mrb[240].mxu1 %vm17037_vm11, %v20031_v11  ;;  %v15048_v11 = vld [vmem:[%s19478_s4 + $0x1b8] sm:$0xff]  }
 0x80a   : > { %v12736_v48 = vpop.f32.mrb[233].mxu0  ;;  %12374 = vmatprep.mubr.msk.bf16.mxu1 %vm17422_vm13, %v20035_v51  ;;  %13182 = vmatmul.mubr.msk.bf16.gmra.mrb[40].mxu0 %vm17037_vm11, %v12646_v30  ;;  %v12652_v30 = vpack.c.bf16 %v16483_v14, %v20038_v24  ;;  %v20040_v51 = vld [vmem:[#allocation116_spill] sm:$0xff] }
 0x80b   : > { %v18585_v59 = vadd.f32 %v12736_v48, %v12735_v29  ;;  %v12738_v27 = vpop.f32.mrb[234].mxu0  ;;  %13185 = vmatprep.mubr.msk.bf16.mxu0 %vm17027_vm9, %v20037_v42  ;;  %13038 = vmatpush3.bf16.msra.mxu1 %v15046_v44  ;;  %v20039_v48 = vld [vmem:[#allocation117_spill] sm:$0xff] }
 0x80c   : > { %v12739_v34 = vpop.f32.mrb[235].mxu0  ;;  %13039 = vmatprep.subr.bf16.mxu1 %v15047_v60  ;;  %v20041_v25 = vpack.c.bf16 %v20039_v48, %v20040_v51 }
 0x80d   : > { %20036 = vst [vmem:[#allocation62_spill] sm:$0xff] %v18585_v59  ;;  %v18593_v37 = vadd.f32 %v12739_v34, %v12738_v27  ;;  %v20042_v59 = vld [vmem:[#allocation128_spill] sm:$0xff]  ;;  %v20045_v27 = vld [vmem:[#allocation5_spill] sm:$0xff] }
 0x80e   : > { %v20044_v33 = vpack.c.bf16 %v20042_v59, %v20043_v63 }
 0x80f   : > { %13040 = vmatpush3.bf16.msra.mxu1 %v15048_v11 }
 0x811   : > { %v12741_v29 = vpop.f32.mrb[236].mxu0  ;;  %12377 = vmatmul.mubr.msk.bf16.gmra.mrb[244].mxu1 %vm17027_vm9, %v20041_v25  ;;  %v12658_v25 = vpack.c.bf16 %v16483_v14, %v18138_v9 }
 0x812   : > { %v12742_v44 = vpop.f32.mrb[237].mxu0  ;;  %12380 = vmatprep.mubr.msk.bf16.mxu1 %vm17481_vm15, %v20044_v33  ;;  %13186 = vmatmul.mubr.msk.bf16.gmra.mrb[44].mxu0 %vm17037_vm11, %v12652_v30  ;;  %v20046_v30 = vld [vmem:[#allocation131_spill] sm:$0xff] }
 0x813   : > { %v18609_v34 = vadd.f32 %v12742_v44, %v12741_v29  ;;  %v12744_v60 = vpop.f32.mrb[238].mxu0  ;;  %13189 = vmatprep.mubr.msk.bf16.mxu0 %vm17027_vm9, %v20045_v27  ;;  %v20047_v29 = vld [vmem:[#allocation130_spill] sm:$0xff] }
 0x814   : > { %v12745_v11 = vpop.f32.mrb[239].mxu0  ;;  %v20048_v48 = vpack.c.bf16 %v20046_v30, %v20047_v29  ;;  %v20051_v29 = vld [vmem:[#allocation132_spill] sm:$0xff]  ;;  %v20137_v4 = vld [vmem:[#allocation62_spill] sm:$0xff] }
 0x815   : > { %v18614_v24 = vadd.f32 %v12745_v11, %v12744_v60  ;;  %v20050_v60 = vld [vmem:[#allocation19_spill] sm:$0xff] }
 0x819   : > { %v12747_v63 = vpop.f32.mrb[240].mxu0  ;;  %12383 = vmatmul.mubr.msk.bf16.gmra.mrb[248].mxu1 %vm17037_vm11, %v20037_v42  ;;  %v12664_v42 = vpack.c.bf16 %v16483_v14, %v18208_v2 }
 0x81a   : > { %v12748_v33 = vpop.f32.mrb[241].mxu0  ;;  %12386 = vmatprep.mubr.msk.bf16.mxu1 %vm17422_vm13, %v20048_v48  ;;  %13190 = vmatmul.mubr.msk.bf16.gmra.mrb[48].mxu0 %vm17037_vm11, %v12658_v25  ;;  %v20052_v48 = vpack.c.bf16 %v19988_v54, %v20051_v29 }
 0x81b   : > { %v18628_v51 = vadd.f32 %v12748_v33, %v12747_v63  ;;  %v12750_v44 = vpop.f32.mrb[242].mxu0  ;;  %13193 = vmatprep.mubr.msk.bf16.mxu0 %vm17027_vm9, %v20050_v60  ;;  %v20053_v63 = vld [vmem:[#allocation7_spill] sm:$0xff]  ;;  %v20054_v33 = vld [vmem:[#allocation6_spill] sm:$0xff] }
 0x81c   : > { %v12751_v9 = vpop.f32.mrb[243].mxu0 }
 0x81d   : > { %20049 = vst [vmem:[#allocation63_spill] sm:$0xff] %v18628_v51  ;;  %v18633_v11 = vadd.f32 %v12751_v9, %v12750_v44  ;;  %v20055_v51 = vpack.c.bf16 %v20053_v63, %v20054_v33  ;;  %v20057_v9 = vld [vmem:[#allocation41_spill] sm:$0xff] }
 0x821   : > { %v12753_v30 = vpop.f32.mrb[244].mxu0  ;;  %12389 = vmatmul.mubr.msk.bf16.gmra.mrb[72].mxu1 %vm17027_vm9, %v20052_v48  ;;  %v12670_v48 = vpack.c.bf16 %v16483_v14, %v18285_v50 }
 0x822   : > { %v12754_v25 = vpop.f32.mrb[245].mxu0  ;;  %12392 = vmatprep.mubr.msk.bf16.mxu1 %vm17481_vm15, %v20055_v51  ;;  %13194 = vmatmul.mubr.msk.bf16.gmra.mrb[52].mxu0 %vm17037_vm11, %v12664_v42  ;;  %v20059_v42 = vld [vmem:[#allocation11_spill] sm:$0xff] }
 0x823   : > { %v18649_v44 = vadd.f32 %v12754_v25, %v12753_v30  ;;  %v12756_v2 = vpop.f32.mrb[246].mxu0  ;;  %13197 = vmatprep.mubr.msk.bf16.mxu0 %vm17027_vm9, %v20057_v9  ;;  %v20060_v30 = vld [vmem:[#allocation9_spill] sm:$0xff] }
 0x824   : > { %v12757_v54 = vpop.f32.mrb[247].mxu0  ;;  %v20061_v25 = vpack.c.bf16 %v20059_v42, %v20060_v30  ;;  %v20063_v30 = vld [vmem:[#allocation10_spill] sm:$0xff] }
 0x825   : > { %20056 = vst [vmem:[#allocation64_spill] sm:$0xff] %v18649_v44  ;;  %v18654_v29 = vadd.f32 %v12757_v54, %v12756_v2 }
 0x827   : > { %20058 = vst [vmem:[#allocation65_spill] sm:$0xff] %v18654_v29 }
 0x829   : > { %v12759_v33 = vpop.f32.mrb[248].mxu0  ;;  %12395 = vmatmul.mubr.msk.bf16.gmra.mrb[76].mxu1 %vm17037_vm11, %v20045_v27  ;;  %v12676_v27 = vpack.c.bf16 %v16483_v14, %v18339_v23 }
 0x82a   : > { %v12760_v51 = vpop.f32.mrb[249].mxu0  ;;  %12398 = vmatprep.mubr.msk.bf16.mxu1 %vm17422_vm13, %v20061_v25  ;;  %13198 = vmatmul.mubr.msk.bf16.gmra.mrb[56].mxu0 %vm17037_vm11, %v12670_v48  ;;  %v20064_v25 = vpack.c.bf16 %v17372_v3, %v20063_v30  ;;  %v18684_v48 = vpack.c.bf16 %v18482_v46, %v18425_v1  ;;  %v12682_v46 = vpack.c.bf16 %v16483_v14, %v18486_v18  ;;  %v20075_v18 = vld [vmem:[#allocation29_spill] sm:$0xff] }
 0x82b   : > { %v18668_v2 = vadd.f32 %v12760_v51, %v12759_v33  ;;  %v12762_v54 = vpop.f32.mrb[250].mxu0  ;;  %13201 = vmatprep.mubr.msk.bf16.mxu0 %vm17027_vm9, %v18255_v31  ;;  %v20065_v51 = vld [vmem:[#allocation17_spill] sm:$0xff] }
 0x82c   : > { %v12763_v50 = vpop.f32.mrb[251].mxu0 }
 0x82d   : > { %20062 = vst [vmem:[#allocation66_spill] sm:$0xff] %v18668_v2  ;;  %v18673_v29 = vadd.f32 %v12763_v50, %v12762_v54  ;;  %v20066_v2 = vld [vmem:[#allocation18_spill] sm:$0xff]  ;;  %v20070_v50 = vld [vmem:[#allocation28_spill] sm:$0xff] }
 0x82e   : > { %v20067_v44 = vpack.c.bf16 %v20065_v51, %v20066_v2 }
 0x831   : > { %v12765_v42 = vpop.f32.mrb[72].mxu0  ;;  %12401 = vmatmul.mubr.msk.bf16.gmra.mrb[80].mxu1 %vm17027_vm9, %v20064_v25 }
 0x832   : > { %v12766_v33 = vpop.f32.mrb[73].mxu0  ;;  %12404 = vmatprep.mubr.msk.bf16.mxu1 %vm17481_vm15, %v20067_v44  ;;  %13202 = vmatmul.mubr.msk.bf16.gmra.mrb[60].mxu0 %vm17037_vm11, %v12676_v27  ;;  %v20071_v27 = vld [vmem:[#allocation27_spill] sm:$0xff] }
 0x833   : > { %v18693_v23 = vadd.f32 %v12766_v33, %v12765_v42  ;;  %v12768_v3 = vpop.f32.mrb[74].mxu0  ;;  %13205 = vmatprep.mubr.msk.bf16.mxu0 %vm17027_vm9, %v18684_v48  ;;  %v20072_v42 = vpack.c.bf16 %v20070_v50, %v20071_v27  ;;  %v20078_v50 = vld [vmem:[#allocation36_spill] sm:$0xff] }
 0x834   : > { %v12769_v54 = vpop.f32.mrb[75].mxu0 }
 0x835   : > { %20068 = vst [vmem:[#allocation67_spill] sm:$0xff] %v18693_v23  ;;  %v18698_v1 = vadd.f32 %v12769_v54, %v12768_v3  ;;  %v20076_v3 = vpack.c.bf16 %v20001_v19, %v20075_v18  ;;  %v20077_v54 = vld [vmem:[#allocation42_spill] sm:$0xff]  ;;  %v20111_v23 = vld [vmem:[#allocation23_spill] sm:$0xff] }
 0x836   : > { %v20079_v27 = vpack.c.bf16 %v20077_v54, %v20078_v50 }
 0x837   : > { %20069 = vst [vmem:[#allocation68_spill] sm:$0xff] %v18698_v1  ;;  %v20106_v1 = vld [vmem:[#allocation22_spill] sm:$0xff] }
 0x839   : > { %v12771_v2 = vpop.f32.mrb[76].mxu0  ;;  %12407 = vmatmul.mubr.msk.bf16.gmra.mrb[84].mxu1 %vm17037_vm11, %v20050_v60 }
 0x83a   : > { %v12772_v44 = vpop.f32.mrb[77].mxu0  ;;  %12410 = vmatprep.mubr.msk.bf16.mxu1 %vm17422_vm13, %v20072_v42  ;;  %13206 = vmatmul.mubr.msk.bf16.gmra.mrb[64].mxu0 %vm17037_vm11, %v12682_v46 }
 0x83b   : > { %v18712_v30 = vadd.f32 %v12772_v44, %v12771_v2  ;;  %v12774_v25 = vpop.f32.mrb[78].mxu0 }
 0x83c   : > { %v12775_v33 = vpop.f32.mrb[79].mxu0 }
 0x83d   : > { %20073 = vst [vmem:[#allocation69_spill] sm:$0xff] %v18712_v30  ;;  %v18714_v14 = vadd.f32 %v12775_v33, %v12774_v25  ;;  %v20080_v33 = vpack.c.bf16 %v18093_v52, %v17988_v35  ;;  %v20082_v35 = vpack.c.bf16 %v18240_v8, %v18178_v40  ;;  %v20083_v40 = vpack.c.bf16 %v18382_v5, %v18326_v13  ;;  %v20101_v30 = vld [vmem:[#allocation16_spill] sm:$0xff] }
 0x83e   : > { %v20087_v5 = vpack.c.bf16 %v18489_v15, %v18419_v43 }
 0x83f   : > { %20074 = vst [vmem:[#allocation70_spill] sm:$0xff] %v18714_v14  ;;  %v20086_v14 = vpack.c.bf16 %v18391_v32, %v18388_v45  ;;  %v20088_v32 = vld [vmem:[#allocation12_spill] sm:$0xff] }
 0x841   : > { %12413 = vmatmul.mubr.msk.bf16.gmra.mrb[88].mxu1 %vm17027_vm9, %v20076_v3 }
 0x842   : > { %12416 = vmatprep.mubr.msk.bf16.mxu1 %vm17481_vm15, %v20079_v27 }
 0x843   : > { %v12929_v60 = vpop.f32.mrb[80].mxu0 }
 0x844   : > { %v12930_v46 = vpop.f32.mrb[81].mxu0 }
 0x845   : > { %v18726_v2 = vadd.f32 %v12930_v46, %v12929_v60  ;;  %v12932_v44 = vpop.f32.mrb[82].mxu0  ;;  %v20081_v46 = vpack.c.bf16 %v18100_v16, %v18083_v10 }
 0x846   : > { %v12933_v42 = vpop.f32.mrb[83].mxu0 }
 0x847   : > { %v18728_v25 = vadd.f32 %v12933_v42, %v12932_v44 }
 0x849   : > { %12419 = vmatmul.mubr.msk.bf16.gmra.mrb[92].mxu1 %vm17037_vm11, %v20057_v9 }
 0x84a   : > { %12422 = vmatprep.mubr.msk.bf16.mxu1 %vm17422_vm13, %v20080_v33 }
 0x84b   : > { %v12935_v19 = vpop.f32.mrb[84].mxu0 }
 0x84c   : > { %v12936_v18 = vpop.f32.mrb[85].mxu0 }
 0x84d   : > { %v18738_v3 = vadd.f32 %v12936_v18, %v12935_v19  ;;  %v12938_v60 = vpop.f32.mrb[86].mxu0 }
 0x84e   : > { %v12939_v50 = vpop.f32.mrb[87].mxu0 }
 0x84f   : > { %v18740_v27 = vadd.f32 %v12939_v50, %v12938_v60 }
 0x851   : > { %12425 = vmatmul.mubr.msk.bf16.gmra.mrb[96].mxu1 %vm17027_vm9, %v20081_v46 }
 0x852   : > { %12428 = vmatprep.mubr.msk.bf16.mxu1 %vm17481_vm15, %v20082_v35 }
 0x853   : > { %v12941_v9 = vpop.f32.mrb[88].mxu0 }
 0x854   : > { %v12942_v52 = vpop.f32.mrb[89].mxu0 }
 0x855   : > { %v18752_v44 = vadd.f32 %v12942_v52, %v12941_v9  ;;  %v12944_v42 = vpop.f32.mrb[90].mxu0 }
 0x856   : > { %v12945_v19 = vpop.f32.mrb[91].mxu0 }
 0x857   : > { %v18754_v33 = vadd.f32 %v12945_v19, %v12944_v42 }
 0x859   : > { %v12777_v18 = vpop.f32.mrb[32].mxu1  ;;  %12431 = vmatmul.mubr.msk.bf16.gmra.mrb[100].mxu1 %vm17037_vm11, %v18255_v31 }
 0x85a   : > { %v12778_v16 = vpop.f32.mrb[33].mxu1  ;;  %12434 = vmatprep.mubr.msk.bf16.mxu1 %vm17422_vm13, %v20083_v40 }
 0x85b   : > { %v12947_v10 = vpop.f32.mrb[92].mxu0  ;;  %v18764_v50 = vadd.f32 %v12778_v16, %v12777_v18  ;;  %v12780_v46 = vpop.f32.mrb[34].mxu1 }
 0x85c   : > { %v12948_v60 = vpop.f32.mrb[93].mxu0  ;;  %v12781_v52 = vpop.f32.mrb[35].mxu1 }
 0x85d   : > { %20084 = vst [vmem:[#allocation71_spill] sm:$0xff] %v18764_v50  ;;  %v18766_v9 = vadd.f32 %v12948_v60, %v12947_v10  ;;  %v12950_v35 = vpop.f32.mrb[94].mxu0  ;;  %v18768_v19 = vadd.f32 %v12781_v52, %v12780_v46 }
 0x85e   : > { %v12951_v42 = vpop.f32.mrb[95].mxu0 }
 0x85f   : > { %20085 = vst [vmem:[#allocation109_spill] sm:$0xff] %v18768_v19  ;;  %v18770_v31 = vadd.f32 %v12951_v42, %v12950_v35  ;;  %v20096_v19 = vld [vmem:[#allocation115_spill] sm:$0xff] }
 0x860   : > { %v20097_v50 = vpack.c.bf16 %v20096_v19, %v20017_v28 }
 0x861   : > { %12437 = vmatmul.mubr.msk.bf16.gmra.mrb[104].mxu1 %vm17027_vm9, %v20086_v14  ;;  %vm11642_vm9 = vcmask 1041409  }
 0x862   : > { %12440 = vmatprep.mubr.msk.bf16.mxu1 %vm17481_vm15, %v20087_v5  ;;  %v20094_v5 = vld [vmem:[#allocation13_spill] sm:$0xff] }
 0x863   : > { %v12953_v13 = vpop.f32.mrb[96].mxu0 }
 0x864   : > { %v12954_v18 = vpop.f32.mrb[97].mxu0 }
 0x865   : > { %v18782_v10 = vadd.f32 %v12954_v18, %v12953_v13  ;;  %v12956_v16 = vpop.f32.mrb[98].mxu0 }
 0x866   : > { %v12957_v40 = vpop.f32.mrb[99].mxu0 }
 0x867   : > { %v18784_v60 = vadd.f32 %v12957_v40, %v12956_v16 }
 0x869   : > { %12443 = vmatmul.mubr.msk.bf16.gmra.mrb[108].mxu1 %vm17037_vm11, %v18684_v48  ;;  %v12547_v48 = vpack.c.bf16 %v19731_v57, %v20093_v62  ;;  %vm11644_vm11 = vcmask 1042434  }
 0x86a   : > { %12542 = vmatprep.mubr.msk.bf16.mxu1 %vm17019_vm6, %v20088_v32 }
 0x86b   : > { %v12959_v7 = vpop.f32.mrb[100].mxu0 }
 0x86c   : > { %v12960_v45 = vpop.f32.mrb[101].mxu0 }
 0x86d   : > { %v18792_v43 = vadd.f32 %v12960_v45, %v12959_v7  ;;  %v12962_v14 = vpop.f32.mrb[102].mxu0 }
 0x86e   : > { %v12963_v46 = vpop.f32.mrb[103].mxu0 }
 0x86f   : > { %v18794_v35 = vadd.f32 %v12963_v46, %v12962_v14 }
 0x871   : > { %12545 = vmatmul.mubr.msk.bf16.vlgmr.msra.gmra.mrb[112].mxu1 %vm17422_vm13, %v20094_v5 }
 0x872   : > { %12548 = vmatprep.mubr.msk.bf16.mxu1 %vm18799_vm1, %v12547_v48 }
 0x873   : > { %v12965_v13 = vpop.f32.mrb[104].mxu0 }
 0x874   : > { %v12966_v18 = vpop.f32.mrb[105].mxu0 }
 0x875   : > { %v18810_v16 = vadd.f32 %v12966_v18, %v12965_v13  ;;  %v12968_v40 = vpop.f32.mrb[106].mxu0  ;;  %v20098_v13 = vld [vmem:[#allocation14_spill] sm:$0xff] }
 0x876   : > { %v12969_v7 = vpop.f32.mrb[107].mxu0 }
 0x877   : > { %v18812_v45 = vadd.f32 %v12969_v7, %v12968_v40 }
 0x878   : > { %v12783_v32 = vpop.f32.mrb[36].mxu1 }
 0x879   : > { %v12784_v14 = vpop.f32.mrb[37].mxu1  ;;  %12551 = vmatmul.mubr.msk.bf16.gmra.mrb[116].mxu1 %vm17481_vm15, %v20097_v50 }
 0x87a   : > { %v18814_v46 = vadd.f32 %v12784_v14, %v12783_v32  ;;  %v12786_v52 = vpop.f32.mrb[38].mxu1  ;;  %12554 = vmatprep.mubr.msk.bf16.mxu1 %vm17019_vm6, %v20098_v13 }
 0x87b   : > { %v12971_v62 = vpop.f32.mrb[108].mxu0  ;;  %v12787_v5 = vpop.f32.mrb[39].mxu1 }
 0x87c   : > { %20095 = vst [vmem:[#allocation123_spill] sm:$0xff] %v18814_v46  ;;  %v12972_v48 = vpop.f32.mrb[109].mxu0  ;;  %v18824_v18 = vadd.f32 %v12787_v5, %v12786_v52  ;;  %v20100_v46 = vld [vmem:[#allocation52_spill] sm:$0xff] }
 0x87d   : > { %v18826_v40 = vadd.f32 %v12972_v48, %v12971_v62  ;;  %v12974_v7 = vpop.f32.mrb[110].mxu0  ;;  %v12559_v28 = vpack.c.bf16 %v19731_v57, %v20100_v46 }
 0x87e   : > { %20099 = vst [vmem:[#allocation111_spill] sm:$0xff] %v18824_v18  ;;  %v12975_v32 = vpop.f32.mrb[111].mxu0  ;;  %v20104_v18 = vld [vmem:[#allocation21_spill] sm:$0xff] }
 0x87f   : > { %v18828_v14 = vadd.f32 %v12975_v32, %v12974_v7  ;;  %v20102_v7 = vld [vmem:[#allocation56_spill] sm:$0xff] }
 0x880   : > { %v20103_v32 = vpack.c.bf16 %v20102_v7, %v20028_v58 }
 0x881   : > { %12557 = vmatmul.mubr.msk.bf16.gmra.mrb[120].mxu1 %vm17422_vm13, %v20101_v30 }
 0x882   : > { %12560 = vmatprep.mubr.msk.bf16.mxu1 %vm18799_vm1, %v12559_v28 }
 0x883   : > { %v12977_v19 = vpop.f32.mrb[112].mxu0 }
 0x884   : > { %v12978_v50 = vpop.f32.mrb[113].mxu0 }
 0x885   : > { %v18837_v52 = vadd.f32 %v12978_v50, %v12977_v19  ;;  %v12980_v62 = vpop.f32.mrb[114].mxu0 }
 0x886   : > { %v12981_v5 = vpop.f32.mrb[115].mxu0 }
 0x887   : > { %v18839_v48 = vadd.f32 %v12981_v5, %v12980_v62  ;;  %v12571_v62 = vpack.c.bf16 %v19731_v57, %v19965_v41 }
 0x889   : > { %12563 = vmatmul.mubr.msk.bf16.gmra.mrb[124].mxu1 %vm17481_vm15, %v20103_v32 }
 0x88a   : > { %12566 = vmatprep.mubr.msk.bf16.mxu1 %vm17019_vm6, %v20104_v18 }
 0x88b   : > { %v12983_v13 = vpop.f32.mrb[116].mxu0 }
 0x88c   : > { %v12984_v46 = vpop.f32.mrb[117].mxu0 }
 0x88d   : > { %v18849_v30 = vadd.f32 %v12984_v46, %v12983_v13  ;;  %v12986_v28 = vpop.f32.mrb[118].mxu0 }
 0x88e   : > { %v12987_v19 = vpop.f32.mrb[119].mxu0 }
 0x88f   : > { %v18851_v50 = vadd.f32 %v12987_v19, %v12986_v28  ;;  %v20109_v28 = vld [vmem:[#allocation129_spill] sm:$0xff] }
 0x890   : > { %v20110_v19 = vpack.c.bf16 %v20109_v28, %v20042_v59  ;;  %v12583_v59 = vpack.c.bf16 %v19731_v57, %v19990_v47  ;;  %v20115_v47 = vld [vmem:[#allocation8_spill] sm:$0xff] }
 0x891   : > { %20105 = vst [vmem:[#allocation72_spill] sm:$0xff] %v18851_v50  ;;  %12569 = vmatmul.mubr.msk.bf16.gmra.mrb[128].mxu1 %vm17422_vm13, %v20106_v1  ;;  %v20113_v50 = vld [vmem:[#allocation26_spill] sm:$0xff] }
 0x892   : > { %12572 = vmatprep.mubr.msk.bf16.mxu1 %vm18799_vm1, %v12571_v62 }
 0x893   : > { %v12989_v5 = vpop.f32.mrb[120].mxu0 }
 0x894   : > { %v12990_v58 = vpop.f32.mrb[121].mxu0 }
 0x895   : > { %v18860_v7 = vadd.f32 %v12990_v58, %v12989_v5  ;;  %v12992_v18 = vpop.f32.mrb[122].mxu0 }
 0x896   : > { %v12993_v13 = vpop.f32.mrb[123].mxu0 }
 0x897   : > { %20107 = vst [vmem:[#allocation73_spill] sm:$0xff] %v18860_v7  ;;  %v18862_v32 = vadd.f32 %v12993_v13, %v12992_v18 }
 0x899   : > { %20108 = vst [vmem:[#allocation74_spill] sm:$0xff] %v18862_v32  ;;  %12575 = vmatmul.mubr.msk.bf16.gmra.mrb[132].mxu1 %vm17481_vm15, %v20110_v19 }
 0x89a   : > { %12578 = vmatprep.mubr.msk.bf16.mxu1 %vm17019_vm6, %v20111_v23 }
 0x89b   : > { %v12995_v46 = vpop.f32.mrb[124].mxu0 }
 0x89c   : > { %v12996_v41 = vpop.f32.mrb[125].mxu0 }
 0x89d   : > { %v18872_v1 = vadd.f32 %v12996_v41, %v12995_v46  ;;  %v12998_v62 = vpop.f32.mrb[126].mxu0 }
 0x89e   : > { %v12999_v5 = vpop.f32.mrb[127].mxu0  ;;  %v12789_v18 = vpop.f32.mrb[220].mxu1 }
 0x89f   : > { %v18874_v58 = vadd.f32 %v12999_v5, %v12998_v62  ;;  %v12790_v13 = vpop.f32.mrb[221].mxu1 }
 0x8a0   : > { %v18876_v32 = vadd.f32 %v12790_v13, %v12789_v18  ;;  %v12792_v7 = vpop.f32.mrb[222].mxu1 }
 0x8a1   : > { %v12793_v28 = vpop.f32.mrb[223].mxu1  ;;  %12581 = vmatmul.mubr.msk.bf16.gmra.mrb[136].mxu1 %vm17422_vm13, %v20113_v50 }
 0x8a2   : > { %20112 = vst [vmem:[#allocation75_spill] sm:$0xff] %v18876_v32  ;;  %v18883_v23 = vadd.f32 %v12793_v28, %v12792_v7  ;;  %12584 = vmatprep.mubr.msk.bf16.mxu1 %vm18799_vm1, %v12583_v59  ;;  %v20116_v32 = vpack.c.bf16 %v20115_v47, %v20053_v63  ;;  %v20117_v7 = vld [vmem:[#allocation31_spill] sm:$0xff]  ;;  %v20122_v63 = vld [vmem:[#allocation20_spill] sm:$0xff] }
 0x8a3   : > { %v13001_v19 = vpop.f32.mrb[128].mxu0 }
 0x8a4   : > { %20114 = vst [vmem:[#allocation76_spill] sm:$0xff] %v18883_v23  ;;  %v13002_v46 = vpop.f32.mrb[129].mxu0  ;;  %v20121_v23 = vld [vmem:[#allocation33_spill] sm:$0xff] }
 0x8a5   : > { %v18887_v41 = vadd.f32 %v13002_v46, %v13001_v19  ;;  %v13004_v62 = vpop.f32.mrb[130].mxu0 }
 0x8a6   : > { %v13005_v5 = vpop.f32.mrb[131].mxu0 }
 0x8a7   : > { %v18889_v18 = vadd.f32 %v13005_v5, %v13004_v62  ;;  %v20120_v62 = vld [vmem:[#allocation15_spill] sm:$0xff] }
 0x8a8   : > { %v12595_v5 = vpack.c.bf16 %v19731_v57, %v20120_v62 }
 0x8a9   : > { %12587 = vmatmul.mubr.msk.bf16.gmra.mrb[140].mxu1 %vm17481_vm15, %v20116_v32  ;;  %v20123_v32 = vpack.c.bf16 %v20122_v63, %v20065_v51  ;;  %v12607_v63 = vpack.c.bf16 %v19731_v57, %v20003_v61 }
 0x8aa   : > { %12590 = vmatprep.mubr.msk.bf16.mxu1 %vm17019_vm6, %v20117_v7 }
 0x8ab   : > { %v13007_v13 = vpop.f32.mrb[132].mxu0 }
 0x8ac   : > { %v13008_v50 = vpop.f32.mrb[133].mxu0 }
 0x8ad   : > { %v18899_v28 = vadd.f32 %v13008_v50, %v13007_v13  ;;  %v13010_v59 = vpop.f32.mrb[134].mxu0  ;;  %v20124_v13 = vld [vmem:[#allocation35_spill] sm:$0xff] }
 0x8ae   : > { %v13011_v19 = vpop.f32.mrb[135].mxu0 }
 0x8af   : > { %20118 = vst [vmem:[#allocation77_spill] sm:$0xff] %v18899_v28  ;;  %v18901_v46 = vadd.f32 %v13011_v19, %v13010_v59 }
 0x8b1   : > { %20119 = vst [vmem:[#allocation104_spill] sm:$0xff] %v18901_v46  ;;  %12593 = vmatmul.mubr.msk.bf16.gmra.mrb[144].mxu1 %vm17422_vm13, %v20121_v23 }
 0x8b2   : > { %12596 = vmatprep.mubr.msk.bf16.mxu1 %vm18799_vm1, %v12595_v5 }
 0x8b9   : > { %12599 = vmatmul.mubr.msk.bf16.gmra.mrb[40].mxu1 %vm17481_vm15, %v20123_v32 }
 0x8ba   : > { %12602 = vmatprep.mubr.msk.bf16.mxu1 %vm17019_vm6, %v20124_v13  ;;  %v20127_v13 = vld [vmem:[#allocation39_spill] sm:$0xff] }
 0x8bc   : > { %v12795_v47 = vpop.f32.mrb[224].mxu1 }
 0x8bd   : > { %v12796_v50 = vpop.f32.mrb[225].mxu1  ;;  %v13013_v7 = vpop.f32.mrb[136].mxu0 }
 0x8be   : > { %v18918_v59 = vadd.f32 %v12796_v50, %v12795_v47  ;;  %v12798_v19 = vpop.f32.mrb[226].mxu1  ;;  %v13014_v23 = vpop.f32.mrb[137].mxu0 }
 0x8bf   : > { %v18920_v62 = vadd.f32 %v13014_v23, %v13013_v7  ;;  %v12799_v5 = vpop.f32.mrb[227].mxu1  ;;  %v13016_v46 = vpop.f32.mrb[138].mxu0 }
 0x8c0   : > { %20125 = vst [vmem:[#allocation122_spill] sm:$0xff] %v18918_v59  ;;  %v18922_v28 = vadd.f32 %v12799_v5, %v12798_v19  ;;  %v13017_v51 = vpop.f32.mrb[139].mxu0 }
 0x8c1   : > { %v18926_v32 = vadd.f32 %v13017_v51, %v13016_v46  ;;  %12605 = vmatmul.mubr.msk.bf16.gmra.mrb[44].mxu1 %vm17422_vm13, %v20127_v13  ;;  %v20130_v51 = vld [vmem:[#allocation45_spill] sm:$0xff] }
 0x8c2   : > { %20126 = vst [vmem:[#allocation124_spill] sm:$0xff] %v18922_v28  ;;  %12608 = vmatprep.mubr.msk.bf16.mxu1 %vm18799_vm1, %v12607_v63  ;;  %v20128_v28 = vld [vmem:[#allocation43_spill] sm:$0xff] }
 0x8c3   : > { %v20129_v61 = vpack.c.bf16 %v20128_v28, %v20077_v54 }
 0x8c4   : > { %v12817_v47 = vpop.f32.mrb[228].mxu1 }
 0x8c5   : > { %v12818_v50 = vpop.f32.mrb[229].mxu1 }
 0x8c6   : > { %v12819_v7 = vadd.f32 %v12818_v50, %v12817_v47  ;;  %v12820_v23 = vpop.f32.mrb[230].mxu1 }
 0x8c7   : > { %v12821_v59 = vpop.f32.mrb[231].mxu1 }
 0x8c8   : > { %v10645_v19 = vadd.f32 %v12819_v7, %v18407_v21  ;;  %v12822_v5 = vadd.f32 %v12821_v59, %v12820_v23 }
 0x8c9   : > { %12611 = vmatmul.mubr.msk.bf16.gmra.mrb[48].mxu1 %vm17481_vm15, %v20129_v61 }
 0x8ca   : > { %v10648_v46 = vadd.f32 %v12822_v5, %v18416_v36  ;;  %12614 = vmatprep.mubr.msk.bf16.mxu1 %vm17019_vm6, %v20130_v51  ;;  %v18944_v63 = vadd.f32 %v18726_v2, %v10645_v19  ;;  %v12619_v2 = vpack.c.bf16 %v19731_v57, %v18217_v0 }
 0x8cc   : > { %v12823_v13 = vpop.f32.mrb[232].mxu1  ;;  %v18947_v47 = vadd.f32 %v18728_v25, %v10648_v46  ;;  %v20131_v25 = vld [vmem:[#allocation46_spill] sm:$0xff] }
 0x8cd   : > { %v12824_v21 = vpop.f32.mrb[233].mxu1  ;;  %v13019_v59 = vpop.f32.mrb[140].mxu0 }
 0x8ce   : > { %v12825_v50 = vadd.f32 %v12824_v21, %v12823_v13  ;;  %v12826_v54 = vpop.f32.mrb[234].mxu1  ;;  %v13020_v28 = vpop.f32.mrb[141].mxu0 }
 0x8cf   : > { %v18949_v7 = vadd.f32 %v13020_v28, %v13019_v59  ;;  %v12827_v23 = vpop.f32.mrb[235].mxu1  ;;  %v13022_v36 = vpop.f32.mrb[142].mxu0 }
 0x8d0   : > { %v10653_v5 = vadd.f32 %v12825_v50, %v18447_v22  ;;  %v12828_v61 = vadd.f32 %v12827_v23, %v12826_v54  ;;  %v13023_v51 = vpop.f32.mrb[143].mxu0 }
 0x8d1   : > { %v18954_v19 = vadd.f32 %v13023_v51, %v13022_v36  ;;  %12617 = vmatmul.mubr.msk.bf16.gmra.mrb[52].mxu1 %vm17422_vm13, %v20131_v25 }
 0x8d2   : > { %v10656_v46 = vadd.f32 %v12828_v61, %v18449_v17  ;;  %12620 = vmatprep.mubr.msk.bf16.mxu1 %vm18799_vm1, %v12619_v2  ;;  %v18963_v13 = vadd.f32 %v18738_v3, %v10653_v5  ;;  %v20132_v3 = vld [vmem:[#allocation134_spill] sm:$0xff] }
 0x8d3   : > { %v20133_v5 = vpack.c.bf16 %v20132_v3, %v18240_v8 }
 0x8d4   : > { %v12829_v22 = vpop.f32.mrb[236].mxu1  ;;  %v18966_v21 = vadd.f32 %v18740_v27, %v10656_v46 }
 0x8d5   : > { %v12830_v59 = vpop.f32.mrb[237].mxu1  ;;  %v18968_v0 = vpop.f32.mrb[144].mxu0 }
 0x8d6   : > { %v12831_v50 = vadd.f32 %v12830_v59, %v12829_v22  ;;  %v12832_v54 = vpop.f32.mrb[238].mxu1  ;;  %v18970_v28 = vpop.f32.mrb[145].mxu0 }
 0x8d7   : > { %v12833_v23 = vpop.f32.mrb[239].mxu1  ;;  %v18972_v36 = vpop.f32.mrb[146].mxu0 }
 0x8d8   : > { %v10661_v17 = vadd.f32 %v12831_v50, %v18472_v26  ;;  %v12834_v61 = vadd.f32 %v12833_v23, %v12832_v54  ;;  %v18975_v51 = vpop.f32.mrb[147].mxu0 }
 0x8d9   : > { %12623 = vmatmul.mubr.msk.bf16.gmra.mrb[56].mxu1 %vm17481_vm15, %v20133_v5 }
 0x8da   : > { %v10664_v27 = vadd.f32 %v12834_v61, %v18479_v20  ;;  %12626 = vmatprep.mubr.msk.bf16.mxu1 %vm17019_vm6, %v18413_v56  ;;  %v18987_v2 = vadd.f32 %v18752_v44, %v10661_v17  ;;  %v12631_v44 = vpack.c.bf16 %v19731_v57, %v18467_v12  ;;  %vm11529_vm6 = vcmask 523264  }
 0x8dc   : > { %v12835_v25 = vpop.f32.mrb[240].mxu1  ;;  %v18990_v26 = vadd.f32 %v18754_v33, %v10664_v27 }
 0x8dd   : > { %v12836_v46 = vpop.f32.mrb[241].mxu1  ;;  %v18992_v22 = vpop.f32.mrb[40].mxu0 }
 0x8de   : > { %v12837_v8 = vadd.f32 %v12836_v46, %v12835_v25  ;;  %v12838_v59 = vpop.f32.mrb[242].mxu1  ;;  %v18994_v50 = vpop.f32.mrb[41].mxu0 }
 0x8df   : > { %v12839_v54 = vpop.f32.mrb[243].mxu1  ;;  %v18996_v20 = vpop.f32.mrb[42].mxu0 }
 0x8e0   : > { %v10669_v53 = vadd.f32 %v12837_v8, %v18521_v49  ;;  %v12840_v56 = vadd.f32 %v12839_v54, %v12838_v59  ;;  %v18999_v23 = vpop.f32.mrb[43].mxu0 }
 0x8e1   : > { %12629 = vmatmul.mubr.msk.bf16.gmra.mrb[60].mxu1 %vm17422_vm13, %v18429_v6  ;;  %vm11654_vm13 = vcmask 1047559  }
 0x8e2   : > { %v10672_v33 = vadd.f32 %v12840_v56, %v18532_v55  ;;  %12632 = vmatprep.mubr.msk.bf16.mxu1 %vm18799_vm1, %v12631_v44  ;;  %v19010_v17 = vadd.f32 %v18766_v9, %v10669_v53  ;;  %v20134_v9 = vld [vmem:[#allocation60_spill] sm:$0xff] }
 0x8e3   : > { %v20135_v46 = vpack.c.bf16 %v20134_v9, %v18489_v15 }
 0x8e4   : > { %v12841_v61 = vpop.f32.mrb[244].mxu1  ;;  %v19013_v49 = vadd.f32 %v18770_v31, %v10672_v33  ;;  %v20136_v31 = vld [vmem:[#allocation61_spill] sm:$0xff] }
 0x8e5   : > { %v12842_v3 = vpop.f32.mrb[245].mxu1  ;;  %v19015_v5 = vpop.f32.mrb[44].mxu0 }
 0x8e6   : > { %v12843_v57 = vadd.f32 %v12842_v3, %v12841_v61  ;;  %v12844_v12 = vpop.f32.mrb[246].mxu1  ;;  %v19017_v27 = vpop.f32.mrb[45].mxu0 }
 0x8e7   : > { %v12845_v38 = vpop.f32.mrb[247].mxu1  ;;  %v19019_v6 = vpop.f32.mrb[46].mxu0 }
 0x8e8   : > { %v10677_v55 = vadd.f32 %v12843_v57, %v18554_v39  ;;  %v12846_v42 = vadd.f32 %v12845_v38, %v12844_v12  ;;  %v19022_v25 = vpop.f32.mrb[47].mxu0 }
 0x8e9   : > { %12635 = vmatmul.mubr.msk.bf16.gmra.mrb[64].mxu1 %vm17481_vm15, %v20135_v46 }
 0x8ea   : > { %v10680_v8 = vadd.f32 %v12846_v42, %v20136_v31  ;;  %v19031_v59 = vadd.f32 %v18782_v10, %v10677_v55 }
 0x8ec   : > { %v12847_v54 = vpop.f32.mrb[248].mxu1  ;;  %v19034_v53 = vadd.f32 %v18784_v60, %v10680_v8 }
 0x8ed   : > { %v12848_v56 = vpop.f32.mrb[249].mxu1  ;;  %v19036_v39 = vpop.f32.mrb[48].mxu0 }
 0x8ee   : > { %v12849_v44 = vadd.f32 %v12848_v56, %v12847_v54  ;;  %v12850_v33 = vpop.f32.mrb[250].mxu1  ;;  %v19038_v61 = vpop.f32.mrb[49].mxu0 }
 0x8ef   : > { %v12851_v15 = vpop.f32.mrb[251].mxu1  ;;  %v19040_v3 = vpop.f32.mrb[50].mxu0 }
 0x8f0   : > { %v10685_v57 = vadd.f32 %v12849_v44, %v20137_v4  ;;  %v12852_v12 = vadd.f32 %v12851_v15, %v12850_v33  ;;  %v19043_v38 = vpop.f32.mrb[51].mxu0 }
 0x8f2   : > { %v10688_v10 = vadd.f32 %v12852_v12, %v18593_v37  ;;  %v19047_v60 = vadd.f32 %v18792_v43, %v10685_v57 }
 0x8f4   : > { %v12853_v55 = vpop.f32.mrb[72].mxu1  ;;  %v19050_v42 = vadd.f32 %v18794_v35, %v10688_v10 }
 0x8f5   : > { %v12854_v9 = vpop.f32.mrb[73].mxu1  ;;  %v19052_v46 = vpop.f32.mrb[52].mxu0 }
 0x8f6   : > { %20138 = vst [vmem:[#allocation78_spill] sm:$0xff] %v19052_v46  ;;  %v12855_v31 = vadd.f32 %v12854_v9, %v12853_v55  ;;  %v12856_v8 = vpop.f32.mrb[74].mxu1  ;;  %v19054_v54 = vpop.f32.mrb[53].mxu0  ;;  %v20161_v46 = vld [vmem:[#allocation67_spill] sm:$0xff] }
 0x8f7   : > { %v12857_v56 = vpop.f32.mrb[75].mxu1  ;;  %v19056_v44 = vpop.f32.mrb[54].mxu0 }
 0x8f8   : > { %20139 = vst [vmem:[#allocation79_spill] sm:$0xff] %v19056_v44  ;;  %v10693_v33 = vadd.f32 %v12855_v31, %v18609_v34  ;;  %v12858_v37 = vadd.f32 %v12857_v56, %v12856_v8  ;;  %v19059_v15 = vpop.f32.mrb[55].mxu0  ;;  %v20144_v8 = vld [vmem:[#allocation63_spill] sm:$0xff] }
 0x8f9   : > { %20140 = vst [vmem:[#allocation80_spill] sm:$0xff] %v19059_v15 }
 0x8fa   : > { %v10696_v43 = vadd.f32 %v12858_v37, %v18614_v24  ;;  %v19063_v35 = vadd.f32 %v18810_v16, %v10693_v33 }
 0x8fc   : > { %v12859_v4 = vpop.f32.mrb[76].mxu1  ;;  %v19066_v57 = vadd.f32 %v18812_v45, %v10696_v43 }
 0x8fd   : > { %v12860_v12 = vpop.f32.mrb[77].mxu1  ;;  %v19068_v10 = vpop.f32.mrb[56].mxu0 }
 0x8fe   : > { %20141 = vst [vmem:[#allocation81_spill] sm:$0xff] %v19068_v10  ;;  %v12861_v55 = vadd.f32 %v12860_v12, %v12859_v4  ;;  %v12862_v9 = vpop.f32.mrb[78].mxu1  ;;  %v19070_v44 = vpop.f32.mrb[57].mxu0 }
 0x8ff   : > { %20142 = vst [vmem:[#allocation82_spill] sm:$0xff] %v19070_v44  ;;  %v12863_v34 = vpop.f32.mrb[79].mxu1  ;;  %v19072_v31 = vpop.f32.mrb[58].mxu0 }
 0x900   : > { %20143 = vst [vmem:[#allocation83_spill] sm:$0xff] %v19072_v31  ;;  %v10701_v56 = vadd.f32 %v12861_v55, %v20144_v8  ;;  %v12864_v24 = vadd.f32 %v12863_v34, %v12862_v9  ;;  %v19075_v37 = vpop.f32.mrb[59].mxu0  ;;  %v20149_v34 = vld [vmem:[#allocation64_spill] sm:$0xff] }
 0x901   : > { %20145 = vst [vmem:[#allocation51_spill] sm:$0xff] %v19075_v37 }
 0x902   : > { %v10704_v16 = vadd.f32 %v12864_v24, %v18633_v11  ;;  %v19079_v45 = vadd.f32 %v18826_v40, %v10701_v56  ;;  %v20151_v40 = vld [vmem:[#allocation65_spill] sm:$0xff] }
 0x904   : > { %v12865_v33 = vpop.f32.mrb[80].mxu1  ;;  %v19082_v43 = vadd.f32 %v18828_v14, %v10704_v16 }
 0x905   : > { %v12866_v4 = vpop.f32.mrb[81].mxu1  ;;  %v19084_v12 = vpop.f32.mrb[60].mxu0 }
 0x906   : > { %20146 = vst [vmem:[#allocation50_spill] sm:$0xff] %v19084_v12  ;;  %v12867_v10 = vadd.f32 %v12866_v4, %v12865_v33  ;;  %v12868_v44 = vpop.f32.mrb[82].mxu1  ;;  %v19086_v31 = vpop.f32.mrb[61].mxu0 }
 0x907   : > { %20147 = vst [vmem:[#allocation84_spill] sm:$0xff] %v19086_v31  ;;  %v12869_v55 = vpop.f32.mrb[83].mxu1  ;;  %v19088_v9 = vpop.f32.mrb[62].mxu0 }
 0x908   : > { %20148 = vst [vmem:[#allocation54_spill] sm:$0xff] %v19088_v9  ;;  %v10709_v8 = vadd.f32 %v12867_v10, %v20149_v34  ;;  %v12870_v11 = vadd.f32 %v12869_v55, %v12868_v44  ;;  %v19091_v24 = vpop.f32.mrb[63].mxu0  ;;  %v20156_v55 = vld [vmem:[#allocation66_spill] sm:$0xff] }
 0x909   : > { %20150 = vst [vmem:[#allocation85_spill] sm:$0xff] %v19091_v24 }
 0x90a   : > { %v10712_v56 = vadd.f32 %v12870_v11, %v20151_v40  ;;  %v19095_v14 = vadd.f32 %v18837_v52, %v10709_v8 }
 0x90c   : > { %v12871_v16 = vpop.f32.mrb[84].mxu1  ;;  %v19098_v12 = vadd.f32 %v18839_v48, %v10712_v56  ;;  %v20159_v56 = vld [vmem:[#allocation72_spill] sm:$0xff] }
 0x90d   : > { %v12872_v33 = vpop.f32.mrb[85].mxu1  ;;  %v19100_v4 = vpop.f32.mrb[64].mxu0 }
 0x90e   : > { %20152 = vst [vmem:[#allocation86_spill] sm:$0xff] %v19098_v12  ;;  %20153 = vst [vmem:[#allocation87_spill] sm:$0xff] %v19100_v4  ;;  %v12873_v31 = vadd.f32 %v12872_v33, %v12871_v16  ;;  %v12874_v37 = vpop.f32.mrb[86].mxu1  ;;  %v19102_v9 = vpop.f32.mrb[65].mxu0 }
 0x90f   : > { %20154 = vst [vmem:[#allocation88_spill] sm:$0xff] %v19102_v9  ;;  %v12875_v10 = vpop.f32.mrb[87].mxu1  ;;  %v19104_v44 = vpop.f32.mrb[66].mxu0 }
 0x910   : > { %20155 = vst [vmem:[#allocation89_spill] sm:$0xff] %v19104_v44  ;;  %v10717_v34 = vadd.f32 %v12873_v31, %v20156_v55  ;;  %v12876_v11 = vadd.f32 %v12875_v10, %v12874_v37  ;;  %v19107_v40 = vpop.f32.mrb[67].mxu0  ;;  %v20162_v31 = vld [vmem:[#allocation68_spill] sm:$0xff]  ;;  %v20163_v10 = vld [vmem:[#allocation73_spill] sm:$0xff] }
 0x911   : > { %20157 = vst [vmem:[#allocation90_spill] sm:$0xff] %v19107_v40 }
 0x912   : > { %v10720_v52 = vadd.f32 %v12876_v11, %v18673_v29  ;;  %v19111_v48 = vadd.f32 %v18849_v30, %v10717_v34  ;;  %v20164_v11 = vld [vmem:[#allocation74_spill] sm:$0xff] }
 0x914   : > { %20158 = vst [vmem:[#allocation121_spill] sm:$0xff] %v19111_v48  ;;  %v12877_v8 = vpop.f32.mrb[88].mxu1  ;;  %v19114_v4 = vadd.f32 %v20159_v56, %v10720_v52  ;;  %v20166_v48 = vld [vmem:[#allocation70_spill] sm:$0xff] }
 0x915   : > { %v12878_v16 = vpop.f32.mrb[89].mxu1 }
 0x916   : > { %20160 = vst [vmem:[#allocation91_spill] sm:$0xff] %v19114_v4  ;;  %v12879_v33 = vadd.f32 %v12878_v16, %v12877_v8  ;;  %v12880_v9 = vpop.f32.mrb[90].mxu1  ;;  %v20165_v4 = vld [vmem:[#allocation69_spill] sm:$0xff] }
 0x917   : > { %v12881_v24 = vpop.f32.mrb[91].mxu1 }
 0x918   : > { %v10725_v44 = vadd.f32 %v12879_v33, %v20161_v46  ;;  %v12882_v15 = vadd.f32 %v12881_v24, %v12880_v9 }
 0x91a   : > { %v10728_v37 = vadd.f32 %v12882_v15, %v20162_v31  ;;  %v19119_v55 = vadd.f32 %v20163_v10, %v10725_v44 }
 0x91c   : > { %v12883_v29 = vpop.f32.mrb[92].mxu1  ;;  %v19122_v30 = vadd.f32 %v20164_v11, %v10728_v37  ;;  %v20167_v37 = vld [vmem:[#allocation71_spill] sm:$0xff]  ;;  %v20168_v11 = vld [vmem:[#allocation109_spill] sm:$0xff] }
 0x91d   : > { %v12884_v34 = vpop.f32.mrb[93].mxu1 }
 0x91e   : > { %v12885_v40 = vadd.f32 %v12884_v34, %v12883_v29  ;;  %v12886_v52 = vpop.f32.mrb[94].mxu1 }
 0x91f   : > { %v12887_v56 = vpop.f32.mrb[95].mxu1 }
 0x920   : > { %v10733_v8 = vadd.f32 %v12885_v40, %v20165_v4  ;;  %v12888_v16 = vadd.f32 %v12887_v56, %v12886_v52  ;;  %v20171_v56 = vld [vmem:[#allocation123_spill] sm:$0xff] }
 0x922   : > { %v10736_v12 = vadd.f32 %v12888_v16, %v20166_v48  ;;  %v19127_v46 = vadd.f32 %v18872_v1, %v10733_v8 }
 0x924   : > { %v12889_v15 = vpop.f32.mrb[96].mxu1  ;;  %v19130_v9 = vadd.f32 %v18874_v58, %v10736_v12 }
 0x925   : > { %v12890_v24 = vpop.f32.mrb[97].mxu1 }
 0x926   : > { %v12891_v44 = vadd.f32 %v12890_v24, %v12889_v15  ;;  %v12892_v33 = vpop.f32.mrb[98].mxu1  ;;  %v20172_v15 = vld [vmem:[#allocation111_spill] sm:$0xff] }
 0x927   : > { %v12893_v31 = vpop.f32.mrb[99].mxu1 }
 0x928   : > { %v10741_v10 = vadd.f32 %v12891_v44, %v20167_v37  ;;  %v12894_v29 = vadd.f32 %v12893_v31, %v12892_v33  ;;  %v20173_v44 = vld [vmem:[#allocation77_spill] sm:$0xff]  ;;  %v20174_v37 = vld [vmem:[#allocation104_spill] sm:$0xff] }
 0x92a   : > { %v10744_v34 = vadd.f32 %v12894_v29, %v20168_v11  ;;  %v19135_v4 = vadd.f32 %v18887_v41, %v10741_v10 }
 0x92c   : > { %20169 = vst [vmem:[#allocation92_spill] sm:$0xff] %v19135_v4  ;;  %v12895_v40 = vpop.f32.mrb[100].mxu1  ;;  %v19138_v1 = vadd.f32 %v18889_v18, %v10744_v34  ;;  %v20175_v34 = vld [vmem:[#allocation75_spill] sm:$0xff] }
 0x92d   : > { %v12896_v48 = vpop.f32.mrb[101].mxu1 }
 0x92e   : > { %20170 = vst [vmem:[#allocation93_spill] sm:$0xff] %v19138_v1  ;;  %v12897_v52 = vadd.f32 %v12896_v48, %v12895_v40  ;;  %v12898_v58 = vpop.f32.mrb[102].mxu1  ;;  %v20176_v1 = vld [vmem:[#allocation76_spill] sm:$0xff] }
 0x92f   : > { %v12899_v12 = vpop.f32.mrb[103].mxu1 }
 0x930   : > { %v10749_v8 = vadd.f32 %v12897_v52, %v20171_v56  ;;  %v12900_v16 = vadd.f32 %v12899_v12, %v12898_v58 }
 0x932   : > { %v10752_v24 = vadd.f32 %v12900_v16, %v20172_v15  ;;  %v19143_v33 = vadd.f32 %v20173_v44, %v10749_v8 }
 0x934   : > { %v12901_v31 = vpop.f32.mrb[104].mxu1  ;;  %v19146_v41 = vadd.f32 %v20174_v37, %v10752_v24  ;;  %v20177_v24 = vld [vmem:[#allocation122_spill] sm:$0xff]  ;;  %v20178_v37 = vld [vmem:[#allocation124_spill] sm:$0xff] }
 0x935   : > { %v12902_v10 = vpop.f32.mrb[105].mxu1 }
 0x936   : > { %v12903_v29 = vadd.f32 %v12902_v10, %v12901_v31  ;;  %v12904_v18 = vpop.f32.mrb[106].mxu1 }
 0x937   : > { %v12905_v11 = vpop.f32.mrb[107].mxu1 }
 0x938   : > { %v10757_v40 = vadd.f32 %v12903_v29, %v20175_v34  ;;  %v12906_v48 = vadd.f32 %v12905_v11, %v12904_v18 }
 0x93a   : > { %v10760_v4 = vadd.f32 %v12906_v48, %v20176_v1  ;;  %v19151_v52 = vadd.f32 %v18920_v62, %v10757_v40  ;;  %v19168_v48 = vld [vmem:[%s19479_s5] ss:$0 sm:$0xff] }
 0x93c   : > { %v12907_v58 = vpop.f32.mrb[108].mxu1  ;;  %v19154_v12 = vadd.f32 %v18926_v32, %v10760_v4 }
 0x93d   : > { %v12908_v56 = vpop.f32.mrb[109].mxu1 }
 0x93e   : > { %v12909_v8 = vadd.f32 %v12908_v56, %v12907_v58  ;;  %v12910_v16 = vpop.f32.mrb[110].mxu1 }
 0x93f   : > { %v12911_v15 = vpop.f32.mrb[111].mxu1 }
 0x940   : > { %v10765_v44 = vadd.f32 %v12909_v8, %v20177_v24  ;;  %v12912_v31 = vadd.f32 %v12911_v15, %v12910_v16 }
 0x942   : > { %v10768_v10 = vadd.f32 %v12912_v31, %v20178_v37  ;;  %v19159_v29 = vadd.f32 %v18949_v7, %v10765_v44 }
 0x944   : > { %v13041_v1 = vpop.f32.mrb[112].mxu1  ;;  %v19162_v62 = vadd.f32 %v18954_v19, %v10768_v10  ;;  %v19175_v19 = vld [vmem:[%s19480_s6] ss:$0 sm:$0xff] }
 0x945   : > { %v13042_v18 = vpop.f32.mrb[113].mxu1 }
 0x946   : > { %v13043_v11 = vadd.f32 %v13042_v18, %v13041_v1  ;;  %v13044_v32 = vpop.f32.mrb[114].mxu1 }
 0x947   : > { %v13045_v4 = vpop.f32.mrb[115].mxu1 }
 0x948   : > { %v10967_v34 = vadd.f32 %v13043_v11, %v18944_v63  ;;  %v13046_v40 = vadd.f32 %v13045_v4, %v13044_v32  ;;  %v20179_v32 = vld [vmem:[#allocation119_spill] sm:$0xff] }
 0x949   : > { %vm11396_vm2 = vcmp.lt.s32.totalorder %v20179_v32, 7 }
 0x94a   : > { %v11128_v58 = vadd.f32 %v18970_v28, %v10967_v34  ;;  %v10970_v7 = vadd.f32 %v13046_v40, %v18947_v47 }
 0x94c   : > { %v11261_v56 = vmul.f32 %v19168_v48, %v11128_v58  ;;  %v11131_v8 = vadd.f32 %v18975_v51, %v10970_v7  ;;  %v13047_v63 = vpop.f32.mrb[116].mxu1 }
 0x94d   : > { %v13048_v16 = vpop.f32.mrb[117].mxu1 }
 0x94e   : > { %v11300_v15 = vadd.f32 %v19175_v19, %v11261_v56  ;;  %v11262_v24 = vmul.f32 %v19168_v48, %v11131_v8  ;;  %v13049_v44 = vadd.f32 %v13048_v16, %v13047_v63  ;;  %v13050_v31 = vpop.f32.mrb[118].mxu1 }
 0x94f   : > { %v13051_v28 = vpop.f32.mrb[119].mxu1 }
 0x950   : > { %v11332_v37 = vmax.f32 %v11300_v15, 0.0  ;;  %v11301_v47 = vadd.f32 %v19175_v19, %v11262_v24  ;;  %v10975_v10 = vadd.f32 %v13049_v44, %v18963_v13  ;;  %v13052_v1 = vadd.f32 %v13051_v28, %v13050_v31 }
 0x952   : > { %v11333_v18 = vmax.f32 %v11301_v47, 0.0  ;;  %v11136_v11 = vadd.f32 %v18968_v0, %v10975_v10  ;;  %v10978_v51 = vadd.f32 %v13052_v1, %v18966_v21  ;;  %v11364_v4 = vrot.slane %v11332_v37, 1 }
 0x954   : > { %v11372_v34 = vrot.slane %v11333_v18, 1  ;;  %v11263_v40 = vmul.f32 %v19168_v48, %v11136_v11  ;;  %v11139_v58 = vadd.f32 %v18972_v36, %v10978_v51  ;;  %v13053_v7 = vpop.f32.mrb[120].mxu1 }
 0x955   : > { %v13054_v56 = vpop.f32.mrb[121].mxu1 }
 0x956   : > { %v11413_v8 = vsel %vm11396_vm2, %v11364_v4, %v11372_v34  ;;  %v11302_v13 = vadd.f32 %v19175_v19, %v11263_v40  ;;  %v11264_v63 = vmul.f32 %v19168_v48, %v11139_v58  ;;  %v13055_v0 = vadd.f32 %v13054_v56, %v13053_v7  ;;  %v13056_v16 = vpop.f32.mrb[122].mxu1 }
 0x957   : > { %v11429_v21 = vmax.f32 %v11332_v37, %v11413_v8  ;;  %v13057_v15 = vpop.f32.mrb[123].mxu1 }
 0x958   : > { %v11334_v24 = vmax.f32 %v11302_v13, 0.0  ;;  %v11303_v44 = vadd.f32 %v19175_v19, %v11264_v63  ;;  %v10983_v31 = vadd.f32 %v13055_v0, %v18987_v2  ;;  %v13058_v28 = vadd.f32 %v13057_v15, %v13056_v16  ;;  %v19214_v15 = vld [vmem:[%s19481_s7 + $0x8] sm:$0xff] }
 0x95a   : > { %v11380_v36 = vrot.slane %v11334_v24, 1  ;;  %v11335_v47 = vmax.f32 %v11303_v44, 0.0  ;;  %v11144_v10 = vadd.f32 %v18994_v50, %v10983_v31  ;;  %v10986_v1 = vadd.f32 %v13058_v28, %v18990_v26  ;;  %v19207_v26 = vld [vmem:[%s19481_s7] sm:$0xff] }
 0x95c   : > { %v11405_v11 = vsel %vm11396_vm2, %v11372_v34, %v11380_v36  ;;  %v11388_v51 = vrot.slane %v11335_v47, 1  ;;  %v11265_v40 = vmul.f32 %v19168_v48, %v11144_v10  ;;  %v11147_v37 = vadd.f32 %v18999_v23, %v10986_v1  ;;  %v13059_v58 = vpop.f32.mrb[124].mxu1  ;;  %v19226_v1 = vld [vmem:[%s19481_s7 + $0x18] sm:$0xff] }
 0x95d   : > { %v11430_v7 = vmax.f32 %v11333_v18, %v11405_v11  ;;  %v13060_v56 = vpop.f32.mrb[125].mxu1 }
 0x95e   : > { %v11397_v2 = vsel %vm11396_vm2, %v11380_v36, %v11388_v51  ;;  %v11421_v8 = vsel %vm11396_vm2, %v11388_v51, %v11364_v4  ;;  %v11304_v50 = vadd.f32 %v19175_v19, %v11265_v40  ;;  %v11266_v34 = vmul.f32 %v19168_v48, %v11147_v37  ;;  %v13062_v13 = vpop.f32.mrb[126].mxu1  ;;  %v19219_v4 = vld [vmem:[%s19481_s7 + $0x10] sm:$0xff] }
 0x95f   : > { %v11431_v23 = vmax.f32 %v11334_v24, %v11397_v2  ;;  %v11432_v63 = vmax.f32 %v11335_v47, %v11421_v8  ;;  %v11461_v18 = vmax.f32 %v11429_v21, %v11430_v7  ;;  %v13061_v0 = vadd.f32 %v13060_v56, %v13059_v58  ;;  %v13063_v16 = vpop.f32.mrb[127].mxu1 }
 0x960   : > { %v11336_v44 = vmax.f32 %v11304_v50, 0.0  ;;  %v11305_v31 = vadd.f32 %v19175_v19, %v11266_v34  ;;  %v13064_v28 = vadd.f32 %v13063_v16, %v13062_v13 }
 0x961   : > { %v11462_v36 = vmax.f32 %v11430_v7, %v11431_v23  ;;  %v11463_v24 = vmax.f32 %v11431_v23, %v11432_v63  ;;  %v11464_v47 = vmax.f32 %v11432_v63, %v11429_v21  ;;  %v11497_v10 = vmul.f32 %v19207_v26, %v11461_v18 }
 0x962   : > { %v11337_v11 = vmax.f32 %v11305_v31, 0.0  ;;  %v10991_v51 = vadd.f32 %v13061_v0, %v19010_v17  ;;  %v10994_v40 = vadd.f32 %v13064_v28, %v19013_v49  ;;  %v11365_v7 = vrot.slane %v11336_v44, 1 }
 0x963   : > { %v11498_v37 = vmul.f32 %v19214_v15, %v11462_v36  ;;  %v11499_v58 = vmul.f32 %v19219_v4, %v11463_v24  ;;  %v11500_v50 = vmul.f32 %v19226_v1, %v11464_v47  ;;  %v11530_v34 = vsel %vm11529_vm6, %v11497_v10, 0.0 }
 0x964   : > { %v11373_v56 = vrot.slane %v11337_v11, 1  ;;  %v11152_v21 = vadd.f32 %v18992_v22, %v10991_v51  ;;  %v11155_v2 = vadd.f32 %v18996_v20, %v10994_v40  ;;  %v13065_v8 = vpop.f32.mrb[128].mxu1 }
 0x965   : > { %v11531_v13 = vsel %vm11529_vm6, %v11498_v37, 0.0  ;;  %v13066_v17 = vpop.f32.mrb[129].mxu1  ;;  %v11533_v22 = vsel %vm11529_vm6, %v11499_v58, 0.0  ;;  %v11535_v10 = vsel %vm11529_vm6, %v11500_v50, 0.0 }
 0x966   : > { %v11532_v23 = vadd.f32 %v11531_v13, %v11530_v34  ;;  %v11414_v49 = vsel %vm11396_vm2, %v11365_v7, %v11373_v56  ;;  %v11267_v63 = vmul.f32 %v19168_v48, %v11152_v21  ;;  %v11268_v18 = vmul.f32 %v19168_v48, %v11155_v2  ;;  %v13068_v0 = vpop.f32.mrb[130].mxu1 }
 0x967   : > { %v11433_v20 = vmax.f32 %v11336_v44, %v11414_v49  ;;  %v13067_v16 = vadd.f32 %v13066_v17, %v13065_v8  ;;  %v13069_v31 = vpop.f32.mrb[131].mxu1 }
 0x968   : > { %v11534_v28 = vadd.f32 %v11533_v22, %v11532_v23  ;;  %v11306_v36 = vadd.f32 %v19175_v19, %v11267_v63  ;;  %v11307_v24 = vadd.f32 %v19175_v19, %v11268_v18  ;;  %v13070_v47 = vadd.f32 %v13069_v31, %v13068_v0 }
 0x969   : > { %v10999_v51 = vadd.f32 %v13067_v16, %v19031_v59 }
 0x96a   : > { %v11536_v40 = vadd.f32 %v11535_v10, %v11534_v28  ;;  %v11338_v37 = vmax.f32 %v11306_v36, 0.0  ;;  %v11339_v21 = vmax.f32 %v11307_v24, 0.0  ;;  %v11002_v2 = vadd.f32 %v13070_v47, %v19034_v53 }
 0x96b   : > { %v11160_v58 = vadd.f32 %v19017_v27, %v10999_v51 }
 0x96c   : > { %v11381_v44 = vrot.slane %v11338_v37, 1  ;;  %v11389_v8 = vrot.slane %v11339_v21, 1  ;;  %v11163_v34 = vadd.f32 %v19022_v25, %v11002_v2  ;;  %v13071_v13 = vpop.f32.mrb[132].mxu1  ;;  %v11537_v49 = vrot.slane %v11536_v40, 4 }
 0x96d   : > { %v11269_v17 = vmul.f32 %v19168_v48, %v11160_v58  ;;  %v13072_v23 = vpop.f32.mrb[133].mxu1 }
 0x96e   : > { %v11406_v50 = vsel %vm11396_vm2, %v11373_v56, %v11381_v44  ;;  %v11398_v59 = vsel %vm11396_vm2, %v11381_v44, %v11389_v8  ;;  %v11422_v53 = vsel %vm11396_vm2, %v11389_v8, %v11365_v7  ;;  %v13074_v63 = vpop.f32.mrb[134].mxu1  ;;  %v11270_v16 = vmul.f32 %v19168_v48, %v11163_v34 }
 0x96f   : > { %v11434_v27 = vmax.f32 %v11337_v11, %v11406_v50  ;;  %v11435_v18 = vmax.f32 %v11338_v37, %v11398_v59  ;;  %v11436_v0 = vmax.f32 %v11339_v21, %v11422_v53  ;;  %v11308_v25 = vadd.f32 %v19175_v19, %v11269_v17  ;;  %v13075_v22 = vpop.f32.mrb[135].mxu1 }
 0x970   : > { %v13073_v31 = vadd.f32 %v13072_v23, %v13071_v13  ;;  %v13076_v28 = vadd.f32 %v13075_v22, %v13074_v63  ;;  %v11309_v51 = vadd.f32 %v19175_v19, %v11270_v16  ;;  %v11538_v37 = vadd.f32 %v11537_v49, %v11536_v40 }
 0x971   : > { %v11465_v36 = vmax.f32 %v11433_v20, %v11434_v27  ;;  %v11466_v24 = vmax.f32 %v11434_v27, %v11435_v18  ;;  %v11467_v56 = vmax.f32 %v11435_v18, %v11436_v0  ;;  %v11468_v47 = vmax.f32 %v11436_v0, %v11433_v20 }
 0x972   : > { %v11340_v10 = vmax.f32 %v11308_v25, 0.0  ;;  %v11007_v7 = vadd.f32 %v13073_v31, %v19047_v60  ;;  %v11010_v11 = vadd.f32 %v13076_v28, %v19050_v42  ;;  %v11341_v44 = vmax.f32 %v11309_v51, 0.0 }
 0x973   : > { %v11501_v21 = vmul.f32 %v19207_v26, %v11465_v36  ;;  %v11502_v2 = vmul.f32 %v19214_v15, %v11466_v24  ;;  %v11503_v58 = vmul.f32 %v19219_v4, %v11467_v56  ;;  %v11504_v13 = vmul.f32 %v19226_v1, %v11468_v47 }
 0x974   : > { %v11168_v8 = vadd.f32 %v19015_v5, %v11007_v7  ;;  %v11171_v34 = vadd.f32 %v19019_v6, %v11010_v11  ;;  %v13077_v20 = vpop.f32.mrb[136].mxu1  ;;  %v11366_v42 = vrot.slane %v11340_v10, 1  ;;  %v11374_v49 = vrot.slane %v11341_v44, 1 }
 0x975   : > { %v11543_v17 = vsel %vm11529_vm6, %v11501_v21, 0.0  ;;  %v11544_v60 = vsel %vm11529_vm6, %v11502_v2, 0.0  ;;  %v13078_v40 = vpop.f32.mrb[137].mxu1  ;;  %v11539_v63 = vrot.slane %v11538_v37, 2  ;;  %v11546_v5 = vsel %vm11529_vm6, %v11503_v58, 0.0 }
 0x976   : > { %v11545_v23 = vadd.f32 %v11544_v60, %v11543_v17  ;;  %v11271_v50 = vmul.f32 %v19168_v48, %v11168_v8  ;;  %v11272_v59 = vmul.f32 %v19168_v48, %v11171_v34  ;;  %v13080_v53 = vpop.f32.mrb[138].mxu1  ;;  %v13079_v6 = vadd.f32 %v13078_v40, %v13077_v20 }
 0x977   : > { %v13081_v27 = vpop.f32.mrb[139].mxu1  ;;  %v11415_v0 = vsel %vm11396_vm2, %v11366_v42, %v11374_v49  ;;  %v11548_v16 = vsel %vm11529_vm6, %v11504_v13, 0.0 }
 0x978   : > { %v11547_v18 = vadd.f32 %v11546_v5, %v11545_v23  ;;  %v11310_v25 = vadd.f32 %v19175_v19, %v11271_v50  ;;  %v11311_v22 = vadd.f32 %v19175_v19, %v11272_v59  ;;  %v11437_v31 = vmax.f32 %v11340_v10, %v11415_v0 }
 0x979   : > { %v11015_v28 = vadd.f32 %v13079_v6, %v19063_v35  ;;  %v13082_v36 = vadd.f32 %v13081_v27, %v13080_v53  ;;  %v11540_v10 = vadd.f32 %v11539_v63, %v11538_v37 }
 0x97a   : > { %v11549_v24 = vadd.f32 %v11548_v16, %v11547_v18  ;;  %v11342_v56 = vmax.f32 %v11310_v25, 0.0  ;;  %v11343_v47 = vmax.f32 %v11311_v22, 0.0 }
 0x97b   : > { %v11176_v51 = vadd.f32 %v19038_v61, %v11015_v28  ;;  %v11018_v7 = vadd.f32 %v13082_v36, %v19066_v57 }
 0x97c   : > { %v11550_v11 = vrot.slane %v11549_v24, 4  ;;  %v11382_v21 = vrot.slane %v11342_v56, 1  ;;  %v11390_v2 = vrot.slane %v11343_v47, 1  ;;  %v13083_v58 = vpop.f32.mrb[140].mxu1 }
 0x97d   : > { %v11273_v8 = vmul.f32 %v19168_v48, %v11176_v51  ;;  %v11179_v34 = vadd.f32 %v19043_v38, %v11018_v7  ;;  %v13084_v20 = vpop.f32.mrb[141].mxu1  ;;  %v11541_v7 = vrot.slane %v11540_v10, 1 }
 0x97e   : > { %v11551_v13 = vadd.f32 %v11550_v11, %v11549_v24  ;;  %v11407_v35 = vsel %vm11396_vm2, %v11374_v49, %v11382_v21  ;;  %v11399_v17 = vsel %vm11396_vm2, %v11382_v21, %v11390_v2  ;;  %v11423_v61 = vsel %vm11396_vm2, %v11390_v2, %v11366_v42  ;;  %v13086_v57 = vpop.f32.mrb[142].mxu1 }
 0x97f   : > { %v11438_v60 = vmax.f32 %v11341_v44, %v11407_v35  ;;  %v11439_v40 = vmax.f32 %v11342_v56, %v11399_v17  ;;  %v11440_v23 = vmax.f32 %v11343_v47, %v11423_v61  ;;  %v11312_v50 = vadd.f32 %v19175_v19, %v11273_v8  ;;  %v13087_v59 = vpop.f32.mrb[143].mxu1 }
 0x980   : > { %v11552_v38 = vrot.slane %v11551_v13, 2  ;;  %v11274_v37 = vmul.f32 %v19168_v48, %v11179_v34  ;;  %v13085_v53 = vadd.f32 %v13084_v20, %v13083_v58  ;;  %v13088_v63 = vadd.f32 %v13087_v59, %v13086_v57 }
 0x981   : > { %v11469_v5 = vmax.f32 %v11437_v31, %v11438_v60  ;;  %v11470_v49 = vmax.f32 %v11438_v60, %v11439_v40  ;;  %v11471_v6 = vmax.f32 %v11439_v40, %v11440_v23  ;;  %v11472_v27 = vmax.f32 %v11440_v23, %v11437_v31 }
 0x982   : > { %v11344_v18 = vmax.f32 %v11312_v50, 0.0  ;;  %v11313_v0 = vadd.f32 %v19175_v19, %v11274_v37  ;;  %v11023_v42 = vadd.f32 %v13085_v53, %v19079_v45  ;;  %v11026_v44 = vadd.f32 %v13088_v63, %v19082_v43 }
 0x983   : > { %v11505_v25 = vmul.f32 %v19207_v26, %v11469_v5  ;;  %v11506_v22 = vmul.f32 %v19214_v15, %v11470_v49  ;;  %v11507_v16 = vmul.f32 %v19219_v4, %v11471_v6  ;;  %v11508_v28 = vmul.f32 %v19226_v1, %v11472_v27 }
 0x984   : > { %v11345_v36 = vmax.f32 %v11313_v0, 0.0  ;;  %v11184_v24 = vadd.f32 %v19036_v39, %v11023_v42  ;;  %v11187_v31 = vadd.f32 %v19040_v3, %v11026_v44  ;;  %v13089_v56 = vpop.f32.mrb[144].mxu1  ;;  %v11367_v51 = vrot.slane %v11344_v18, 1 }
 0x985   : > { %v11556_v47 = vsel %vm11529_vm6, %v11505_v25, 0.0  ;;  %v11557_v45 = vsel %vm11529_vm6, %v11506_v22, 0.0  ;;  %v13090_v43 = vpop.f32.mrb[145].mxu1  ;;  %v11559_v34 = vsel %vm11529_vm6, %v11507_v16, 0.0  ;;  %v11561_v39 = vsel %vm11529_vm6, %v11508_v28, 0.0  ;;  %v20181_v25 = vld [vmem:[#allocation80_spill] sm:$0xff] }
 0x986   : > { %v11558_v11 = vadd.f32 %v11557_v45, %v11556_v47  ;;  %v11375_v21 = vrot.slane %v11345_v36, 1  ;;  %v11275_v2 = vmul.f32 %v19168_v48, %v11184_v24  ;;  %v11276_v58 = vmul.f32 %v19168_v48, %v11187_v31  ;;  %v13092_v8 = vpop.f32.mrb[146].mxu1 }
 0x987   : > { %v13091_v3 = vadd.f32 %v13090_v43, %v13089_v56  ;;  %v13093_v20 = vpop.f32.mrb[147].mxu1  ;;  %v11553_v35 = vadd.f32 %v11552_v38, %v11551_v13  ;;  %v20180_v13 = vld [vmem:[#allocation86_spill] sm:$0xff]  ;;  %v11542_v49 = vadd.f32 %v11541_v7, %v11540_v10 }
 0x988   : > { %v11560_v17 = vadd.f32 %v11559_v34, %v11558_v11  ;;  %v11416_v61 = vsel %vm11396_vm2, %v11367_v51, %v11375_v21  ;;  %v11314_v57 = vadd.f32 %v19175_v19, %v11275_v2  ;;  %v11315_v60 = vadd.f32 %v19175_v19, %v11276_v58 }
 0x989   : > { %v11441_v40 = vmax.f32 %v11344_v18, %v11416_v61  ;;  %v11031_v23 = vadd.f32 %v13091_v3, %v19095_v14  ;;  %v13094_v50 = vadd.f32 %v13093_v20, %v13092_v8  ;;  %v11554_v59 = vrot.slane %v11553_v35, 1 }
 0x98a   : > { %v11562_v37 = vadd.f32 %v11561_v39, %v11560_v17  ;;  %v11346_v53 = vmax.f32 %v11314_v57, 0.0  ;;  %v11347_v63 = vmax.f32 %v11315_v60, 0.0 }
 0x98b   : > { %v11192_v5 = vadd.f32 %v19054_v54, %v11031_v23  ;;  %v11034_v38 = vadd.f32 %v13094_v50, %v20180_v13  ;;  %v11555_v6 = vadd.f32 %v11554_v59, %v11553_v35 }
 0x98c   : > { %v11563_v27 = vrot.slane %v11562_v37, 4  ;;  %v11383_v0 = vrot.slane %v11346_v53, 1  ;;  %v11391_v42 = vrot.slane %v11347_v63, 1  ;;  %v13095_v44 = vpop.f32.mrb[40].mxu1 }
 0x98d   : > { %v11277_v18 = vmul.f32 %v19168_v48, %v11192_v5  ;;  %v11195_v14 = vadd.f32 %v20181_v25, %v11034_v38  ;;  %v13096_v22 = vpop.f32.mrb[41].mxu1  ;;  %v19314_v16 = vsel %vm11642_vm9, %v11555_v6, %v11542_v49 }
 0x98e   : > { %v11564_v28 = vadd.f32 %v11563_v27, %v11562_v37  ;;  %v11408_v24 = vsel %vm11396_vm2, %v11375_v21, %v11383_v0  ;;  %v11400_v54 = vsel %vm11396_vm2, %v11383_v0, %v11391_v42  ;;  %v11424_v10 = vsel %vm11396_vm2, %v11391_v42, %v11367_v51  ;;  %v13098_v31 = vpop.f32.mrb[42].mxu1  ;;  %v20182_v51 = vld [vmem:[#allocation121_spill] sm:$0xff]  ;;  %v20184_v37 = vld [vmem:[#allocation78_spill] sm:$0xff] }
 0x98f   : > { %v11442_v56 = vmax.f32 %v11345_v36, %v11408_v24  ;;  %v11443_v47 = vmax.f32 %v11346_v53, %v11400_v54  ;;  %v11444_v45 = vmax.f32 %v11347_v63, %v11424_v10  ;;  %v11316_v43 = vadd.f32 %v19175_v19, %v11277_v18  ;;  %v13099_v7 = vpop.f32.mrb[43].mxu1  ;;  %v20183_v36 = vld [vmem:[#allocation91_spill] sm:$0xff] }
 0x990   : > { %v11278_v11 = vmul.f32 %v19168_v48, %v11195_v14  ;;  %v13097_v2 = vadd.f32 %v13096_v22, %v13095_v44  ;;  %v13100_v58 = vadd.f32 %v13099_v7, %v13098_v31  ;;  %v11565_v8 = vrot.slane %v11564_v28, 2  ;;  %v20185_v63 = vld [vmem:[#allocation79_spill] sm:$0xff] }
 0x991   : > { %v11473_v34 = vmax.f32 %v11441_v40, %v11442_v56  ;;  %v11474_v21 = vmax.f32 %v11442_v56, %v11443_v47  ;;  %v11475_v39 = vmax.f32 %v11443_v47, %v11444_v45  ;;  %v11476_v3 = vmax.f32 %v11444_v45, %v11441_v40 }
 0x992   : > { %v11348_v20 = vmax.f32 %v11316_v43, 0.0  ;;  %v11317_v35 = vadd.f32 %v19175_v19, %v11278_v11  ;;  %v11039_v17 = vadd.f32 %v13097_v2, %v20182_v51  ;;  %v11042_v61 = vadd.f32 %v13100_v58, %v20183_v36 }
 0x993   : > { %v11509_v57 = vmul.f32 %v19207_v26, %v11473_v34  ;;  %v11510_v60 = vmul.f32 %v19214_v15, %v11474_v21  ;;  %v11511_v23 = vmul.f32 %v19219_v4, %v11475_v39  ;;  %v11512_v50 = vmul.f32 %v19226_v1, %v11476_v3  ;;  %v20186_v21 = vld [vmem:[#allocation82_spill] sm:$0xff] }
 0x994   : > { %v11349_v59 = vmax.f32 %v11317_v35, 0.0  ;;  %v11200_v53 = vadd.f32 %v20184_v37, %v11039_v17  ;;  %v11203_v40 = vadd.f32 %v20185_v63, %v11042_v61  ;;  %v13101_v5 = vpop.f32.mrb[44].mxu1  ;;  %v11368_v49 = vrot.slane %v11348_v20, 1 }
 0x995   : > { %v11569_v13 = vsel %vm11529_vm6, %v11509_v57, 0.0  ;;  %v11570_v38 = vsel %vm11529_vm6, %v11510_v60, 0.0  ;;  %v13102_v6 = vpop.f32.mrb[45].mxu1  ;;  %v11572_v25 = vsel %vm11529_vm6, %v11511_v23, 0.0  ;;  %v11574_v14 = vsel %vm11529_vm6, %v11512_v50, 0.0 }
 0x996   : > { %v11571_v27 = vadd.f32 %v11570_v38, %v11569_v13  ;;  %v11376_v0 = vrot.slane %v11349_v59, 1  ;;  %v11279_v42 = vmul.f32 %v19168_v48, %v11200_v53  ;;  %v11280_v44 = vmul.f32 %v19168_v48, %v11203_v40  ;;  %v13104_v18 = vpop.f32.mrb[46].mxu1 }
 0x997   : > { %v13103_v22 = vadd.f32 %v13102_v6, %v13101_v5  ;;  %v13105_v24 = vpop.f32.mrb[47].mxu1  ;;  %v11566_v54 = vadd.f32 %v11565_v8, %v11564_v28 }
 0x998   : > { %v11573_v10 = vadd.f32 %v11572_v25, %v11571_v27  ;;  %v11417_v31 = vsel %vm11396_vm2, %v11368_v49, %v11376_v0  ;;  %v11318_v56 = vadd.f32 %v19175_v19, %v11279_v42  ;;  %v11319_v47 = vadd.f32 %v19175_v19, %v11280_v44 }
 0x999   : > { %v11445_v45 = vmax.f32 %v11348_v20, %v11417_v31  ;;  %v11047_v43 = vadd.f32 %v13103_v22, %v19119_v55  ;;  %v13106_v7 = vadd.f32 %v13105_v24, %v13104_v18  ;;  %v11567_v11 = vrot.slane %v11566_v54, 1  ;;  %v20187_v20 = vld [vmem:[#allocation51_spill] sm:$0xff] }
 0x99a   : > { %v11575_v2 = vadd.f32 %v11574_v14, %v11573_v10  ;;  %v11350_v58 = vmax.f32 %v11318_v56, 0.0  ;;  %v11351_v34 = vmax.f32 %v11319_v47, 0.0  ;;  %v20188_v14 = vld [vmem:[#allocation81_spill] sm:$0xff]  ;;  %v20189_v47 = vld [vmem:[#allocation83_spill] sm:$0xff] }
 0x99b   : > { %v11208_v39 = vadd.f32 %v20186_v21, %v11047_v43  ;;  %v11050_v28 = vadd.f32 %v13106_v7, %v19122_v30  ;;  %v11568_v8 = vadd.f32 %v11567_v11, %v11566_v54 }
 0x99c   : > { %v11576_v3 = vrot.slane %v11575_v2, 4  ;;  %v11384_v35 = vrot.slane %v11350_v58, 1  ;;  %v11392_v51 = vrot.slane %v11351_v34, 1  ;;  %v13107_v17 = vpop.f32.mrb[48].mxu1 }
 0x99d   : > { %v11281_v36 = vmul.f32 %v19168_v48, %v11208_v39  ;;  %v11211_v61 = vadd.f32 %v20187_v20, %v11050_v28  ;;  %v13108_v55 = vpop.f32.mrb[49].mxu1  ;;  %v19349_v57 = vsel %vm11644_vm11, %v11568_v8, %v19314_v16 }
 0x99e   : > { %v11409_v60 = vsel %vm11396_vm2, %v11376_v0, %v11384_v35  ;;  %v11401_v23 = vsel %vm11396_vm2, %v11384_v35, %v11392_v51  ;;  %v11425_v30 = vsel %vm11396_vm2, %v11392_v51, %v11368_v49  ;;  %v13109_v50 = vadd.f32 %v13108_v55, %v13107_v17  ;;  %v13110_v37 = vpop.f32.mrb[50].mxu1 }
 0x99f   : > { %v11446_v53 = vmax.f32 %v11349_v59, %v11409_v60  ;;  %v11447_v63 = vmax.f32 %v11350_v58, %v11401_v23  ;;  %v11448_v40 = vmax.f32 %v11351_v34, %v11425_v30  ;;  %v11320_v5 = vadd.f32 %v19175_v19, %v11281_v36  ;;  %v13111_v13 = vpop.f32.mrb[51].mxu1  ;;  %v20190_v23 = vld [vmem:[#allocation92_spill] sm:$0xff] }
 0x9a0   : > { %v11282_v16 = vmul.f32 %v19168_v48, %v11211_v61  ;;  %v11055_v38 = vadd.f32 %v13109_v50, %v19127_v46  ;;  %v13112_v6 = vadd.f32 %v13111_v13, %v13110_v37  ;;  %v11577_v27 = vadd.f32 %v11576_v3, %v11575_v2 }
 0x9a1   : > { %v11477_v0 = vmax.f32 %v11445_v45, %v11446_v53  ;;  %v11478_v42 = vmax.f32 %v11446_v53, %v11447_v63  ;;  %v11479_v44 = vmax.f32 %v11447_v63, %v11448_v40  ;;  %v11480_v18 = vmax.f32 %v11448_v40, %v11445_v45 }
 0x9a2   : > { %v11352_v25 = vmax.f32 %v11320_v5, 0.0  ;;  %v11321_v49 = vadd.f32 %v19175_v19, %v11282_v16  ;;  %v11216_v59 = vadd.f32 %v20188_v14, %v11055_v38  ;;  %v11058_v22 = vadd.f32 %v13112_v6, %v19130_v9  ;;  %v20191_v5 = vld [vmem:[#allocation84_spill] sm:$0xff]  ;;  %v20192_v16 = vld [vmem:[#allocation93_spill] sm:$0xff] }
 0x9a3   : > { %v11513_v24 = vmul.f32 %v19207_v26, %v11477_v0  ;;  %v11514_v54 = vmul.f32 %v19214_v15, %v11478_v42  ;;  %v11515_v10 = vmul.f32 %v19219_v4, %v11479_v44  ;;  %v11516_v46 = vmul.f32 %v19226_v1, %v11480_v18 }
 0x9a4   : > { %v11353_v31 = vmax.f32 %v11321_v49, 0.0  ;;  %v11283_v56 = vmul.f32 %v19168_v48, %v11216_v59  ;;  %v11219_v45 = vadd.f32 %v20189_v47, %v11058_v22  ;;  %v13113_v43 = vpop.f32.mrb[52].mxu1  ;;  %v11369_v2 = vrot.slane %v11352_v25, 1  ;;  %v20193_v49 = vld [vmem:[#allocation85_spill] sm:$0xff] }
 0x9a5   : > { %v11582_v7 = vsel %vm11529_vm6, %v11513_v24, 0.0  ;;  %v11583_v11 = vsel %vm11529_vm6, %v11514_v54, 0.0  ;;  %v13114_v9 = vpop.f32.mrb[53].mxu1  ;;  %v11585_v8 = vsel %vm11529_vm6, %v11515_v10, 0.0  ;;  %v11587_v3 = vsel %vm11529_vm6, %v11516_v46, 0.0 }
 0x9a6   : > { %v11584_v58 = vadd.f32 %v11583_v11, %v11582_v7  ;;  %v11377_v34 = vrot.slane %v11353_v31, 1  ;;  %v11322_v21 = vadd.f32 %v19175_v19, %v11283_v56  ;;  %v11284_v39 = vmul.f32 %v19168_v48, %v11219_v45  ;;  %v13116_v28 = vpop.f32.mrb[54].mxu1 }
 0x9a7   : > { %v13115_v35 = vadd.f32 %v13114_v9, %v13113_v43  ;;  %v13117_v51 = vpop.f32.mrb[55].mxu1  ;;  %v11578_v17 = vrot.slane %v11577_v27, 2 }
 0x9a8   : > { %v11586_v36 = vadd.f32 %v11585_v8, %v11584_v58  ;;  %v11418_v20 = vsel %vm11396_vm2, %v11369_v2, %v11377_v34  ;;  %v11354_v61 = vmax.f32 %v11322_v21, 0.0  ;;  %v11323_v55 = vadd.f32 %v19175_v19, %v11284_v39 }
 0x9a9   : > { %v11449_v60 = vmax.f32 %v11352_v25, %v11418_v20  ;;  %v11063_v30 = vadd.f32 %v13115_v35, %v20190_v23  ;;  %v13118_v50 = vadd.f32 %v13117_v51, %v13116_v28  ;;  %v11579_v37 = vadd.f32 %v11578_v17, %v11577_v27  ;;  %v20195_v23 = vld [vmem:[#allocation54_spill] sm:$0xff] }
 0x9aa   : > { %v11385_v53 = vrot.slane %v11354_v61, 1  ;;  %v11355_v63 = vmax.f32 %v11323_v55, 0.0  ;;  %v11588_v40 = vadd.f32 %v11587_v3, %v11586_v36  ;;  %v20194_v3 = vld [vmem:[#allocation50_spill] sm:$0xff] }
 0x9ab   : > { %v11224_v13 = vadd.f32 %v20191_v5, %v11063_v30  ;;  %v11066_v38 = vadd.f32 %v13118_v50, %v20192_v16  ;;  %v11580_v59 = vrot.slane %v11579_v37, 1 }
 0x9ac   : > { %v11410_v6 = vsel %vm11396_vm2, %v11377_v34, %v11385_v53  ;;  %v11393_v0 = vrot.slane %v11355_v63, 1  ;;  %v13119_v42 = vpop.f32.mrb[56].mxu1  ;;  %v11589_v44 = vrot.slane %v11588_v40, 4 }
 0x9ad   : > { %v11450_v18 = vmax.f32 %v11353_v31, %v11410_v6  ;;  %v11285_v25 = vmul.f32 %v19168_v48, %v11224_v13  ;;  %v11227_v14 = vadd.f32 %v20193_v49, %v11066_v38  ;;  %v13120_v27 = vpop.f32.mrb[57].mxu1  ;;  %v11581_v20 = vadd.f32 %v11580_v59, %v11579_v37 }
 0x9ae   : > { %v11402_v22 = vsel %vm11396_vm2, %v11385_v53, %v11393_v0  ;;  %v11426_v24 = vsel %vm11396_vm2, %v11393_v0, %v11369_v2  ;;  %v13121_v54 = vadd.f32 %v13120_v27, %v13119_v42  ;;  %v13122_v10 = vpop.f32.mrb[58].mxu1  ;;  %v11590_v46 = vadd.f32 %v11589_v44, %v11588_v40 }
 0x9af   : > { %v11451_v56 = vmax.f32 %v11354_v61, %v11402_v22  ;;  %v11452_v47 = vmax.f32 %v11355_v63, %v11426_v24  ;;  %v11481_v45 = vmax.f32 %v11449_v60, %v11450_v18  ;;  %v11324_v31 = vadd.f32 %v19175_v19, %v11285_v25  ;;  %v13123_v43 = vpop.f32.mrb[59].mxu1 }
 0x9b0   : > { %v11286_v7 = vmul.f32 %v19168_v48, %v11227_v14  ;;  %v11071_v11 = vadd.f32 %v13121_v54, %v19143_v33  ;;  %v13124_v9 = vadd.f32 %v13123_v43, %v13122_v10  ;;  %v11591_v58 = vrot.slane %v11590_v46, 2 }
 0x9b1   : > { %v11482_v34 = vmax.f32 %v11450_v18, %v11451_v56  ;;  %v11483_v21 = vmax.f32 %v11451_v56, %v11452_v47  ;;  %v11484_v39 = vmax.f32 %v11452_v47, %v11449_v60  ;;  %v11517_v2 = vmul.f32 %v19207_v26, %v11481_v45  ;;  %v20196_v47 = vld [vmem:[#allocation88_spill] sm:$0xff] }
 0x9b2   : > { %v11356_v28 = vmax.f32 %v11324_v31, 0.0  ;;  %v11325_v8 = vadd.f32 %v19175_v19, %v11286_v7  ;;  %v11232_v35 = vadd.f32 %v20194_v3, %v11071_v11  ;;  %v11074_v51 = vadd.f32 %v13124_v9, %v19146_v41 }
 0x9b3   : > { %v11518_v17 = vmul.f32 %v19214_v15, %v11482_v34  ;;  %v11519_v36 = vmul.f32 %v19219_v4, %v11483_v21  ;;  %v11592_v33 = vadd.f32 %v11591_v58, %v11590_v46  ;;  %v11520_v61 = vmul.f32 %v19226_v1, %v11484_v39  ;;  %v20197_v34 = vld [vmem:[#allocation90_spill] sm:$0xff] }
 0x9b4   : > { %v11357_v55 = vmax.f32 %v11325_v8, 0.0  ;;  %v11287_v60 = vmul.f32 %v19168_v48, %v11232_v35  ;;  %v11235_v30 = vadd.f32 %v20195_v23, %v11074_v51  ;;  %v13125_v50 = vpop.f32.mrb[60].mxu1  ;;  %v11370_v53 = vrot.slane %v11356_v28, 1 }
 0x9b5   : > { %v13126_v63 = vpop.f32.mrb[61].mxu1  ;;  %v11593_v40 = vrot.slane %v11592_v33, 1  ;;  %v11595_v5 = vsel %vm11529_vm6, %v11517_v2, 0.0  ;;  %v11596_v41 = vsel %vm11529_vm6, %v11518_v17, 0.0  ;;  %v11598_v0 = vsel %vm11529_vm6, %v11519_v36, 0.0 }
 0x9b6   : > { %v11378_v13 = vrot.slane %v11357_v55, 1  ;;  %v11326_v16 = vadd.f32 %v19175_v19, %v11287_v60  ;;  %v11288_v37 = vmul.f32 %v19168_v48, %v11235_v30  ;;  %v13127_v38 = vadd.f32 %v13126_v63, %v13125_v50  ;;  %v13128_v6 = vpop.f32.mrb[62].mxu1 }
 0x9b7   : > { %v13129_v42 = vpop.f32.mrb[63].mxu1  ;;  %v11594_v44 = vadd.f32 %v11593_v40, %v11592_v33  ;;  %v11597_v18 = vadd.f32 %v11596_v41, %v11595_v5  ;;  %v11647_v25 = vsel %vm11646_vm4, %v11581_v20, %v19349_v57  ;;  %v11600_v57 = vsel %vm11529_vm6, %v11520_v61, 0.0  ;;  %v20198_v5 = vld [vmem:[#allocation87_spill] sm:$0xff] }
 0x9b8   : > { %v11419_v49 = vsel %vm11396_vm2, %v11370_v53, %v11378_v13  ;;  %v11358_v14 = vmax.f32 %v11326_v16, 0.0  ;;  %v11327_v27 = vadd.f32 %v19175_v19, %v11288_v37  ;;  %v11079_v59 = vadd.f32 %v13127_v38, %v19151_v52 }
 0x9b9   : > { %v11453_v22 = vmax.f32 %v11356_v28, %v11419_v49  ;;  %v13130_v24 = vadd.f32 %v13129_v42, %v13128_v6  ;;  %v11599_v54 = vadd.f32 %v11598_v0, %v11597_v18  ;;  %v19413_v10 = vsel %vm11648_vm10, %v11594_v44, %v11647_v25  ;;  %v20199_v42 = vld [vmem:[#allocation89_spill] sm:$0xff] }
 0x9ba   : > { %v11386_v46 = vrot.slane %v11358_v14, 1  ;;  %v11359_v56 = vmax.f32 %v11327_v27, 0.0  ;;  %v11240_v45 = vadd.f32 %v20196_v47, %v11079_v59 }
 0x9bb   : > { %v11082_v31 = vadd.f32 %v13130_v24, %v19154_v12  ;;  %v11601_v43 = vadd.f32 %v11600_v57, %v11599_v54 }
 0x9bc   : > { %v11411_v7 = vsel %vm11396_vm2, %v11378_v13, %v11386_v46  ;;  %v11394_v11 = vrot.slane %v11359_v56, 1  ;;  %v11289_v52 = vmul.f32 %v19168_v48, %v11240_v45  ;;  %v13131_v9 = vpop.f32.mrb[64].mxu1 }
 0x9bd   : > { %v11454_v58 = vmax.f32 %v11357_v55, %v11411_v7  ;;  %v11243_v21 = vadd.f32 %v20197_v34, %v11082_v31  ;;  %v13132_v39 = vpop.f32.mrb[65].mxu1  ;;  %v11602_v2 = vrot.slane %v11601_v43, 4 }
 0x9be   : > { %v11403_v28 = vsel %vm11396_vm2, %v11386_v46, %v11394_v11  ;;  %v11427_v8 = vsel %vm11396_vm2, %v11394_v11, %v11370_v53  ;;  %v11328_v12 = vadd.f32 %v19175_v19, %v11289_v52  ;;  %v13133_v3 = vadd.f32 %v13132_v39, %v13131_v9  ;;  %v13134_v35 = vpop.f32.mrb[66].mxu1 }
 0x9bf   : > { %v11455_v51 = vmax.f32 %v11358_v14, %v11403_v28  ;;  %v11456_v17 = vmax.f32 %v11359_v56, %v11427_v8  ;;  %v11485_v36 = vmax.f32 %v11453_v22, %v11454_v58  ;;  %v11290_v20 = vmul.f32 %v19168_v48, %v11243_v21  ;;  %v13135_v33 = vpop.f32.mrb[67].mxu1 }
 0x9c0   : > { %v11360_v61 = vmax.f32 %v11328_v12, 0.0  ;;  %v11087_v55 = vadd.f32 %v13133_v3, %v19159_v29  ;;  %v13136_v60 = vadd.f32 %v13135_v33, %v13134_v35  ;;  %v11603_v23 = vadd.f32 %v11602_v2, %v11601_v43 }
 0x9c1   : > { %v11486_v30 = vmax.f32 %v11454_v58, %v11455_v51  ;;  %v11487_v50 = vmax.f32 %v11455_v51, %v11456_v17  ;;  %v11488_v63 = vmax.f32 %v11456_v17, %v11453_v22  ;;  %v11521_v53 = vmul.f32 %v19207_v26, %v11485_v36 }
 0x9c2   : > { %v11329_v40 = vadd.f32 %v19175_v19, %v11290_v20  ;;  %v11248_v41 = vadd.f32 %v20198_v5, %v11087_v55  ;;  %v11090_v13 = vadd.f32 %v13136_v60, %v19162_v62  ;;  %v11604_v38 = vrot.slane %v11603_v23, 2 }
 0x9c3   : > { %v11522_v16 = vmul.f32 %v19214_v15, %v11486_v30  ;;  %v11523_v37 = vmul.f32 %v19219_v4, %v11487_v50  ;;  %v11371_v6 = vrot.slane %v11360_v61, 1  ;;  %v11524_v18 = vmul.f32 %v19226_v1, %v11488_v63 }
 0x9c4   : > { %v11361_v29 = vmax.f32 %v11329_v40, 0.0  ;;  %v11291_v0 = vmul.f32 %v19168_v48, %v11248_v41  ;;  %v11251_v44 = vadd.f32 %v20199_v42, %v11090_v13  ;;  %v11605_v25 = vadd.f32 %v11604_v38, %v11603_v23  ;;  %v12686_v38 = vld [vmem:[%s19482_s8] ss:$0 sm:$0xff] }
 0x9c5   : > { %v11608_v49 = vsel %vm11529_vm6, %v11521_v53, 0.0  ;;  %v11609_v14 = vsel %vm11529_vm6, %v11522_v16, 0.0  ;;  %v11611_v54 = vsel %vm11529_vm6, %v11523_v37, 0.0  ;;  %v11613_v43 = vsel %vm11529_vm6, %v11524_v18, 0.0 }
 0x9c6   : > { %v11379_v27 = vrot.slane %v11361_v29, 1  ;;  %v11330_v62 = vadd.f32 %v19175_v19, %v11291_v0  ;;  %v11292_v59 = vmul.f32 %v19168_v48, %v11251_v44  ;;  %v11610_v22 = vadd.f32 %v11609_v14, %v11608_v49 }
 0x9c7   : > { %v11606_v24 = vrot.slane %v11605_v25, 1 }
 0x9c8   : > { %v11420_v46 = vsel %vm11396_vm2, %v11371_v6, %v11379_v27  ;;  %v11362_v56 = vmax.f32 %v11330_v62, 0.0  ;;  %v11331_v47 = vadd.f32 %v19175_v19, %v11292_v59  ;;  %v11612_v45 = vadd.f32 %v11611_v54, %v11610_v22 }
 0x9c9   : > { %v11457_v57 = vmax.f32 %v11360_v61, %v11420_v46  ;;  %v11607_v31 = vadd.f32 %v11606_v24, %v11605_v25 }
 0x9ca   : > { %v11387_v7 = vrot.slane %v11362_v56, 1  ;;  %v11363_v11 = vmax.f32 %v11331_v47, 0.0  ;;  %v11614_v52 = vadd.f32 %v11613_v43, %v11612_v45 }
 0x9cb   : > { %v11651_v48 = vsel %vm11650_vm12, %v11607_v31, %v19413_v10 }
 0x9cc   : > { %v11412_v9 = vsel %vm11396_vm2, %v11379_v27, %v11387_v7  ;;  %v11395_v58 = vrot.slane %v11363_v11, 1  ;;  %v11615_v34 = vrot.slane %v11614_v52, 4 }
 0x9cd   : > { %v11458_v21 = vmax.f32 %v11361_v29, %v11412_v9 }
 0x9ce   : > { %v11404_v39 = vsel %vm11396_vm2, %v11387_v7, %v11395_v58  ;;  %v11428_v19 = vsel %vm11396_vm2, %v11395_v58, %v11371_v6  ;;  %v11616_v2 = vadd.f32 %v11615_v34, %v11614_v52 }
 0x9cf   : > { %v11459_v28 = vmax.f32 %v11362_v56, %v11404_v39  ;;  %v11460_v8 = vmax.f32 %v11363_v11, %v11428_v19  ;;  %v11489_v12 = vmax.f32 %v11457_v57, %v11458_v21 }
 0x9d0   : > { %v11617_v3 = vrot.slane %v11616_v2, 2 }
 0x9d1   : > { %v11490_v35 = vmax.f32 %v11458_v21, %v11459_v28  ;;  %v11491_v51 = vmax.f32 %v11459_v28, %v11460_v8  ;;  %v11492_v10 = vmax.f32 %v11460_v8, %v11457_v57  ;;  %v11525_v17 = vmul.f32 %v19207_v26, %v11489_v12 }
 0x9d2   : > { %v11618_v36 = vadd.f32 %v11617_v3, %v11616_v2 }
 0x9d3   : > { %v11527_v20 = vmul.f32 %v19219_v4, %v11491_v51  ;;  %v11526_v33 = vmul.f32 %v19214_v15, %v11490_v35  ;;  %v11528_v55 = vmul.f32 %v19226_v1, %v11492_v10  ;;  %v11621_v32 = vsel %vm11529_vm6, %v11525_v17, 0.0 }
 0x9d4   : > { %v11619_v61 = vrot.slane %v11618_v36, 1 }
 0x9d5   : > { %v11622_v60 = vsel %vm11529_vm6, %v11526_v33, 0.0  ;;  %v11624_v50 = vsel %vm11529_vm6, %v11527_v20, 0.0  ;;  %v11626_v4 = vsel %vm11529_vm6, %v11528_v55, 0.0 }
 0x9d6   : > { %v11620_v23 = vadd.f32 %v11619_v61, %v11618_v36  ;;  %v11623_v30 = vadd.f32 %v11622_v60, %v11621_v32 }
 0x9d8   : > { %v11625_v26 = vadd.f32 %v11624_v50, %v11623_v30  ;;  %v11653_v63 = vsel %vm11652_vm14, %v11620_v23, %v11651_v48 }
 0x9da   : > { %v11627_v53 = vadd.f32 %v11626_v4, %v11625_v26 }
 0x9dc   : > { %v11628_v15 = vrot.slane %v11627_v53, 4 }
 0x9de   : > { %v11629_v40 = vadd.f32 %v11628_v15, %v11627_v53 }
 0x9e0   : > { %v11630_v5 = vrot.slane %v11629_v40, 2 }
 0x9e2   : > { %v11631_v1 = vadd.f32 %v11630_v5, %v11629_v40 }
 0x9e4   : > { %v11632_v41 = vrot.slane %v11631_v1, 1 }
 0x9e6   : > { %v11633_v13 = vadd.f32 %v11632_v41, %v11631_v1 }
 0x9e8   : > { %v11655_v16 = vsel %vm11654_vm13, %v11633_v13, %v11653_v63 }
 0x9e9   : > { %v11657_v37 = vsel %vm11529_vm6, %v11655_v16, 0.0 }
 0x9ea   : > { %11658 = vadd.xlane.f32.xlu0 %v11657_v37 }
 0xa77   : > { %v11659_v6 = vpop.xlane.xlu0 %11658 }
 0xa78   : > { %v11667_v29 = vadd.f32 %v12686_v38, %v11659_v6 }
 0xa7a   : > { %11668 = vst [vmem:[%s335_s29] sm:$0xff] %v11667_v29 }
 0xa7b PF: > { %s19_s30 = sadd.s32 1, %s15186_s30  }
 0xa7c   : > { %p16_p5 = scmp.ge.s32.totalorder %s19_s30, 4  }
 0xa7e   :  { %18 = sbr.rel (!%p16_p5) target bundleno = 1 (0x1), region = 149 }

</bundles_post_ra>
